<compile_context>
chip_gen: v7x
topology: tpu7x:2x2x1
jax: 0.10.0
libtpu: 0.0.40
codegen_flags: <defaults>
</compile_context>

<pallas_src>
import jax
import jax.numpy as jnp
from jax import lax
from jax.experimental import pallas as pl
from jax.experimental.pallas import tpu as pltpu


# ----------------------------------------------------------------------------- utils
def _ln(x, w, b, eps=1e-5):
    """LayerNorm over the last axis (f32 math, matches torch.nn.LayerNorm defaults)."""
    mu = jnp.mean(x, axis=-1, keepdims=True)
    var = jnp.mean(jnp.square(x - mu), axis=-1, keepdims=True)
    return (x - mu) * lax.rsqrt(var + eps) * w + b


def _bcast_spec(shape):
    """BlockSpec for a parameter that is identical for every grid step."""
    zeros = (0,) * len(shape)
    return pl.BlockSpec(shape, lambda i, _z=zeros: _z)


def _round_up(x, m):
    return ((x + m - 1) // m) * m


def _vmem_estimate_bytes(tbb, N, D, S, Hd):
    """Rough f32-equivalent live-intermediate footprint for one grid block."""
    slot_attn = 6 * tbb * N * D + 10 * tbb * S * max(D, Hd) + 4 * tbb * S * N
    decoder = tbb * S * N * (D + Hd // 2 + 3 * (D + 1)) + 4 * tbb * N * D
    return 4 * (slot_attn + decoder)


def _pick_block(tb, N, D, S, Hd, vmem_cap=20 << 20):
    """Largest divisor of tb under the VMEM cap; keep >=2 grid steps so both v7x
    TensorCores get work (no cost on v5e/v6e)."""
    best = 1
    for b in range(1, tb + 1):
        if tb % b:
            continue
        if tb >= 2 and tb // b < 2:
            continue
        if _vmem_estimate_bytes(b, N, D, S, Hd) > vmem_cap:
            continue
        best = b
    return best


# ------------------------------------------------- fused slot-attention + decoder/MSE
def dinosaur_fused_call(feats, params, num_iters, tbb):
    """feats: (TB, N, D) f32 -> (slots (TB,S,D), attn (TB,S,N), loss scalar)."""
    TB, N, D = feats.shape
    S = params["slot_init"].shape[0]
    Hd = params["mlp_w1"].shape[1]
    nblk = TB // tbb
    scale = float(D) ** -0.5
    Dp = _round_up(D, 128)   # lane-dense store widths
    Np = _round_up(N, 128)
    total = float(TB * N * D)

    # ---- weight prep (plain XLA, outside the kernel) --------------------------------
    # Fold Wq into the key projection: logits = sLN @ Wq @ Wk^T @ fLN^T
    #   => kproj = fLN @ (Wk @ Wq^T) * scale  (computed once per block, not per iter).
    wkq = (params["wk"] @ params["wq"].T * scale).astype(jnp.bfloat16)    # (D, D)
    wv = params["wv"].astype(jnp.bfloat16)                                # (D, D)
    lnp = jnp.concatenate([params["ln_in_w"], params["ln_in_b"],
                           params["ln_s_w"], params["ln_s_b"],
                           params["ln_u_w"], params["ln_u_b"]], axis=0)   # (6, D) f32
    w1 = params["mlp_w1"].astype(jnp.bfloat16)                            # (D, Hd)
    b1 = params["mlp_b1"]                                                 # (1, Hd) f32
    w2 = params["mlp_w2"].astype(jnp.bfloat16)                            # (Hd, D)
    b2 = params["mlp_b2"]                                                 # (1, D)  f32
    sinit = params["slot_init"]                                           # (S, D)  f32
    pos = params["pos"]                                                   # (N, D)  f32
    dw1 = params["dec_w1"].astype(jnp.bfloat16)                           # (D, Hd)
    db1 = params["dec_b1"]                                                # (1, Hd) f32
    # Fold the alpha head into the second decoder matmul: one (Hd, D+1) matmul
    # yields both fdec (cols :D) and the alpha logit (col D).
    dw2a = jnp.concatenate([params["dec_w2"], params["dec_wa"].T],
                           axis=1).astype(jnp.bfloat16)                   # (Hd, D+1)
    db2a = jnp.concatenate([params["dec_b2"], params["dec_ba"]], axis=1)  # (1, D+1) f32
    outln = jnp.concatenate([params["out_ln_w"], params["out_ln_b"]], axis=0)  # (2, D)

    def kernel(feats_ref, sinit_ref, wkq_ref, wv_ref, lnp_ref,
               w1_ref, b1_ref, w2_ref, b2_ref,
               pos_ref, dw1_ref, db1_ref, dw2a_ref, db2a_ref, outln_ref,
               slots_out_ref, attn_out_ref, partial_ref):
        ln_in_w, ln_in_b = lnp_ref[0:1, :], lnp_ref[1:2, :]
        ln_s_w, ln_s_b = lnp_ref[2:3, :], lnp_ref[3:4, :]
        ln_u_w, ln_u_b = lnp_ref[4:5, :], lnp_ref[5:6, :]

        # ---------------- slot attention ----------------
        f = feats_ref[...]                                               # (tbb, N, D) f32
        f_ln = _ln(f, ln_in_w, ln_in_b)
        f2_bf = f_ln.reshape(tbb * N, D).astype(jnp.bfloat16)            # big MXU rows
        kproj_bf = jnp.dot(f2_bf, wkq_ref[...],
                           preferred_element_type=jnp.float32
                           ).reshape(tbb, N, D).astype(jnp.bfloat16)
        v_bf = jnp.dot(f2_bf, wv_ref[...],
                       preferred_element_type=jnp.float32
                       ).reshape(tbb, N, D).astype(jnp.bfloat16)

        slots = jnp.broadcast_to(sinit_ref[...][None], (tbb, S, D)).astype(jnp.float32)
        attn = jnp.zeros((tbb, S, N), jnp.float32)
        for _ in range(num_iters):                                       # static unroll
            s_ln = _ln(slots, ln_s_w, ln_s_b)
            logits = jnp.einsum("bsd,bnd->bsn", s_ln.astype(jnp.bfloat16), kproj_bf,
                                preferred_element_type=jnp.float32)      # (tbb,S,N)
            lmax = jnp.max(logits, axis=1, keepdims=True)                # compete over slots
            le = jnp.exp(logits - lmax)
            attn = le * pl.reciprocal(jnp.sum(le, axis=1, keepdims=True), approx=True)
            attn_w = attn * pl.reciprocal(
                jnp.sum(attn, axis=2, keepdims=True) + 1e-8, approx=True)
            upd = jnp.einsum("bsn,bnd->bsd", attn_w.astype(jnp.bfloat16), v_bf,
                             preferred_element_type=jnp.float32)         # (tbb,S,D)
            u_ln = _ln(upd, ln_u_w, ln_u_b)
            # Flat (tbb*S, D) matmuls: MLP weights are shared across the batch,
            # so no per-sample weight broadcasts / batched einsums are needed.
            u_flat = u_ln.reshape(tbb * S, D).astype(jnp.bfloat16)
            h_bf = jnp.maximum(
                jnp.dot(u_flat, w1_ref[...], preferred_element_type=jnp.float32)
                + b1_ref[...], 0.0).astype(jnp.bfloat16)                 # (tbb*S, Hd)
            # TODO(synk): reference SlotModel uses a GRU here; residual MLP used instead.
            slots = upd + (jnp.dot(h_bf, w2_ref[...],
                                   preferred_element_type=jnp.float32)
                           + b2_ref[...]).reshape(tbb, S, D)

        # Lane-dense stores: zero-pad the last dim to a 128 multiple (wrapper slices).
        if Dp > D:
            slots_out_ref[...] = jnp.concatenate(
                [slots, jnp.zeros((tbb, S, Dp - D), jnp.float32)], axis=-1)
        else:
            slots_out_ref[...] = slots
        if Np > N:
            attn_out_ref[...] = jnp.concatenate(
                [attn, jnp.zeros((tbb, S, Np - N), jnp.float32)], axis=-1)
        else:
            attn_out_ref[...] = attn

        # ---------------- spatial-broadcast decoder + trainer LN + MSE ----------------
        pe = pos_ref[...]                                                # (N, D)
        z = slots[:, :, None, :] + pe[None, None, :, :]                  # one VPU pass
        z_bf = z.reshape(tbb * S * N, D).astype(jnp.bfloat16)
        hdec = jnp.maximum(
            jnp.dot(z_bf, dw1_ref[...], preferred_element_type=jnp.float32)
            + db1_ref[...], 0.0).astype(jnp.bfloat16)                    # bf16 slab
        out = (jnp.dot(hdec, dw2a_ref[...], preferred_element_type=jnp.float32)
               + db2a_ref[...]).reshape(tbb, S, N, D + 1)                # fdec | alpha
        fdec = out[..., :D]
        alog = out[..., D:]
        amax = jnp.max(alog, axis=1, keepdims=True)                      # softmax over slots
        ae = jnp.exp(alog - amax)
        alpha = ae * pl.reciprocal(jnp.sum(ae, axis=1, keepdims=True), approx=True)
        recon = jnp.sum(alpha * fdec, axis=1)                            # (tbb, N, D)

        # Trainer LayerNorm + squared error vs the input features (never hits HBM).
        xn = _ln(recon, outln_ref[0:1, :], outln_ref[1:2, :])
        d = xn - f
        partial_ref[0] = jnp.full((8, 128), jnp.sum(d * d), dtype=jnp.float32)

    weights = [sinit, wkq, wv, lnp, w1, b1, w2, b2,
               pos, dw1, db1, dw2a, db2a, outln]
    est = _vmem_estimate_bytes(tbb, N, D, S, Hd)
    vmem_limit = int(min(64 << 20, max(32 << 20, 2 * est)))

    slots_pad, attn_pad, partials = pl.pallas_call(
        kernel,
        out_shape=(jax.ShapeDtypeStruct((TB, S, Dp), jnp.float32),
                   jax.ShapeDtypeStruct((TB, S, Np), jnp.float32),
                   jax.ShapeDtypeStruct((nblk, 8, 128), jnp.float32)),
        grid=(nblk,),
        in_specs=[pl.BlockSpec((tbb, N, D), lambda i: (i, 0, 0))]
                 + [_bcast_spec(w.shape) for w in weights],
        out_specs=[pl.BlockSpec((tbb, S, Dp), lambda i: (i, 0, 0)),
                   pl.BlockSpec((tbb, S, Np), lambda i: (i, 0, 0)),
                   pl.BlockSpec((1, 8, 128), lambda i: (i, 0, 0))],
        compiler_params=pltpu.CompilerParams(
            dimension_semantics=("parallel",),
            vmem_limit_bytes=vmem_limit),
    )(feats, *weights)

    loss = jnp.sum(partials[:, 0, 0]) / total
    return slots_pad[:, :, :D], attn_pad[:, :, :N], loss


# --------------------------------------------------------------------- DINOSAUR fwd
def dinosaur_forward(vid, params, perm_key, num_slots, num_iters):
    """vid: (B, T, C, H, W) patch features (PyTorch NCHW-per-frame convention)."""
    B, T, C, H, W = vid.shape
    N = H * W
    TB = T * B

    # b t c h w -> t b c h w, random frame permutation (torch.randperm equivalent)
    pats_t = jnp.transpose(vid, (1, 0, 2, 3, 4))
    perm = jax.random.permutation(perm_key, T)
    pats_t = pats_t[perm]

    # (t b) c h w -> (t*b, n, c)  channels-last kernel layout (f32 so the MSE target
    # matches the torch reference; matmul operands are cast to bf16 in-kernel).
    feats = jnp.transpose(pats_t, (0, 1, 3, 4, 2)).reshape(TB, N, C)

    S = params["slot_init"].shape[0]
    Hd = params["mlp_w1"].shape[1]
    tbb = _pick_block(TB, N, C, S, Hd)

    # _pred_slots + _pred_feats + trainer LayerNorm/MSE, all in one fused kernel.
    slots_tb, attn_tb, loss = dinosaur_fused_call(feats, params, num_iters, tbb)

    slots_t = slots_tb.reshape(T, B, num_slots, C)
    attn_t = attn_tb.reshape(T, B, num_slots, N)
    debug = {"mse": loss}
    return loss, debug, slots_t, attn_t


# ----------------------------------------------------------------------- parameters
def init_params(key, D, S, N, Hd):
    ks = jax.random.split(key, 10)

    def nrm(k, shape, scale):
        return scale * jax.random.normal(k, shape, jnp.float32)

    return {
        # slot-attention projections / norms / update MLP
        "wq": nrm(ks[0], (D, D), D ** -0.5),
        "wk": nrm(ks[1], (D, D), D ** -0.5),
        "wv": nrm(ks[2], (D, D), D ** -0.5),
        "ln_in_w": jnp.ones((1, D), jnp.float32), "ln_in_b": jnp.zeros((1, D), jnp.float32),
        "ln_s_w": jnp.ones((1, D), jnp.float32), "ln_s_b": jnp.zeros((1, D), jnp.float32),
        "ln_u_w": jnp.ones((1, D), jnp.float32), "ln_u_b": jnp.zeros((1, D), jnp.float32),
        "mlp_w1": nrm(ks[3], (D, Hd), 0.05), "mlp_b1": jnp.zeros((1, Hd), jnp.float32),
        "mlp_w2": nrm(ks[4], (Hd, D), 0.05), "mlp_b2": jnp.zeros((1, D), jnp.float32),
        "slot_init": nrm(ks[5], (S, D), 1.0),
        # spatial-broadcast decoder
        "pos": nrm(ks[6], (N, D), 0.02),
        "dec_w1": nrm(ks[7], (D, Hd), 0.05), "dec_b1": jnp.zeros((1, Hd), jnp.float32),
        "dec_w2": nrm(ks[8], (Hd, D), 0.05), "dec_b2": jnp.zeros((1, D), jnp.float32),
        "dec_wa": nrm(ks[9], (1, Hd), 0.05), "dec_ba": jnp.zeros((1, 1), jnp.float32),
        # trainer LayerNorm (self.layernorm)
        "out_ln_w": jnp.ones((1, D), jnp.float32), "out_ln_b": jnp.zeros((1, D), jnp.float32),
    }


if __name__ == "__main__":
    B, T, C, H, W = 2, 2, 32, 8, 8
    NUM_SLOTS, NUM_ITERS, HIDDEN = 5, 3, 64
    N = H * W

    vid = jax.random.normal(jax.random.PRNGKey(0), (B, T, C, H, W), jnp.float32)
    params = init_params(jax.random.PRNGKey(1), C, NUM_SLOTS, N, HIDDEN)

    fwd = jax.jit(dinosaur_forward, static_argnames=("num_slots", "num_iters"))
    loss, debug, slots_t, attn_t = fwd(
        vid, params, jax.random.PRNGKey(2),
        num_slots=NUM_SLOTS, num_iters=NUM_ITERS)

    jax.block_until_ready(loss)
    assert slots_t.shape == (T, B, NUM_SLOTS, C)
    assert attn_t.shape == (T, B, NUM_SLOTS, N)
    assert bool(jnp.isfinite(loss))
    print("KERNEL_OK")
</pallas_src>

<mosaic_0001>
module attributes {stable_mosaic.version = 11 : i64} {
  func.func @kernel(%arg0: i32, %arg1: memref<2x64x32xf32, #tpu.memory_space<vmem>>, %arg2: memref<5x32xf32, #tpu.memory_space<vmem>>, %arg3: memref<32x32xbf16, #tpu.memory_space<vmem>>, %arg4: memref<32x32xbf16, #tpu.memory_space<vmem>>, %arg5: memref<6x32xf32, #tpu.memory_space<vmem>>, %arg6: memref<32x64xbf16, #tpu.memory_space<vmem>>, %arg7: memref<1x64xf32, #tpu.memory_space<vmem>>, %arg8: memref<64x32xbf16, #tpu.memory_space<vmem>>, %arg9: memref<1x32xf32, #tpu.memory_space<vmem>>, %arg10: memref<64x32xf32, #tpu.memory_space<vmem>>, %arg11: memref<32x64xbf16, #tpu.memory_space<vmem>>, %arg12: memref<1x64xf32, #tpu.memory_space<vmem>>, %arg13: memref<64x33xbf16, #tpu.memory_space<vmem>>, %arg14: memref<1x33xf32, #tpu.memory_space<vmem>>, %arg15: memref<2x32xf32, #tpu.memory_space<vmem>>, %arg16: memref<2x5x128xf32, #tpu.memory_space<vmem>>, %arg17: memref<2x5x128xf32, #tpu.memory_space<vmem>>, %arg18: memref<1x8x128xf32, #tpu.memory_space<vmem>>) attributes {dimension_semantics = [#tpu.dimension_semantics<parallel>], iteration_bounds = array<i64: 2>, scalar_prefetch = 0 : i64, scratch_operands = 0 : i64, tpu.core_type = #tpu.core_type<tc>, window_params = [{transform_indices = @transform_0, window_bounds = array<i64: 2, 64, 32>}, {pipeline_mode = #tpu.pipeline_mode<synchronous>, transform_indices = @transform_1, window_bounds = array<i64: 5, 32>}, {pipeline_mode = #tpu.pipeline_mode<synchronous>, transform_indices = @transform_2, window_bounds = array<i64: 32, 32>}, {pipeline_mode = #tpu.pipeline_mode<synchronous>, transform_indices = @transform_3, window_bounds = array<i64: 32, 32>}, {pipeline_mode = #tpu.pipeline_mode<synchronous>, transform_indices = @transform_4, window_bounds = array<i64: 6, 32>}, {pipeline_mode = #tpu.pipeline_mode<synchronous>, transform_indices = @transform_5, window_bounds = array<i64: 32, 64>}, {pipeline_mode = #tpu.pipeline_mode<synchronous>, transform_indices = @transform_6, window_bounds = array<i64: 1, 64>}, {pipeline_mode = #tpu.pipeline_mode<synchronous>, transform_indices = @transform_7, window_bounds = array<i64: 64, 32>}, {pipeline_mode = #tpu.pipeline_mode<synchronous>, transform_indices = @transform_8, window_bounds = array<i64: 1, 32>}, {pipeline_mode = #tpu.pipeline_mode<synchronous>, transform_indices = @transform_9, window_bounds = array<i64: 64, 32>}, {pipeline_mode = #tpu.pipeline_mode<synchronous>, transform_indices = @transform_10, window_bounds = array<i64: 32, 64>}, {pipeline_mode = #tpu.pipeline_mode<synchronous>, transform_indices = @transform_11, window_bounds = array<i64: 1, 64>}, {pipeline_mode = #tpu.pipeline_mode<synchronous>, transform_indices = @transform_12, window_bounds = array<i64: 64, 33>}, {pipeline_mode = #tpu.pipeline_mode<synchronous>, transform_indices = @transform_13, window_bounds = array<i64: 1, 33>}, {pipeline_mode = #tpu.pipeline_mode<synchronous>, transform_indices = @transform_14, window_bounds = array<i64: 2, 32>}, {transform_indices = @transform_15, window_bounds = array<i64: 2, 5, 128>}, {transform_indices = @transform_16, window_bounds = array<i64: 2, 5, 128>}, {transform_indices = @transform_17, window_bounds = array<i64: 1, 8, 128>}]} {
    %c0 = arith.constant 0 : index
    %c0_0 = arith.constant 0 : index
    %0 = vector.load %arg5[%c0, %c0_0] : memref<6x32xf32, #tpu.memory_space<vmem>>, vector<1x32xf32>
    %c1 = arith.constant 1 : index
    %c0_1 = arith.constant 0 : index
    %1 = vector.load %arg5[%c1, %c0_1] : memref<6x32xf32, #tpu.memory_space<vmem>>, vector<1x32xf32>
    %c2 = arith.constant 2 : index
    %c0_2 = arith.constant 0 : index
    %2 = vector.load %arg5[%c2, %c0_2] : memref<6x32xf32, #tpu.memory_space<vmem>>, vector<1x32xf32>
    %c3 = arith.constant 3 : index
    %c0_3 = arith.constant 0 : index
    %3 = vector.load %arg5[%c3, %c0_3] : memref<6x32xf32, #tpu.memory_space<vmem>>, vector<1x32xf32>
    %c4 = arith.constant 4 : index
    %c0_4 = arith.constant 0 : index
    %4 = vector.load %arg5[%c4, %c0_4] : memref<6x32xf32, #tpu.memory_space<vmem>>, vector<1x32xf32>
    %c5 = arith.constant 5 : index
    %c0_5 = arith.constant 0 : index
    %5 = vector.load %arg5[%c5, %c0_5] : memref<6x32xf32, #tpu.memory_space<vmem>>, vector<1x32xf32>
    %c0_6 = arith.constant 0 : index
    %c0_7 = arith.constant 0 : index
    %c0_8 = arith.constant 0 : index
    %6 = vector.load %arg1[%c0_6, %c0_7, %c0_8] : memref<2x64x32xf32, #tpu.memory_space<vmem>>, vector<2x64x32xf32>
    %cst = arith.constant dense<0.000000e+00> : vector<2x64xf32>
    %7 = vector.multi_reduction <add>, %6, %cst [2] : vector<2x64x32xf32> to vector<2x64xf32>
    %8 = vector.shape_cast %7 : vector<2x64xf32> to vector<2x64x1xf32>
    %cst_9 = arith.constant 3.200000e+01 : f32
    %9 = vector.broadcast %cst_9 : f32 to vector<2x64x1xf32>
    %10 = arith.divf %8, %9 : vector<2x64x1xf32>
    %11 = vector.broadcast %10 : vector<2x64x1xf32> to vector<2x64x32xf32>
    %12 = arith.subf %6, %11 : vector<2x64x32xf32>
    %13 = arith.mulf %12, %12 : vector<2x64x32xf32>
    %cst_10 = arith.constant dense<0.000000e+00> : vector<2x64xf32>
    %14 = vector.multi_reduction <add>, %13, %cst_10 [2] : vector<2x64x32xf32> to vector<2x64xf32>
    %15 = vector.shape_cast %14 : vector<2x64xf32> to vector<2x64x1xf32>
    %cst_11 = arith.constant 3.200000e+01 : f32
    %16 = vector.broadcast %cst_11 : f32 to vector<2x64x1xf32>
    %17 = arith.divf %15, %16 : vector<2x64x1xf32>
    %18 = vector.broadcast %10 : vector<2x64x1xf32> to vector<2x64x32xf32>
    %19 = arith.subf %6, %18 : vector<2x64x32xf32>
    %cst_12 = arith.constant 9.99999974E-6 : f32
    %20 = vector.broadcast %cst_12 : f32 to vector<2x64x1xf32>
    %21 = arith.addf %17, %20 : vector<2x64x1xf32>
    %22 = math.rsqrt %21 : vector<2x64x1xf32>
    %23 = vector.broadcast %22 : vector<2x64x1xf32> to vector<2x64x32xf32>
    %24 = arith.mulf %19, %23 : vector<2x64x32xf32>
    %25 = vector.shape_cast %0 : vector<1x32xf32> to vector<1x1x32xf32>
    %26 = vector.broadcast %25 : vector<1x1x32xf32> to vector<2x64x32xf32>
    %27 = arith.mulf %24, %26 : vector<2x64x32xf32>
    %28 = vector.shape_cast %1 : vector<1x32xf32> to vector<1x1x32xf32>
    %29 = vector.broadcast %28 : vector<1x1x32xf32> to vector<2x64x32xf32>
    %30 = arith.addf %27, %29 : vector<2x64x32xf32>
    %31 = vector.shape_cast %30 : vector<2x64x32xf32> to vector<128x32xf32>
    %32 = arith.truncf %31 : vector<128x32xf32> to vector<128x32xbf16>
    %c0_13 = arith.constant 0 : index
    %c0_14 = arith.constant 0 : index
    %33 = vector.load %arg3[%c0_13, %c0_14] : memref<32x32xbf16, #tpu.memory_space<vmem>>, vector<32x32xbf16>
    %cst_15 = arith.constant dense<0.000000e+00> : vector<128x32xf32>
    %34 = tpu.matmul %32, %33, %cst_15 {dimension_numbers = #tpu.dot_dimension_numbers<[1], [0], [0], [1], [0, 0, 1, 1], [], []>} : vector<128x32xbf16>, vector<32x32xbf16>, vector<128x32xf32> -> vector<128x32xf32>
    %35 = vector.shape_cast %34 : vector<128x32xf32> to vector<2x64x32xf32>
    %36 = arith.truncf %35 : vector<2x64x32xf32> to vector<2x64x32xbf16>
    %c0_16 = arith.constant 0 : index
    %c0_17 = arith.constant 0 : index
    %37 = vector.load %arg4[%c0_16, %c0_17] : memref<32x32xbf16, #tpu.memory_space<vmem>>, vector<32x32xbf16>
    %cst_18 = arith.constant dense<0.000000e+00> : vector<128x32xf32>
    %38 = tpu.matmul %32, %37, %cst_18 {dimension_numbers = #tpu.dot_dimension_numbers<[1], [0], [0], [1], [0, 0, 1, 1], [], []>} : vector<128x32xbf16>, vector<32x32xbf16>, vector<128x32xf32> -> vector<128x32xf32>
    %39 = vector.shape_cast %38 : vector<128x32xf32> to vector<2x64x32xf32>
    %40 = arith.truncf %39 : vector<2x64x32xf32> to vector<2x64x32xbf16>
    %c0_19 = arith.constant 0 : index
    %c0_20 = arith.constant 0 : index
    %41 = vector.load %arg2[%c0_19, %c0_20] : memref<5x32xf32, #tpu.memory_space<vmem>>, vector<5x32xf32>
    %42 = vector.shape_cast %41 : vector<5x32xf32> to vector<1x5x32xf32>
    %43 = vector.shape_cast %42 : vector<1x5x32xf32> to vector<1x5x32xf32>
    %44 = vector.broadcast %43 : vector<1x5x32xf32> to vector<2x5x32xf32>
    %cst_21 = arith.constant dense<0.000000e+00> : vector<2x5xf32>
    %45 = vector.multi_reduction <add>, %44, %cst_21 [2] : vector<2x5x32xf32> to vector<2x5xf32>
    %46 = vector.shape_cast %45 : vector<2x5xf32> to vector<2x5x1xf32>
    %cst_22 = arith.constant 3.200000e+01 : f32
    %47 = vector.broadcast %cst_22 : f32 to vector<2x5x1xf32>
    %48 = arith.divf %46, %47 : vector<2x5x1xf32>
    %49 = vector.broadcast %48 : vector<2x5x1xf32> to vector<2x5x32xf32>
    %50 = arith.subf %44, %49 : vector<2x5x32xf32>
    %51 = arith.mulf %50, %50 : vector<2x5x32xf32>
    %cst_23 = arith.constant dense<0.000000e+00> : vector<2x5xf32>
    %52 = vector.multi_reduction <add>, %51, %cst_23 [2] : vector<2x5x32xf32> to vector<2x5xf32>
    %53 = vector.shape_cast %52 : vector<2x5xf32> to vector<2x5x1xf32>
    %cst_24 = arith.constant 3.200000e+01 : f32
    %54 = vector.broadcast %cst_24 : f32 to vector<2x5x1xf32>
    %55 = arith.divf %53, %54 : vector<2x5x1xf32>
    %56 = vector.broadcast %48 : vector<2x5x1xf32> to vector<2x5x32xf32>
    %57 = arith.subf %44, %56 : vector<2x5x32xf32>
    %cst_25 = arith.constant 9.99999974E-6 : f32
    %58 = vector.broadcast %cst_25 : f32 to vector<2x5x1xf32>
    %59 = arith.addf %55, %58 : vector<2x5x1xf32>
    %60 = math.rsqrt %59 : vector<2x5x1xf32>
    %61 = vector.broadcast %60 : vector<2x5x1xf32> to vector<2x5x32xf32>
    %62 = arith.mulf %57, %61 : vector<2x5x32xf32>
    %63 = vector.shape_cast %2 : vector<1x32xf32> to vector<1x1x32xf32>
    %64 = vector.broadcast %63 : vector<1x1x32xf32> to vector<2x5x32xf32>
    %65 = arith.mulf %62, %64 : vector<2x5x32xf32>
    %66 = vector.shape_cast %3 : vector<1x32xf32> to vector<1x1x32xf32>
    %67 = vector.broadcast %66 : vector<1x1x32xf32> to vector<2x5x32xf32>
    %68 = arith.addf %65, %67 : vector<2x5x32xf32>
    %69 = arith.truncf %68 : vector<2x5x32xf32> to vector<2x5x32xbf16>
    "tpu.trace_start"() <{level = 10 : i32, message = "bsd,bnd->bsn"}> : () -> ()
    %cst_26 = arith.constant dense<0.000000e+00> : vector<2x5x64xf32>
    %70 = tpu.matmul %69, %36, %cst_26 {dimension_numbers = #tpu.dot_dimension_numbers<[2], [2], [1], [1], [0, 0, 0, 1, 1, 1], [0], [0]>} : vector<2x5x32xbf16>, vector<2x64x32xbf16>, vector<2x5x64xf32> -> vector<2x5x64xf32>
    "tpu.trace_stop"() : () -> ()
    %cst_27 = arith.constant dense<0xFF800000> : vector<2x64xf32>
    %71 = vector.multi_reduction <maximumf>, %70, %cst_27 [1] : vector<2x5x64xf32> to vector<2x64xf32>
    %72 = vector.shape_cast %71 : vector<2x64xf32> to vector<2x1x64xf32>
    %73 = vector.broadcast %72 : vector<2x1x64xf32> to vector<2x5x64xf32>
    %74 = arith.subf %70, %73 : vector<2x5x64xf32>
    %75 = math.exp %74 : vector<2x5x64xf32>
    %cst_28 = arith.constant dense<0.000000e+00> : vector<2x64xf32>
    %76 = vector.multi_reduction <add>, %75, %cst_28 [1] : vector<2x5x64xf32> to vector<2x64xf32>
    %77 = vector.shape_cast %76 : vector<2x64xf32> to vector<2x1x64xf32>
    %78 = tpu.reciprocal %77 {approx = true} : vector<2x1x64xf32> -> vector<2x1x64xf32>
    %79 = vector.broadcast %78 : vector<2x1x64xf32> to vector<2x5x64xf32>
    %80 = arith.mulf %75, %79 : vector<2x5x64xf32>
    %cst_29 = arith.constant dense<0.000000e+00> : vector<2x5xf32>
    %81 = vector.multi_reduction <add>, %80, %cst_29 [2] : vector<2x5x64xf32> to vector<2x5xf32>
    %82 = vector.shape_cast %81 : vector<2x5xf32> to vector<2x5x1xf32>
    %cst_30 = arith.constant 9.99999993E-9 : f32
    %83 = vector.broadcast %cst_30 : f32 to vector<2x5x1xf32>
    %84 = arith.addf %82, %83 : vector<2x5x1xf32>
    %85 = tpu.reciprocal %84 {approx = true} : vector<2x5x1xf32> -> vector<2x5x1xf32>
    %86 = vector.broadcast %85 : vector<2x5x1xf32> to vector<2x5x64xf32>
    %87 = arith.mulf %80, %86 : vector<2x5x64xf32>
    %88 = arith.truncf %87 : vector<2x5x64xf32> to vector<2x5x64xbf16>
    "tpu.trace_start"() <{level = 10 : i32, message = "bsn,bnd->bsd"}> : () -> ()
    %cst_31 = arith.constant dense<0.000000e+00> : vector<2x5x32xf32>
    %89 = tpu.matmul %88, %40, %cst_31 {dimension_numbers = #tpu.dot_dimension_numbers<[2], [1], [1], [2], [0, 0, 0, 1, 1, 2], [0], [0]>} : vector<2x5x64xbf16>, vector<2x64x32xbf16>, vector<2x5x32xf32> -> vector<2x5x32xf32>
    "tpu.trace_stop"() : () -> ()
    %cst_32 = arith.constant dense<0.000000e+00> : vector<2x5xf32>
    %90 = vector.multi_reduction <add>, %89, %cst_32 [2] : vector<2x5x32xf32> to vector<2x5xf32>
    %91 = vector.shape_cast %90 : vector<2x5xf32> to vector<2x5x1xf32>
    %cst_33 = arith.constant 3.200000e+01 : f32
    %92 = vector.broadcast %cst_33 : f32 to vector<2x5x1xf32>
    %93 = arith.divf %91, %92 : vector<2x5x1xf32>
    %94 = vector.broadcast %93 : vector<2x5x1xf32> to vector<2x5x32xf32>
    %95 = arith.subf %89, %94 : vector<2x5x32xf32>
    %96 = arith.mulf %95, %95 : vector<2x5x32xf32>
    %cst_34 = arith.constant dense<0.000000e+00> : vector<2x5xf32>
    %97 = vector.multi_reduction <add>, %96, %cst_34 [2] : vector<2x5x32xf32> to vector<2x5xf32>
    %98 = vector.shape_cast %97 : vector<2x5xf32> to vector<2x5x1xf32>
    %cst_35 = arith.constant 3.200000e+01 : f32
    %99 = vector.broadcast %cst_35 : f32 to vector<2x5x1xf32>
    %100 = arith.divf %98, %99 : vector<2x5x1xf32>
    %101 = vector.broadcast %93 : vector<2x5x1xf32> to vector<2x5x32xf32>
    %102 = arith.subf %89, %101 : vector<2x5x32xf32>
    %cst_36 = arith.constant 9.99999974E-6 : f32
    %103 = vector.broadcast %cst_36 : f32 to vector<2x5x1xf32>
    %104 = arith.addf %100, %103 : vector<2x5x1xf32>
    %105 = math.rsqrt %104 : vector<2x5x1xf32>
    %106 = vector.broadcast %105 : vector<2x5x1xf32> to vector<2x5x32xf32>
    %107 = arith.mulf %102, %106 : vector<2x5x32xf32>
    %108 = vector.shape_cast %4 : vector<1x32xf32> to vector<1x1x32xf32>
    %109 = vector.broadcast %108 : vector<1x1x32xf32> to vector<2x5x32xf32>
    %110 = arith.mulf %107, %109 : vector<2x5x32xf32>
    %111 = vector.shape_cast %5 : vector<1x32xf32> to vector<1x1x32xf32>
    %112 = vector.broadcast %111 : vector<1x1x32xf32> to vector<2x5x32xf32>
    %113 = arith.addf %110, %112 : vector<2x5x32xf32>
    %114 = vector.shape_cast %113 : vector<2x5x32xf32> to vector<10x32xf32>
    %115 = arith.truncf %114 : vector<10x32xf32> to vector<10x32xbf16>
    %c0_37 = arith.constant 0 : index
    %c0_38 = arith.constant 0 : index
    %116 = vector.load %arg6[%c0_37, %c0_38] : memref<32x64xbf16, #tpu.memory_space<vmem>>, vector<32x64xbf16>
    %cst_39 = arith.constant dense<0.000000e+00> : vector<10x64xf32>
    %117 = tpu.matmul %115, %116, %cst_39 {dimension_numbers = #tpu.dot_dimension_numbers<[1], [0], [0], [1], [0, 0, 1, 1], [], []>} : vector<10x32xbf16>, vector<32x64xbf16>, vector<10x64xf32> -> vector<10x64xf32>
    %c0_40 = arith.constant 0 : index
    %c0_41 = arith.constant 0 : index
    %118 = vector.load %arg7[%c0_40, %c0_41] : memref<1x64xf32, #tpu.memory_space<vmem>>, vector<1x64xf32>
    %119 = vector.broadcast %118 : vector<1x64xf32> to vector<10x64xf32>
    %120 = arith.addf %117, %119 : vector<10x64xf32>
    %cst_42 = arith.constant 0.000000e+00 : f32
    %121 = vector.broadcast %cst_42 : f32 to vector<10x64xf32>
    %122 = arith.maximumf %120, %121 : vector<10x64xf32>
    %123 = arith.truncf %122 : vector<10x64xf32> to vector<10x64xbf16>
    %c0_43 = arith.constant 0 : index
    %c0_44 = arith.constant 0 : index
    %124 = vector.load %arg8[%c0_43, %c0_44] : memref<64x32xbf16, #tpu.memory_space<vmem>>, vector<64x32xbf16>
    %cst_45 = arith.constant dense<0.000000e+00> : vector<10x32xf32>
    %125 = tpu.matmul %123, %124, %cst_45 {dimension_numbers = #tpu.dot_dimension_numbers<[1], [0], [0], [1], [0, 0, 1, 1], [], []>} : vector<10x64xbf16>, vector<64x32xbf16>, vector<10x32xf32> -> vector<10x32xf32>
    %c0_46 = arith.constant 0 : index
    %c0_47 = arith.constant 0 : index
    %126 = vector.load %arg9[%c0_46, %c0_47] : memref<1x32xf32, #tpu.memory_space<vmem>>, vector<1x32xf32>
    %127 = vector.broadcast %126 : vector<1x32xf32> to vector<10x32xf32>
    %128 = arith.addf %125, %127 : vector<10x32xf32>
    %129 = vector.shape_cast %128 : vector<10x32xf32> to vector<2x5x32xf32>
    %130 = arith.addf %89, %129 : vector<2x5x32xf32>
    %cst_48 = arith.constant dense<0.000000e+00> : vector<2x5xf32>
    %131 = vector.multi_reduction <add>, %130, %cst_48 [2] : vector<2x5x32xf32> to vector<2x5xf32>
    %132 = vector.shape_cast %131 : vector<2x5xf32> to vector<2x5x1xf32>
    %cst_49 = arith.constant 3.200000e+01 : f32
    %133 = vector.broadcast %cst_49 : f32 to vector<2x5x1xf32>
    %134 = arith.divf %132, %133 : vector<2x5x1xf32>
    %135 = vector.broadcast %134 : vector<2x5x1xf32> to vector<2x5x32xf32>
    %136 = arith.subf %130, %135 : vector<2x5x32xf32>
    %137 = arith.mulf %136, %136 : vector<2x5x32xf32>
    %cst_50 = arith.constant dense<0.000000e+00> : vector<2x5xf32>
    %138 = vector.multi_reduction <add>, %137, %cst_50 [2] : vector<2x5x32xf32> to vector<2x5xf32>
    %139 = vector.shape_cast %138 : vector<2x5xf32> to vector<2x5x1xf32>
    %cst_51 = arith.constant 3.200000e+01 : f32
    %140 = vector.broadcast %cst_51 : f32 to vector<2x5x1xf32>
    %141 = arith.divf %139, %140 : vector<2x5x1xf32>
    %142 = vector.broadcast %134 : vector<2x5x1xf32> to vector<2x5x32xf32>
    %143 = arith.subf %130, %142 : vector<2x5x32xf32>
    %cst_52 = arith.constant 9.99999974E-6 : f32
    %144 = vector.broadcast %cst_52 : f32 to vector<2x5x1xf32>
    %145 = arith.addf %141, %144 : vector<2x5x1xf32>
    %146 = math.rsqrt %145 : vector<2x5x1xf32>
    %147 = vector.broadcast %146 : vector<2x5x1xf32> to vector<2x5x32xf32>
    %148 = arith.mulf %143, %147 : vector<2x5x32xf32>
    %149 = vector.shape_cast %2 : vector<1x32xf32> to vector<1x1x32xf32>
    %150 = vector.broadcast %149 : vector<1x1x32xf32> to vector<2x5x32xf32>
    %151 = arith.mulf %148, %150 : vector<2x5x32xf32>
    %152 = vector.shape_cast %3 : vector<1x32xf32> to vector<1x1x32xf32>
    %153 = vector.broadcast %152 : vector<1x1x32xf32> to vector<2x5x32xf32>
    %154 = arith.addf %151, %153 : vector<2x5x32xf32>
    %155 = arith.truncf %154 : vector<2x5x32xf32> to vector<2x5x32xbf16>
    "tpu.trace_start"() <{level = 10 : i32, message = "bsd,bnd->bsn"}> : () -> ()
    %cst_53 = arith.constant dense<0.000000e+00> : vector<2x5x64xf32>
    %156 = tpu.matmul %155, %36, %cst_53 {dimension_numbers = #tpu.dot_dimension_numbers<[2], [2], [1], [1], [0, 0, 0, 1, 1, 1], [0], [0]>} : vector<2x5x32xbf16>, vector<2x64x32xbf16>, vector<2x5x64xf32> -> vector<2x5x64xf32>
    "tpu.trace_stop"() : () -> ()
    %cst_54 = arith.constant dense<0xFF800000> : vector<2x64xf32>
    %157 = vector.multi_reduction <maximumf>, %156, %cst_54 [1] : vector<2x5x64xf32> to vector<2x64xf32>
    %158 = vector.shape_cast %157 : vector<2x64xf32> to vector<2x1x64xf32>
    %159 = vector.broadcast %158 : vector<2x1x64xf32> to vector<2x5x64xf32>
    %160 = arith.subf %156, %159 : vector<2x5x64xf32>
    %161 = math.exp %160 : vector<2x5x64xf32>
    %cst_55 = arith.constant dense<0.000000e+00> : vector<2x64xf32>
    %162 = vector.multi_reduction <add>, %161, %cst_55 [1] : vector<2x5x64xf32> to vector<2x64xf32>
    %163 = vector.shape_cast %162 : vector<2x64xf32> to vector<2x1x64xf32>
    %164 = tpu.reciprocal %163 {approx = true} : vector<2x1x64xf32> -> vector<2x1x64xf32>
    %165 = vector.broadcast %164 : vector<2x1x64xf32> to vector<2x5x64xf32>
    %166 = arith.mulf %161, %165 : vector<2x5x64xf32>
    %cst_56 = arith.constant dense<0.000000e+00> : vector<2x5xf32>
    %167 = vector.multi_reduction <add>, %166, %cst_56 [2] : vector<2x5x64xf32> to vector<2x5xf32>
    %168 = vector.shape_cast %167 : vector<2x5xf32> to vector<2x5x1xf32>
    %cst_57 = arith.constant 9.99999993E-9 : f32
    %169 = vector.broadcast %cst_57 : f32 to vector<2x5x1xf32>
    %170 = arith.addf %168, %169 : vector<2x5x1xf32>
    %171 = tpu.reciprocal %170 {approx = true} : vector<2x5x1xf32> -> vector<2x5x1xf32>
    %172 = vector.broadcast %171 : vector<2x5x1xf32> to vector<2x5x64xf32>
    %173 = arith.mulf %166, %172 : vector<2x5x64xf32>
    %174 = arith.truncf %173 : vector<2x5x64xf32> to vector<2x5x64xbf16>
    "tpu.trace_start"() <{level = 10 : i32, message = "bsn,bnd->bsd"}> : () -> ()
    %cst_58 = arith.constant dense<0.000000e+00> : vector<2x5x32xf32>
    %175 = tpu.matmul %174, %40, %cst_58 {dimension_numbers = #tpu.dot_dimension_numbers<[2], [1], [1], [2], [0, 0, 0, 1, 1, 2], [0], [0]>} : vector<2x5x64xbf16>, vector<2x64x32xbf16>, vector<2x5x32xf32> -> vector<2x5x32xf32>
    "tpu.trace_stop"() : () -> ()
    %cst_59 = arith.constant dense<0.000000e+00> : vector<2x5xf32>
    %176 = vector.multi_reduction <add>, %175, %cst_59 [2] : vector<2x5x32xf32> to vector<2x5xf32>
    %177 = vector.shape_cast %176 : vector<2x5xf32> to vector<2x5x1xf32>
    %cst_60 = arith.constant 3.200000e+01 : f32
    %178 = vector.broadcast %cst_60 : f32 to vector<2x5x1xf32>
    %179 = arith.divf %177, %178 : vector<2x5x1xf32>
    %180 = vector.broadcast %179 : vector<2x5x1xf32> to vector<2x5x32xf32>
    %181 = arith.subf %175, %180 : vector<2x5x32xf32>
    %182 = arith.mulf %181, %181 : vector<2x5x32xf32>
    %cst_61 = arith.constant dense<0.000000e+00> : vector<2x5xf32>
    %183 = vector.multi_reduction <add>, %182, %cst_61 [2] : vector<2x5x32xf32> to vector<2x5xf32>
    %184 = vector.shape_cast %183 : vector<2x5xf32> to vector<2x5x1xf32>
    %cst_62 = arith.constant 3.200000e+01 : f32
    %185 = vector.broadcast %cst_62 : f32 to vector<2x5x1xf32>
    %186 = arith.divf %184, %185 : vector<2x5x1xf32>
    %187 = vector.broadcast %179 : vector<2x5x1xf32> to vector<2x5x32xf32>
    %188 = arith.subf %175, %187 : vector<2x5x32xf32>
    %cst_63 = arith.constant 9.99999974E-6 : f32
    %189 = vector.broadcast %cst_63 : f32 to vector<2x5x1xf32>
    %190 = arith.addf %186, %189 : vector<2x5x1xf32>
    %191 = math.rsqrt %190 : vector<2x5x1xf32>
    %192 = vector.broadcast %191 : vector<2x5x1xf32> to vector<2x5x32xf32>
    %193 = arith.mulf %188, %192 : vector<2x5x32xf32>
    %194 = vector.shape_cast %4 : vector<1x32xf32> to vector<1x1x32xf32>
    %195 = vector.broadcast %194 : vector<1x1x32xf32> to vector<2x5x32xf32>
    %196 = arith.mulf %193, %195 : vector<2x5x32xf32>
    %197 = vector.shape_cast %5 : vector<1x32xf32> to vector<1x1x32xf32>
    %198 = vector.broadcast %197 : vector<1x1x32xf32> to vector<2x5x32xf32>
    %199 = arith.addf %196, %198 : vector<2x5x32xf32>
    %200 = vector.shape_cast %199 : vector<2x5x32xf32> to vector<10x32xf32>
    %201 = arith.truncf %200 : vector<10x32xf32> to vector<10x32xbf16>
    %c0_64 = arith.constant 0 : index
    %c0_65 = arith.constant 0 : index
    %202 = vector.load %arg6[%c0_64, %c0_65] : memref<32x64xbf16, #tpu.memory_space<vmem>>, vector<32x64xbf16>
    %cst_66 = arith.constant dense<0.000000e+00> : vector<10x64xf32>
    %203 = tpu.matmul %201, %202, %cst_66 {dimension_numbers = #tpu.dot_dimension_numbers<[1], [0], [0], [1], [0, 0, 1, 1], [], []>} : vector<10x32xbf16>, vector<32x64xbf16>, vector<10x64xf32> -> vector<10x64xf32>
    %c0_67 = arith.constant 0 : index
    %c0_68 = arith.constant 0 : index
    %204 = vector.load %arg7[%c0_67, %c0_68] : memref<1x64xf32, #tpu.memory_space<vmem>>, vector<1x64xf32>
    %205 = vector.broadcast %204 : vector<1x64xf32> to vector<10x64xf32>
    %206 = arith.addf %203, %205 : vector<10x64xf32>
    %cst_69 = arith.constant 0.000000e+00 : f32
    %207 = vector.broadcast %cst_69 : f32 to vector<10x64xf32>
    %208 = arith.maximumf %206, %207 : vector<10x64xf32>
    %209 = arith.truncf %208 : vector<10x64xf32> to vector<10x64xbf16>
    %c0_70 = arith.constant 0 : index
    %c0_71 = arith.constant 0 : index
    %210 = vector.load %arg8[%c0_70, %c0_71] : memref<64x32xbf16, #tpu.memory_space<vmem>>, vector<64x32xbf16>
    %cst_72 = arith.constant dense<0.000000e+00> : vector<10x32xf32>
    %211 = tpu.matmul %209, %210, %cst_72 {dimension_numbers = #tpu.dot_dimension_numbers<[1], [0], [0], [1], [0, 0, 1, 1], [], []>} : vector<10x64xbf16>, vector<64x32xbf16>, vector<10x32xf32> -> vector<10x32xf32>
    %c0_73 = arith.constant 0 : index
    %c0_74 = arith.constant 0 : index
    %212 = vector.load %arg9[%c0_73, %c0_74] : memref<1x32xf32, #tpu.memory_space<vmem>>, vector<1x32xf32>
    %213 = vector.broadcast %212 : vector<1x32xf32> to vector<10x32xf32>
    %214 = arith.addf %211, %213 : vector<10x32xf32>
    %215 = vector.shape_cast %214 : vector<10x32xf32> to vector<2x5x32xf32>
    %216 = arith.addf %175, %215 : vector<2x5x32xf32>
    %cst_75 = arith.constant dense<0.000000e+00> : vector<2x5xf32>
    %217 = vector.multi_reduction <add>, %216, %cst_75 [2] : vector<2x5x32xf32> to vector<2x5xf32>
    %218 = vector.shape_cast %217 : vector<2x5xf32> to vector<2x5x1xf32>
    %cst_76 = arith.constant 3.200000e+01 : f32
    %219 = vector.broadcast %cst_76 : f32 to vector<2x5x1xf32>
    %220 = arith.divf %218, %219 : vector<2x5x1xf32>
    %221 = vector.broadcast %220 : vector<2x5x1xf32> to vector<2x5x32xf32>
    %222 = arith.subf %216, %221 : vector<2x5x32xf32>
    %223 = arith.mulf %222, %222 : vector<2x5x32xf32>
    %cst_77 = arith.constant dense<0.000000e+00> : vector<2x5xf32>
    %224 = vector.multi_reduction <add>, %223, %cst_77 [2] : vector<2x5x32xf32> to vector<2x5xf32>
    %225 = vector.shape_cast %224 : vector<2x5xf32> to vector<2x5x1xf32>
    %cst_78 = arith.constant 3.200000e+01 : f32
    %226 = vector.broadcast %cst_78 : f32 to vector<2x5x1xf32>
    %227 = arith.divf %225, %226 : vector<2x5x1xf32>
    %228 = vector.broadcast %220 : vector<2x5x1xf32> to vector<2x5x32xf32>
    %229 = arith.subf %216, %228 : vector<2x5x32xf32>
    %cst_79 = arith.constant 9.99999974E-6 : f32
    %230 = vector.broadcast %cst_79 : f32 to vector<2x5x1xf32>
    %231 = arith.addf %227, %230 : vector<2x5x1xf32>
    %232 = math.rsqrt %231 : vector<2x5x1xf32>
    %233 = vector.broadcast %232 : vector<2x5x1xf32> to vector<2x5x32xf32>
    %234 = arith.mulf %229, %233 : vector<2x5x32xf32>
    %235 = vector.shape_cast %2 : vector<1x32xf32> to vector<1x1x32xf32>
    %236 = vector.broadcast %235 : vector<1x1x32xf32> to vector<2x5x32xf32>
    %237 = arith.mulf %234, %236 : vector<2x5x32xf32>
    %238 = vector.shape_cast %3 : vector<1x32xf32> to vector<1x1x32xf32>
    %239 = vector.broadcast %238 : vector<1x1x32xf32> to vector<2x5x32xf32>
    %240 = arith.addf %237, %239 : vector<2x5x32xf32>
    %241 = arith.truncf %240 : vector<2x5x32xf32> to vector<2x5x32xbf16>
    "tpu.trace_start"() <{level = 10 : i32, message = "bsd,bnd->bsn"}> : () -> ()
    %cst_80 = arith.constant dense<0.000000e+00> : vector<2x5x64xf32>
    %242 = tpu.matmul %241, %36, %cst_80 {dimension_numbers = #tpu.dot_dimension_numbers<[2], [2], [1], [1], [0, 0, 0, 1, 1, 1], [0], [0]>} : vector<2x5x32xbf16>, vector<2x64x32xbf16>, vector<2x5x64xf32> -> vector<2x5x64xf32>
    "tpu.trace_stop"() : () -> ()
    %cst_81 = arith.constant dense<0xFF800000> : vector<2x64xf32>
    %243 = vector.multi_reduction <maximumf>, %242, %cst_81 [1] : vector<2x5x64xf32> to vector<2x64xf32>
    %244 = vector.shape_cast %243 : vector<2x64xf32> to vector<2x1x64xf32>
    %245 = vector.broadcast %244 : vector<2x1x64xf32> to vector<2x5x64xf32>
    %246 = arith.subf %242, %245 : vector<2x5x64xf32>
    %247 = math.exp %246 : vector<2x5x64xf32>
    %cst_82 = arith.constant dense<0.000000e+00> : vector<2x64xf32>
    %248 = vector.multi_reduction <add>, %247, %cst_82 [1] : vector<2x5x64xf32> to vector<2x64xf32>
    %249 = vector.shape_cast %248 : vector<2x64xf32> to vector<2x1x64xf32>
    %250 = tpu.reciprocal %249 {approx = true} : vector<2x1x64xf32> -> vector<2x1x64xf32>
    %251 = vector.broadcast %250 : vector<2x1x64xf32> to vector<2x5x64xf32>
    %252 = arith.mulf %247, %251 : vector<2x5x64xf32>
    %cst_83 = arith.constant dense<0.000000e+00> : vector<2x5xf32>
    %253 = vector.multi_reduction <add>, %252, %cst_83 [2] : vector<2x5x64xf32> to vector<2x5xf32>
    %254 = vector.shape_cast %253 : vector<2x5xf32> to vector<2x5x1xf32>
    %cst_84 = arith.constant 9.99999993E-9 : f32
    %255 = vector.broadcast %cst_84 : f32 to vector<2x5x1xf32>
    %256 = arith.addf %254, %255 : vector<2x5x1xf32>
    %257 = tpu.reciprocal %256 {approx = true} : vector<2x5x1xf32> -> vector<2x5x1xf32>
    %258 = vector.broadcast %257 : vector<2x5x1xf32> to vector<2x5x64xf32>
    %259 = arith.mulf %252, %258 : vector<2x5x64xf32>
    %260 = arith.truncf %259 : vector<2x5x64xf32> to vector<2x5x64xbf16>
    "tpu.trace_start"() <{level = 10 : i32, message = "bsn,bnd->bsd"}> : () -> ()
    %cst_85 = arith.constant dense<0.000000e+00> : vector<2x5x32xf32>
    %261 = tpu.matmul %260, %40, %cst_85 {dimension_numbers = #tpu.dot_dimension_numbers<[2], [1], [1], [2], [0, 0, 0, 1, 1, 2], [0], [0]>} : vector<2x5x64xbf16>, vector<2x64x32xbf16>, vector<2x5x32xf32> -> vector<2x5x32xf32>
    "tpu.trace_stop"() : () -> ()
    %cst_86 = arith.constant dense<0.000000e+00> : vector<2x5xf32>
    %262 = vector.multi_reduction <add>, %261, %cst_86 [2] : vector<2x5x32xf32> to vector<2x5xf32>
    %263 = vector.shape_cast %262 : vector<2x5xf32> to vector<2x5x1xf32>
    %cst_87 = arith.constant 3.200000e+01 : f32
    %264 = vector.broadcast %cst_87 : f32 to vector<2x5x1xf32>
    %265 = arith.divf %263, %264 : vector<2x5x1xf32>
    %266 = vector.broadcast %265 : vector<2x5x1xf32> to vector<2x5x32xf32>
    %267 = arith.subf %261, %266 : vector<2x5x32xf32>
    %268 = arith.mulf %267, %267 : vector<2x5x32xf32>
    %cst_88 = arith.constant dense<0.000000e+00> : vector<2x5xf32>
    %269 = vector.multi_reduction <add>, %268, %cst_88 [2] : vector<2x5x32xf32> to vector<2x5xf32>
    %270 = vector.shape_cast %269 : vector<2x5xf32> to vector<2x5x1xf32>
    %cst_89 = arith.constant 3.200000e+01 : f32
    %271 = vector.broadcast %cst_89 : f32 to vector<2x5x1xf32>
    %272 = arith.divf %270, %271 : vector<2x5x1xf32>
    %273 = vector.broadcast %265 : vector<2x5x1xf32> to vector<2x5x32xf32>
    %274 = arith.subf %261, %273 : vector<2x5x32xf32>
    %cst_90 = arith.constant 9.99999974E-6 : f32
    %275 = vector.broadcast %cst_90 : f32 to vector<2x5x1xf32>
    %276 = arith.addf %272, %275 : vector<2x5x1xf32>
    %277 = math.rsqrt %276 : vector<2x5x1xf32>
    %278 = vector.broadcast %277 : vector<2x5x1xf32> to vector<2x5x32xf32>
    %279 = arith.mulf %274, %278 : vector<2x5x32xf32>
    %280 = vector.shape_cast %4 : vector<1x32xf32> to vector<1x1x32xf32>
    %281 = vector.broadcast %280 : vector<1x1x32xf32> to vector<2x5x32xf32>
    %282 = arith.mulf %279, %281 : vector<2x5x32xf32>
    %283 = vector.shape_cast %5 : vector<1x32xf32> to vector<1x1x32xf32>
    %284 = vector.broadcast %283 : vector<1x1x32xf32> to vector<2x5x32xf32>
    %285 = arith.addf %282, %284 : vector<2x5x32xf32>
    %286 = vector.shape_cast %285 : vector<2x5x32xf32> to vector<10x32xf32>
    %287 = arith.truncf %286 : vector<10x32xf32> to vector<10x32xbf16>
    %c0_91 = arith.constant 0 : index
    %c0_92 = arith.constant 0 : index
    %288 = vector.load %arg6[%c0_91, %c0_92] : memref<32x64xbf16, #tpu.memory_space<vmem>>, vector<32x64xbf16>
    %cst_93 = arith.constant dense<0.000000e+00> : vector<10x64xf32>
    %289 = tpu.matmul %287, %288, %cst_93 {dimension_numbers = #tpu.dot_dimension_numbers<[1], [0], [0], [1], [0, 0, 1, 1], [], []>} : vector<10x32xbf16>, vector<32x64xbf16>, vector<10x64xf32> -> vector<10x64xf32>
    %c0_94 = arith.constant 0 : index
    %c0_95 = arith.constant 0 : index
    %290 = vector.load %arg7[%c0_94, %c0_95] : memref<1x64xf32, #tpu.memory_space<vmem>>, vector<1x64xf32>
    %291 = vector.broadcast %290 : vector<1x64xf32> to vector<10x64xf32>
    %292 = arith.addf %289, %291 : vector<10x64xf32>
    %cst_96 = arith.constant 0.000000e+00 : f32
    %293 = vector.broadcast %cst_96 : f32 to vector<10x64xf32>
    %294 = arith.maximumf %292, %293 : vector<10x64xf32>
    %295 = arith.truncf %294 : vector<10x64xf32> to vector<10x64xbf16>
    %c0_97 = arith.constant 0 : index
    %c0_98 = arith.constant 0 : index
    %296 = vector.load %arg8[%c0_97, %c0_98] : memref<64x32xbf16, #tpu.memory_space<vmem>>, vector<64x32xbf16>
    %cst_99 = arith.constant dense<0.000000e+00> : vector<10x32xf32>
    %297 = tpu.matmul %295, %296, %cst_99 {dimension_numbers = #tpu.dot_dimension_numbers<[1], [0], [0], [1], [0, 0, 1, 1], [], []>} : vector<10x64xbf16>, vector<64x32xbf16>, vector<10x32xf32> -> vector<10x32xf32>
    %c0_100 = arith.constant 0 : index
    %c0_101 = arith.constant 0 : index
    %298 = vector.load %arg9[%c0_100, %c0_101] : memref<1x32xf32, #tpu.memory_space<vmem>>, vector<1x32xf32>
    %299 = vector.broadcast %298 : vector<1x32xf32> to vector<10x32xf32>
    %300 = arith.addf %297, %299 : vector<10x32xf32>
    %301 = vector.shape_cast %300 : vector<10x32xf32> to vector<2x5x32xf32>
    %302 = arith.addf %261, %301 : vector<2x5x32xf32>
    %cst_102 = arith.constant 0.000000e+00 : f32
    %303 = vector.broadcast %cst_102 : f32 to vector<2x5x96xf32>
    %304 = tpu.concatenate %302, %303 in 2 : vector<2x5x32xf32>, vector<2x5x96xf32> -> vector<2x5x128xf32>
    %c0_103 = arith.constant 0 : index
    %c0_104 = arith.constant 0 : index
    %c0_105 = arith.constant 0 : index
    %305 = vector.load %arg16[%c0_103, %c0_104, %c0_105] : memref<2x5x128xf32, #tpu.memory_space<vmem>>, vector<2x5x128xf32>
    tpu.vector_store %arg16[%c0_103, %c0_104, %c0_105], %304 {strides = array<i32>} : memref<2x5x128xf32, #tpu.memory_space<vmem>>, vector<2x5x128xf32>,
    %cst_106 = arith.constant 0.000000e+00 : f32
    %306 = vector.broadcast %cst_106 : f32 to vector<2x5x64xf32>
    %307 = tpu.concatenate %252, %306 in 2 : vector<2x5x64xf32>, vector<2x5x64xf32> -> vector<2x5x128xf32>
    %c0_107 = arith.constant 0 : index
    %c0_108 = arith.constant 0 : index
    %c0_109 = arith.constant 0 : index
    %308 = vector.load %arg17[%c0_107, %c0_108, %c0_109] : memref<2x5x128xf32, #tpu.memory_space<vmem>>, vector<2x5x128xf32>
    tpu.vector_store %arg17[%c0_107, %c0_108, %c0_109], %307 {strides = array<i32>} : memref<2x5x128xf32, #tpu.memory_space<vmem>>, vector<2x5x128xf32>,
    %c0_110 = arith.constant 0 : index
    %c0_111 = arith.constant 0 : index
    %309 = vector.load %arg10[%c0_110, %c0_111] : memref<64x32xf32, #tpu.memory_space<vmem>>, vector<64x32xf32>
    %310 = vector.shape_cast %302 : vector<2x5x32xf32> to vector<2x5x1x32xf32>
    %311 = vector.shape_cast %309 : vector<64x32xf32> to vector<1x1x64x32xf32>
    %312 = vector.broadcast %310 : vector<2x5x1x32xf32> to vector<2x5x64x32xf32>
    %313 = vector.broadcast %311 : vector<1x1x64x32xf32> to vector<2x5x64x32xf32>
    %314 = arith.addf %312, %313 : vector<2x5x64x32xf32>
    %315 = vector.shape_cast %314 : vector<2x5x64x32xf32> to vector<640x32xf32>
    %316 = arith.truncf %315 : vector<640x32xf32> to vector<640x32xbf16>
    %c0_112 = arith.constant 0 : index
    %c0_113 = arith.constant 0 : index
    %317 = vector.load %arg11[%c0_112, %c0_113] : memref<32x64xbf16, #tpu.memory_space<vmem>>, vector<32x64xbf16>
    %cst_114 = arith.constant dense<0.000000e+00> : vector<640x64xf32>
    %318 = tpu.matmul %316, %317, %cst_114 {dimension_numbers = #tpu.dot_dimension_numbers<[1], [0], [0], [1], [0, 0, 1, 1], [], []>} : vector<640x32xbf16>, vector<32x64xbf16>, vector<640x64xf32> -> vector<640x64xf32>
    %c0_115 = arith.constant 0 : index
    %c0_116 = arith.constant 0 : index
    %319 = vector.load %arg12[%c0_115, %c0_116] : memref<1x64xf32, #tpu.memory_space<vmem>>, vector<1x64xf32>
    %320 = vector.broadcast %319 : vector<1x64xf32> to vector<640x64xf32>
    %321 = arith.addf %318, %320 : vector<640x64xf32>
    %cst_117 = arith.constant 0.000000e+00 : f32
    %322 = vector.broadcast %cst_117 : f32 to vector<640x64xf32>
    %323 = arith.maximumf %321, %322 : vector<640x64xf32>
    %324 = arith.truncf %323 : vector<640x64xf32> to vector<640x64xbf16>
    %c0_118 = arith.constant 0 : index
    %c0_119 = arith.constant 0 : index
    %325 = vector.load %arg13[%c0_118, %c0_119] : memref<64x33xbf16, #tpu.memory_space<vmem>>, vector<64x33xbf16>
    %cst_120 = arith.constant dense<0.000000e+00> : vector<640x33xf32>
    %326 = tpu.matmul %324, %325, %cst_120 {dimension_numbers = #tpu.dot_dimension_numbers<[1], [0], [0], [1], [0, 0, 1, 1], [], []>} : vector<640x64xbf16>, vector<64x33xbf16>, vector<640x33xf32> -> vector<640x33xf32>
    %c0_121 = arith.constant 0 : index
    %c0_122 = arith.constant 0 : index
    %327 = vector.load %arg14[%c0_121, %c0_122] : memref<1x33xf32, #tpu.memory_space<vmem>>, vector<1x33xf32>
    %328 = vector.broadcast %327 : vector<1x33xf32> to vector<640x33xf32>
    %329 = arith.addf %326, %328 : vector<640x33xf32>
    %330 = vector.shape_cast %329 : vector<640x33xf32> to vector<2x5x64x33xf32>
    %331 = vector.extract_strided_slice %330 {offsets = [0, 0, 0, 0], sizes = [2, 5, 64, 32], strides = [1, 1, 1, 1]} : vector<2x5x64x33xf32> to vector<2x5x64x32xf32>
    %332 = vector.extract_strided_slice %330 {offsets = [0, 0, 0, 32], sizes = [2, 5, 64, 1], strides = [1, 1, 1, 1]} : vector<2x5x64x33xf32> to vector<2x5x64x1xf32>
    %cst_123 = arith.constant dense<0xFF800000> : vector<2x64x1xf32>
    %333 = vector.multi_reduction <maximumf>, %332, %cst_123 [1] : vector<2x5x64x1xf32> to vector<2x64x1xf32>
    %334 = vector.shape_cast %333 : vector<2x64x1xf32> to vector<2x1x64x1xf32>
    %335 = vector.broadcast %334 : vector<2x1x64x1xf32> to vector<2x5x64x1xf32>
    %336 = arith.subf %332, %335 : vector<2x5x64x1xf32>
    %337 = math.exp %336 : vector<2x5x64x1xf32>
    %cst_124 = arith.constant dense<0.000000e+00> : vector<2x64x1xf32>
    %338 = vector.multi_reduction <add>, %337, %cst_124 [1] : vector<2x5x64x1xf32> to vector<2x64x1xf32>
    %339 = vector.shape_cast %338 : vector<2x64x1xf32> to vector<2x1x64x1xf32>
    %340 = tpu.reciprocal %339 {approx = true} : vector<2x1x64x1xf32> -> vector<2x1x64x1xf32>
    %341 = vector.broadcast %340 : vector<2x1x64x1xf32> to vector<2x5x64x1xf32>
    %342 = arith.mulf %337, %341 : vector<2x5x64x1xf32>
    %343 = vector.broadcast %342 : vector<2x5x64x1xf32> to vector<2x5x64x32xf32>
    %344 = arith.mulf %343, %331 : vector<2x5x64x32xf32>
    %cst_125 = arith.constant dense<0.000000e+00> : vector<2x64x32xf32>
    %345 = vector.multi_reduction <add>, %344, %cst_125 [1] : vector<2x5x64x32xf32> to vector<2x64x32xf32>
    %c0_126 = arith.constant 0 : index
    %c0_127 = arith.constant 0 : index
    %346 = vector.load %arg15[%c0_126, %c0_127] : memref<2x32xf32, #tpu.memory_space<vmem>>, vector<1x32xf32>
    %c1_128 = arith.constant 1 : index
    %c0_129 = arith.constant 0 : index
    %347 = vector.load %arg15[%c1_128, %c0_129] : memref<2x32xf32, #tpu.memory_space<vmem>>, vector<1x32xf32>
    %cst_130 = arith.constant dense<0.000000e+00> : vector<2x64xf32>
    %348 = vector.multi_reduction <add>, %345, %cst_130 [2] : vector<2x64x32xf32> to vector<2x64xf32>
    %349 = vector.shape_cast %348 : vector<2x64xf32> to vector<2x64x1xf32>
    %cst_131 = arith.constant 3.200000e+01 : f32
    %350 = vector.broadcast %cst_131 : f32 to vector<2x64x1xf32>
    %351 = arith.divf %349, %350 : vector<2x64x1xf32>
    %352 = vector.broadcast %351 : vector<2x64x1xf32> to vector<2x64x32xf32>
    %353 = arith.subf %345, %352 : vector<2x64x32xf32>
    %354 = arith.mulf %353, %353 : vector<2x64x32xf32>
    %cst_132 = arith.constant dense<0.000000e+00> : vector<2x64xf32>
    %355 = vector.multi_reduction <add>, %354, %cst_132 [2] : vector<2x64x32xf32> to vector<2x64xf32>
    %356 = vector.shape_cast %355 : vector<2x64xf32> to vector<2x64x1xf32>
    %cst_133 = arith.constant 3.200000e+01 : f32
    %357 = vector.broadcast %cst_133 : f32 to vector<2x64x1xf32>
    %358 = arith.divf %356, %357 : vector<2x64x1xf32>
    %359 = vector.broadcast %351 : vector<2x64x1xf32> to vector<2x64x32xf32>
    %360 = arith.subf %345, %359 : vector<2x64x32xf32>
    %cst_134 = arith.constant 9.99999974E-6 : f32
    %361 = vector.broadcast %cst_134 : f32 to vector<2x64x1xf32>
    %362 = arith.addf %358, %361 : vector<2x64x1xf32>
    %363 = math.rsqrt %362 : vector<2x64x1xf32>
    %364 = vector.broadcast %363 : vector<2x64x1xf32> to vector<2x64x32xf32>
    %365 = arith.mulf %360, %364 : vector<2x64x32xf32>
    %366 = vector.shape_cast %346 : vector<1x32xf32> to vector<1x1x32xf32>
    %367 = vector.broadcast %366 : vector<1x1x32xf32> to vector<2x64x32xf32>
    %368 = arith.mulf %365, %367 : vector<2x64x32xf32>
    %369 = vector.shape_cast %347 : vector<1x32xf32> to vector<1x1x32xf32>
    %370 = vector.broadcast %369 : vector<1x1x32xf32> to vector<2x64x32xf32>
    %371 = arith.addf %368, %370 : vector<2x64x32xf32>
    %372 = arith.subf %371, %6 : vector<2x64x32xf32>
    %373 = arith.mulf %372, %372 : vector<2x64x32xf32>
    %374 = vector.shape_cast %373 : vector<2x64x32xf32> to vector<1x2x64x32xf32>
    %cst_135 = arith.constant dense<0.000000e+00> : vector<1xf32>
    %375 = vector.multi_reduction <add>, %374, %cst_135 [1, 2, 3] : vector<1x2x64x32xf32> to vector<1xf32>
    %376 = vector.shape_cast %375 : vector<1xf32> to vector<1x1x1x1xf32>
    %377 = vector.extract %376[0, 0, 0, 0] : f32 from vector<1x1x1x1xf32>
    %378 = vector.broadcast %377 : f32 to vector<8x128xf32>
    %c0_136 = arith.constant 0 : index
    %c0_137 = arith.constant 0 : index
    %c0_138 = arith.constant 0 : index
    %379 = vector.load %arg18[%c0_136, %c0_137, %c0_138] : memref<1x8x128xf32, #tpu.memory_space<vmem>>, vector<1x8x128xf32>
    %380 = vector.shape_cast %379 : vector<1x8x128xf32> to vector<8x128xf32>
    %381 = vector.shape_cast %378 : vector<8x128xf32> to vector<1x8x128xf32>
    tpu.vector_store %arg18[%c0_136, %c0_137, %c0_138], %381 {strides = array<i32>} : memref<1x8x128xf32, #tpu.memory_space<vmem>>, vector<1x8x128xf32>,
    return
  }
  func.func @transform_0(%arg0: i32) -> (i32, i32, i32) {
    %c0_i32 = arith.constant 0 : i32
    %c0_i32_0 = arith.constant 0 : i32
    %c0_i32_1 = arith.constant 0 : i32
    return %arg0, %c0_i32, %c0_i32_0 : i32, i32, i32
  }
  func.func @transform_1(%arg0: i32) -> (i32, i32) {
    %c0_i32 = arith.constant 0 : i32
    %c0_i32_0 = arith.constant 0 : i32
    %c0_i32_1 = arith.constant 0 : i32
    return %c0_i32, %c0_i32_0 : i32, i32
  }
  func.func @transform_2(%arg0: i32) -> (i32, i32) {
    %c0_i32 = arith.constant 0 : i32
    %c0_i32_0 = arith.constant 0 : i32
    %c0_i32_1 = arith.constant 0 : i32
    return %c0_i32, %c0_i32_0 : i32, i32
  }
  func.func @transform_3(%arg0: i32) -> (i32, i32) {
    %c0_i32 = arith.constant 0 : i32
    %c0_i32_0 = arith.constant 0 : i32
    %c0_i32_1 = arith.constant 0 : i32
    return %c0_i32, %c0_i32_0 : i32, i32
  }
  func.func @transform_4(%arg0: i32) -> (i32, i32) {
    %c0_i32 = arith.constant 0 : i32
    %c0_i32_0 = arith.constant 0 : i32
    %c0_i32_1 = arith.constant 0 : i32
    return %c0_i32, %c0_i32_0 : i32, i32
  }
  func.func @transform_5(%arg0: i32) -> (i32, i32) {
    %c0_i32 = arith.constant 0 : i32
    %c0_i32_0 = arith.constant 0 : i32
    %c0_i32_1 = arith.constant 0 : i32
    return %c0_i32, %c0_i32_0 : i32, i32
  }
  func.func @transform_6(%arg0: i32) -> (i32, i32) {
    %c0_i32 = arith.constant 0 : i32
    %c0_i32_0 = arith.constant 0 : i32
    %c0_i32_1 = arith.constant 0 : i32
    return %c0_i32, %c0_i32_0 : i32, i32
  }
  func.func @transform_7(%arg0: i32) -> (i32, i32) {
    %c0_i32 = arith.constant 0 : i32
    %c0_i32_0 = arith.constant 0 : i32
    %c0_i32_1 = arith.constant 0 : i32
    return %c0_i32, %c0_i32_0 : i32, i32
  }
  func.func @transform_8(%arg0: i32) -> (i32, i32) {
    %c0_i32 = arith.constant 0 : i32
    %c0_i32_0 = arith.constant 0 : i32
    %c0_i32_1 = arith.constant 0 : i32
    return %c0_i32, %c0_i32_0 : i32, i32
  }
  func.func @transform_9(%arg0: i32) -> (i32, i32) {
    %c0_i32 = arith.constant 0 : i32
    %c0_i32_0 = arith.constant 0 : i32
    %c0_i32_1 = arith.constant 0 : i32
    return %c0_i32, %c0_i32_0 : i32, i32
  }
  func.func @transform_10(%arg0: i32) -> (i32, i32) {
    %c0_i32 = arith.constant 0 : i32
    %c0_i32_0 = arith.constant 0 : i32
    %c0_i32_1 = arith.constant 0 : i32
    return %c0_i32, %c0_i32_0 : i32, i32
  }
  func.func @transform_11(%arg0: i32) -> (i32, i32) {
    %c0_i32 = arith.constant 0 : i32
    %c0_i32_0 = arith.constant 0 : i32
    %c0_i32_1 = arith.constant 0 : i32
    return %c0_i32, %c0_i32_0 : i32, i32
  }
  func.func @transform_12(%arg0: i32) -> (i32, i32) {
    %c0_i32 = arith.constant 0 : i32
    %c0_i32_0 = arith.constant 0 : i32
    %c0_i32_1 = arith.constant 0 : i32
    return %c0_i32, %c0_i32_0 : i32, i32
  }
  func.func @transform_13(%arg0: i32) -> (i32, i32) {
    %c0_i32 = arith.constant 0 : i32
    %c0_i32_0 = arith.constant 0 : i32
    %c0_i32_1 = arith.constant 0 : i32
    return %c0_i32, %c0_i32_0 : i32, i32
  }
  func.func @transform_14(%arg0: i32) -> (i32, i32) {
    %c0_i32 = arith.constant 0 : i32
    %c0_i32_0 = arith.constant 0 : i32
    %c0_i32_1 = arith.constant 0 : i32
    return %c0_i32, %c0_i32_0 : i32, i32
  }
  func.func @transform_15(%arg0: i32) -> (i32, i32, i32) {
    %c0_i32 = arith.constant 0 : i32
    %c0_i32_0 = arith.constant 0 : i32
    %c0_i32_1 = arith.constant 0 : i32
    return %arg0, %c0_i32, %c0_i32_0 : i32, i32, i32
  }
  func.func @transform_16(%arg0: i32) -> (i32, i32, i32) {
    %c0_i32 = arith.constant 0 : i32
    %c0_i32_0 = arith.constant 0 : i32
    %c0_i32_1 = arith.constant 0 : i32
    return %arg0, %c0_i32, %c0_i32_0 : i32, i32, i32
  }
  func.func @transform_17(%arg0: i32) -> (i32, i32, i32) {
    %c0_i32 = arith.constant 0 : i32
    %c0_i32_0 = arith.constant 0 : i32
    %c0_i32_1 = arith.constant 0 : i32
    return %arg0, %c0_i32, %c0_i32_0 : i32, i32, i32
  }
}

</mosaic_0001>

<bundles_post_ra>
// kernel: dinosaur_forward.1
= control target key start
LH: loop header
LB: loop body
LE: loop exit
PB: predicated region body
PF: predicated region fallthrough
CT: control target
= control target key end

     0   :  { %s7729_s24 = smov 0   ;;  %s10943_s0 = inlined_call_operand.vmem [shape: f32[4,64,32], index: 0, kind: input, shape index: {}]   ;;  %s10944_s1 = inlined_call_operand.vmem [shape: f32[5,32], index: 1, kind: input, shape index: {}]   ;;  %s10945_s2 = inlined_call_operand.vmem [shape: bf16[32,32], index: 2, kind: input, shape index: {}]   ;;  %s10946_s3 = inlined_call_operand.vmem [shape: bf16[32,32], index: 3, kind: input, shape index: {}]   ;;  %s10947_s4 = inlined_call_operand.vmem [shape: f32[6,32], index: 4, kind: input, shape index: {}]   ;;  %s10948_s5 = inlined_call_operand.vmem [shape: bf16[32,64], index: 5, kind: input, shape index: {}]   ;;  %s10949_s6 = inlined_call_operand.vmem [shape: f32[1,64], index: 6, kind: input, shape index: {}]   ;;  %s10950_s7 = inlined_call_operand.vmem [shape: bf16[64,32], index: 7, kind: input, shape index: {}]   ;;  %s10951_s8 = inlined_call_operand.vmem [shape: f32[1,32], index: 8, kind: input, shape index: {}]   ;;  %s10952_s9 = inlined_call_operand.vmem [shape: f32[64,32], index: 9, kind: input, shape index: {}]   ;;  %s10953_s10 = inlined_call_operand.vmem [shape: bf16[32,64], index: 10, kind: input, shape index: {}]   ;;  %s10954_s11 = inlined_call_operand.vmem [shape: f32[1,64], index: 11, kind: input, shape index: {}]   ;;  %s10955_s12 = inlined_call_operand.vmem [shape: bf16[64,33], index: 12, kind: input, shape index: {}]   ;;  %s10956_s13 = inlined_call_operand.vmem [shape: f32[1,33], index: 13, kind: input, shape index: {}]   ;;  %s10957_s14 = inlined_call_operand.vmem [shape: f32[2,32], index: 14, kind: input, shape index: {}]   ;;  %s10958_s15 = inlined_call_operand.vmem [shape: f32[4,5,128], index: 15, kind: output, shape index: {0}]   ;;  %s10959_s16 = inlined_call_operand.vmem [shape: f32[4,5,128], index: 16, kind: output, shape index: {1}]   ;;  %s10960_s17 = inlined_call_operand.vmem [shape: f32[2,8,128], index: 17, kind: output, shape index: {2}]  }
   0x1   :  { %11042 = sst [smem:[#allocation81_spill]] %s10943_s0 }
   0x2   :  { %11043 = sst [smem:[#allocation82_spill]] %s10944_s1 }
   0x3 LB: > { %s7735_s25 = sadd.s32 4294967295, %s7633_s24   ;;  %p6466_p0 = scmp.ge.s32.totalorder %s7633_s24, 1  ;;  %s7633_s24 = sphi %s7729_s24, %s28_s24  }
   0x4   : > { %p494_p1 = scmp.lt.s32.totalorder %s7633_s24, 3 }
   0x6   : > { %p495_p2 = pnand %p6466_p0, %p494_p1 }
   0x8   : > { %498 = sbr.rel (%p495_p2) target bundleno = 6928 (0x1b10), region = 80 }
   0xf   : > { %s6467_s26 = sshll.u32 %s7735_s25, 1  ;;  %vm602_vm0 = vcmask 261120   ;;  %s11044_s0 = sld [smem:[#allocation81_spill]]  ;;  %vm1127_vm1 = vcmask 258048   ;;  %vm7636_vm2 = vmmov 0   ;;  %vm1259_vm3 = vcmask 520192  }
  0x10   : > { %p557_p3 = scmp.lt.s32.totalorder %s6467_s26, 3  ;;  %s11045_s1 = sld [smem:[#allocation82_spill]]  ;;  %vm1312_vm4 = vcmask 523264   ;;  %vm4768_vm5 = vcmask 269568  }
  0x11   : > { %p575_p4 = scmp.lt.s32.totalorder %s7735_s25, 1 }
  0x12   : > { %s11275_s26 = smov (!%p557_p3, %s6467_s26), 3 }
  0x13   : > { %s6641_s27 = sshll.u32 %s11275_s26, 6  ;;  %s6471_s18 = sshll.u32 %s11275_s26, 3 }
  0x14   : > { %s573_s20 = scalar_lea.vmem %s10959_s16, %s6471_s18  ;;  %s11277_s25 = smov (!%p575_p4, %s7735_s25), 1 }
  0x15   : > { %s7746_s30 = scalar_lea.vmem %s11044_s0, %s6641_s27  ;;  %s567_s0 = scalar_lea.vmem %s10958_s15, %s6471_s18 }
  0x16   : > { %v586_v0 = vld [vmem:[%s7746_s30] sm:$0xff]  ;;  %v588_v1 = vld [vmem:[%s7746_s30 + $0x10] sm:$0xff]  ;;  %v587_v2 = vld [vmem:[%s7746_s30 + $0x8] sm:$0xff] }
  0x17   : > { %v603_v3 = vsel %vm602_vm0, %v586_v0, 0.0  ;;  %v609_v4 = vsel %vm602_vm0, %v588_v1, 0.0  ;;  %v589_v5 = vld [vmem:[%s7746_s30 + $0x18] sm:$0xff]  ;;  %v7755_v6 = vld [vmem:[%s7746_s30 + $0x20] sm:$0xff]  ;;  %v7758_v7 = vld [vmem:[%s7746_s30 + $0x28] sm:$0xff]  ;;  %v606_v10 = vsel %vm602_vm0, %v587_v2, 0.0 }
  0x18   : > { %604 = vadd.xlane.f32.xlu0 %v603_v3  ;;  %610 = vadd.xlane.f32.xlu1 %v609_v4  ;;  %v7761_v8 = vld [vmem:[%s7746_s30 + $0x30] sm:$0xff]  ;;  %v7764_v9 = vld [vmem:[%s7746_s30 + $0x38] sm:$0xff]  ;;  %v612_v11 = vsel %vm602_vm0, %v589_v5, 0.0  ;;  %v7769_v12 = vld [vmem:[%s7746_s30 + $0x40] sm:$0xff]  ;;  %v615_v14 = vsel %vm602_vm0, %v7755_v6, 0.0  ;;  %v618_v15 = vsel %vm602_vm0, %v7758_v7, 0.0 }
  0x19   : > { %v7772_v13 = vld [vmem:[%s7746_s30 + $0x48] sm:$0xff]  ;;  %v621_v16 = vsel %vm602_vm0, %v7761_v8, 0.0  ;;  %v624_v17 = vsel %vm602_vm0, %v7764_v9, 0.0  ;;  %v627_v18 = vsel %vm602_vm0, %v7769_v12, 0.0  ;;  %v7787_v20 = vld [vmem:[%s7746_s30 + $0x50] sm:$0xff]  ;;  %v7790_v21 = vld [vmem:[%s7746_s30 + $0x58] sm:$0xff] }
  0x1a   : > { %v630_v19 = vsel %vm602_vm0, %v7772_v13, 0.0  ;;  %v633_v22 = vsel %vm602_vm0, %v7787_v20, 0.0  ;;  %v636_v23 = vsel %vm602_vm0, %v7790_v21, 0.0  ;;  %v7797_v24 = vld [vmem:[%s7746_s30 + $0x60] sm:$0xff]  ;;  %v7800_v25 = vld [vmem:[%s7746_s30 + $0x68] sm:$0xff]  ;;  %v7807_v28 = vld [vmem:[%s7746_s30 + $0x70] sm:$0xff] }
  0x1b   : > { %v639_v26 = vsel %vm602_vm0, %v7797_v24, 0.0  ;;  %v642_v27 = vsel %vm602_vm0, %v7800_v25, 0.0  ;;  %v7810_v29 = vld [vmem:[%s7746_s30 + $0x78] sm:$0xff]  ;;  %v645_v30 = vsel %vm602_vm0, %v7807_v28, 0.0 }
  0x1c   : > { %607 = vadd.xlane.f32.xlu0 %v606_v10  ;;  %613 = vadd.xlane.f32.xlu1 %v612_v11  ;;  %v648_v31 = vsel %vm602_vm0, %v7810_v29, 0.0 }
  0x20   : > { %616 = vadd.xlane.f32.xlu0 %v615_v14  ;;  %619 = vadd.xlane.f32.xlu1 %v618_v15 }
  0x24   : > { %622 = vadd.xlane.f32.xlu0 %v621_v16  ;;  %625 = vadd.xlane.f32.xlu1 %v624_v17 }
  0x28   : > { %628 = vadd.xlane.f32.xlu0 %v627_v18  ;;  %631 = vadd.xlane.f32.xlu1 %v630_v19 }
  0x2c   : > { %634 = vadd.xlane.f32.xlu0 %v633_v22  ;;  %637 = vadd.xlane.f32.xlu1 %v636_v23 }
  0x30   : > { %640 = vadd.xlane.f32.xlu0 %v639_v26  ;;  %643 = vadd.xlane.f32.xlu1 %v642_v27 }
  0x34   : > { %646 = vadd.xlane.f32.xlu0 %v645_v30  ;;  %649 = vadd.xlane.f32.xlu1 %v648_v31 }
  0xa5   : > { %v605_v32 = vpop.xlane.xlu0 %604  ;;  %v611_v33 = vpop.xlane.xlu1 %610 }
  0xa6   : > { %v652_v34 = vmul.f32 0.03125, %v605_v32  ;;  %v654_v35 = vmul.f32 0.03125, %v611_v33 }
  0xa8   : > { %v7816_v36 = vsub.f32 %v586_v0, %v652_v34  ;;  %v7818_v37 = vsub.f32 %v588_v1, %v654_v35 }
  0xa9   : > { %v608_v38 = vpop.xlane.xlu0 %607  ;;  %v614_v39 = vpop.xlane.xlu1 %613 }
  0xaa   : > { %v653_v40 = vmul.f32 0.03125, %v608_v38  ;;  %v655_v41 = vmul.f32 0.03125, %v614_v39  ;;  %v684_v42 = vmul.f32 %v7816_v36, %v7816_v36  ;;  %v686_v43 = vmul.f32 %v7818_v37, %v7818_v37 }
  0xac   : > { %v7824_v44 = vsub.f32 %v587_v2, %v653_v40  ;;  %v7826_v45 = vsub.f32 %v589_v5, %v655_v41  ;;  %v700_v46 = vsel %vm602_vm0, %v684_v42, 0.0  ;;  %v706_v49 = vsel %vm602_vm0, %v686_v43, 0.0 }
  0xad   : > { %701 = vadd.xlane.f32.xlu0 %v700_v46  ;;  %v617_v47 = vpop.xlane.xlu0 %616  ;;  %v620_v48 = vpop.xlane.xlu1 %619 }
  0xae   : > { %v656_v50 = vmul.f32 0.03125, %v617_v47  ;;  %v657_v51 = vmul.f32 0.03125, %v620_v48  ;;  %v685_v52 = vmul.f32 %v7824_v44, %v7824_v44  ;;  %v687_v53 = vmul.f32 %v7826_v45, %v7826_v45 }
  0xb0   : > { %v7835_v54 = vsub.f32 %v7755_v6, %v656_v50  ;;  %v7838_v55 = vsub.f32 %v7758_v7, %v657_v51  ;;  %v703_v56 = vsel %vm602_vm0, %v685_v52, 0.0  ;;  %v709_v59 = vsel %vm602_vm0, %v687_v53, 0.0 }
  0xb1   : > { %707 = vadd.xlane.f32.xlu0 %v706_v49  ;;  %704 = vadd.xlane.f32.xlu1 %v703_v56  ;;  %v623_v57 = vpop.xlane.xlu0 %622  ;;  %v626_v58 = vpop.xlane.xlu1 %625  ;;  %v7264_v56 = vld [vmem:[%s10945_s2] sm:$0xff]  }
  0xb2   : > { %v658_v60 = vmul.f32 0.03125, %v623_v57  ;;  %v659_v61 = vmul.f32 0.03125, %v626_v58  ;;  %v688_v62 = vmul.f32 %v7835_v54, %v7835_v54  ;;  %v689_v63 = vmul.f32 %v7838_v55, %v7838_v55  ;;  %v7265_v57 = vld [vmem:[%s10946_s3] sm:$0xff]   ;;  %6832 = vmatprep.subr.bf16.mxu0 %v7264_v56  ;;  %v7266_v58 = vld [vmem:[%s10945_s2 + $0x8] sm:$0xff]  }
  0xb3   : > { %6852 = vmatprep.subr.bf16.mxu1 %v7265_v57  ;;  %6833 = vmatpush3.bf16.msra.mxu0 %v7264_v56 }
  0xb4   : > { %v7847_v0 = vsub.f32 %v7761_v8, %v658_v60  ;;  %v7850_v1 = vsub.f32 %v7764_v9, %v659_v61  ;;  %v712_v2 = vsel %vm602_vm0, %v688_v62, 0.0  ;;  %v715_v5 = vsel %vm602_vm0, %v689_v63, 0.0  ;;  %6853 = vmatpush3.bf16.msra.mxu1 %v7265_v57  ;;  %6834 = vmatprep.subr.bf16.mxu0 %v7266_v58 }
  0xb5   : > { %710 = vadd.xlane.f32.xlu1 %v709_v59  ;;  %713 = vadd.xlane.f32.xlu0 %v712_v2  ;;  %v629_v3 = vpop.xlane.xlu0 %628  ;;  %v632_v4 = vpop.xlane.xlu1 %631  ;;  %v7267_v59 = vld [vmem:[%s10946_s3 + $0x8] sm:$0xff]  }
  0xb6   : > { %v660_v6 = vmul.f32 0.03125, %v629_v3  ;;  %v661_v7 = vmul.f32 0.03125, %v632_v4  ;;  %v690_v10 = vmul.f32 %v7847_v0, %v7847_v0  ;;  %v691_v8 = vmul.f32 %v7850_v1, %v7850_v1  ;;  %6854 = vmatprep.subr.bf16.mxu1 %v7267_v59 }
  0xb7   : > { %6835 = vmatpush3.bf16.msra.mxu0 %v7266_v58 }
  0xb8   : > { %v7859_v11 = vsub.f32 %v7769_v12, %v660_v6  ;;  %v7862_v9 = vsub.f32 %v7772_v13, %v661_v7  ;;  %v718_v14 = vsel %vm602_vm0, %v690_v10, 0.0  ;;  %v721_v17 = vsel %vm602_vm0, %v691_v8, 0.0  ;;  %6855 = vmatpush3.bf16.msra.mxu1 %v7267_v59 }
  0xb9   : > { %716 = vadd.xlane.f32.xlu1 %v715_v5  ;;  %719 = vadd.xlane.f32.xlu0 %v718_v14  ;;  %v635_v15 = vpop.xlane.xlu0 %634  ;;  %v638_v16 = vpop.xlane.xlu1 %637 }
  0xba   : > { %v662_v18 = vmul.f32 0.03125, %v635_v15  ;;  %v663_v19 = vmul.f32 0.03125, %v638_v16  ;;  %v692_v22 = vmul.f32 %v7859_v11, %v7859_v11  ;;  %v693_v12 = vmul.f32 %v7862_v9, %v7862_v9 }
  0xbc   : > { %v7871_v23 = vsub.f32 %v7787_v20, %v662_v18  ;;  %v7874_v13 = vsub.f32 %v7790_v21, %v663_v19  ;;  %v724_v26 = vsel %vm602_vm0, %v692_v22, 0.0  ;;  %v727_v31 = vsel %vm602_vm0, %v693_v12, 0.0 }
  0xbd   : > { %722 = vadd.xlane.f32.xlu1 %v721_v17  ;;  %725 = vadd.xlane.f32.xlu0 %v724_v26  ;;  %v641_v27 = vpop.xlane.xlu0 %640  ;;  %v644_v30 = vpop.xlane.xlu1 %643 }
  0xbe   : > { %v664_v32 = vmul.f32 0.03125, %v641_v27  ;;  %v665_v33 = vmul.f32 0.03125, %v644_v30  ;;  %v694_v34 = vmul.f32 %v7871_v23, %v7871_v23  ;;  %v695_v20 = vmul.f32 %v7874_v13, %v7874_v13 }
  0xc0   : > { %v7883_v35 = vsub.f32 %v7797_v24, %v664_v32  ;;  %v7886_v21 = vsub.f32 %v7800_v25, %v665_v33  ;;  %v730_v38 = vsel %vm602_vm0, %v694_v34, 0.0  ;;  %v733_v41 = vsel %vm602_vm0, %v695_v20, 0.0  ;;  %v7931_v20 = vld [vmem:[%s10947_s4] ss:$0 sm:$0xff] }
  0xc1   : > { %728 = vadd.xlane.f32.xlu1 %v727_v31  ;;  %731 = vadd.xlane.f32.xlu0 %v730_v38  ;;  %v647_v39 = vpop.xlane.xlu0 %646  ;;  %v650_v40 = vpop.xlane.xlu1 %649 }
  0xc2   : > { %v666_v42 = vmul.f32 0.03125, %v647_v39  ;;  %v667_v43 = vmul.f32 0.03125, %v650_v40  ;;  %v696_v46 = vmul.f32 %v7883_v35, %v7883_v35  ;;  %v697_v24 = vmul.f32 %v7886_v21, %v7886_v21 }
  0xc4   : > { %v7895_v47 = vsub.f32 %v7807_v28, %v666_v42  ;;  %v7898_v25 = vsub.f32 %v7810_v29, %v667_v43  ;;  %v736_v48 = vsel %vm602_vm0, %v696_v46, 0.0  ;;  %v739_v49 = vsel %vm602_vm0, %v697_v24, 0.0  ;;  %v7909_v28 = vld [vmem:[%s11045_s1] sm:$0x1f] }
  0xc5   : > { %734 = vadd.xlane.f32.xlu1 %v733_v41  ;;  %737 = vadd.xlane.f32.xlu0 %v736_v48  ;;  %v1128_v53 = vsel %vm1127_vm1, %v7909_v28, 0.0 }
  0xc6   : > { %v698_v50 = vmul.f32 %v7895_v47, %v7895_v47  ;;  %v699_v51 = vmul.f32 %v7898_v25, %v7898_v25 }
  0xc8   : > { %v742_v29 = vsel %vm602_vm0, %v698_v50, 0.0  ;;  %v745_v52 = vsel %vm602_vm0, %v699_v51, 0.0 }
  0xc9   : > { %740 = vadd.xlane.f32.xlu1 %v739_v49  ;;  %743 = vadd.xlane.f32.xlu0 %v742_v29  ;;  %v7938_v49 = vld [vmem:[%s10947_s4 + $0x1] ss:$0 sm:$0xff] }
  0xcd   : > { %746 = vadd.xlane.f32.xlu1 %v745_v52  ;;  %1129 = vadd.xlane.f32.xlu0 %v1128_v53 }
 0x13a   : > { %v702_v60 = vpop.xlane.xlu0 %701 }
 0x13b   : > { %v748_v61 = vmul.f32 0.03125, %v702_v60 }
 0x13d   : > { %v764_v62 = vadd.f32 1e-05, %v748_v61 }
 0x13e   : > { %v705_v63 = vpop.xlane.xlu1 %704  ;;  %v708_v2 = vpop.xlane.xlu0 %707 }
 0x13f   : > { %7292 = vrsqrt.f32 %v764_v62  ;;  %v749_v3 = vmul.f32 0.03125, %v705_v63  ;;  %v750_v4 = vmul.f32 0.03125, %v708_v2 }
 0x141   : > { %v765_v5 = vadd.f32 1e-05, %v749_v3  ;;  %v766_v6 = vadd.f32 1e-05, %v750_v4 }
 0x142   : > { %v711_v7 = vpop.xlane.xlu1 %710  ;;  %v714_v10 = vpop.xlane.xlu0 %713 }
 0x143   : > { %7294 = vrsqrt.f32 %v765_v5  ;;  %v751_v8 = vmul.f32 0.03125, %v711_v7  ;;  %v752_v14 = vmul.f32 0.03125, %v714_v10 }
 0x144   : > { %7296 = vrsqrt.f32 %v766_v6 }
 0x145   : > { %v767_v15 = vadd.f32 1e-05, %v751_v8  ;;  %v768_v16 = vadd.f32 1e-05, %v752_v14 }
 0x146   : > { %v717_v17 = vpop.xlane.xlu1 %716  ;;  %v720_v18 = vpop.xlane.xlu0 %719 }
 0x147   : > { %7298 = vrsqrt.f32 %v767_v15  ;;  %v753_v19 = vmul.f32 0.03125, %v717_v17  ;;  %v754_v22 = vmul.f32 0.03125, %v720_v18 }
 0x148   : > { %7300 = vrsqrt.f32 %v768_v16 }
 0x149   : > { %v7293_v12 = vpop.eup %7292  ;;  %v769_v26 = vadd.f32 1e-05, %v753_v19  ;;  %v770_v27 = vadd.f32 1e-05, %v754_v22 }
 0x14a   : > { %v723_v30 = vpop.xlane.xlu1 %722  ;;  %v726_v31 = vpop.xlane.xlu0 %725  ;;  %v796_v32 = vmul.f32 %v7293_v12, %v7816_v36 }
 0x14b   : > { %7302 = vrsqrt.f32 %v769_v26  ;;  %v755_v33 = vmul.f32 0.03125, %v723_v30  ;;  %v756_v34 = vmul.f32 0.03125, %v726_v31 }
 0x14c   : > { %7304 = vrsqrt.f32 %v770_v27  ;;  %v816_v24 = vmul.f32 %v7931_v20, %v796_v32 }
 0x14d   : > { %v7295_v38 = vpop.eup %7294  ;;  %v771_v39 = vadd.f32 1e-05, %v755_v33  ;;  %v772_v40 = vadd.f32 1e-05, %v756_v34 }
 0x14e   : > { %v7297_v41 = vpop.eup %7296  ;;  %v729_v42 = vpop.xlane.xlu1 %728  ;;  %v797_v46 = vmul.f32 %v7295_v38, %v7824_v44  ;;  %v836_v59 = vadd.f32 %v7938_v49, %v816_v24 }
 0x14f   : > { %v732_v43 = vpop.xlane.xlu0 %731  ;;  %7306 = vrsqrt.f32 %v771_v39  ;;  %v757_v36 = vmul.f32 0.03125, %v729_v42  ;;  %v798_v50 = vmul.f32 %v7297_v41, %v7818_v37 }
 0x150   : > { %v758_v48 = vmul.f32 0.03125, %v732_v43  ;;  %7308 = vrsqrt.f32 %v772_v40  ;;  %v817_v51 = vmul.f32 %v7931_v20, %v797_v46 }
 0x151   : > { %v7299_v29 = vpop.eup %7298  ;;  %v773_v52 = vadd.f32 1e-05, %v757_v36  ;;  %v818_v44 = vmul.f32 %v7931_v20, %v798_v50 }
 0x152   : > { %v774_v53 = vadd.f32 1e-05, %v758_v48  ;;  %v7301_v56 = vpop.eup %7300  ;;  %v735_v57 = vpop.xlane.xlu1 %734  ;;  %v837_v60 = vadd.f32 %v7938_v49, %v817_v51  ;;  %v799_v61 = vmul.f32 %v7299_v29, %v7826_v45 }
 0x153   : > { %v738_v58 = vpop.xlane.xlu0 %737  ;;  %7310 = vrsqrt.f32 %v773_v52  ;;  %v759_v62 = vmul.f32 0.03125, %v735_v57  ;;  %v800_v3 = vmul.f32 %v7301_v56, %v7835_v54  ;;  %v838_v7 = vadd.f32 %v7938_v49, %v818_v44 }
 0x154   : > { %v760_v37 = vmul.f32 0.03125, %v738_v58  ;;  %7312 = vrsqrt.f32 %v774_v53  ;;  %v852_v63 = vpack.c.bf16 %v837_v60, %v836_v59  ;;  %v819_v2 = vmul.f32 %v7931_v20, %v799_v61 }
 0x155   : > { %v7303_v4 = vpop.eup %7302  ;;  %v775_v5 = vadd.f32 1e-05, %v759_v62  ;;  %v820_v16 = vmul.f32 %v7931_v20, %v800_v3 }
 0x156   : > { %v776_v6 = vadd.f32 1e-05, %v760_v37  ;;  %v7305_v10 = vpop.eup %7304  ;;  %v741_v8 = vpop.xlane.xlu1 %740  ;;  %6836 = vmatprep.mubr.msk.bf16.mxu0 %vm602_vm0, %v852_v63  ;;  %6856 = vmatprep.mubr.msk.bf16.mxu1 %vm602_vm0, %v852_v63  ;;  %v839_v14 = vadd.f32 %v7938_v49, %v819_v2  ;;  %v801_v15 = vmul.f32 %v7303_v4, %v7838_v55 }
 0x157   : > { %v744_v45 = vpop.xlane.xlu0 %743  ;;  %7314 = vrsqrt.f32 %v775_v5  ;;  %v761_v54 = vmul.f32 0.03125, %v741_v8  ;;  %v802_v18 = vmul.f32 %v7305_v10, %v7847_v0  ;;  %v840_v33 = vadd.f32 %v7938_v49, %v820_v16 }
 0x158   : > { %v762_v17 = vmul.f32 0.03125, %v744_v45  ;;  %7316 = vrsqrt.f32 %v776_v6  ;;  %v853_v19 = vpack.c.bf16 %v839_v14, %v838_v7  ;;  %v821_v22 = vmul.f32 %v7931_v20, %v801_v15 }
 0x159   : > { %v7307_v12 = vpop.eup %7306  ;;  %v777_v26 = vadd.f32 1e-05, %v761_v54  ;;  %v822_v30 = vmul.f32 %v7931_v20, %v802_v18  ;;  %v7635_v54 = vmov 0.0  }
 0x15a   : > { %v778_v27 = vadd.f32 1e-05, %v762_v17  ;;  %v7309_v31 = vpop.eup %7308  ;;  %v747_v32 = vpop.xlane.xlu1 %746  ;;  %6837 = vmatmul.mubr.msk.bf16.vlgmr.msra.gmra.mrb[0].mxu0 %vm602_vm0, %v853_v19  ;;  %6857 = vmatmul.mubr.msk.bf16.vlgmr.msra.gmra.mrb[0].mxu1 %vm602_vm0, %v853_v19  ;;  %v841_v0 = vadd.f32 %v7938_v49, %v821_v22  ;;  %v803_v34 = vmul.f32 %v7307_v12, %v7850_v1 }
 0x15b   : > { %v1130_v55 = vpop.xlane.xlu0 %1129  ;;  %7318 = vrsqrt.f32 %v777_v26  ;;  %v763_v38 = vmul.f32 0.03125, %v747_v32  ;;  %v804_v42 = vmul.f32 %v7309_v31, %v7859_v11  ;;  %v842_v36 = vadd.f32 %v7938_v49, %v822_v30  ;;  %6872 = vmatprep.subr.bf16.mxu0 %v7635_v54  ;;  %6884 = vmatprep.subr.bf16.mxu1 %v7635_v54 }
 0x15c   : > { %v1131_v39 = vmul.f32 0.03125, %v1130_v55  ;;  %7320 = vrsqrt.f32 %v778_v27  ;;  %v854_v40 = vpack.c.bf16 %v841_v0, %v840_v33  ;;  %v823_v41 = vmul.f32 %v7931_v20, %v803_v34 }
 0x15d   : > { %v7311_v43 = vpop.eup %7310  ;;  %v779_v46 = vadd.f32 1e-05, %v763_v38  ;;  %v824_v51 = vmul.f32 %v7931_v20, %v804_v42 }
 0x15e   : > { %v7965_v24 = vsub.f32 %v7909_v28, %v1131_v39  ;;  %v7313_v48 = vpop.eup %7312  ;;  %6840 = vmatprep.mubr.msk.bf16.mxu0 %vm602_vm0, %v854_v40  ;;  %6860 = vmatprep.mubr.msk.bf16.mxu1 %vm602_vm0, %v854_v40  ;;  %v843_v1 = vadd.f32 %v7938_v49, %v823_v41  ;;  %v805_v50 = vmul.f32 %v7311_v43, %v7862_v9 }
 0x15f   : > { %7322 = vrsqrt.f32 %v779_v46  ;;  %v806_v28 = vmul.f32 %v7313_v48, %v7871_v23  ;;  %v844_v56 = vadd.f32 %v7938_v49, %v824_v51 }
 0x160   : > { %v1133_v11 = vmul.f32 %v7965_v24, %v7965_v24  ;;  %v855_v29 = vpack.c.bf16 %v843_v1, %v842_v36  ;;  %v825_v52 = vmul.f32 %v7931_v20, %v805_v50 }
 0x161   : > { %v7315_v53 = vpop.eup %7314  ;;  %v826_v59 = vmul.f32 %v7931_v20, %v806_v28 }
 0x162   : > { %v1134_v44 = vsel %vm1127_vm1, %v1133_v11, 0.0  ;;  %v7317_v57 = vpop.eup %7316  ;;  %6841 = vmatmul.mubr.msk.bf16.gmra.mrb[4].mxu0 %vm602_vm0, %v855_v29  ;;  %6861 = vmatmul.mubr.msk.bf16.gmra.mrb[4].mxu1 %vm602_vm0, %v855_v29  ;;  %v845_v9 = vadd.f32 %v7938_v49, %v825_v52  ;;  %v807_v58 = vmul.f32 %v7315_v53, %v7874_v13 }
 0x163   : > { %1135 = vadd.xlane.f32.xlu1 %v1134_v44  ;;  %v808_v23 = vmul.f32 %v7317_v57, %v7883_v35  ;;  %v846_v2 = vadd.f32 %v7938_v49, %v826_v59 }
 0x164   : > { %v856_v60 = vpack.c.bf16 %v845_v9, %v844_v56  ;;  %v827_v61 = vmul.f32 %v7931_v20, %v807_v58 }
 0x165   : > { %v7319_v62 = vpop.eup %7318  ;;  %v828_v37 = vmul.f32 %v7931_v20, %v808_v23 }
 0x166   : > { %v7321_v63 = vpop.eup %7320  ;;  %6844 = vmatprep.mubr.msk.bf16.mxu0 %vm602_vm0, %v856_v60  ;;  %6864 = vmatprep.mubr.msk.bf16.mxu1 %vm602_vm0, %v856_v60  ;;  %v847_v13 = vadd.f32 %v7938_v49, %v827_v61  ;;  %v809_v3 = vmul.f32 %v7319_v62, %v7886_v21 }
 0x167   : > { %v810_v4 = vmul.f32 %v7321_v63, %v7895_v47  ;;  %v848_v7 = vadd.f32 %v7938_v49, %v828_v37 }
 0x168   : > { %v857_v35 = vpack.c.bf16 %v847_v13, %v846_v2  ;;  %v829_v5 = vmul.f32 %v7931_v20, %v809_v3  ;;  %v8049_v13 = vld [vmem:[%s10947_s4 + $0x2] ss:$0 sm:$0xff] }
 0x169   : > { %v7323_v6 = vpop.eup %7322  ;;  %v830_v45 = vmul.f32 %v7931_v20, %v810_v4 }
 0x16a   : > { %6845 = vmatmul.mubr.msk.bf16.gmra.mrb[8].mxu0 %vm602_vm0, %v857_v35  ;;  %6865 = vmatmul.mubr.msk.bf16.gmra.mrb[8].mxu1 %vm602_vm0, %v857_v35  ;;  %v849_v10 = vadd.f32 %v7938_v49, %v829_v5  ;;  %v811_v8 = vmul.f32 %v7323_v6, %v7898_v25 }
 0x16b   : > { %v850_v47 = vadd.f32 %v7938_v49, %v830_v45 }
 0x16c   : > { %v858_v14 = vpack.c.bf16 %v849_v10, %v848_v7  ;;  %v831_v21 = vmul.f32 %v7931_v20, %v811_v8 }
 0x16e   : > { %6848 = vmatprep.mubr.msk.bf16.mxu0 %vm602_vm0, %v858_v14  ;;  %6868 = vmatprep.mubr.msk.bf16.mxu1 %vm602_vm0, %v858_v14  ;;  %v851_v15 = vadd.f32 %v7938_v49, %v831_v21  ;;  %v8059_v21 = vld [vmem:[%s10947_s4 + $0x3] ss:$0 sm:$0xff] }
 0x170   : > { %v859_v16 = vpack.c.bf16 %v851_v15, %v850_v47 }
 0x172   : > { %6849 = vmatmul.mubr.msk.bf16.gmra.mrb[12].mxu0 %vm602_vm0, %v859_v16  ;;  %6869 = vmatmul.mubr.msk.bf16.gmra.mrb[12].mxu1 %vm602_vm0, %v859_v16 }
 0x173   : > { %6880 = vmatprep.mubr.msk.bf16.mxu0 %vm7636_vm2, %v7635_v54  ;;  %6892 = vmatprep.mubr.msk.bf16.mxu1 %vm7636_vm2, %v7635_v54 }
 0x1f0   : > { %v1136_v25 = vpop.xlane.xlu1 %1135 }
 0x1f1   : > { %v1137_v12 = vmul.f32 0.03125, %v1136_v25 }
 0x1f3   : > { %v1138_v0 = vadd.f32 1e-05, %v1137_v12 }
 0x1f5   : > { %7324 = vrsqrt.f32 %v1138_v0 }
 0x1ff   : > { %v7325_v60 = vpop.eup %7324 }
 0x200   : > { %v1140_v37 = vmul.f32 %v7325_v60, %v7965_v24 }
 0x202   : > { %v1145_v8 = vmul.f32 %v8049_v13, %v1140_v37 }
 0x204   : > { %v1150_v16 = vadd.f32 %v8059_v21, %v1145_v8 }
 0x206   : > { %v1151_v25 = vpack.c.bf16 %v1150_v16, %v1150_v16 }
 0x22d   : > { %v6838_v20 = vpop.f32.mrb[0].mxu0  ;;  %v6858_v49 = vpop.f32.mrb[0].mxu1 }
 0x22e   : > { %v934_v17 = vpop.f32.mrb[1].mxu0  ;;  %v1055_v18 = vpop.f32.mrb[1].mxu1 }
 0x22f   : > { %v6839_v19 = vpop.f32.mrb[2].mxu0  ;;  %v6859_v22 = vpop.f32.mrb[2].mxu1 }
 0x230   : > { %v998_v26 = vpack.c.bf16 %v6839_v19, %v6838_v20  ;;  %v8013_v27 = vpack.c.bf16 %v6859_v22, %v6858_v49  ;;  %v937_v30 = vpop.f32.mrb[3].mxu0  ;;  %v1058_v31 = vpop.f32.mrb[3].mxu1 }
 0x231   : > { %v997_v32 = vpack.c.bf16 %v937_v30, %v934_v17  ;;  %v8015_v55 = vpack.c.bf16 %v1058_v31, %v1055_v18 }
 0x232   : > { %v8027_v51 = vsel %vm602_vm0, %v998_v26, 0 }
 0x233   : > { %v8018_v33 = vsel %vm602_vm0, %v997_v32, 0 }
 0x234   : > { %6873 = vmatpush3.bf16.xpose.msra.mxu0 %v8018_v33 }
 0x235   : > { %v6842_v34 = vpop.f32.mrb[4].mxu0  ;;  %v6862_v38 = vpop.f32.mrb[4].mxu1  ;;  %6874 = vmatprep.subr.bf16.mxu0 %v7635_v54 }
 0x236   : > { %v950_v39 = vpop.f32.mrb[5].mxu0  ;;  %v1071_v40 = vpop.f32.mrb[5].mxu1 }
 0x237   : > { %v6843_v41 = vpop.f32.mrb[6].mxu0  ;;  %v6863_v42 = vpop.f32.mrb[6].mxu1 }
 0x238   : > { %v1000_v43 = vpack.c.bf16 %v6843_v41, %v6842_v34  ;;  %v8022_v46 = vpack.c.bf16 %v6863_v42, %v6862_v38  ;;  %v953_v36 = vpop.f32.mrb[7].mxu0  ;;  %v1074_v48 = vpop.f32.mrb[7].mxu1 }
 0x239   : > { %v999_v1 = vpack.c.bf16 %v953_v36, %v950_v39  ;;  %v8024_v50 = vpack.c.bf16 %v1074_v48, %v1071_v40 }
 0x23a   : > { %v8062_v47 = vsel %vm602_vm0, %v1000_v43, 0 }
 0x23b   : > { %v8036_v61 = vsel %vm602_vm0, %v999_v1, 0 }
 0x23c   : > { %6875 = vmatpush3.bf16.xpose.msra.mxu0 %v8027_v51 }
 0x23d   : > { %v6846_v11 = vpop.f32.mrb[8].mxu0  ;;  %v6866_v28 = vpop.f32.mrb[8].mxu1  ;;  %6876 = vmatprep.subr.bf16.mxu0 %v7635_v54 }
 0x23e   : > { %v966_v29 = vpop.f32.mrb[9].mxu0  ;;  %v1087_v52 = vpop.f32.mrb[9].mxu1 }
 0x23f   : > { %v6847_v53 = vpop.f32.mrb[10].mxu0  ;;  %v6867_v44 = vpop.f32.mrb[10].mxu1 }
 0x240   : > { %v1002_v56 = vpack.c.bf16 %v6847_v53, %v6846_v11  ;;  %v8031_v57 = vpack.c.bf16 %v6867_v44, %v6866_v28  ;;  %v969_v9 = vpop.f32.mrb[11].mxu0  ;;  %v1090_v58 = vpop.f32.mrb[11].mxu1 }
 0x241   : > { %v1001_v59 = vpack.c.bf16 %v969_v9, %v966_v29  ;;  %v8033_v23 = vpack.c.bf16 %v1090_v58, %v1087_v52 }
 0x242   : > { %v8065_v15 = vsel %vm602_vm0, %v1002_v56, 0 }
 0x243   : > { %v8039_v62 = vsel %vm602_vm0, %v1001_v59, 0 }
 0x244   : > { %6877 = vmatpush3.bf16.xpose.msra.mxu0 %v8036_v61  ;;  %6885 = vmatpush3.bf16.xpose.msra.mxu1 %v8039_v62 }
 0x245   : > { %v6850_v63 = vpop.f32.mrb[12].mxu0  ;;  %v6870_v2 = vpop.f32.mrb[12].mxu1  ;;  %6878 = vmatprep.subr.bf16.mxu0 %v7635_v54  ;;  %6886 = vmatprep.subr.bf16.mxu1 %v7635_v54 }
 0x246   : > { %v982_v3 = vpop.f32.mrb[13].mxu0  ;;  %v1103_v4 = vpop.f32.mrb[13].mxu1 }
 0x247   : > { %v6851_v35 = vpop.f32.mrb[14].mxu0  ;;  %v6871_v5 = vpop.f32.mrb[14].mxu1 }
 0x248   : > { %v1004_v6 = vpack.c.bf16 %v6851_v35, %v6850_v63  ;;  %v8051_v7 = vpack.c.bf16 %v6871_v5, %v6870_v2  ;;  %v985_v10 = vpop.f32.mrb[15].mxu0  ;;  %v1106_v24 = vpop.f32.mrb[15].mxu1 }
 0x249   : > { %v1003_v45 = vpack.c.bf16 %v985_v10, %v982_v3  ;;  %v8054_v14 = vpack.c.bf16 %v1106_v24, %v1103_v4 }
 0x24a   : > { %v8085_v49 = vsel %vm602_vm0, %v1004_v6, 0 }
 0x24b   : > { %v8073_v20 = vsel %vm602_vm0, %v1003_v45, 0 }
 0x24c   : > { %6879 = vmatpush3.bf16.xpose.msra.mxu0 %v8062_v47  ;;  %6887 = vmatpush3.bf16.xpose.msra.mxu1 %v8065_v15 }
 0x24d   : > { %6888 = vmatprep.subr.bf16.mxu1 %v7635_v54  ;;  %6896 = vmatprep.subr.bf16.mxu0 %v7635_v54 }
 0x253   : > { %6881 = vmatmul.mubr.msk.bf16.vlgmr.msra.gmra.mrb[16].mxu0 %vm602_vm0, %v1151_v25 }
 0x254   : > { %6889 = vmatpush3.bf16.xpose.msra.mxu1 %v8073_v20  ;;  %6897 = vmatpush3.bf16.msra.mxu0 %v8015_v55 }
 0x255   : > { %6898 = vmatprep.subr.bf16.mxu0 %v7635_v54  ;;  %6890 = vmatprep.subr.bf16.mxu1 %v7635_v54 }
 0x256   : > { %6904 = vmatprep.mubr.msk.bf16.mxu0 %vm7636_vm2, %v7635_v54 }
 0x258   : > { %6899 = vmatpush3.bf16.msra.mxu0 %v8013_v27 }
 0x259   : > { %6900 = vmatprep.subr.bf16.mxu0 %v7635_v54 }
 0x25c   : > { %6891 = vmatpush3.bf16.xpose.msra.mxu1 %v8085_v49  ;;  %6901 = vmatpush3.bf16.msra.mxu0 %v8024_v50 }
 0x25d   : > { %6902 = vmatprep.subr.bf16.mxu0 %v7635_v54  ;;  %6908 = vmatprep.subr.bf16.mxu1 %v7635_v54 }
 0x260   : > { %6903 = vmatpush3.bf16.msra.mxu0 %v8022_v46 }
 0x261   : > { %6920 = vmatprep.subr.bf16.mxu0 %v7635_v54 }
 0x263   : > { %6893 = vmatmul.mubr.msk.bf16.vlgmr.msra.gmra.mrb[16].mxu1 %vm602_vm0, %v1151_v25 }
 0x264   : > { %6909 = vmatpush3.bf16.msra.mxu1 %v8033_v23  ;;  %6916 = vmatprep.mubr.msk.bf16.mxu1 %vm7636_vm2, %v7635_v54 }
 0x265   : > { %6910 = vmatprep.subr.bf16.mxu1 %v7635_v54 }
 0x268   : > { %6911 = vmatpush3.bf16.msra.mxu1 %v8031_v57 }
 0x269   : > { %6912 = vmatprep.subr.bf16.mxu1 %v7635_v54 }
 0x26c   : > { %6913 = vmatpush3.bf16.msra.mxu1 %v8054_v14 }
 0x26d   : > { %6914 = vmatprep.subr.bf16.mxu1 %v7635_v54 }
 0x270   : > { %6915 = vmatpush3.bf16.msra.mxu1 %v8051_v7 }
 0x271   : > { %6928 = vmatprep.subr.bf16.mxu1 %v7635_v54 }
 0x326   : > { %v1201_v17 = vpop.f32.mrb[16].mxu0 }
 0x327   : > { %v1260_v18 = vsel %vm1259_vm3, %v1201_v17, -inf  ;;  %v6882_v19 = vpop.f32.mrb[17].mxu0 }
 0x328   : > { %v1261_v22 = vrot.slane %v1260_v18, 4  ;;  %v1204_v12 = vpop.f32.mrb[18].mxu0 }
 0x329   : > { %v6883_v26 = vpop.f32.mrb[19].mxu0 }
 0x32a   : > { %v1262_v30 = vmax.f32 %v1260_v18, %v1261_v22 }
 0x32c   : > { %v1263_v31 = vrot.slane %v1262_v30, 2 }
 0x32e   : > { %v1264_v32 = vmax.f32 %v1262_v30, %v1263_v31 }
 0x330   : > { %v1265_v0 = vrot.slane %v1264_v32, 1 }
 0x332   : > { %v1266_v34 = vmax.f32 %v1264_v32, %v1265_v0 }
 0x334   : > { %v1274_v38 = vsub.f32 %v1201_v17, %v1266_v34 }
 0x336   : > { %v1276_v39 = vmul.f32 1.442695, %v1274_v38  ;;  %v1253_v40 = vpop.f32.mrb[16].mxu1 }
 0x337   : > { %v1267_v41 = vsel %vm1259_vm3, %v1253_v40, -inf  ;;  %v6894_v42 = vpop.f32.mrb[17].mxu1 }
 0x338   : > { %7326 = vpow2.f32 %v1276_v39  ;;  %v1268_v43 = vrot.slane %v1267_v41, 4  ;;  %v1256_v36 = vpop.f32.mrb[18].mxu1 }
 0x339   : > { %v6895_v48 = vpop.f32.mrb[19].mxu1 }
 0x33a   : > { %v1269_v1 = vmax.f32 %v1267_v41, %v1268_v43 }
 0x33c   : > { %v1270_v11 = vrot.slane %v1269_v1, 2 }
 0x33e   : > { %v1271_v28 = vmax.f32 %v1269_v1, %v1270_v11 }
 0x340   : > { %v1272_v29 = vrot.slane %v1271_v28, 1 }
 0x342   : > { %v7327_v52 = vpop.eup %7326  ;;  %v1273_v53 = vmax.f32 %v1271_v28, %v1272_v29 }
 0x343   : > { %v1280_v44 = vsel %vm1259_vm3, %v7327_v52, 0.0 }
 0x344   : > { %v1281_v56 = vrot.slane %v1280_v44, 4  ;;  %v1275_v9 = vsub.f32 %v1253_v40, %v1273_v53 }
 0x346   : > { %v1282_v58 = vadd.f32 %v1281_v56, %v1280_v44  ;;  %v1278_v59 = vmul.f32 1.442695, %v1275_v9 }
 0x348   : > { %v1283_v60 = vrot.slane %v1282_v58, 2  ;;  %7328 = vpow2.f32 %v1278_v59 }
 0x34a   : > { %v1284_v37 = vadd.f32 %v1283_v60, %v1282_v58 }
 0x34c   : > { %v1285_v63 = vrot.slane %v1284_v37, 1 }
 0x34e   : > { %v1286_v2 = vadd.f32 %v1285_v63, %v1284_v37 }
 0x350   : > { %7330 = vrcp.f32 %v1286_v2  ;;  %v7268_v2 = vld [vmem:[%s10948_s5] sm:$0xff]  }
 0x352   : > { %v7329_v3 = vpop.eup %7328 }
 0x353   : > { %v1287_v4 = vsel %vm1259_vm3, %v7329_v3, 0.0 }
 0x354   : > { %v1288_v35 = vrot.slane %v1287_v4, 4 }
 0x356   : > { %v1289_v5 = vadd.f32 %v1288_v35, %v1287_v4  ;;  %v7270_v4 = vld [vmem:[%s10950_s7] sm:$0xff]   ;;  %v7271_v35 = vld [vmem:[%s10950_s7 + $0x8] sm:$0xff]  }
 0x358   : > { %v1290_v6 = vrot.slane %v1289_v5, 2 }
 0x35a   : > { %v7331_v10 = vpop.eup %7330  ;;  %v1291_v24 = vadd.f32 %v1290_v6, %v1289_v5  ;;  %v7272_v5 = vld [vmem:[%s10950_s7 + $0x10] sm:$0xff]  }
 0x35b   : > { %v1296_v8 = vmul.f32 %v7331_v10, %v7327_v52 }
 0x35c   : > { %v1292_v45 = vrot.slane %v1291_v24, 1 }
 0x35d   : > { %v1298_v16 = vsel %vm1259_vm3, %v1296_v8, 0.0 }
 0x35e   : > { %1299 = vadd.xlane.f32.xlu0 %v1298_v16  ;;  %v1293_v25 = vadd.f32 %v1292_v45, %v1291_v24  ;;  %v1443_v16 = vlaneseq }
 0x360   : > { %7332 = vrcp.f32 %v1293_v25 }
 0x36a   : > { %v7333_v17 = vpop.eup %7332 }
 0x36b   : > { %v1297_v18 = vmul.f32 %v7333_v17, %v7329_v3  ;;  %v7269_v3 = vld [vmem:[%s10948_s5 + $0x8] sm:$0xff]   ;;  %v8151_v17 = vld [vmem:[%s10947_s4 + $0x4] ss:$0 sm:$0xff] }
 0x36d   : > { %v1301_v19 = vsel %vm1259_vm3, %v1297_v18, 0.0 }
 0x36e   : > { %1302 = vadd.xlane.f32.xlu1 %v1301_v19 }
 0x3eb   : > { %v1300_v22 = vpop.xlane.xlu0 %1299 }
 0x3ec   : > { %v1304_v12 = vadd.f32 1e-08, %v1300_v22 }
 0x3ee   : > { %7334 = vrcp.f32 %v1304_v12  ;;  %v8153_v12 = vshrl.u32 %v1443_v16, 7 }
 0x3f8   : > { %v7335_v26 = vpop.eup %7334 }
 0x3f9   : > { %v1308_v30 = vmul.f32 %v7335_v26, %v1296_v8  ;;  %v7637_v8 = vmov 1966171168  }
 0x3fa   : > { %v1441_v45 = vunpack.c.l.s4 %v7637_v8 }
 0x3fb   : > { %v1303_v31 = vpop.xlane.xlu1 %1302  ;;  %v1310_v32 = vpack.c.bf16 %v1308_v30, %v1308_v30  ;;  %v8158_v30 = vld [vmem:[%s10947_s4 + $0x5] ss:$0 sm:$0xff] }
 0x3fc   : > { %v1305_v0 = vadd.f32 1e-08, %v1303_v31  ;;  %v1442_v22 = vunpack.c.0.s8 %v1441_v45 }
 0x3fd   : > { %6905 = vmatmul.mubr.msk.bf16.vlgmr.msra.gmra.mrb[20].mxu0 %vm1312_vm4, %v1310_v32 }
 0x3fe   : > { %7336 = vrcp.f32 %v1305_v0  ;;  %6924 = vmatprep.mubr.msk.bf16.mxu0 %vm7636_vm2, %v7635_v54  ;;  %6921 = vmatpush3.bf16.msra.mxu0 %v7268_v2  ;;  %v8162_v0 = vsub.s32 %v1442_v22, %v8153_v12 }
 0x3ff   : > { %6922 = vmatprep.subr.bf16.mxu0 %v7635_v54 }
 0x402   : > { %6923 = vmatpush3.bf16.msra.mxu0 %v7269_v3 }
 0x403   : > { %6940 = vmatprep.subr.bf16.mxu0 %v7635_v54 }
 0x408   : > { %v7337_v34 = vpop.eup %7336 }
 0x409   : > { %v1309_v38 = vmul.f32 %v7337_v34, %v1297_v18 }
 0x40b   : > { %v1311_v39 = vpack.c.bf16 %v1309_v38, %v1309_v38 }
 0x40d   : > { %6917 = vmatmul.mubr.msk.bf16.vlgmr.msra.gmra.mrb[20].mxu1 %vm1312_vm4, %v1311_v39 }
 0x40e   : > { %6936 = vmatprep.mubr.msk.bf16.mxu1 %vm7636_vm2, %v7635_v54  ;;  %6929 = vmatpush3.bf16.msra.mxu1 %v7270_v4 }
 0x40f   : > { %6930 = vmatprep.subr.bf16.mxu1 %v7635_v54 }
 0x412   : > { %6931 = vmatpush3.bf16.msra.mxu1 %v7271_v35 }
 0x413   : > { %6932 = vmatprep.subr.bf16.mxu1 %v7635_v54 }
 0x416   : > { %6933 = vmatpush3.bf16.msra.mxu1 %v7272_v5 }
 0x417   : > { %6934 = vmatprep.subr.bf16.mxu1 %v7635_v54 }
 0x4d0   : > { %v8116_v40 = vpop.f32.mrb[20].mxu0 }
 0x4d1   : > { %v6906_v41 = vpop.f32.mrb[21].mxu0  ;;  %v1399_v42 = vsel %vm1127_vm1, %v8116_v40, 0.0 }
 0x4d2   : > { %1400 = vadd.xlane.f32.xlu0 %v1399_v42  ;;  %v1353_v43 = vpop.f32.mrb[22].mxu0 }
 0x4d3   : > { %v6907_v36 = vpop.f32.mrb[23].mxu0 }
 0x4e0   : > { %v8120_v48 = vpop.f32.mrb[20].mxu1 }
 0x4e1   : > { %v6918_v1 = vpop.f32.mrb[21].mxu1  ;;  %v1402_v11 = vsel %vm1127_vm1, %v8120_v48, 0.0 }
 0x4e2   : > { %1403 = vadd.xlane.f32.xlu1 %v1402_v11  ;;  %v1396_v28 = vpop.f32.mrb[22].mxu1 }
 0x4e3   : > { %v6919_v29 = vpop.f32.mrb[23].mxu1 }
 0x55f   : > { %v1401_v52 = vpop.xlane.xlu0 %1400 }
 0x560   : > { %v1405_v53 = vmul.f32 0.03125, %v1401_v52 }
 0x562   : > { %v1407_v44 = vsub.f32 %v8116_v40, %v1405_v53 }
 0x564   : > { %v1409_v56 = vmul.f32 %v1407_v44, %v1407_v44 }
 0x566   : > { %v1411_v9 = vsel %vm1127_vm1, %v1409_v56, 0.0 }
 0x567   : > { %1412 = vadd.xlane.f32.xlu0 %v1411_v9 }
 0x56f   : > { %v1404_v58 = vpop.xlane.xlu1 %1403 }
 0x570   : > { %v1406_v59 = vmul.f32 0.03125, %v1404_v58 }
 0x572   : > { %v1408_v60 = vsub.f32 %v8120_v48, %v1406_v59 }
 0x574   : > { %v1410_v37 = vmul.f32 %v1408_v60, %v1408_v60 }
 0x576   : > { %v1414_v63 = vsel %vm1127_vm1, %v1410_v37, 0.0 }
 0x577   : > { %1415 = vadd.xlane.f32.xlu1 %v1414_v63 }
 0x5f4   : > { %v1413_v6 = vpop.xlane.xlu0 %1412 }
 0x5f5   : > { %v1417_v10 = vmul.f32 0.03125, %v1413_v6 }
 0x5f7   : > { %v1419_v24 = vadd.f32 1e-05, %v1417_v10 }
 0x5f9   : > { %7338 = vrsqrt.f32 %v1419_v24 }
 0x603   : > { %v7339_v25 = vpop.eup %7338 }
 0x604   : > { %v1423_v18 = vmul.f32 %v7339_v25, %v1407_v44  ;;  %v1416_v19 = vpop.xlane.xlu1 %1415 }
 0x605   : > { %v1418_v26 = vmul.f32 0.03125, %v1416_v19 }
 0x606   : > { %v1429_v31 = vmul.f32 %v8151_v17, %v1423_v18 }
 0x607   : > { %v1420_v32 = vadd.f32 1e-05, %v1418_v26 }
 0x608   : > { %v1435_v34 = vadd.f32 %v8158_v30, %v1429_v31 }
 0x609   : > { %7340 = vrsqrt.f32 %v1420_v32  ;;  %v7273_v32 = vld [vmem:[%s10950_s7 + $0x18] sm:$0xff]  }
 0x60a   : > { %v1446_v38 = vrot.slane %v1435_v34, %v8162_v0  ;;  %v1439_v42 = vcombine.high %v1435_v34, %v1435_v34  ;;  %6935 = vmatpush3.bf16.msra.mxu1 %v7273_v32  ;;  %v8203_v34 = vld [vmem:[%s10949_s6] ss:$0 sm:$0xff] }
 0x60b   : > { %6952 = vmatprep.subr.bf16.mxu1 %v7635_v54 }
 0x60c   : > { %v1454_v39 = vcombine.high %v1446_v38, %v1446_v38  ;;  %v1461_v11 = vrot.slane %v1446_v38, %v8162_v0  ;;  %v1453_v28 = vrot.slane %v1439_v42, %v8162_v0 }
 0x60e   : > { %v1475_v36 = vrot.slane %v1454_v39, %v8162_v0  ;;  %v1468_v9 = vrot.slane %v1453_v28, %v8162_v0 }
 0x610   : > { %v1517_v52 = vcombine.low %v1461_v11, %v1475_v36  ;;  %v6505_v56 = vcombine.high %v1461_v11, %v1475_v36 }
 0x612   : > { %v1527_v37 = vrot.slane %v1517_v52, %v8162_v0  ;;  %v1534_v4 = vrot.slane %v6505_v56, %v8162_v0 }
 0x613   : > { %v7341_v41 = vpop.eup %7340 }
 0x614   : > { %v1424_v43 = vmul.f32 %v7341_v41, %v1408_v60  ;;  %v1549_v8 = vcombine.low %v1527_v37, %v1534_v4 }
 0x616   : > { %v1430_v1 = vmul.f32 %v8151_v17, %v1424_v43  ;;  %v1557_v18 = vrot.slane %v1549_v8, %v8162_v0 }
 0x618   : > { %v1436_v29 = vadd.f32 %v8158_v30, %v1430_v1 }
 0x61a   : > { %v1478_v53 = vcombine.high %v1436_v29, %v1436_v29  ;;  %v1485_v44 = vrot.slane %v1436_v29, %v8162_v0  ;;  %v8221_v29 = vld [vmem:[%s10951_s8] ss:$0 sm:$0xff] }
 0x61c   : > { %v1492_v58 = vrot.slane %v1478_v53, %v8162_v0  ;;  %v1493_v59 = vcombine.high %v1485_v44, %v1485_v44  ;;  %v1500_v60 = vrot.slane %v1485_v44, %v8162_v0 }
 0x61e   : > { %v1515_v63 = vcombine.high %v1500_v60, %v1500_v60  ;;  %v1514_v2 = vrot.slane %v1493_v59, %v8162_v0  ;;  %v1519_v3 = vcombine.low %v1468_v9, %v1500_v60  ;;  %v1507_v35 = vrot.slane %v1492_v58, %v8162_v0 }
 0x620   : > { %v1516_v5 = vcombine.high %v1514_v2, %v1514_v2  ;;  %v1520_v6 = vcombine.low %v1514_v2, %v1515_v63  ;;  %v1541_v10 = vrot.slane %v1519_v3, %v8162_v0 }
 0x622   : > { %v1548_v24 = vrot.slane %v1520_v6, %v8162_v0  ;;  %v1566_v45 = vcombine.low %v1516_v5, %v1507_v35 }
 0x624   : > { %v1550_v16 = vcombine.low %v1541_v10, %v1548_v24  ;;  %v1573_v25 = vrot.slane %v1566_v45, %v8162_v0 }
 0x626   : > { %v1564_v19 = vrot.slane %v1550_v16, %v8162_v0  ;;  %v1580_v26 = vrot.slane %v1573_v25, %v8162_v0 }
 0x628   : > { %v1565_v22 = vcombine.low %v1557_v18, %v1564_v19 }
 0x62a   : > { %v1583_v31 = vpack.c.bf16 %v1580_v26, %v1565_v22 }
 0x62c   : > { %6925 = vmatmul.mubr.msk.bf16.vlgmr.msra.gmra.mrb[24].mxu0 %vm602_vm0, %v1583_v31 }
 0x62d   : > { %6941 = vmatpush3.bf16.xpose.msra.mxu0 %v8018_v33  ;;  %6948 = vmatprep.mubr.msk.bf16.mxu0 %vm7636_vm2, %v7635_v54 }
 0x62e   : > { %6942 = vmatprep.subr.bf16.mxu0 %v7635_v54 }
 0x635   : > { %6943 = vmatpush3.bf16.xpose.msra.mxu0 %v8027_v51 }
 0x636   : > { %6944 = vmatprep.subr.bf16.mxu0 %v7635_v54 }
 0x63d   : > { %6945 = vmatpush3.bf16.xpose.msra.mxu0 %v8036_v61 }
 0x63e   : > { %6946 = vmatprep.subr.bf16.mxu0 %v7635_v54 }
 0x645   : > { %6947 = vmatpush3.bf16.xpose.msra.mxu0 %v8062_v47 }
 0x646   : > { %6964 = vmatprep.subr.bf16.mxu0 %v7635_v54 }
 0x6ff   : > { %v1644_v38 = vpop.f32.mrb[24].mxu0 }
 0x700   : > { %v1645_v39 = vadd.f32 %v8203_v34, %v1644_v38  ;;  %v6926_v41 = vpop.f32.mrb[25].mxu0 }
 0x701   : > { %v1647_v42 = vpop.f32.mrb[26].mxu0 }
 0x702   : > { %v1648_v43 = vadd.f32 %v8203_v34, %v1647_v42  ;;  %v6927_v36 = vpop.f32.mrb[27].mxu0  ;;  %v1651_v1 = vmax.f32 %v1645_v39, 0.0 }
 0x704   : > { %v1652_v11 = vmax.f32 %v1648_v43, 0.0 }
 0x706   : > { %v1653_v28 = vpack.c.bf16 %v1652_v11, %v1651_v1 }
 0x708   : > { %6937 = vmatmul.mubr.msk.bf16.vlgmr.msra.gmra.mrb[24].mxu1 %vm1312_vm4, %v1653_v28 }
 0x709   : > { %6953 = vmatpush3.bf16.xpose.msra.mxu1 %v8039_v62  ;;  %6960 = vmatprep.mubr.msk.bf16.mxu1 %vm7636_vm2, %v7635_v54 }
 0x70a   : > { %6954 = vmatprep.subr.bf16.mxu1 %v7635_v54 }
 0x711   : > { %6955 = vmatpush3.bf16.xpose.msra.mxu1 %v8065_v15 }
 0x712   : > { %6956 = vmatprep.subr.bf16.mxu1 %v7635_v54 }
 0x719   : > { %6957 = vmatpush3.bf16.xpose.msra.mxu1 %v8073_v20 }
 0x71a   : > { %6958 = vmatprep.subr.bf16.mxu1 %v7635_v54 }
 0x721   : > { %6959 = vmatpush3.bf16.xpose.msra.mxu1 %v8085_v49 }
 0x722   : > { %6976 = vmatprep.subr.bf16.mxu1 %v7635_v54 }
 0x7db   : > { %v1730_v52 = vpop.f32.mrb[24].mxu1 }
 0x7dc   : > { %v1731_v53 = vadd.f32 %v8221_v29, %v1730_v52  ;;  %v6938_v44 = vpop.f32.mrb[25].mxu1 }
 0x7dd   : > { %v1733_v56 = vpop.f32.mrb[26].mxu1 }
 0x7de   : > { %v1739_v9 = vcombine.high %v1731_v53, %v1731_v53  ;;  %v1746_v58 = vrot.slane %v1731_v53, %v8162_v0  ;;  %v1734_v59 = vadd.f32 %v8221_v29, %v1733_v56  ;;  %v6939_v60 = vpop.f32.mrb[27].mxu1 }
 0x7e0   : > { %v1753_v37 = vrot.slane %v1739_v9, %v8162_v0  ;;  %v1754_v63 = vcombine.high %v1746_v58, %v1746_v58  ;;  %v1794_v2 = vrot.slane %v1734_v59, %v8162_v0  ;;  %v1762_v3 = vrot.slane %v1746_v58, %v8162_v0 }
 0x7e2   : > { %v1755_v4 = vcombine.high %v1753_v37, %v1753_v37  ;;  %v1769_v35 = vrot.slane %v1753_v37, %v8162_v0  ;;  %v1776_v5 = vrot.slane %v1754_v63, %v8162_v0  ;;  %v1795_v6 = vcombine.high %v1794_v2, %v1794_v2 }
 0x7e3   : > { %v1802_v16 = vrot.slane %v1794_v2, %v8162_v0 }
 0x7e4   : > { %v1783_v10 = vrot.slane %v1755_v4, %v8162_v0  ;;  %v1785_v24 = vcombine.high %v1769_v35, %v1769_v35  ;;  %v1810_v8 = vcombine.low %v1762_v3, %v1776_v5  ;;  %v6516_v45 = vcombine.high %v1762_v3, %v1776_v5 }
 0x7e5   : > { %v1809_v25 = vrot.slane %v1795_v6, %v8162_v0  ;;  %v1832_v18 = vrot.slane %v1769_v35, %v8162_v0 }
 0x7e6   : > { %v1818_v19 = vrot.slane %v1810_v8, %v8162_v0  ;;  %v1825_v22 = vrot.slane %v6516_v45, %v8162_v0  ;;  %v1849_v26 = vcombine.low %v1783_v10, %v1785_v24  ;;  %v1787_v31 = vcombine.high %v1783_v10, %v1783_v10 }
 0x7e7   : > { %v1847_v39 = vrot.slane %v1832_v18, %v8162_v0  ;;  %v1871_v36 = vrot.slane %v1809_v25, %v8162_v0 }
 0x7e8   : > { %v1850_v32 = vcombine.low %v1787_v31, %v1802_v16  ;;  %v1833_v38 = vcombine.low %v1818_v19, %v1825_v22  ;;  %v1857_v43 = vrot.slane %v1849_v26, %v8162_v0 }
 0x7e9   : > { %v1886_v53 = vrot.slane %v1871_v36, %v8162_v0 }
 0x7ea   : > { %v1864_v41 = vrot.slane %v1850_v32, %v8162_v0  ;;  %v1840_v42 = vrot.slane %v1833_v38, %v8162_v0 }
 0x7ec   : > { %v1848_v1 = vcombine.low %v1840_v42, %v1847_v39  ;;  %v1872_v11 = vcombine.low %v1857_v43, %v1864_v41 }
 0x7ee   : > { %v1890_v28 = vadd.f32 %v1848_v1, %v8116_v40  ;;  %v1879_v52 = vrot.slane %v1872_v11, %v8162_v0 }
 0x7f0   : > { %v1892_v44 = vsel %vm1127_vm1, %v1890_v28, 0.0  ;;  %v1887_v56 = vcombine.low %v1879_v52, %v1886_v53 }
 0x7f1   : > { %1893 = vadd.xlane.f32.xlu0 %v1892_v44 }
 0x7f2   : > { %v1891_v9 = vadd.f32 %v1887_v56, %v8120_v48 }
 0x7f4   : > { %v1895_v58 = vsel %vm1127_vm1, %v1891_v9, 0.0 }
 0x7f5   : > { %1896 = vadd.xlane.f32.xlu1 %v1895_v58 }
 0x87e   : > { %v1894_v59 = vpop.xlane.xlu0 %1893 }
 0x87f   : > { %v1898_v60 = vmul.f32 0.03125, %v1894_v59 }
 0x881   : > { %v1900_v37 = vsub.f32 %v1890_v28, %v1898_v60 }
 0x882   : > { %v1897_v63 = vpop.xlane.xlu1 %1896 }
 0x883   : > { %v1899_v2 = vmul.f32 0.03125, %v1897_v63  ;;  %v1902_v3 = vmul.f32 %v1900_v37, %v1900_v37 }
 0x885   : > { %v1901_v40 = vsub.f32 %v1891_v9, %v1899_v2  ;;  %v1904_v4 = vsel %vm1127_vm1, %v1902_v3, 0.0 }
 0x886   : > { %1905 = vadd.xlane.f32.xlu0 %v1904_v4 }
 0x887   : > { %v1903_v35 = vmul.f32 %v1901_v40, %v1901_v40 }
 0x889   : > { %v1907_v5 = vsel %vm1127_vm1, %v1903_v35, 0.0 }
 0x88a   : > { %1908 = vadd.xlane.f32.xlu1 %v1907_v5 }
 0x913   : > { %v1906_v6 = vpop.xlane.xlu0 %1905 }
 0x914   : > { %v1910_v10 = vmul.f32 0.03125, %v1906_v6 }
 0x916   : > { %v1912_v48 = vadd.f32 1e-05, %v1910_v10 }
 0x917   : > { %v1909_v24 = vpop.xlane.xlu1 %1908 }
 0x918   : > { %7342 = vrsqrt.f32 %v1912_v48  ;;  %v1911_v8 = vmul.f32 0.03125, %v1909_v24 }
 0x91a   : > { %v1913_v45 = vadd.f32 1e-05, %v1911_v8 }
 0x91c   : > { %7344 = vrsqrt.f32 %v1913_v45 }
 0x922   : > { %v7343_v16 = vpop.eup %7342 }
 0x923   : > { %v1916_v25 = vmul.f32 %v7343_v16, %v1900_v37 }
 0x925   : > { %v1918_v18 = vmul.f32 %v8049_v13, %v1916_v25 }
 0x926   : > { %v7345_v19 = vpop.eup %7344 }
 0x927   : > { %v1917_v22 = vmul.f32 %v7345_v19, %v1901_v40  ;;  %v1920_v26 = vadd.f32 %v8059_v21, %v1918_v18 }
 0x929   : > { %v1922_v31 = vpack.c.bf16 %v1920_v26, %v1920_v26  ;;  %v1919_v32 = vmul.f32 %v8049_v13, %v1917_v22 }
 0x92b   : > { %6949 = vmatmul.mubr.msk.bf16.vlgmr.msra.gmra.mrb[28].mxu0 %vm602_vm0, %v1922_v31  ;;  %v1921_v38 = vadd.f32 %v8059_v21, %v1919_v32 }
 0x92c   : > { %6965 = vmatpush3.bf16.msra.mxu0 %v8015_v55  ;;  %6972 = vmatprep.mubr.msk.bf16.mxu0 %vm7636_vm2, %v7635_v54 }
 0x92d   : > { %6966 = vmatprep.subr.bf16.mxu0 %v7635_v54  ;;  %v1923_v39 = vpack.c.bf16 %v1921_v38, %v1921_v38 }
 0x92f   : > { %6961 = vmatmul.mubr.msk.bf16.vlgmr.msra.gmra.mrb[28].mxu1 %vm602_vm0, %v1923_v39 }
 0x930   : > { %6967 = vmatpush3.bf16.msra.mxu0 %v8013_v27  ;;  %6977 = vmatpush3.bf16.msra.mxu1 %v8033_v23 }
 0x931   : > { %6968 = vmatprep.subr.bf16.mxu0 %v7635_v54  ;;  %6978 = vmatprep.subr.bf16.mxu1 %v7635_v54 }
 0x932   : > { %6984 = vmatprep.mubr.msk.bf16.mxu1 %vm7636_vm2, %v7635_v54 }
 0x934   : > { %6969 = vmatpush3.bf16.msra.mxu0 %v8024_v50  ;;  %6979 = vmatpush3.bf16.msra.mxu1 %v8031_v57 }
 0x935   : > { %6970 = vmatprep.subr.bf16.mxu0 %v7635_v54  ;;  %6980 = vmatprep.subr.bf16.mxu1 %v7635_v54 }
 0x938   : > { %6971 = vmatpush3.bf16.msra.mxu0 %v8022_v46  ;;  %6981 = vmatpush3.bf16.msra.mxu1 %v8054_v14 }
 0x939   : > { %6982 = vmatprep.subr.bf16.mxu1 %v7635_v54  ;;  %6988 = vmatprep.subr.bf16.mxu0 %v7635_v54 }
 0x93c   : > { %6983 = vmatpush3.bf16.msra.mxu1 %v8051_v7 }
 0x93d   : > { %7008 = vmatprep.subr.bf16.mxu1 %v7635_v54 }
 0x9fe   : > { %v1961_v13 = vpop.f32.mrb[28].mxu0 }
 0x9ff   : > { %v2010_v21 = vsel %vm1259_vm3, %v1961_v13, -inf  ;;  %v6950_v41 = vpop.f32.mrb[29].mxu0 }
 0xa00   : > { %v2011_v42 = vrot.slane %v2010_v21, 4  ;;  %v1964_v43 = vpop.f32.mrb[30].mxu0 }
 0xa01   : > { %v6951_v36 = vpop.f32.mrb[31].mxu0 }
 0xa02   : > { %v2012_v1 = vmax.f32 %v2010_v21, %v2011_v42  ;;  %v2004_v11 = vpop.f32.mrb[28].mxu1 }
 0xa03   : > { %v2017_v28 = vsel %vm1259_vm3, %v2004_v11, -inf  ;;  %v6962_v52 = vpop.f32.mrb[29].mxu1 }
 0xa04   : > { %v2013_v53 = vrot.slane %v2012_v1, 2  ;;  %v2018_v44 = vrot.slane %v2017_v28, 4  ;;  %v2007_v56 = vpop.f32.mrb[30].mxu1 }
 0xa05   : > { %v6963_v9 = vpop.f32.mrb[31].mxu1 }
 0xa06   : > { %v2014_v58 = vmax.f32 %v2012_v1, %v2013_v53  ;;  %v2019_v59 = vmax.f32 %v2017_v28, %v2018_v44 }
 0xa08   : > { %v2015_v60 = vrot.slane %v2014_v58, 1  ;;  %v2020_v37 = vrot.slane %v2019_v59, 2 }
 0xa0a   : > { %v2016_v63 = vmax.f32 %v2014_v58, %v2015_v60  ;;  %v2021_v2 = vmax.f32 %v2019_v59, %v2020_v37 }
 0xa0c   : > { %v2024_v3 = vsub.f32 %v1961_v13, %v2016_v63  ;;  %v2022_v40 = vrot.slane %v2021_v2, 1 }
 0xa0e   : > { %v2026_v4 = vmul.f32 1.442695, %v2024_v3  ;;  %v2023_v35 = vmax.f32 %v2021_v2, %v2022_v40 }
 0xa10   : > { %7346 = vpow2.f32 %v2026_v4  ;;  %v2025_v5 = vsub.f32 %v2004_v11, %v2023_v35 }
 0xa12   : > { %v2028_v6 = vmul.f32 1.442695, %v2025_v5 }
 0xa14   : > { %7348 = vpow2.f32 %v2028_v6 }
 0xa1a   : > { %v7347_v10 = vpop.eup %7346 }
 0xa1b   : > { %v2030_v48 = vsel %vm1259_vm3, %v7347_v10, 0.0 }
 0xa1c   : > { %v2031_v24 = vrot.slane %v2030_v48, 4 }
 0xa1e   : > { %v7349_v8 = vpop.eup %7348  ;;  %v2032_v45 = vadd.f32 %v2031_v24, %v2030_v48 }
 0xa1f   : > { %v2037_v16 = vsel %vm1259_vm3, %v7349_v8, 0.0 }
 0xa20   : > { %v2033_v25 = vrot.slane %v2032_v45, 2  ;;  %v2038_v18 = vrot.slane %v2037_v16, 4 }
 0xa22   : > { %v2039_v19 = vadd.f32 %v2038_v18, %v2037_v16  ;;  %v2034_v22 = vadd.f32 %v2033_v25, %v2032_v45  ;;  %v7274_v18 = vld [vmem:[%s10948_s5] sm:$0xff]  }
 0xa24   : > { %v2040_v26 = vrot.slane %v2039_v19, 2  ;;  %v2035_v31 = vrot.slane %v2034_v22, 1 }
 0xa26   : > { %v2036_v32 = vadd.f32 %v2035_v31, %v2034_v22  ;;  %v2041_v38 = vadd.f32 %v2040_v26, %v2039_v19  ;;  %v7275_v19 = vld [vmem:[%s10948_s5 + $0x8] sm:$0xff]  }
 0xa28   : > { %7350 = vrcp.f32 %v2036_v32  ;;  %v2042_v39 = vrot.slane %v2041_v38, 1 }
 0xa2a   : > { %v2043_v13 = vadd.f32 %v2042_v39, %v2041_v38 }
 0xa2c   : > { %7352 = vrcp.f32 %v2043_v13 }
 0xa32   : > { %v7351_v21 = vpop.eup %7350 }
 0xa33   : > { %v2046_v41 = vmul.f32 %v7351_v21, %v7347_v10 }
 0xa35   : > { %v2048_v42 = vsel %vm1259_vm3, %v2046_v41, 0.0 }
 0xa36   : > { %v7353_v43 = vpop.eup %7352  ;;  %2049 = vadd.xlane.f32.xlu0 %v2048_v42 }
 0xa37   : > { %v2047_v36 = vmul.f32 %v7353_v43, %v7349_v8 }
 0xa39   : > { %v2051_v1 = vsel %vm1259_vm3, %v2047_v36, 0.0 }
 0xa3a   : > { %2052 = vadd.xlane.f32.xlu1 %v2051_v1 }
 0xac3   : > { %v2050_v11 = vpop.xlane.xlu0 %2049 }
 0xac4   : > { %v2054_v28 = vadd.f32 1e-08, %v2050_v11 }
 0xac6   : > { %7354 = vrcp.f32 %v2054_v28 }
 0xac7   : > { %v2053_v52 = vpop.xlane.xlu1 %2052 }
 0xac8   : > { %v2055_v53 = vadd.f32 1e-08, %v2053_v52 }
 0xaca   : > { %7356 = vrcp.f32 %v2055_v53 }
 0xad0   : > { %v7355_v44 = vpop.eup %7354 }
 0xad1   : > { %v2058_v56 = vmul.f32 %v7355_v44, %v2046_v41 }
 0xad3   : > { %v2060_v9 = vpack.c.bf16 %v2058_v56, %v2058_v56 }
 0xad4   : > { %v7357_v58 = vpop.eup %7356 }
 0xad5   : > { %6973 = vmatmul.mubr.msk.bf16.vlgmr.msra.gmra.mrb[32].mxu0 %vm1312_vm4, %v2060_v9  ;;  %v2059_v59 = vmul.f32 %v7357_v58, %v2047_v36 }
 0xad6   : > { %6992 = vmatprep.mubr.msk.bf16.mxu0 %vm7636_vm2, %v7635_v54  ;;  %6989 = vmatpush3.bf16.msra.mxu0 %v7274_v18 }
 0xad7   : > { %v2061_v60 = vpack.c.bf16 %v2059_v59, %v2059_v59  ;;  %6990 = vmatprep.subr.bf16.mxu0 %v7635_v54 }
 0xad9   : > { %6985 = vmatmul.mubr.msk.bf16.vlgmr.msra.gmra.mrb[32].mxu1 %vm1312_vm4, %v2061_v60 }
 0xada   : > { %7009 = vmatpush3.bf16.xpose.msra.mxu1 %v8018_v33  ;;  %7016 = vmatprep.mubr.msk.bf16.mxu1 %vm7636_vm2, %v7635_v54 }
 0xadb   : > { %7010 = vmatprep.subr.bf16.mxu1 %v7635_v54  ;;  %6991 = vmatpush3.bf16.msra.mxu0 %v7275_v19 }
 0xadc   : > { %6996 = vmatprep.subr.bf16.mxu0 %v7635_v54 }
 0xae2   : > { %7011 = vmatpush3.bf16.xpose.msra.mxu1 %v8027_v51 }
 0xae3   : > { %7012 = vmatprep.subr.bf16.mxu1 %v7635_v54 }
 0xaea   : > { %7013 = vmatpush3.bf16.xpose.msra.mxu1 %v8036_v61 }
 0xaeb   : > { %7014 = vmatprep.subr.bf16.mxu1 %v7635_v54 }
 0xaf2   : > { %7015 = vmatpush3.bf16.xpose.msra.mxu1 %v8062_v47 }
 0xaf3   : > { %7032 = vmatprep.subr.bf16.mxu1 %v7635_v54 }
 0xba8   : > { %v8296_v37 = vpop.f32.mrb[32].mxu0 }
 0xba9   : > { %v6974_v33 = vpop.f32.mrb[33].mxu0  ;;  %v2148_v63 = vsel %vm1127_vm1, %v8296_v37, 0.0 }
 0xbaa   : > { %2149 = vadd.xlane.f32.xlu0 %v2148_v63  ;;  %v2102_v2 = vpop.f32.mrb[34].mxu0 }
 0xbab   : > { %v6975_v3 = vpop.f32.mrb[35].mxu0 }
 0xbac   : > { %v8300_v51 = vpop.f32.mrb[32].mxu1 }
 0xbad   : > { %v6986_v40 = vpop.f32.mrb[33].mxu1  ;;  %v2151_v61 = vsel %vm1127_vm1, %v8300_v51, 0.0 }
 0xbae   : > { %2152 = vadd.xlane.f32.xlu1 %v2151_v61  ;;  %v2145_v4 = vpop.f32.mrb[34].mxu1 }
 0xbaf   : > { %v6987_v47 = vpop.f32.mrb[35].mxu1 }
 0xc37   : > { %v2150_v35 = vpop.xlane.xlu0 %2149 }
 0xc38   : > { %v2154_v5 = vmul.f32 0.03125, %v2150_v35 }
 0xc3a   : > { %v2156_v6 = vsub.f32 %v8296_v37, %v2154_v5 }
 0xc3b   : > { %v2153_v10 = vpop.xlane.xlu1 %2152 }
 0xc3c   : > { %v2155_v48 = vmul.f32 0.03125, %v2153_v10  ;;  %v2158_v24 = vmul.f32 %v2156_v6, %v2156_v6 }
 0xc3e   : > { %v2157_v8 = vsub.f32 %v8300_v51, %v2155_v48  ;;  %v2160_v45 = vsel %vm1127_vm1, %v2158_v24, 0.0 }
 0xc3f   : > { %2161 = vadd.xlane.f32.xlu0 %v2160_v45 }
 0xc40   : > { %v2159_v16 = vmul.f32 %v2157_v8, %v2157_v8 }
 0xc42   : > { %v2163_v25 = vsel %vm1127_vm1, %v2159_v16, 0.0 }
 0xc43   : > { %2164 = vadd.xlane.f32.xlu1 %v2163_v25 }
 0xccc   : > { %v2162_v22 = vpop.xlane.xlu0 %2161 }
 0xccd   : > { %v2166_v26 = vmul.f32 0.03125, %v2162_v22 }
 0xccf   : > { %v2168_v31 = vadd.f32 1e-05, %v2166_v26  ;;  %v7276_v26 = vld [vmem:[%s10950_s7] sm:$0xff]  }
 0xcd0   : > { %v2165_v32 = vpop.xlane.xlu1 %2164 }
 0xcd1   : > { %7358 = vrsqrt.f32 %v2168_v31  ;;  %v2167_v38 = vmul.f32 0.03125, %v2165_v32  ;;  %v7277_v32 = vld [vmem:[%s10950_s7 + $0x8] sm:$0xff]  }
 0xcd3   : > { %v2169_v39 = vadd.f32 1e-05, %v2167_v38  ;;  %v7278_v38 = vld [vmem:[%s10950_s7 + $0x10] sm:$0xff]  }
 0xcd5   : > { %7360 = vrsqrt.f32 %v2169_v39  ;;  %v7279_v39 = vld [vmem:[%s10950_s7 + $0x18] sm:$0xff]  }
 0xcdb   : > { %v7359_v13 = vpop.eup %7358 }
 0xcdc   : > { %v2172_v21 = vmul.f32 %v7359_v13, %v2156_v6 }
 0xcde   : > { %v2174_v41 = vmul.f32 %v8151_v17, %v2172_v21 }
 0xcdf   : > { %v7361_v42 = vpop.eup %7360 }
 0xce0   : > { %v2176_v43 = vadd.f32 %v8158_v30, %v2174_v41  ;;  %v2173_v36 = vmul.f32 %v7361_v42, %v2157_v8 }
 0xce2   : > { %v2180_v1 = vcombine.high %v2176_v43, %v2176_v43  ;;  %v2187_v11 = vrot.slane %v2176_v43, %v8162_v0  ;;  %v2175_v28 = vmul.f32 %v8151_v17, %v2173_v36 }
 0xce4   : > { %v2194_v52 = vrot.slane %v2180_v1, %v8162_v0  ;;  %v2195_v53 = vcombine.high %v2187_v11, %v2187_v11  ;;  %v2177_v44 = vadd.f32 %v8158_v30, %v2175_v28  ;;  %v2202_v56 = vrot.slane %v2187_v11, %v8162_v0 }
 0xce6   : > { %v2216_v9 = vrot.slane %v2195_v53, %v8162_v0  ;;  %v2219_v58 = vcombine.high %v2177_v44, %v2177_v44  ;;  %v2226_v59 = vrot.slane %v2177_v44, %v8162_v0  ;;  %v2209_v60 = vrot.slane %v2194_v52, %v8162_v0 }
 0xce8   : > { %v2233_v33 = vrot.slane %v2219_v58, %v8162_v0  ;;  %v2234_v63 = vcombine.high %v2226_v59, %v2226_v59  ;;  %v2241_v2 = vrot.slane %v2226_v59, %v8162_v0  ;;  %v2258_v17 = vcombine.low %v2202_v56, %v2216_v9 }
 0xce9   : > { %v6521_v3 = vcombine.high %v2202_v56, %v2216_v9 }
 0xcea   : > { %v2256_v40 = vcombine.high %v2241_v2, %v2241_v2  ;;  %v2255_v61 = vrot.slane %v2234_v63, %v8162_v0  ;;  %v2260_v30 = vcombine.low %v2209_v60, %v2241_v2  ;;  %v2268_v4 = vrot.slane %v2258_v17, %v8162_v0 }
 0xceb   : > { %v2275_v47 = vrot.slane %v6521_v3, %v8162_v0  ;;  %v2248_v35 = vrot.slane %v2233_v33, %v8162_v0 }
 0xcec   : > { %v2257_v5 = vcombine.high %v2255_v61, %v2255_v61  ;;  %v2261_v6 = vcombine.low %v2255_v61, %v2256_v40  ;;  %v2282_v10 = vrot.slane %v2260_v30, %v8162_v0 }
 0xced   : > { %v2290_v24 = vcombine.low %v2268_v4, %v2275_v47 }
 0xcee   : > { %v2289_v48 = vrot.slane %v2261_v6, %v8162_v0  ;;  %v2307_v8 = vcombine.low %v2257_v5, %v2248_v35 }
 0xcef   : > { %v2298_v25 = vrot.slane %v2290_v24, %v8162_v0 }
 0xcf0   : > { %v2291_v45 = vcombine.low %v2282_v10, %v2289_v48  ;;  %v2314_v16 = vrot.slane %v2307_v8, %v8162_v0 }
 0xcf2   : > { %v2305_v18 = vrot.slane %v2291_v45, %v8162_v0  ;;  %v2321_v22 = vrot.slane %v2314_v16, %v8162_v0 }
 0xcf4   : > { %v2306_v19 = vcombine.low %v2298_v25, %v2305_v18 }
 0xcf6   : > { %v2324_v31 = vpack.c.bf16 %v2321_v22, %v2306_v19 }
 0xcf8   : > { %6993 = vmatmul.mubr.msk.bf16.vlgmr.msra.gmra.mrb[36].mxu0 %vm602_vm0, %v2324_v31 }
 0xcf9   : > { %6997 = vmatpush3.bf16.msra.mxu0 %v7276_v26  ;;  %7004 = vmatprep.mubr.msk.bf16.mxu0 %vm7636_vm2, %v7635_v54 }
 0xcfa   : > { %6998 = vmatprep.subr.bf16.mxu0 %v7635_v54 }
 0xcfd   : > { %6999 = vmatpush3.bf16.msra.mxu0 %v7277_v32 }
 0xcfe   : > { %7000 = vmatprep.subr.bf16.mxu0 %v7635_v54 }
 0xd01   : > { %7001 = vmatpush3.bf16.msra.mxu0 %v7278_v38 }
 0xd02   : > { %7002 = vmatprep.subr.bf16.mxu0 %v7635_v54 }
 0xd05   : > { %7003 = vmatpush3.bf16.msra.mxu0 %v7279_v39 }
 0xd06   : > { %7020 = vmatprep.subr.bf16.mxu0 %v7635_v54 }
 0xdcb   : > { %v2385_v13 = vpop.f32.mrb[36].mxu0 }
 0xdcc   : > { %v2386_v21 = vadd.f32 %v8203_v34, %v2385_v13  ;;  %v6994_v41 = vpop.f32.mrb[37].mxu0 }
 0xdcd   : > { %v2388_v42 = vpop.f32.mrb[38].mxu0 }
 0xdce   : > { %v2389_v43 = vadd.f32 %v8203_v34, %v2388_v42  ;;  %v6995_v36 = vpop.f32.mrb[39].mxu0  ;;  %v2392_v1 = vmax.f32 %v2386_v21, 0.0 }
 0xdd0   : > { %v2393_v11 = vmax.f32 %v2389_v43, 0.0 }
 0xdd2   : > { %v2394_v28 = vpack.c.bf16 %v2393_v11, %v2392_v1 }
 0xdd4   : > { %7005 = vmatmul.mubr.msk.bf16.vlgmr.msra.gmra.mrb[40].mxu0 %vm1312_vm4, %v2394_v28 }
 0xdd5   : > { %7021 = vmatpush3.bf16.xpose.msra.mxu0 %v8039_v62  ;;  %7028 = vmatprep.mubr.msk.bf16.mxu0 %vm7636_vm2, %v7635_v54 }
 0xdd6   : > { %7022 = vmatprep.subr.bf16.mxu0 %v7635_v54 }
 0xddd   : > { %7023 = vmatpush3.bf16.xpose.msra.mxu0 %v8065_v15 }
 0xdde   : > { %7024 = vmatprep.subr.bf16.mxu0 %v7635_v54 }
 0xde5   : > { %7025 = vmatpush3.bf16.xpose.msra.mxu0 %v8073_v20 }
 0xde6   : > { %7026 = vmatprep.subr.bf16.mxu0 %v7635_v54 }
 0xded   : > { %7027 = vmatpush3.bf16.xpose.msra.mxu0 %v8085_v49 }
 0xdee   : > { %7044 = vmatprep.subr.bf16.mxu0 %v7635_v54 }
 0xea7   : > { %v2471_v34 = vpop.f32.mrb[40].mxu0 }
 0xea8   : > { %v2472_v62 = vadd.f32 %v8221_v29, %v2471_v34  ;;  %v7006_v52 = vpop.f32.mrb[41].mxu0 }
 0xea9   : > { %v2474_v53 = vpop.f32.mrb[42].mxu0 }
 0xeaa   : > { %v2480_v44 = vcombine.high %v2472_v62, %v2472_v62  ;;  %v2487_v56 = vrot.slane %v2472_v62, %v8162_v0  ;;  %v2475_v15 = vadd.f32 %v8221_v29, %v2474_v53  ;;  %v7007_v9 = vpop.f32.mrb[43].mxu0 }
 0xeac   : > { %v2494_v58 = vrot.slane %v2480_v44, %v8162_v0  ;;  %v2495_v20 = vcombine.high %v2487_v56, %v2487_v56  ;;  %v2535_v59 = vrot.slane %v2475_v15, %v8162_v0  ;;  %v2503_v49 = vrot.slane %v2487_v56, %v8162_v0 }
 0xeae   : > { %v2496_v60 = vcombine.high %v2494_v58, %v2494_v58  ;;  %v2510_v33 = vrot.slane %v2494_v58, %v8162_v0  ;;  %v2517_v63 = vrot.slane %v2495_v20, %v8162_v0  ;;  %v2536_v2 = vcombine.high %v2535_v59, %v2535_v59  ;;  %v7606_v58 = vld [vmem:[%s10947_s4 + $0x2] ss:$0 sm:$0xff] }
 0xeaf   : > { %v2543_v29 = vrot.slane %v2535_v59, %v8162_v0 }
 0xeb0   : > { %v2524_v17 = vrot.slane %v2496_v60, %v8162_v0  ;;  %v2526_v3 = vcombine.high %v2510_v33, %v2510_v33  ;;  %v2551_v40 = vcombine.low %v2503_v49, %v2517_v63  ;;  %v6532_v61 = vcombine.high %v2503_v49, %v2517_v63  ;;  %v7607_v60 = vld [vmem:[%s10947_s4 + $0x3] ss:$0 sm:$0xff] }
 0xeb1   : > { %v2550_v30 = vrot.slane %v2536_v2, %v8162_v0  ;;  %v2573_v4 = vrot.slane %v2510_v33, %v8162_v0 }
 0xeb2   : > { %v2559_v47 = vrot.slane %v2551_v40, %v8162_v0  ;;  %v2566_v35 = vrot.slane %v6532_v61, %v8162_v0  ;;  %v2590_v5 = vcombine.low %v2524_v17, %v2526_v3  ;;  %v2528_v6 = vcombine.high %v2524_v17, %v2524_v17 }
 0xeb3   : > { %v2588_v24 = vrot.slane %v2573_v4, %v8162_v0  ;;  %v2612_v25 = vrot.slane %v2550_v30, %v8162_v0 }
 0xeb4   : > { %v2591_v10 = vcombine.low %v2528_v6, %v2543_v29  ;;  %v2574_v48 = vcombine.low %v2559_v47, %v2566_v35  ;;  %v2598_v16 = vrot.slane %v2590_v5, %v8162_v0 }
 0xeb5   : > { %v2627_v31 = vrot.slane %v2612_v25, %v8162_v0 }
 0xeb6   : > { %v2605_v8 = vrot.slane %v2591_v10, %v8162_v0  ;;  %v2581_v45 = vrot.slane %v2574_v48, %v8162_v0 }
 0xeb8   : > { %v2589_v18 = vcombine.low %v2581_v45, %v2588_v24  ;;  %v2613_v19 = vcombine.low %v2598_v16, %v2605_v8 }
 0xeba   : > { %v2631_v22 = vadd.f32 %v2589_v18, %v8296_v37  ;;  %v2620_v26 = vrot.slane %v2613_v19, %v8162_v0 }
 0xebc   : > { %v2633_v32 = vsel %vm1127_vm1, %v2631_v22, 0.0  ;;  %v2628_v38 = vcombine.low %v2620_v26, %v2627_v31 }
 0xebd   : > { %2634 = vadd.xlane.f32.xlu0 %v2633_v32 }
 0xebe   : > { %v2632_v39 = vadd.f32 %v2628_v38, %v8300_v51 }
 0xec0   : > { %v2636_v13 = vsel %vm1127_vm1, %v2632_v39, 0.0 }
 0xec1   : > { %2637 = vadd.xlane.f32.xlu1 %v2636_v13 }
 0xf4a   : > { %v2635_v21 = vpop.xlane.xlu0 %2634 }
 0xf4b   : > { %v2639_v41 = vmul.f32 0.03125, %v2635_v21 }
 0xf4d   : > { %v2641_v42 = vsub.f32 %v2631_v22, %v2639_v41 }
 0xf4e   : > { %v2638_v43 = vpop.xlane.xlu1 %2637 }
 0xf4f   : > { %v2640_v36 = vmul.f32 0.03125, %v2638_v43  ;;  %v2643_v1 = vmul.f32 %v2641_v42, %v2641_v42 }
 0xf51   : > { %v2642_v37 = vsub.f32 %v2632_v39, %v2640_v36  ;;  %v2645_v11 = vsel %vm1127_vm1, %v2643_v1, 0.0 }
 0xf52   : > { %2646 = vadd.xlane.f32.xlu0 %v2645_v11 }
 0xf53   : > { %v2644_v28 = vmul.f32 %v2642_v37, %v2642_v37 }
 0xf55   : > { %v2648_v34 = vsel %vm1127_vm1, %v2644_v28, 0.0 }
 0xf56   : > { %2649 = vadd.xlane.f32.xlu1 %v2648_v34 }
 0xfdf   : > { %v2647_v62 = vpop.xlane.xlu0 %2646 }
 0xfe0   : > { %v2651_v52 = vmul.f32 0.03125, %v2647_v62 }
 0xfe2   : > { %v2653_v51 = vadd.f32 1e-05, %v2651_v52 }
 0xfe3   : > { %v2650_v53 = vpop.xlane.xlu1 %2649 }
 0xfe4   : > { %7362 = vrsqrt.f32 %v2653_v51  ;;  %v2652_v44 = vmul.f32 0.03125, %v2650_v53 }
 0xfe6   : > { %v2654_v56 = vadd.f32 1e-05, %v2652_v44 }
 0xfe8   : > { %7364 = vrsqrt.f32 %v2654_v56 }
 0xfee   : > { %v7363_v15 = vpop.eup %7362 }
 0xfef   : > { %v2657_v9 = vmul.f32 %v7363_v15, %v2641_v42 }
 0xff1   : > { %v2659_v20 = vmul.f32 %v7606_v58, %v2657_v9 }
 0xff2   : > { %v7365_v59 = vpop.eup %7364 }
 0xff3   : > { %v2658_v49 = vmul.f32 %v7365_v59, %v2642_v37  ;;  %v2661_v33 = vadd.f32 %v7607_v60, %v2659_v20 }
 0xff5   : > { %v2663_v63 = vpack.c.bf16 %v2661_v33, %v2661_v33  ;;  %v2660_v2 = vmul.f32 %v7606_v58, %v2658_v49 }
 0xff7   : > { %7017 = vmatmul.mubr.msk.bf16.vlgmr.msra.gmra.mrb[36].mxu1 %vm602_vm0, %v2663_v63  ;;  %v2662_v17 = vadd.f32 %v7607_v60, %v2660_v2 }
 0xff8   : > { %7033 = vmatpush3.bf16.msra.mxu1 %v8015_v55  ;;  %7040 = vmatprep.mubr.msk.bf16.mxu1 %vm7636_vm2, %v7635_v54 }
 0xff9   : > { %7034 = vmatprep.subr.bf16.mxu1 %v7635_v54  ;;  %v2664_v3 = vpack.c.bf16 %v2662_v17, %v2662_v17 }
 0xffb   : > { %7029 = vmatmul.mubr.msk.bf16.vlgmr.msra.gmra.mrb[44].mxu0 %vm602_vm0, %v2664_v3 }
 0xffc   : > { %7035 = vmatpush3.bf16.msra.mxu1 %v8013_v27  ;;  %7045 = vmatpush3.bf16.msra.mxu0 %v8033_v23 }
 0xffd   : > { %7036 = vmatprep.subr.bf16.mxu1 %v7635_v54  ;;  %7046 = vmatprep.subr.bf16.mxu0 %v7635_v54 }
 0xffe   : > { %7052 = vmatprep.mubr.msk.bf16.mxu0 %vm7636_vm2, %v7635_v54 }
0x1000   : > { %7037 = vmatpush3.bf16.msra.mxu1 %v8024_v50  ;;  %7047 = vmatpush3.bf16.msra.mxu0 %v8031_v57 }
0x1001   : > { %7038 = vmatprep.subr.bf16.mxu1 %v7635_v54  ;;  %7048 = vmatprep.subr.bf16.mxu0 %v7635_v54 }
0x1004   : > { %7039 = vmatpush3.bf16.msra.mxu1 %v8022_v46  ;;  %7049 = vmatpush3.bf16.msra.mxu0 %v8054_v14 }
0x1005   : > { %7050 = vmatprep.subr.bf16.mxu0 %v7635_v54  ;;  %7064 = vmatprep.subr.bf16.mxu1 %v7635_v54 }
0x1008   : > { %7051 = vmatpush3.bf16.msra.mxu0 %v8051_v7 }
0x1009   : > { %7056 = vmatprep.subr.bf16.mxu0 %v7635_v54 }
0x10ca   : > { %v2702_v27 = vpop.f32.mrb[36].mxu1 }
0x10cb   : > { %v2751_v55 = vsel %vm1259_vm3, %v2702_v27, -inf  ;;  %v7018_v50 = vpop.f32.mrb[37].mxu1 }
0x10cc   : > { %v2752_v57 = vrot.slane %v2751_v55, 4  ;;  %v2705_v23 = vpop.f32.mrb[38].mxu1 }
0x10cd   : > { %v7019_v40 = vpop.f32.mrb[39].mxu1 }
0x10ce   : > { %v2753_v61 = vmax.f32 %v2751_v55, %v2752_v57  ;;  %v2745_v29 = vpop.f32.mrb[44].mxu0 }
0x10cf   : > { %v2758_v46 = vsel %vm1259_vm3, %v2745_v29, -inf  ;;  %v7030_v14 = vpop.f32.mrb[45].mxu0 }
0x10d0   : > { %v2754_v30 = vrot.slane %v2753_v61, 2  ;;  %v2759_v4 = vrot.slane %v2758_v46, 4  ;;  %v2748_v47 = vpop.f32.mrb[46].mxu0 }
0x10d1   : > { %v7031_v35 = vpop.f32.mrb[47].mxu0 }
0x10d2   : > { %v2755_v5 = vmax.f32 %v2753_v61, %v2754_v30  ;;  %v2760_v7 = vmax.f32 %v2758_v46, %v2759_v4 }
0x10d4   : > { %v2756_v6 = vrot.slane %v2755_v5, 1  ;;  %v2761_v10 = vrot.slane %v2760_v7, 2 }
0x10d6   : > { %v2757_v48 = vmax.f32 %v2755_v5, %v2756_v6  ;;  %v2762_v24 = vmax.f32 %v2760_v7, %v2761_v10 }
0x10d8   : > { %v2765_v8 = vsub.f32 %v2702_v27, %v2757_v48  ;;  %v2763_v45 = vrot.slane %v2762_v24, 1 }
0x10da   : > { %v2767_v16 = vmul.f32 1.442695, %v2765_v8  ;;  %v2764_v25 = vmax.f32 %v2762_v24, %v2763_v45  ;;  %v7280_v24 = vld [vmem:[%s10948_s5] sm:$0xff]   ;;  %v7281_v8 = vld [vmem:[%s10948_s5 + $0x8] sm:$0xff]  }
0x10db   : > { %v7282_v45 = vld [vmem:[%s10950_s7] sm:$0xff]  }
0x10dc   : > { %7366 = vpow2.f32 %v2767_v16  ;;  %v2766_v18 = vsub.f32 %v2745_v29, %v2764_v25  ;;  %v7283_v16 = vld [vmem:[%s10950_s7 + $0x8] sm:$0xff]  }
0x10de   : > { %v2769_v19 = vmul.f32 1.442695, %v2766_v18 }
0x10e0   : > { %7368 = vpow2.f32 %v2769_v19 }
0x10e6   : > { %v7367_v22 = vpop.eup %7366 }
0x10e7   : > { %v2771_v26 = vsel %vm1259_vm3, %v7367_v22, 0.0 }
0x10e8   : > { %v2772_v31 = vrot.slane %v2771_v26, 4 }
0x10ea   : > { %v7369_v32 = vpop.eup %7368  ;;  %v2773_v38 = vadd.f32 %v2772_v31, %v2771_v26 }
0x10eb   : > { %v2778_v39 = vsel %vm1259_vm3, %v7369_v32, 0.0 }
0x10ec   : > { %v2774_v13 = vrot.slane %v2773_v38, 2  ;;  %v2779_v21 = vrot.slane %v2778_v39, 4 }
0x10ee   : > { %v2775_v41 = vadd.f32 %v2774_v13, %v2773_v38  ;;  %v2780_v42 = vadd.f32 %v2779_v21, %v2778_v39  ;;  %v7608_v39 = vld [vmem:[%s10947_s4 + $0x4] ss:$0 sm:$0xff] }
0x10f0   : > { %v2781_v43 = vrot.slane %v2780_v42, 2  ;;  %v2776_v36 = vrot.slane %v2775_v41, 1 }
0x10f2   : > { %v2782_v1 = vadd.f32 %v2781_v43, %v2780_v42  ;;  %v2777_v37 = vadd.f32 %v2776_v36, %v2775_v41  ;;  %v7609_v41 = vld [vmem:[%s10947_s4 + $0x5] ss:$0 sm:$0xff] }
0x10f4   : > { %7370 = vrcp.f32 %v2777_v37  ;;  %v2783_v11 = vrot.slane %v2782_v1, 1 }
0x10f6   : > { %v2784_v28 = vadd.f32 %v2783_v11, %v2782_v1 }
0x10f8   : > { %7372 = vrcp.f32 %v2784_v28 }
0x10fe   : > { %v7371_v34 = vpop.eup %7370 }
0x10ff   : > { %v2787_v62 = vmul.f32 %v7371_v34, %v7367_v22 }
0x1101   : > { %v2789_v52 = vsel %vm1259_vm3, %v2787_v62, 0.0  ;;  %v3378_v51 = vsel %vm1312_vm4, %v2787_v62, 0.0 }
0x1102   : > { %v7373_v53 = vpop.eup %7372  ;;  %3380 = vst [vmem:[%s573_s20] sm:$0x1f] %v3378_v51  ;;  %2790 = vadd.xlane.f32.xlu0 %v2789_v52 }
0x1103   : > { %v2788_v44 = vmul.f32 %v7373_v53, %v7369_v32 }
0x1105   : > { %v2792_v56 = vsel %vm1259_vm3, %v2788_v44, 0.0  ;;  %v3379_v15 = vsel %vm1312_vm4, %v2788_v44, 0.0 }
0x1106   : > { %3381 = vst [vmem:[%s573_s20 + $0x8] sm:$0x1f] %v3379_v15  ;;  %2793 = vadd.xlane.f32.xlu1 %v2792_v56 }
0x118f   : > { %v2791_v9 = vpop.xlane.xlu0 %2790 }
0x1190   : > { %v2795_v58 = vadd.f32 1e-08, %v2791_v9 }
0x1192   : > { %7374 = vrcp.f32 %v2795_v58 }
0x1193   : > { %v2794_v20 = vpop.xlane.xlu1 %2793 }
0x1194   : > { %v2796_v59 = vadd.f32 1e-08, %v2794_v20 }
0x1196   : > { %7376 = vrcp.f32 %v2796_v59 }
0x119c   : > { %v7375_v49 = vpop.eup %7374 }
0x119d   : > { %v2799_v60 = vmul.f32 %v7375_v49, %v2787_v62 }
0x119f   : > { %v2801_v33 = vpack.c.bf16 %v2799_v60, %v2799_v60 }
0x11a0   : > { %v7377_v63 = vpop.eup %7376 }
0x11a1   : > { %7041 = vmatmul.mubr.msk.bf16.vlgmr.msra.gmra.mrb[40].mxu1 %vm1312_vm4, %v2801_v33  ;;  %v2800_v2 = vmul.f32 %v7377_v63, %v2788_v44 }
0x11a2   : > { %7072 = vmatprep.mubr.msk.bf16.mxu1 %vm7636_vm2, %v7635_v54  ;;  %7065 = vmatpush3.bf16.msra.mxu1 %v7282_v45 }
0x11a3   : > { %v2802_v17 = vpack.c.bf16 %v2800_v2, %v2800_v2  ;;  %7066 = vmatprep.subr.bf16.mxu1 %v7635_v54 }
0x11a5   : > { %7053 = vmatmul.mubr.msk.bf16.vlgmr.msra.gmra.mrb[48].mxu0 %vm1312_vm4, %v2802_v17 }
0x11a6   : > { %7060 = vmatprep.mubr.msk.bf16.mxu0 %vm7636_vm2, %v7635_v54  ;;  %7057 = vmatpush3.bf16.msra.mxu0 %v7280_v24 }
0x11a7   : > { %7058 = vmatprep.subr.bf16.mxu0 %v7635_v54  ;;  %7067 = vmatpush3.bf16.msra.mxu1 %v7283_v16 }
0x11a8   : > { %7068 = vmatprep.subr.bf16.mxu1 %v7635_v54 }
0x11aa   : > { %7059 = vmatpush3.bf16.msra.mxu0 %v7281_v8 }
0x1274   : > { %v8445_v3 = vpop.f32.mrb[40].mxu1 }
0x1275   : > { %v7042_v27 = vpop.f32.mrb[41].mxu1  ;;  %v2889_v55 = vsel %vm1127_vm1, %v8445_v3, 0.0 }
0x1276   : > { %2890 = vadd.xlane.f32.xlu0 %v2889_v55  ;;  %v2843_v50 = vpop.f32.mrb[42].mxu1 }
0x1277   : > { %v7043_v57 = vpop.f32.mrb[43].mxu1 }
0x1278   : > { %v8449_v23 = vpop.f32.mrb[48].mxu0 }
0x1279   : > { %v7054_v40 = vpop.f32.mrb[49].mxu0  ;;  %v2892_v61 = vsel %vm1127_vm1, %v8449_v23, 0.0 }
0x127a   : > { %2893 = vadd.xlane.f32.xlu1 %v2892_v61  ;;  %v2886_v29 = vpop.f32.mrb[50].mxu0 }
0x127b   : > { %v7055_v46 = vpop.f32.mrb[51].mxu0 }
0x1303   : > { %v2891_v14 = vpop.xlane.xlu0 %2890 }
0x1304   : > { %v2895_v30 = vmul.f32 0.03125, %v2891_v14 }
0x1306   : > { %v2897_v4 = vsub.f32 %v8445_v3, %v2895_v30 }
0x1307   : > { %v2894_v47 = vpop.xlane.xlu1 %2893 }
0x1308   : > { %v2896_v35 = vmul.f32 0.03125, %v2894_v47  ;;  %v2899_v5 = vmul.f32 %v2897_v4, %v2897_v4 }
0x130a   : > { %v2898_v7 = vsub.f32 %v8449_v23, %v2896_v35  ;;  %v2901_v6 = vsel %vm1127_vm1, %v2899_v5, 0.0  ;;  %v7284_v35 = vld [vmem:[%s10950_s7 + $0x10] sm:$0xff]   ;;  %v7285_v5 = vld [vmem:[%s10950_s7 + $0x18] sm:$0xff]  }
0x130b   : > { %2902 = vadd.xlane.f32.xlu0 %v2901_v6  ;;  %7069 = vmatpush3.bf16.msra.mxu1 %v7284_v35 }
0x130c   : > { %v2900_v10 = vmul.f32 %v2898_v7, %v2898_v7  ;;  %7070 = vmatprep.subr.bf16.mxu1 %v7635_v54  ;;  %v7286_v54 = vld [vmem:[%s10953_s10] sm:$0xff]  }
0x130d   : > { %7076 = vmatprep.subr.bf16.mxu0 %v7286_v54 }
0x130e   : > { %v2904_v48 = vsel %vm1127_vm1, %v2900_v10, 0.0 }
0x130f   : > { %2905 = vadd.xlane.f32.xlu1 %v2904_v48  ;;  %7071 = vmatpush3.bf16.msra.mxu1 %v7285_v5 }
0x1398   : > { %v2903_v25 = vpop.xlane.xlu0 %2902 }
0x1399   : > { %v2907_v18 = vmul.f32 0.03125, %v2903_v25 }
0x139b   : > { %v2909_v19 = vadd.f32 1e-05, %v2907_v18 }
0x139c   : > { %v2906_v22 = vpop.xlane.xlu1 %2905 }
0x139d   : > { %7378 = vrsqrt.f32 %v2909_v19  ;;  %v2908_v26 = vmul.f32 0.03125, %v2906_v22  ;;  %v7287_v19 = vld [vmem:[%s10953_s10 + $0x8] sm:$0xff]   ;;  %v6542_v22 = vld [vmem:[%s10951_s8] ss:$0 sm:$0xff] }
0x139f   : > { %v2910_v31 = vadd.f32 1e-05, %v2908_v26 }
0x13a1   : > { %7380 = vrsqrt.f32 %v2910_v31 }
0x13a7   : > { %v7379_v32 = vpop.eup %7378 }
0x13a8   : > { %v2913_v38 = vmul.f32 %v7379_v32, %v2897_v4 }
0x13aa   : > { %v2915_v13 = vmul.f32 %v7608_v39, %v2913_v38 }
0x13ab   : > { %v7381_v21 = vpop.eup %7380 }
0x13ac   : > { %v2917_v42 = vadd.f32 %v7609_v41, %v2915_v13  ;;  %v2914_v43 = vmul.f32 %v7381_v21, %v2898_v7  ;;  %v6538_v7 = vld [vmem:[%s10949_s6] ss:$0 sm:$0xff] }
0x13ae   : > { %v2921_v36 = vcombine.high %v2917_v42, %v2917_v42  ;;  %v2928_v1 = vrot.slane %v2917_v42, %v8162_v0  ;;  %v2916_v37 = vmul.f32 %v7608_v39, %v2914_v43 }
0x13b0   : > { %v2935_v11 = vrot.slane %v2921_v36, %v8162_v0  ;;  %v2936_v28 = vcombine.high %v2928_v1, %v2928_v1  ;;  %v2918_v34 = vadd.f32 %v7609_v41, %v2916_v37  ;;  %v2943_v62 = vrot.slane %v2928_v1, %v8162_v0 }
0x13b2   : > { %v2957_v52 = vrot.slane %v2936_v28, %v8162_v0  ;;  %v2960_v51 = vcombine.high %v2918_v34, %v2918_v34  ;;  %v2967_v53 = vrot.slane %v2918_v34, %v8162_v0  ;;  %v2950_v44 = vrot.slane %v2935_v11, %v8162_v0 }
0x13b4   : > { %v2974_v56 = vrot.slane %v2960_v51, %v8162_v0  ;;  %v2975_v15 = vcombine.high %v2967_v53, %v2967_v53  ;;  %v2982_v9 = vrot.slane %v2967_v53, %v8162_v0  ;;  %v2999_v58 = vcombine.low %v2943_v62, %v2957_v52 }
0x13b5   : > { %v6537_v20 = vcombine.high %v2943_v62, %v2957_v52 }
0x13b6   : > { %v2997_v59 = vcombine.high %v2982_v9, %v2982_v9  ;;  %v2996_v49 = vrot.slane %v2975_v15, %v8162_v0  ;;  %v3001_v60 = vcombine.low %v2950_v44, %v2982_v9  ;;  %v3009_v33 = vrot.slane %v2999_v58, %v8162_v0 }
0x13b7   : > { %v3016_v63 = vrot.slane %v6537_v20, %v8162_v0  ;;  %v2989_v2 = vrot.slane %v2974_v56, %v8162_v0 }
0x13b8   : > { %v2998_v17 = vcombine.high %v2996_v49, %v2996_v49  ;;  %v3002_v27 = vcombine.low %v2996_v49, %v2997_v59  ;;  %v3023_v55 = vrot.slane %v3001_v60, %v8162_v0 }
0x13b9   : > { %v3031_v57 = vcombine.low %v3009_v33, %v3016_v63 }
0x13ba   : > { %v3030_v50 = vrot.slane %v3002_v27, %v8162_v0  ;;  %v3048_v40 = vcombine.low %v2998_v17, %v2989_v2 }
0x13bb   : > { %v3039_v46 = vrot.slane %v3031_v57, %v8162_v0 }
0x13bc   : > { %v3032_v61 = vcombine.low %v3023_v55, %v3030_v50  ;;  %v3055_v29 = vrot.slane %v3048_v40, %v8162_v0 }
0x13be   : > { %v3046_v14 = vrot.slane %v3032_v61, %v8162_v0  ;;  %v3062_v4 = vrot.slane %v3055_v29, %v8162_v0 }
0x13c0   : > { %v3047_v30 = vcombine.low %v3039_v46, %v3046_v14  ;;  %v8545_v14 = vsub.s32 0, %v8153_v12 }
0x13c2   : > { %v3065_v47 = vpack.c.bf16 %v3062_v4, %v3047_v30 }
0x13c4   : > { %7061 = vmatmul.mubr.msk.bf16.vlgmr.msra.gmra.mrb[52].mxu0 %vm602_vm0, %v3065_v47 }
0x13c5   : > { %7077 = vmatpush3.bf16.msra.mxu0 %v7286_v54  ;;  %v8579_v54 = vld [vmem:[%s10952_s9 + $0x20] sm:$0xff] }
0x13c6   : > { %7078 = vmatprep.subr.bf16.mxu0 %v7287_v19 }
0x13c9   : > { %7079 = vmatpush3.bf16.msra.mxu0 %v7287_v19  ;;  %v8584_v19 = vld [vmem:[%s10952_s9 + $0x28] sm:$0xff] }
0x1497   : > { %v3126_v6 = vpop.f32.mrb[52].mxu0 }
0x1498   : > { %v3127_v10 = vadd.f32 %v6538_v7, %v3126_v6  ;;  %v7062_v48 = vpop.f32.mrb[53].mxu0 }
0x1499   : > { %v3129_v24 = vpop.f32.mrb[54].mxu0  ;;  %v8560_v48 = vld [vmem:[%s10952_s9 + $0x8] sm:$0xff] }
0x149a   : > { %v3130_v8 = vadd.f32 %v6538_v7, %v3129_v24  ;;  %v7063_v45 = vpop.f32.mrb[55].mxu0  ;;  %v3133_v16 = vmax.f32 %v3127_v10, 0.0  ;;  %v8553_v7 = vld [vmem:[%s10952_s9] sm:$0xff]  ;;  %v8570_v24 = vld [vmem:[%s10952_s9 + $0x18] sm:$0xff] }
0x149c   : > { %v3134_v25 = vmax.f32 %v3130_v8, 0.0 }
0x149e   : > { %v3135_v18 = vpack.c.bf16 %v3134_v25, %v3133_v16 }
0x14a0   : > { %7073 = vmatmul.mubr.msk.bf16.vlgmr.msra.gmra.mrb[44].mxu1 %vm1312_vm4, %v3135_v18 }
0x1573   : > { %v3212_v26 = vpop.f32.mrb[44].mxu1 }
0x1574   : > { %v3213_v31 = vadd.f32 %v6542_v22, %v3212_v26  ;;  %v7074_v32 = vpop.f32.mrb[45].mxu1 }
0x1575   : > { %v3215_v38 = vpop.f32.mrb[46].mxu1 }
0x1576   : > { %v3221_v39 = vcombine.high %v3213_v31, %v3213_v31  ;;  %v3228_v13 = vrot.slane %v3213_v31, %v8162_v0  ;;  %v3216_v21 = vadd.f32 %v6542_v22, %v3215_v38  ;;  %v7075_v41 = vpop.f32.mrb[47].mxu1 }
0x1578   : > { %v3235_v42 = vrot.slane %v3221_v39, %v8162_v0  ;;  %v3236_v43 = vcombine.high %v3228_v13, %v3228_v13  ;;  %v3276_v36 = vrot.slane %v3216_v21, %v8162_v0  ;;  %v3244_v1 = vrot.slane %v3228_v13, %v8162_v0 }
0x157a   : > { %v3237_v37 = vcombine.high %v3235_v42, %v3235_v42  ;;  %v3251_v11 = vrot.slane %v3235_v42, %v8162_v0  ;;  %v3258_v28 = vrot.slane %v3236_v43, %v8162_v0  ;;  %v3277_v34 = vcombine.high %v3276_v36, %v3276_v36 }
0x157b   : > { %v3284_v56 = vrot.slane %v3276_v36, %v8162_v0 }
0x157c   : > { %v3265_v62 = vrot.slane %v3237_v37, %v8162_v0  ;;  %v3267_v52 = vcombine.high %v3251_v11, %v3251_v11  ;;  %v3292_v51 = vcombine.low %v3244_v1, %v3258_v28  ;;  %v6548_v53 = vcombine.high %v3244_v1, %v3258_v28 }
0x157d   : > { %v3314_v44 = vrot.slane %v3251_v11, %v8162_v0  ;;  %v3291_v15 = vrot.slane %v3277_v34, %v8162_v0 }
0x157e   : > { %v3300_v9 = vrot.slane %v3292_v51, %v8162_v0  ;;  %v3307_v58 = vrot.slane %v6548_v53, %v8162_v0  ;;  %v3331_v20 = vcombine.low %v3265_v62, %v3267_v52  ;;  %v3269_v59 = vcombine.high %v3265_v62, %v3265_v62  ;;  %v8612_v51 = vld [vmem:[%s10952_s9 + $0x30] sm:$0xff]  ;;  %v8617_v53 = vld [vmem:[%s10952_s9 + $0x38] sm:$0xff] }
0x157f   : > { %v3329_v33 = vrot.slane %v3314_v44, %v8162_v0  ;;  %v3353_v27 = vrot.slane %v3291_v15, %v8162_v0 }
0x1580   : > { %v3315_v49 = vcombine.low %v3300_v9, %v3307_v58  ;;  %v3332_v60 = vcombine.low %v3269_v59, %v3284_v56  ;;  %v3339_v2 = vrot.slane %v3331_v20, %v8162_v0 }
0x1581   : > { %v3368_v61 = vrot.slane %v3353_v27, %v8162_v0 }
0x1582   : > { %v3322_v63 = vrot.slane %v3315_v49, %v8162_v0  ;;  %v3346_v17 = vrot.slane %v3332_v60, %v8162_v0 }
0x1584   : > { %v3330_v55 = vcombine.low %v3322_v63, %v3329_v33  ;;  %v3354_v50 = vcombine.low %v3339_v2, %v3346_v17 }
0x1586   : > { %v3372_v57 = vadd.f32 %v3330_v55, %v8445_v3  ;;  %v3361_v40 = vrot.slane %v3354_v50, %v8162_v0 }
0x1588   : > { %v3374_v29 = vsel %vm602_vm0, %v3372_v57, 0.0  ;;  %v3399_v46 = vrot.slane %v3372_v57, %v8162_v0  ;;  %v3369_v30 = vcombine.low %v3361_v40, %v3368_v61  ;;  %v3392_v4 = vcombine.high %v3372_v57, %v3372_v57 }
0x1589   : > { %3376 = vst [vmem:[%s567_s0] sm:$0x1f] %v3374_v29 }
0x158a   : > { %v3414_v47 = vrot.slane %v3399_v46, %v8162_v0  ;;  %v3373_v35 = vadd.f32 %v3369_v30, %v8449_v23  ;;  %v3407_v5 = vcombine.high %v3399_v46, %v3399_v46  ;;  %v8565_v23 = vld [vmem:[%s10952_s9 + $0x10] sm:$0xff]  ;;  %v3406_v8 = vrot.slane %v3392_v4, %v8162_v0 }
0x158c   : > { %v3473_v3 = vrot.slane %v3414_v47, %v8545_v14  ;;  %v3375_v6 = vsel %vm602_vm0, %v3373_v35, 0.0  ;;  %v3431_v10 = vcombine.high %v3373_v35, %v3373_v35  ;;  %v3438_v12 = vrot.slane %v3373_v35, %v8162_v0 }
0x158d   : > { %3377 = vst [vmem:[%s567_s0 + $0x8] sm:$0x1f] %v3375_v6  ;;  %v8587_v22 = vrot.slane %v3407_v5, %v8162_v0  ;;  %v3429_v34 = vcombine.high %v3414_v47, %v3414_v47  ;;  %v3421_v56 = vrot.slane %v3406_v8, %v8162_v0 }
0x158e   : > { %v3445_v45 = vrot.slane %v3431_v10, %v8162_v0  ;;  %v3446_v16 = vcombine.high %v3438_v12, %v3438_v12  ;;  %v3453_v25 = vrot.slane %v3438_v12, %v8162_v0  ;;  %v3520_v18 = vadd.f32 %v3473_v3, %v8553_v7 }
0x158f   : > { %v3521_v26 = vadd.f32 %v3473_v3, %v8560_v48  ;;  %v3522_v31 = vadd.f32 %v3473_v3, %v8565_v23  ;;  %v3523_v32 = vadd.f32 %v3473_v3, %v8570_v24  ;;  %v3524_v43 = vadd.f32 %v3473_v3, %v8579_v54 }
0x1590   : > { %v3460_v38 = vrot.slane %v3445_v45, %v8162_v0  ;;  %v3467_v39 = vrot.slane %v3446_v16, %v8162_v0  ;;  %v3468_v13 = vcombine.high %v3453_v25, %v3453_v25  ;;  %v3493_v21 = vrot.slane %v3453_v25, %v8545_v14 }
0x1591   : > { %v3600_v41 = vpack.c.bf16 %v3521_v26, %v3520_v18  ;;  %v3601_v42 = vpack.c.bf16 %v3523_v32, %v3522_v31  ;;  %v3525_v36 = vadd.f32 %v3473_v3, %v8584_v19  ;;  %v3477_v62 = vrot.slane %v8587_v22, %v8545_v14 }
0x1592   : > { %v3469_v1 = vcombine.high %v3467_v39, %v3467_v39  ;;  %v8598_v37 = vrot.slane %v3467_v39, %v8545_v14  ;;  %v8601_v11 = vrot.slane %v3468_v13, %v8545_v14  ;;  %v8604_v28 = vrot.slane %v3460_v38, %v8545_v14 }
0x1593   : > { %7080 = vmatprep.mubr.msk.bf16.mxu0 %vm602_vm0, %v3600_v41  ;;  %v3602_v52 = vpack.c.bf16 %v3525_v36, %v3524_v43  ;;  %v3526_v15 = vadd.f32 %v3473_v3, %v8612_v51  ;;  %v3527_v9 = vadd.f32 %v3473_v3, %v8617_v53  ;;  %v8628_v58 = vrot.slane %v3429_v34, %v8545_v14 }
0x1594   : > { %v8620_v44 = vrot.slane %v3469_v1, %v8545_v14  ;;  %7081 = vmatmul.mubr.msk.bf16.vlgmr.msra.gmra.mrb[56].mxu0 %vm602_vm0, %v3601_v42  ;;  %v3528_v20 = vadd.f32 %v3477_v62, %v8553_v7  ;;  %v3529_v59 = vadd.f32 %v3477_v62, %v8560_v48  ;;  %v3530_v49 = vadd.f32 %v3477_v62, %v8565_v23 }
0x1595   : > { %7084 = vmatprep.mubr.msk.bf16.mxu0 %vm602_vm0, %v3602_v52  ;;  %v3531_v60 = vadd.f32 %v3477_v62, %v8570_v24  ;;  %v8635_v33 = vrot.slane %v3421_v56, %v8545_v14  ;;  %v3532_v0 = vadd.f32 %v3477_v62, %v8579_v54  ;;  %v3533_v63 = vadd.f32 %v3477_v62, %v8584_v19 }
0x1596   : > { %v3603_v2 = vpack.c.bf16 %v3527_v9, %v3526_v15  ;;  %v8640_v17 = vadd.f32 %v3477_v62, %v8612_v51  ;;  %v8643_v27 = vadd.f32 %v3477_v62, %v8617_v53  ;;  %v3604_v55 = vpack.c.bf16 %v3529_v59, %v3528_v20  ;;  %v7288_v15 = vld [vmem:[%s10955_s12] sm:$0xff]  }
0x1597   : > { %v8647_v50 = vadd.f32 %v8628_v58, %v8553_v7  ;;  %v8651_v57 = vadd.f32 %v8628_v58, %v8560_v48  ;;  %v3605_v40 = vpack.c.bf16 %v3531_v60, %v3530_v49  ;;  %v3606_v61 = vpack.c.bf16 %v3533_v63, %v3532_v0  ;;  %7160 = vmatprep.subr.bf16.mxu1 %v7288_v15 }
0x1598   : > { %v8657_v29 = vadd.f32 %v8628_v58, %v8565_v23  ;;  %v8661_v46 = vadd.f32 %v8635_v33, %v8565_v23  ;;  %v8665_v30 = vadd.f32 %v8635_v33, %v8570_v24  ;;  %v3607_v4 = vpack.c.bf16 %v8643_v27, %v8640_v17  ;;  %7161 = vmatpush3.bf16.msra.mxu1 %v7288_v15 }
0x1599   : > { %v8671_v47 = vadd.f32 %v8635_v33, %v8579_v54  ;;  %v8675_v35 = vadd.f32 %v8635_v33, %v8584_v19  ;;  %v8679_v5 = vadd.f32 %v8635_v33, %v8612_v51  ;;  %v3608_v3 = vpack.c.bf16 %v8651_v57, %v8647_v50 }
0x159a   : > { %v8687_v10 = vadd.f32 %v8635_v33, %v8617_v53  ;;  %v8690_v12 = vadd.f32 %v3493_v21, %v8553_v7  ;;  %v8695_v45 = vadd.f32 %v3493_v21, %v8560_v48  ;;  %v8698_v16 = vadd.f32 %v3493_v21, %v8565_v23 }
0x159b   : > { %v8701_v25 = vadd.f32 %v3493_v21, %v8570_v24  ;;  %v8706_v26 = vadd.f32 %v3493_v21, %v8579_v54  ;;  %v8709_v31 = vadd.f32 %v3493_v21, %v8584_v19  ;;  %v8712_v32 = vadd.f32 %v3493_v21, %v8612_v51 }
0x159c   : > { %7085 = vmatmul.mubr.msk.bf16.gmra.mrb[60].mxu0 %vm602_vm0, %v3603_v2  ;;  %v8719_v13 = vadd.f32 %v3493_v21, %v8617_v53  ;;  %v8723_v41 = vadd.f32 %v8598_v37, %v8553_v7  ;;  %v8729_v43 = vadd.f32 %v8598_v37, %v8560_v48  ;;  %v8733_v36 = vadd.f32 %v8598_v37, %v8565_v23 }
0x159d   : > { %7088 = vmatprep.mubr.msk.bf16.mxu0 %vm602_vm0, %v3604_v55  ;;  %v8737_v1 = vadd.f32 %v8598_v37, %v8570_v24  ;;  %v8744_v34 = vadd.f32 %v8598_v37, %v8579_v54  ;;  %v8748_v62 = vadd.f32 %v8598_v37, %v8584_v19  ;;  %v8752_v52 = vadd.f32 %v8598_v37, %v8612_v51 }
0x159e   : > { %v8761_v9 = vadd.f32 %v8598_v37, %v8617_v53  ;;  %v8765_v20 = vadd.f32 %v8601_v11, %v8553_v7  ;;  %v8771_v49 = vadd.f32 %v8601_v11, %v8560_v48  ;;  %v8775_v60 = vadd.f32 %v8601_v11, %v8565_v23 }
0x159f   : > { %v8779_v0 = vadd.f32 %v8601_v11, %v8570_v24  ;;  %v8785_v63 = vadd.f32 %v8601_v11, %v8579_v54  ;;  %v8789_v2 = vadd.f32 %v8601_v11, %v8584_v19  ;;  %v8793_v17 = vadd.f32 %v8601_v11, %v8612_v51 }
0x15a0   : > { %v8801_v50 = vadd.f32 %v8601_v11, %v8617_v53  ;;  %v8805_v57 = vadd.f32 %v8620_v44, %v8553_v7  ;;  %v8815_v27 = vadd.f32 %v8620_v44, %v8565_v23  ;;  %v8819_v55 = vadd.f32 %v8620_v44, %v8570_v24 }
0x15a1   : > { %v8825_v37 = vadd.f32 %v8620_v44, %v8579_v54  ;;  %v8833_v59 = vadd.f32 %v8620_v44, %v8612_v51  ;;  %v8841_v11 = vadd.f32 %v8620_v44, %v8617_v53  ;;  %v8845_v21 = vadd.f32 %v8604_v28, %v8553_v7 }
0x15a2   : > { %v8852_v39 = vadd.f32 %v8604_v28, %v8560_v48  ;;  %v8856_v56 = vadd.f32 %v8604_v28, %v8565_v23  ;;  %v8873_v38 = vadd.f32 %v8604_v28, %v8579_v54  ;;  %v8877_v18 = vadd.f32 %v8604_v28, %v8584_v19 }
0x15a3   : > { %11046 = vst [vmem:[#allocation2_spill] sm:$0xff] %v8825_v37  ;;  %11048 = vst [vmem:[#allocation4_spill] sm:$0xff] %v8833_v59  ;;  %v8881_v8 = vadd.f32 %v8604_v28, %v8612_v51  ;;  %v3539_v6 = vadd.f32 %v8628_v58, %v8570_v24  ;;  %v8891_v59 = vadd.f32 %v8604_v28, %v8617_v53 }
0x15a4   : > { %7089 = vmatmul.mubr.msk.bf16.gmra.mrb[64].mxu0 %vm602_vm0, %v3605_v40  ;;  %v8829_v40 = vadd.f32 %v8620_v44, %v8584_v19  ;;  %11049 = vst [vmem:[#allocation5_spill] sm:$0xff] %v8841_v11  ;;  %11050 = vst [vmem:[#allocation6_spill] sm:$0xff] %v8856_v56  ;;  %v3430_v11 = vcombine.high %v8587_v22, %v8587_v22  ;;  %v3540_v37 = vadd.f32 %v8628_v58, %v8579_v54 }
0x15a5   : > { %7092 = vmatprep.mubr.msk.bf16.mxu0 %vm602_vm0, %v3606_v61  ;;  %v8811_v61 = vadd.f32 %v8620_v44, %v8560_v48  ;;  %v8860_v44 = vadd.f32 %v8604_v28, %v8570_v24  ;;  %v3639_v42 = vpack.c.bf16 %v8891_v59, %v8881_v8  ;;  %v3609_v28 = vpack.c.bf16 %v3539_v6, %v8657_v29 }
0x15a6   : > { %11047 = vst [vmem:[#allocation3_spill] sm:$0xff] %v8829_v40  ;;  %v3541_v40 = vadd.f32 %v8628_v58, %v8584_v19  ;;  %v3485_v56 = vrot.slane %v3430_v11, %v8545_v14  ;;  %v3542_v22 = vadd.f32 %v8628_v58, %v8612_v51 }
0x15a7   : > { %11051 = vst [vmem:[#allocation7_spill] sm:$0xff] %v8860_v44 }
0x15a8   : > { %v3610_v44 = vpack.c.bf16 %v3541_v40, %v3540_v37  ;;  %v3545_v8 = vadd.f32 %v3485_v56, %v8560_v48  ;;  %v3546_v14 = vadd.f32 %v3485_v56, %v8565_v23  ;;  %v3547_v6 = vadd.f32 %v3485_v56, %v8570_v24 }
0x15a9   : > { %v3548_v59 = vadd.f32 %v3485_v56, %v8579_v54  ;;  %v3549_v37 = vadd.f32 %v3485_v56, %v8584_v19  ;;  %v3550_v11 = vadd.f32 %v3485_v56, %v8612_v51  ;;  %v3553_v23 = vadd.f32 %v8635_v33, %v8560_v48 }
0x15aa   : > { %v3613_v40 = vpack.c.bf16 %v3547_v6, %v3546_v14  ;;  %v11052_v19 = vpack.c.bf16 %v8665_v30, %v8661_v46  ;;  %v11053_v51 = vpack.c.bf16 %v8675_v35, %v8671_v47  ;;  %v11055_v48 = vpack.c.bf16 %v8695_v45, %v8690_v12  ;;  %v7290_v47 = vld [vmem:[%s10955_s12 + $0x10] sm:$0xff]   ;;  %v7291_v35 = vld [vmem:[%s10955_s12 + $0x18] sm:$0xff]  }
0x15ab   : > { %v11058_v46 = vpack.c.bf16 %v8719_v13, %v8712_v32  ;;  %v11059_v30 = vpack.c.bf16 %v8729_v43, %v8723_v41  ;;  %v11062_v12 = vpack.c.bf16 %v8761_v9, %v8752_v52  ;;  %v11063_v45 = vpack.c.bf16 %v8771_v49, %v8765_v20  ;;  %v11070_v41 = vld [vmem:[#allocation2_spill] sm:$0xff] }
0x15ac   : > { %7093 = vmatmul.mubr.msk.bf16.gmra.mrb[68].mxu0 %vm602_vm0, %v3607_v4  ;;  %v7289_v4 = vld [vmem:[%s10955_s12 + $0x8] sm:$0xff]   ;;  %v11068_v32 = vpack.c.bf16 %v8819_v55, %v8815_v27  ;;  %v9024_v20 = vld [vmem:[%s10954_s11] ss:$0 sm:$0xff] }
0x15ad   : > { %7096 = vmatprep.mubr.msk.bf16.mxu0 %vm602_vm0, %v3608_v3  ;;  %v3638_v3 = vpack.c.bf16 %v8877_v18, %v8873_v38  ;;  %7162 = vmatprep.subr.bf16.mxu1 %v7289_v4  ;;  %v3543_v18 = vadd.f32 %v8628_v58, %v8617_v53  ;;  %v3544_v38 = vadd.f32 %v3485_v56, %v8553_v7  ;;  %v11069_v13 = vld [vmem:[#allocation3_spill] sm:$0xff] }
0x15ae   : > { %7163 = vmatpush3.bf16.msra.mxu1 %v7289_v4  ;;  %v3614_v58 = vpack.c.bf16 %v3549_v37, %v3548_v59  ;;  %v3552_v4 = vadd.f32 %v8635_v33, %v8553_v7  ;;  %v11054_v7 = vpack.c.bf16 %v8687_v10, %v8679_v5  ;;  %v11057_v33 = vpack.c.bf16 %v8709_v31, %v8706_v26  ;;  %v11076_v52 = vld [vmem:[#allocation7_spill] sm:$0xff] }
0x15af   : > { %v3611_v15 = vpack.c.bf16 %v3543_v18, %v3542_v22  ;;  %v3612_v29 = vpack.c.bf16 %v3545_v8, %v3544_v38  ;;  %7164 = vmatprep.subr.bf16.mxu1 %v7290_v47  ;;  %v11060_v5 = vpack.c.bf16 %v8737_v1, %v8733_v36  ;;  %v11061_v10 = vpack.c.bf16 %v8748_v62, %v8744_v34  ;;  %v11072_v36 = vld [vmem:[#allocation5_spill] sm:$0xff]  ;;  %v11073_v1 = vld [vmem:[#allocation4_spill] sm:$0xff] }
0x15b0   : > { %v3616_v54 = vpack.c.bf16 %v3553_v23, %v3552_v4  ;;  %v11066_v26 = vpack.c.bf16 %v8801_v50, %v8793_v17  ;;  %v11067_v31 = vpack.c.bf16 %v8811_v61, %v8805_v57  ;;  %v11071_v43 = vpack.c.bf16 %v11069_v13, %v11070_v41 }
0x15b1   : > { %v11074_v34 = vpack.c.bf16 %v11072_v36, %v11073_v1  ;;  %v11075_v62 = vpack.c.bf16 %v8852_v39, %v8845_v21 }
0x15b2   : > { %7165 = vmatpush3.bf16.msra.mxu1 %v7290_v47 }
0x15b3   : > { %7166 = vmatprep.subr.bf16.mxu1 %v7291_v35 }
0x15b4   : > { %7097 = vmatmul.mubr.msk.bf16.gmra.mrb[72].mxu0 %vm602_vm0, %v3609_v28 }
0x15b5   : > { %7100 = vmatprep.mubr.msk.bf16.mxu0 %vm602_vm0, %v3610_v44  ;;  %v3551_v44 = vadd.f32 %v3485_v56, %v8617_v53  ;;  %v11056_v53 = vpack.c.bf16 %v8701_v25, %v8698_v16  ;;  %v11064_v16 = vpack.c.bf16 %v8779_v0, %v8775_v60  ;;  %v11065_v25 = vpack.c.bf16 %v8789_v2, %v8785_v63  ;;  %v11077_v56 = vld [vmem:[#allocation6_spill] sm:$0xff] }
0x15b6   : > { %7167 = vmatpush3.bf16.msra.mxu1 %v7291_v35  ;;  %v11078_v9 = vpack.c.bf16 %v11076_v52, %v11077_v56 }
0x15b7   : > { %v3615_v24 = vpack.c.bf16 %v3551_v44, %v3550_v11 }
0x15bc   : > { %7101 = vmatmul.mubr.msk.bf16.gmra.mrb[76].mxu0 %vm602_vm0, %v3611_v15 }
0x15bd   : > { %7104 = vmatprep.mubr.msk.bf16.mxu0 %vm602_vm0, %v3612_v29 }
0x15c4   : > { %7105 = vmatmul.mubr.msk.bf16.gmra.mrb[80].mxu0 %vm602_vm0, %v3613_v40 }
0x15c5   : > { %7108 = vmatprep.mubr.msk.bf16.mxu0 %vm602_vm0, %v3614_v58 }
0x15cc   : > { %7109 = vmatmul.mubr.msk.bf16.gmra.mrb[84].mxu0 %vm602_vm0, %v3615_v24 }
0x15cd   : > { %7112 = vmatprep.mubr.msk.bf16.mxu0 %vm602_vm0, %v3616_v54 }
0x15d4   : > { %7113 = vmatmul.mubr.msk.bf16.gmra.mrb[88].mxu0 %vm602_vm0, %v11052_v19 }
0x15d5   : > { %7116 = vmatprep.mubr.msk.bf16.mxu0 %vm602_vm0, %v11053_v51 }
0x15dc   : > { %7117 = vmatmul.mubr.msk.bf16.gmra.mrb[92].mxu0 %vm602_vm0, %v11054_v7 }
0x15dd   : > { %7120 = vmatprep.mubr.msk.bf16.mxu0 %vm602_vm0, %v11055_v48 }
0x15e4   : > { %7121 = vmatmul.mubr.msk.bf16.gmra.mrb[96].mxu0 %vm602_vm0, %v11056_v53 }
0x15e5   : > { %7124 = vmatprep.mubr.msk.bf16.mxu0 %vm602_vm0, %v11057_v33 }
0x15ec   : > { %7125 = vmatmul.mubr.msk.bf16.gmra.mrb[100].mxu0 %vm602_vm0, %v11058_v46 }
0x15ed   : > { %7128 = vmatprep.mubr.msk.bf16.mxu0 %vm602_vm0, %v11059_v30 }
0x15f4   : > { %7129 = vmatmul.mubr.msk.bf16.gmra.mrb[104].mxu0 %vm602_vm0, %v11060_v5 }
0x15f5   : > { %7132 = vmatprep.mubr.msk.bf16.mxu0 %vm602_vm0, %v11061_v10 }
0x15fc   : > { %7133 = vmatmul.mubr.msk.bf16.gmra.mrb[108].mxu0 %vm602_vm0, %v11062_v12 }
0x15fd   : > { %7136 = vmatprep.mubr.msk.bf16.mxu0 %vm602_vm0, %v11063_v45 }
0x1604   : > { %7137 = vmatmul.mubr.msk.bf16.gmra.mrb[112].mxu0 %vm602_vm0, %v11064_v16 }
0x1605   : > { %7140 = vmatprep.mubr.msk.bf16.mxu0 %vm602_vm0, %v11065_v25 }
0x160c   : > { %7141 = vmatmul.mubr.msk.bf16.gmra.mrb[116].mxu0 %vm602_vm0, %v11066_v26 }
0x160d   : > { %7144 = vmatprep.mubr.msk.bf16.mxu0 %vm602_vm0, %v11067_v31 }
0x1614   : > { %7145 = vmatmul.mubr.msk.bf16.gmra.mrb[120].mxu0 %vm602_vm0, %v11068_v32 }
0x1615   : > { %7148 = vmatprep.mubr.msk.bf16.mxu0 %vm602_vm0, %v11071_v43 }
0x161c   : > { %7149 = vmatmul.mubr.msk.bf16.gmra.mrb[124].mxu0 %vm602_vm0, %v11074_v34 }
0x161d   : > { %7152 = vmatprep.mubr.msk.bf16.mxu0 %vm602_vm0, %v11075_v62 }
0x1624   : > { %7153 = vmatmul.mubr.msk.bf16.gmra.mrb[128].mxu0 %vm602_vm0, %v11078_v9 }
0x1625   : > { %7156 = vmatprep.mubr.msk.bf16.mxu0 %vm602_vm0, %v3638_v3 }
0x162c   : > { %7157 = vmatmul.mubr.msk.bf16.gmra.mrb[132].mxu0 %vm602_vm0, %v3639_v42 }
0x1667   : > { %v7082_v49 = vpop.f32.mrb[56].mxu0 }
0x1668   : > { %v3826_v60 = vadd.f32 %v7082_v49, %v9024_v20  ;;  %v3817_v39 = vpop.f32.mrb[57].mxu0 }
0x1669   : > { %v3818_v21 = vadd.f32 %v9024_v20, %v3817_v39  ;;  %v7083_v0 = vpop.f32.mrb[58].mxu0 }
0x166a   : > { %v3829_v63 = vadd.f32 %v7083_v0, %v9024_v20  ;;  %v3820_v2 = vpop.f32.mrb[59].mxu0  ;;  %v4138_v27 = vmax.f32 %v3826_v60, 0.0 }
0x166b   : > { %v3821_v17 = vadd.f32 %v9024_v20, %v3820_v2  ;;  %v4136_v42 = vmax.f32 %v3818_v21, 0.0 }
0x166c   : > { %v4139_v55 = vmax.f32 %v3829_v63, 0.0 }
0x166d   : > { %v4137_v50 = vmax.f32 %v3821_v17, 0.0 }
0x166e   : > { %v4217_v57 = vpack.c.bf16 %v4139_v55, %v4138_v27 }
0x166f   : > { %v4216_v61 = vpack.c.bf16 %v4137_v50, %v4136_v42  ;;  %v7086_v3 = vpop.f32.mrb[60].mxu0 }
0x1670   : > { %v3842_v28 = vadd.f32 %v7086_v3, %v9024_v20  ;;  %v3833_v22 = vpop.f32.mrb[61].mxu0 }
0x1671   : > { %v3834_v18 = vadd.f32 %v9024_v20, %v3833_v22  ;;  %v7087_v38 = vpop.f32.mrb[62].mxu0  ;;  %7168 = vmatprep.mubr.msk.bf16.mxu1 %vm1312_vm4, %v4216_v61 }
0x1672   : > { %v3845_v8 = vadd.f32 %v7087_v38, %v9024_v20  ;;  %v3836_v15 = vpop.f32.mrb[63].mxu0  ;;  %7169 = vmatmul.mubr.msk.bf16.vlgmr.msra.gmra.mrb[48].mxu1 %vm1312_vm4, %v4217_v57  ;;  %v4142_v14 = vmax.f32 %v3842_v28, 0.0 }
0x1673   : > { %v3837_v29 = vadd.f32 %v9024_v20, %v3836_v15  ;;  %v4140_v59 = vmax.f32 %v3834_v18, 0.0 }
0x1674   : > { %v4143_v6 = vmax.f32 %v3845_v8, 0.0 }
0x1675   : > { %v4141_v37 = vmax.f32 %v3837_v29, 0.0 }
0x1676   : > { %v4219_v40 = vpack.c.bf16 %v4143_v6, %v4142_v14 }
0x1677   : > { %v4218_v58 = vpack.c.bf16 %v4141_v37, %v4140_v59  ;;  %v7090_v11 = vpop.f32.mrb[64].mxu0 }
0x1678   : > { %v3858_v44 = vadd.f32 %v7090_v11, %v9024_v20  ;;  %v3849_v4 = vpop.f32.mrb[65].mxu0 }
0x1679   : > { %v3850_v23 = vadd.f32 %v9024_v20, %v3849_v4  ;;  %v7091_v24 = vpop.f32.mrb[66].mxu0  ;;  %7172 = vmatprep.mubr.msk.bf16.mxu1 %vm1312_vm4, %v4218_v58 }
0x167a   : > { %v3861_v54 = vadd.f32 %v7091_v24, %v9024_v20  ;;  %v3852_v19 = vpop.f32.mrb[67].mxu0  ;;  %7173 = vmatmul.mubr.msk.bf16.gmra.mrb[52].mxu1 %vm1312_vm4, %v4219_v40  ;;  %v4146_v7 = vmax.f32 %v3858_v44, 0.0 }
0x167b   : > { %v3853_v51 = vadd.f32 %v9024_v20, %v3852_v19  ;;  %v4144_v53 = vmax.f32 %v3850_v23, 0.0 }
0x167c   : > { %v4147_v48 = vmax.f32 %v3861_v54, 0.0 }
0x167d   : > { %v4145_v33 = vmax.f32 %v3853_v51, 0.0 }
0x167e   : > { %v4221_v46 = vpack.c.bf16 %v4147_v48, %v4146_v7 }
0x167f   : > { %v4220_v30 = vpack.c.bf16 %v4145_v33, %v4144_v53  ;;  %v7094_v47 = vpop.f32.mrb[68].mxu0 }
0x1680   : > { %v3874_v35 = vadd.f32 %v7094_v47, %v9024_v20  ;;  %v3865_v5 = vpop.f32.mrb[69].mxu0 }
0x1681   : > { %v3866_v10 = vadd.f32 %v9024_v20, %v3865_v5  ;;  %v7095_v12 = vpop.f32.mrb[70].mxu0  ;;  %7176 = vmatprep.mubr.msk.bf16.mxu1 %vm1312_vm4, %v4220_v30 }
0x1682   : > { %v3877_v45 = vadd.f32 %v7095_v12, %v9024_v20  ;;  %v3868_v16 = vpop.f32.mrb[71].mxu0  ;;  %7177 = vmatmul.mubr.msk.bf16.gmra.mrb[56].mxu1 %vm1312_vm4, %v4221_v46  ;;  %v4150_v26 = vmax.f32 %v3874_v35, 0.0 }
0x1683   : > { %v3869_v25 = vadd.f32 %v9024_v20, %v3868_v16  ;;  %v4148_v32 = vmax.f32 %v3866_v10, 0.0 }
0x1684   : > { %v4151_v31 = vmax.f32 %v3877_v45, 0.0 }
0x1685   : > { %v4149_v13 = vmax.f32 %v3869_v25, 0.0 }
0x1686   : > { %v4223_v41 = vpack.c.bf16 %v4151_v31, %v4150_v26 }
0x1687   : > { %v4222_v43 = vpack.c.bf16 %v4149_v13, %v4148_v32  ;;  %v7098_v36 = vpop.f32.mrb[72].mxu0 }
0x1688   : > { %v3890_v1 = vadd.f32 %v7098_v36, %v9024_v20  ;;  %v3881_v34 = vpop.f32.mrb[73].mxu0 }
0x1689   : > { %v3882_v62 = vadd.f32 %v9024_v20, %v3881_v34  ;;  %v7099_v52 = vpop.f32.mrb[74].mxu0  ;;  %7180 = vmatprep.mubr.msk.bf16.mxu1 %vm1312_vm4, %v4222_v43 }
0x168a   : > { %v3893_v56 = vadd.f32 %v7099_v52, %v9024_v20  ;;  %v3884_v9 = vpop.f32.mrb[75].mxu0  ;;  %7181 = vmatmul.mubr.msk.bf16.gmra.mrb[60].mxu1 %vm1312_vm4, %v4223_v41  ;;  %v4154_v60 = vmax.f32 %v3890_v1, 0.0 }
0x168b   : > { %v3885_v49 = vadd.f32 %v9024_v20, %v3884_v9  ;;  %v4152_v21 = vmax.f32 %v3882_v62, 0.0 }
0x168c   : > { %v4155_v39 = vmax.f32 %v3893_v56, 0.0 }
0x168d   : > { %v4153_v0 = vmax.f32 %v3885_v49, 0.0 }
0x168e   : > { %v4225_v63 = vpack.c.bf16 %v4155_v39, %v4154_v60 }
0x168f   : > { %v4224_v2 = vpack.c.bf16 %v4153_v0, %v4152_v21  ;;  %v7102_v17 = vpop.f32.mrb[76].mxu0 }
0x1690   : > { %v3906_v27 = vadd.f32 %v7102_v17, %v9024_v20  ;;  %v3897_v55 = vpop.f32.mrb[77].mxu0 }
0x1691   : > { %v3898_v42 = vadd.f32 %v9024_v20, %v3897_v55  ;;  %v7103_v50 = vpop.f32.mrb[78].mxu0  ;;  %7184 = vmatprep.mubr.msk.bf16.mxu1 %vm1312_vm4, %v4224_v2 }
0x1692   : > { %v3909_v57 = vadd.f32 %v7103_v50, %v9024_v20  ;;  %v3900_v61 = vpop.f32.mrb[79].mxu0  ;;  %7185 = vmatmul.mubr.msk.bf16.gmra.mrb[64].mxu1 %vm1312_vm4, %v4225_v63  ;;  %v4158_v28 = vmax.f32 %v3906_v27, 0.0 }
0x1693   : > { %v3901_v3 = vadd.f32 %v9024_v20, %v3900_v61  ;;  %v4156_v18 = vmax.f32 %v3898_v42, 0.0 }
0x1694   : > { %v4159_v22 = vmax.f32 %v3909_v57, 0.0 }
0x1695   : > { %v4157_v38 = vmax.f32 %v3901_v3, 0.0 }
0x1696   : > { %v4227_v8 = vpack.c.bf16 %v4159_v22, %v4158_v28 }
0x1697   : > { %v4226_v15 = vpack.c.bf16 %v4157_v38, %v4156_v18  ;;  %v7106_v29 = vpop.f32.mrb[80].mxu0 }
0x1698   : > { %v3922_v14 = vadd.f32 %v7106_v29, %v9024_v20  ;;  %v3913_v6 = vpop.f32.mrb[81].mxu0 }
0x1699   : > { %v3914_v59 = vadd.f32 %v9024_v20, %v3913_v6  ;;  %v7107_v37 = vpop.f32.mrb[82].mxu0  ;;  %7188 = vmatprep.mubr.msk.bf16.mxu1 %vm1312_vm4, %v4226_v15 }
0x169a   : > { %v3925_v40 = vadd.f32 %v7107_v37, %v9024_v20  ;;  %v3916_v58 = vpop.f32.mrb[83].mxu0  ;;  %7189 = vmatmul.mubr.msk.bf16.gmra.mrb[68].mxu1 %vm1312_vm4, %v4227_v8  ;;  %v4162_v44 = vmax.f32 %v3922_v14, 0.0 }
0x169b   : > { %v3917_v11 = vadd.f32 %v9024_v20, %v3916_v58  ;;  %v4160_v23 = vmax.f32 %v3914_v59, 0.0 }
0x169c   : > { %v4163_v4 = vmax.f32 %v3925_v40, 0.0 }
0x169d   : > { %v4161_v24 = vmax.f32 %v3917_v11, 0.0 }
0x169e   : > { %v4229_v54 = vpack.c.bf16 %v4163_v4, %v4162_v44 }
0x169f   : > { %v4228_v19 = vpack.c.bf16 %v4161_v24, %v4160_v23  ;;  %v7110_v51 = vpop.f32.mrb[84].mxu0 }
0x16a0   : > { %v3938_v7 = vadd.f32 %v7110_v51, %v9024_v20  ;;  %v3929_v48 = vpop.f32.mrb[85].mxu0 }
0x16a1   : > { %v3930_v53 = vadd.f32 %v9024_v20, %v3929_v48  ;;  %v7111_v33 = vpop.f32.mrb[86].mxu0  ;;  %7192 = vmatprep.mubr.msk.bf16.mxu1 %vm1312_vm4, %v4228_v19 }
0x16a2   : > { %v3941_v46 = vadd.f32 %v7111_v33, %v9024_v20  ;;  %v3932_v30 = vpop.f32.mrb[87].mxu0  ;;  %7193 = vmatmul.mubr.msk.bf16.gmra.mrb[72].mxu1 %vm1312_vm4, %v4229_v54  ;;  %v4166_v35 = vmax.f32 %v3938_v7, 0.0 }
0x16a3   : > { %v3933_v47 = vadd.f32 %v9024_v20, %v3932_v30  ;;  %v4164_v10 = vmax.f32 %v3930_v53, 0.0 }
0x16a4   : > { %v4167_v5 = vmax.f32 %v3941_v46, 0.0 }
0x16a5   : > { %v4165_v12 = vmax.f32 %v3933_v47, 0.0 }
0x16a6   : > { %v4231_v45 = vpack.c.bf16 %v4167_v5, %v4166_v35 }
0x16a7   : > { %v4230_v16 = vpack.c.bf16 %v4165_v12, %v4164_v10  ;;  %v7114_v25 = vpop.f32.mrb[88].mxu0 }
0x16a8   : > { %v3954_v26 = vadd.f32 %v7114_v25, %v9024_v20  ;;  %v3945_v31 = vpop.f32.mrb[89].mxu0 }
0x16a9   : > { %v3946_v32 = vadd.f32 %v9024_v20, %v3945_v31  ;;  %v7115_v13 = vpop.f32.mrb[90].mxu0  ;;  %7196 = vmatprep.mubr.msk.bf16.mxu1 %vm1312_vm4, %v4230_v16 }
0x16aa   : > { %v3957_v41 = vadd.f32 %v7115_v13, %v9024_v20  ;;  %v3948_v43 = vpop.f32.mrb[91].mxu0  ;;  %7197 = vmatmul.mubr.msk.bf16.gmra.mrb[76].mxu1 %vm1312_vm4, %v4231_v45  ;;  %v4170_v1 = vmax.f32 %v3954_v26, 0.0 }
0x16ab   : > { %v3949_v36 = vadd.f32 %v9024_v20, %v3948_v43  ;;  %v4168_v62 = vmax.f32 %v3946_v32, 0.0 }
0x16ac   : > { %v4171_v34 = vmax.f32 %v3957_v41, 0.0 }
0x16ad   : > { %v4169_v52 = vmax.f32 %v3949_v36, 0.0 }
0x16ae   : > { %v4233_v56 = vpack.c.bf16 %v4171_v34, %v4170_v1 }
0x16af   : > { %v4232_v9 = vpack.c.bf16 %v4169_v52, %v4168_v62  ;;  %v7118_v49 = vpop.f32.mrb[92].mxu0 }
0x16b0   : > { %v3970_v60 = vadd.f32 %v7118_v49, %v9024_v20  ;;  %v3961_v39 = vpop.f32.mrb[93].mxu0 }
0x16b1   : > { %v3962_v21 = vadd.f32 %v9024_v20, %v3961_v39  ;;  %v7119_v0 = vpop.f32.mrb[94].mxu0  ;;  %7200 = vmatprep.mubr.msk.bf16.mxu1 %vm1312_vm4, %v4232_v9 }
0x16b2   : > { %v3973_v63 = vadd.f32 %v7119_v0, %v9024_v20  ;;  %v3964_v2 = vpop.f32.mrb[95].mxu0  ;;  %7201 = vmatmul.mubr.msk.bf16.gmra.mrb[80].mxu1 %vm1312_vm4, %v4233_v56  ;;  %v4174_v27 = vmax.f32 %v3970_v60, 0.0 }
0x16b3   : > { %v3965_v17 = vadd.f32 %v9024_v20, %v3964_v2  ;;  %v4172_v42 = vmax.f32 %v3962_v21, 0.0 }
0x16b4   : > { %v4175_v55 = vmax.f32 %v3973_v63, 0.0 }
0x16b5   : > { %v4173_v50 = vmax.f32 %v3965_v17, 0.0 }
0x16b6   : > { %v4235_v57 = vpack.c.bf16 %v4175_v55, %v4174_v27 }
0x16b7   : > { %v4234_v61 = vpack.c.bf16 %v4173_v50, %v4172_v42  ;;  %v7122_v3 = vpop.f32.mrb[96].mxu0 }
0x16b8   : > { %v3986_v28 = vadd.f32 %v7122_v3, %v9024_v20  ;;  %v3977_v22 = vpop.f32.mrb[97].mxu0 }
0x16b9   : > { %v3978_v18 = vadd.f32 %v9024_v20, %v3977_v22  ;;  %v7123_v38 = vpop.f32.mrb[98].mxu0  ;;  %7204 = vmatprep.mubr.msk.bf16.mxu1 %vm1312_vm4, %v4234_v61 }
0x16ba   : > { %v3989_v8 = vadd.f32 %v7123_v38, %v9024_v20  ;;  %v3980_v15 = vpop.f32.mrb[99].mxu0  ;;  %7205 = vmatmul.mubr.msk.bf16.gmra.mrb[84].mxu1 %vm1312_vm4, %v4235_v57  ;;  %v4178_v14 = vmax.f32 %v3986_v28, 0.0 }
0x16bb   : > { %v3981_v29 = vadd.f32 %v9024_v20, %v3980_v15  ;;  %v4176_v59 = vmax.f32 %v3978_v18, 0.0 }
0x16bc   : > { %v4179_v6 = vmax.f32 %v3989_v8, 0.0 }
0x16bd   : > { %v4177_v37 = vmax.f32 %v3981_v29, 0.0 }
0x16be   : > { %v4237_v40 = vpack.c.bf16 %v4179_v6, %v4178_v14 }
0x16bf   : > { %v4236_v58 = vpack.c.bf16 %v4177_v37, %v4176_v59  ;;  %v7126_v11 = vpop.f32.mrb[100].mxu0 }
0x16c0   : > { %v4002_v44 = vadd.f32 %v7126_v11, %v9024_v20  ;;  %v3993_v4 = vpop.f32.mrb[101].mxu0 }
0x16c1   : > { %v3994_v23 = vadd.f32 %v9024_v20, %v3993_v4  ;;  %v7127_v24 = vpop.f32.mrb[102].mxu0  ;;  %7208 = vmatprep.mubr.msk.bf16.mxu1 %vm1312_vm4, %v4236_v58 }
0x16c2   : > { %v4005_v54 = vadd.f32 %v7127_v24, %v9024_v20  ;;  %v3996_v19 = vpop.f32.mrb[103].mxu0  ;;  %7209 = vmatmul.mubr.msk.bf16.gmra.mrb[88].mxu1 %vm1312_vm4, %v4237_v40  ;;  %v4182_v7 = vmax.f32 %v4002_v44, 0.0 }
0x16c3   : > { %v3997_v51 = vadd.f32 %v9024_v20, %v3996_v19  ;;  %v4180_v53 = vmax.f32 %v3994_v23, 0.0 }
0x16c4   : > { %v4183_v48 = vmax.f32 %v4005_v54, 0.0 }
0x16c5   : > { %v4181_v33 = vmax.f32 %v3997_v51, 0.0 }
0x16c6   : > { %v4239_v46 = vpack.c.bf16 %v4183_v48, %v4182_v7 }
0x16c7   : > { %v4238_v30 = vpack.c.bf16 %v4181_v33, %v4180_v53  ;;  %v7130_v47 = vpop.f32.mrb[104].mxu0 }
0x16c8   : > { %v4018_v35 = vadd.f32 %v7130_v47, %v9024_v20  ;;  %v4009_v5 = vpop.f32.mrb[105].mxu0 }
0x16c9   : > { %v4010_v10 = vadd.f32 %v9024_v20, %v4009_v5  ;;  %v7131_v12 = vpop.f32.mrb[106].mxu0  ;;  %7212 = vmatprep.mubr.msk.bf16.mxu1 %vm1312_vm4, %v4238_v30 }
0x16ca   : > { %v4021_v45 = vadd.f32 %v7131_v12, %v9024_v20  ;;  %v4012_v16 = vpop.f32.mrb[107].mxu0  ;;  %7213 = vmatmul.mubr.msk.bf16.gmra.mrb[92].mxu1 %vm1312_vm4, %v4239_v46  ;;  %v4186_v26 = vmax.f32 %v4018_v35, 0.0 }
0x16cb   : > { %v4013_v25 = vadd.f32 %v9024_v20, %v4012_v16  ;;  %v4184_v32 = vmax.f32 %v4010_v10, 0.0 }
0x16cc   : > { %v4187_v31 = vmax.f32 %v4021_v45, 0.0 }
0x16cd   : > { %v4185_v13 = vmax.f32 %v4013_v25, 0.0 }
0x16ce   : > { %v4241_v41 = vpack.c.bf16 %v4187_v31, %v4186_v26 }
0x16cf   : > { %v4240_v43 = vpack.c.bf16 %v4185_v13, %v4184_v32  ;;  %v7134_v36 = vpop.f32.mrb[108].mxu0 }
0x16d0   : > { %v4034_v1 = vadd.f32 %v7134_v36, %v9024_v20  ;;  %v4025_v34 = vpop.f32.mrb[109].mxu0 }
0x16d1   : > { %v4026_v62 = vadd.f32 %v9024_v20, %v4025_v34  ;;  %v7135_v52 = vpop.f32.mrb[110].mxu0  ;;  %7216 = vmatprep.mubr.msk.bf16.mxu1 %vm1312_vm4, %v4240_v43 }
0x16d2   : > { %v4037_v56 = vadd.f32 %v7135_v52, %v9024_v20  ;;  %v4028_v9 = vpop.f32.mrb[111].mxu0  ;;  %7217 = vmatmul.mubr.msk.bf16.gmra.mrb[96].mxu1 %vm1312_vm4, %v4241_v41  ;;  %v4190_v60 = vmax.f32 %v4034_v1, 0.0 }
0x16d3   : > { %v4029_v49 = vadd.f32 %v9024_v20, %v4028_v9  ;;  %v4188_v21 = vmax.f32 %v4026_v62, 0.0 }
0x16d4   : > { %v4191_v39 = vmax.f32 %v4037_v56, 0.0 }
0x16d5   : > { %v4189_v0 = vmax.f32 %v4029_v49, 0.0 }
0x16d6   : > { %v4243_v63 = vpack.c.bf16 %v4191_v39, %v4190_v60 }
0x16d7   : > { %v4242_v2 = vpack.c.bf16 %v4189_v0, %v4188_v21  ;;  %v7138_v17 = vpop.f32.mrb[112].mxu0 }
0x16d8   : > { %v4050_v27 = vadd.f32 %v7138_v17, %v9024_v20  ;;  %v4041_v55 = vpop.f32.mrb[113].mxu0 }
0x16d9   : > { %v4042_v42 = vadd.f32 %v9024_v20, %v4041_v55  ;;  %v7139_v50 = vpop.f32.mrb[114].mxu0  ;;  %7220 = vmatprep.mubr.msk.bf16.mxu1 %vm1312_vm4, %v4242_v2 }
0x16da   : > { %v4053_v57 = vadd.f32 %v7139_v50, %v9024_v20  ;;  %v4044_v61 = vpop.f32.mrb[115].mxu0  ;;  %7221 = vmatmul.mubr.msk.bf16.gmra.mrb[100].mxu1 %vm1312_vm4, %v4243_v63  ;;  %v4194_v28 = vmax.f32 %v4050_v27, 0.0 }
0x16db   : > { %v4045_v3 = vadd.f32 %v9024_v20, %v4044_v61  ;;  %v4192_v18 = vmax.f32 %v4042_v42, 0.0 }
0x16dc   : > { %v4195_v22 = vmax.f32 %v4053_v57, 0.0 }
0x16dd   : > { %v4193_v38 = vmax.f32 %v4045_v3, 0.0 }
0x16de   : > { %v4245_v8 = vpack.c.bf16 %v4195_v22, %v4194_v28 }
0x16df   : > { %v4244_v15 = vpack.c.bf16 %v4193_v38, %v4192_v18  ;;  %v7142_v29 = vpop.f32.mrb[116].mxu0 }
0x16e0   : > { %v4066_v14 = vadd.f32 %v7142_v29, %v9024_v20  ;;  %v4057_v6 = vpop.f32.mrb[117].mxu0 }
0x16e1   : > { %v4058_v59 = vadd.f32 %v9024_v20, %v4057_v6  ;;  %v7143_v37 = vpop.f32.mrb[118].mxu0  ;;  %7224 = vmatprep.mubr.msk.bf16.mxu1 %vm1312_vm4, %v4244_v15 }
0x16e2   : > { %v4069_v40 = vadd.f32 %v7143_v37, %v9024_v20  ;;  %v4060_v58 = vpop.f32.mrb[119].mxu0  ;;  %7225 = vmatmul.mubr.msk.bf16.gmra.mrb[104].mxu1 %vm1312_vm4, %v4245_v8  ;;  %v4198_v44 = vmax.f32 %v4066_v14, 0.0 }
0x16e3   : > { %v4061_v11 = vadd.f32 %v9024_v20, %v4060_v58  ;;  %v4196_v23 = vmax.f32 %v4058_v59, 0.0 }
0x16e4   : > { %v4199_v4 = vmax.f32 %v4069_v40, 0.0 }
0x16e5   : > { %v4197_v24 = vmax.f32 %v4061_v11, 0.0  ;;  %v7638_v11 = vmov 32  }
0x16e6   : > { %v4247_v54 = vpack.c.bf16 %v4199_v4, %v4198_v44  ;;  %7263 = vset.pattern.permute.xlu0 %v7638_v11  ;;  %7262 = vset.pattern.permute.xlu1 %v7638_v11 }
0x16e7   : > { %v4246_v19 = vpack.c.bf16 %v4197_v24, %v4196_v23  ;;  %v7146_v51 = vpop.f32.mrb[120].mxu0 }
0x16e8   : > { %v4082_v7 = vadd.f32 %v7146_v51, %v9024_v20  ;;  %v4073_v48 = vpop.f32.mrb[121].mxu0 }
0x16e9   : > { %v4074_v53 = vadd.f32 %v9024_v20, %v4073_v48  ;;  %v7147_v33 = vpop.f32.mrb[122].mxu0  ;;  %7228 = vmatprep.mubr.msk.bf16.mxu1 %vm1312_vm4, %v4246_v19 }
0x16ea   : > { %v4085_v46 = vadd.f32 %v7147_v33, %v9024_v20  ;;  %v4076_v30 = vpop.f32.mrb[123].mxu0  ;;  %7229 = vmatmul.mubr.msk.bf16.gmra.mrb[108].mxu1 %vm1312_vm4, %v4247_v54  ;;  %v4202_v35 = vmax.f32 %v4082_v7, 0.0 }
0x16eb   : > { %v4077_v47 = vadd.f32 %v9024_v20, %v4076_v30  ;;  %v4200_v10 = vmax.f32 %v4074_v53, 0.0 }
0x16ec   : > { %v4203_v5 = vmax.f32 %v4085_v46, 0.0 }
0x16ed   : > { %v4201_v12 = vmax.f32 %v4077_v47, 0.0 }
0x16ee   : > { %v4249_v45 = vpack.c.bf16 %v4203_v5, %v4202_v35 }
0x16ef   : > { %v4248_v16 = vpack.c.bf16 %v4201_v12, %v4200_v10  ;;  %v7150_v25 = vpop.f32.mrb[124].mxu0 }
0x16f0   : > { %v4098_v26 = vadd.f32 %v7150_v25, %v9024_v20  ;;  %v4089_v31 = vpop.f32.mrb[125].mxu0 }
0x16f1   : > { %v4090_v32 = vadd.f32 %v9024_v20, %v4089_v31  ;;  %v7151_v13 = vpop.f32.mrb[126].mxu0  ;;  %7232 = vmatprep.mubr.msk.bf16.mxu1 %vm1312_vm4, %v4248_v16 }
0x16f2   : > { %v4101_v41 = vadd.f32 %v7151_v13, %v9024_v20  ;;  %v4092_v43 = vpop.f32.mrb[127].mxu0  ;;  %7233 = vmatmul.mubr.msk.bf16.gmra.mrb[112].mxu1 %vm1312_vm4, %v4249_v45  ;;  %v4206_v1 = vmax.f32 %v4098_v26, 0.0 }
0x16f3   : > { %v4093_v36 = vadd.f32 %v9024_v20, %v4092_v43  ;;  %v4204_v62 = vmax.f32 %v4090_v32, 0.0 }
0x16f4   : > { %v4207_v34 = vmax.f32 %v4101_v41, 0.0 }
0x16f5   : > { %v4205_v52 = vmax.f32 %v4093_v36, 0.0  ;;  %v9197_v36 = vld [vmem:[%s10956_s13] ss:$0 sm:$0xff] }
0x16f6   : > { %v4251_v56 = vpack.c.bf16 %v4207_v34, %v4206_v1 }
0x16f7   : > { %v4250_v9 = vpack.c.bf16 %v4205_v52, %v4204_v62  ;;  %v7154_v49 = vpop.f32.mrb[128].mxu0 }
0x16f8   : > { %v4114_v60 = vadd.f32 %v7154_v49, %v9024_v20  ;;  %v4105_v39 = vpop.f32.mrb[129].mxu0 }
0x16f9   : > { %v4106_v21 = vadd.f32 %v9024_v20, %v4105_v39  ;;  %v7155_v0 = vpop.f32.mrb[130].mxu0  ;;  %7236 = vmatprep.mubr.msk.bf16.mxu1 %vm1312_vm4, %v4250_v9 }
0x16fa   : > { %v4117_v63 = vadd.f32 %v7155_v0, %v9024_v20  ;;  %v4108_v2 = vpop.f32.mrb[131].mxu0  ;;  %7237 = vmatmul.mubr.msk.bf16.gmra.mrb[116].mxu1 %vm1312_vm4, %v4251_v56  ;;  %v4210_v27 = vmax.f32 %v4114_v60, 0.0 }
0x16fb   : > { %v4109_v17 = vadd.f32 %v9024_v20, %v4108_v2  ;;  %v4208_v42 = vmax.f32 %v4106_v21, 0.0 }
0x16fc   : > { %v4211_v55 = vmax.f32 %v4117_v63, 0.0 }
0x16fd   : > { %v4209_v50 = vmax.f32 %v4109_v17, 0.0 }
0x16fe   : > { %v4253_v57 = vpack.c.bf16 %v4211_v55, %v4210_v27 }
0x16ff   : > { %v4252_v61 = vpack.c.bf16 %v4209_v50, %v4208_v42  ;;  %v7158_v3 = vpop.f32.mrb[132].mxu0 }
0x1700   : > { %v4130_v28 = vadd.f32 %v7158_v3, %v9024_v20  ;;  %v4121_v22 = vpop.f32.mrb[133].mxu0 }
0x1701   : > { %v4122_v18 = vadd.f32 %v9024_v20, %v4121_v22  ;;  %v7159_v38 = vpop.f32.mrb[134].mxu0  ;;  %7240 = vmatprep.mubr.msk.bf16.mxu1 %vm1312_vm4, %v4252_v61 }
0x1702   : > { %v4133_v8 = vadd.f32 %v7159_v38, %v9024_v20  ;;  %v4124_v15 = vpop.f32.mrb[135].mxu0  ;;  %7241 = vmatmul.mubr.msk.bf16.gmra.mrb[120].mxu1 %vm1312_vm4, %v4253_v57  ;;  %v4214_v14 = vmax.f32 %v4130_v28, 0.0 }
0x1703   : > { %v4125_v29 = vadd.f32 %v9024_v20, %v4124_v15  ;;  %v4212_v59 = vmax.f32 %v4122_v18, 0.0 }
0x1704   : > { %v4215_v6 = vmax.f32 %v4133_v8, 0.0 }
0x1705   : > { %v4213_v37 = vmax.f32 %v4125_v29, 0.0 }
0x1706   : > { %v4255_v40 = vpack.c.bf16 %v4215_v6, %v4214_v14 }
0x1707   : > { %v4254_v58 = vpack.c.bf16 %v4213_v37, %v4212_v59 }
0x1709   : > { %7244 = vmatprep.mubr.msk.bf16.mxu1 %vm1312_vm4, %v4254_v58 }
0x170a   : > { %7245 = vmatmul.mubr.msk.bf16.gmra.mrb[124].mxu1 %vm1312_vm4, %v4255_v40 }
0x1745   : > { %v7170_v44 = vpop.f32.mrb[48].mxu1 }
0x1746   : > { %v9146_v4 = vpop.f32.mrb[49].mxu1  ;;  %v9205_v62 = vadd.f32 %v7170_v44, %v9197_v36 }
0x1747   : > { %v9148_v23 = vpop.f32.mrb[50].mxu1 }
0x1748   : > { %v9150_v24 = vpop.f32.mrb[51].mxu1  ;;  %11080 = vst [vmem:[#allocation2_spill] sm:$0xff] %v9205_v62  ;;  %v4787_v21 = vsel %vm4768_vm5, %v9205_v62, -inf }
0x174d   : > { %v9152_v20 = vpop.f32.mrb[52].mxu1 }
0x174e   : > { %v9154_v54 = vpop.f32.mrb[53].mxu1 }
0x174f   : > { %v9156_v19 = vpop.f32.mrb[54].mxu1 }
0x1750   : > { %v9158_v51 = vpop.f32.mrb[55].mxu1 }
0x1755   : > { %v7178_v7 = vpop.f32.mrb[56].mxu1 }
0x1756   : > { %v9160_v48 = vpop.f32.mrb[57].mxu1  ;;  %v9200_v1 = vadd.f32 %v7178_v7, %v9197_v36 }
0x1757   : > { %v9162_v53 = vpop.f32.mrb[58].mxu1 }
0x1758   : > { %v9164_v33 = vpop.f32.mrb[59].mxu1  ;;  %11079 = vst [vmem:[#allocation3_spill] sm:$0xff] %v9200_v1  ;;  %v4788_v49 = vsel %vm4768_vm5, %v9200_v1, -inf }
0x1759   : > { %v4789_v63 = vmax.f32 %v4787_v21, %v4788_v49 }
0x175d   : > { %v9166_v46 = vpop.f32.mrb[60].mxu1 }
0x175e   : > { %v9168_v30 = vpop.f32.mrb[61].mxu1 }
0x175f   : > { %v9170_v47 = vpop.f32.mrb[62].mxu1 }
0x1760   : > { %v9172_v35 = vpop.f32.mrb[63].mxu1 }
0x1765   : > { %v7186_v5 = vpop.f32.mrb[64].mxu1 }
0x1766   : > { %v9174_v10 = vpop.f32.mrb[65].mxu1  ;;  %v9208_v52 = vadd.f32 %v7186_v5, %v9197_v36 }
0x1767   : > { %v9176_v12 = vpop.f32.mrb[66].mxu1 }
0x1768   : > { %v9178_v45 = vpop.f32.mrb[67].mxu1  ;;  %11081 = vst [vmem:[#allocation5_spill] sm:$0xff] %v9208_v52  ;;  %v4790_v0 = vsel %vm4768_vm5, %v9208_v52, -inf }
0x1769   : > { %v4791_v17 = vmax.f32 %v4789_v63, %v4790_v0 }
0x176d   : > { %v9180_v16 = vpop.f32.mrb[68].mxu1 }
0x176e   : > { %v9182_v25 = vpop.f32.mrb[69].mxu1 }
0x176f   : > { %v9184_v26 = vpop.f32.mrb[70].mxu1 }
0x1770   : > { %v9186_v31 = vpop.f32.mrb[71].mxu1 }
0x1775   : > { %v7194_v32 = vpop.f32.mrb[72].mxu1 }
0x1776   : > { %v9188_v13 = vpop.f32.mrb[73].mxu1  ;;  %v9217_v60 = vadd.f32 %v7194_v32, %v9197_v36 }
0x1777   : > { %v9190_v41 = vpop.f32.mrb[74].mxu1 }
0x1778   : > { %v9192_v43 = vpop.f32.mrb[75].mxu1  ;;  %11082 = vst [vmem:[#allocation4_spill] sm:$0xff] %v9217_v60  ;;  %v4792_v2 = vsel %vm4768_vm5, %v9217_v60, -inf }
0x1779   : > { %v4793_v50 = vmax.f32 %v4791_v17, %v4792_v2 }
0x177d   : > { %v9202_v34 = vpop.f32.mrb[76].mxu1 }
0x177e   : > { %v9210_v56 = vpop.f32.mrb[77].mxu1 }
0x177f   : > { %v9212_v9 = vpop.f32.mrb[78].mxu1 }
0x1780   : > { %v9219_v39 = vpop.f32.mrb[79].mxu1 }
0x1785   : > { %v7202_v27 = vpop.f32.mrb[80].mxu1 }
0x1786   : > { %v9228_v55 = vadd.f32 %v7202_v27, %v9197_v36  ;;  %v4577_v42 = vpop.f32.mrb[81].mxu1 }
0x1787   : > { %v9230_v57 = vpop.f32.mrb[82].mxu1 }
0x1788   : > { %11083 = vst [vmem:[#allocation7_spill] sm:$0xff] %v9228_v55  ;;  %v4794_v61 = vsel %vm4768_vm5, %v9228_v55, -inf  ;;  %v9234_v3 = vpop.f32.mrb[83].mxu1 }
0x1789   : > { %v4795_v28 = vmax.f32 %v4793_v50, %v4794_v61  ;;  %v9271_v61 = vadd.f32 %v9197_v36, %v9160_v48 }
0x178b   : > { %v4915_v22 = vsub.f32 %v9205_v62, %v4795_v28  ;;  %v4923_v18 = vsub.f32 %v9200_v1, %v4795_v28  ;;  %v4931_v38 = vsub.f32 %v9208_v52, %v4795_v28  ;;  %v4939_v8 = vsub.f32 %v9217_v60, %v4795_v28  ;;  %11084 = vst [vmem:[#allocation6_spill] sm:$0xff] %v9271_v61 }
0x178c   : > { %v4947_v15 = vsub.f32 %v9228_v55, %v4795_v28  ;;  %v9324_v55 = vadd.f32 %v9166_v46, %v9197_v36  ;;  %v9328_v60 = vadd.f32 %v9176_v12, %v9197_v36  ;;  %v9342_v46 = vadd.f32 %v9197_v36, %v9164_v33 }
0x178d   : > { %v4997_v29 = vmul.f32 1.442695, %v4915_v22  ;;  %v5013_v14 = vmul.f32 1.442695, %v4923_v18  ;;  %v5029_v6 = vmul.f32 1.442695, %v4931_v38  ;;  %v9348_v12 = vadd.f32 %v9180_v16, %v9197_v36 }
0x178e   : > { %v5045_v59 = vmul.f32 1.442695, %v4939_v8  ;;  %v9241_v37 = vpop.f32.mrb[84].mxu1  ;;  %v5061_v40 = vmul.f32 1.442695, %v4947_v15  ;;  %v9283_v15 = vadd.f32 %v9197_v36, %v9146_v4  ;;  %v9303_v4 = vadd.f32 %v9162_v53, %v9197_v36  ;;  %11096 = vst [vmem:[#allocation19_spill] sm:$0xff] %v9324_v55 }
0x178f   : > { %7382 = vpow2.f32 %v4997_v29  ;;  %v9243_v58 = vpop.f32.mrb[85].mxu1  ;;  %v9287_v29 = vadd.f32 %v9197_v36, %v9174_v10  ;;  %v9320_v53 = vadd.f32 %v9197_v36, %v9150_v24  ;;  %11097 = vst [vmem:[#allocation20_spill] sm:$0xff] %v9328_v60  ;;  %11100 = vst [vmem:[#allocation23_spill] sm:$0xff] %v9342_v46  ;;  %v9364_v16 = vadd.f32 %v9197_v36, %v9178_v45 }
0x1790   : > { %7384 = vpow2.f32 %v5013_v14  ;;  %v9245_v11 = vpop.f32.mrb[86].mxu1  ;;  %11087 = vst [vmem:[#allocation10_spill] sm:$0xff] %v9283_v15  ;;  %11092 = vst [vmem:[#allocation15_spill] sm:$0xff] %v9303_v4  ;;  %v4797_v24 = vsel %vm4768_vm5, %v9303_v4, -inf  ;;  %v9374_v1 = vadd.f32 %v9202_v34, %v9197_v36  ;;  %v4779_v45 = vsel %vm4768_vm5, %v9342_v46, -inf }
0x1791   : > { %7386 = vpow2.f32 %v5029_v6  ;;  %v9247_v44 = vpop.f32.mrb[87].mxu1  ;;  %11088 = vst [vmem:[#allocation11_spill] sm:$0xff] %v9287_v29  ;;  %11095 = vst [vmem:[#allocation18_spill] sm:$0xff] %v9320_v53  ;;  %v4826_v34 = vsel %vm4768_vm5, %v9348_v12, -inf }
0x1792   : > { %7388 = vpow2.f32 %v5045_v59  ;;  %11102 = vst [vmem:[#allocation25_spill] sm:$0xff] %v9348_v12  ;;  %11105 = vst [vmem:[#allocation28_spill] sm:$0xff] %v9364_v16 }
0x1793   : > { %7390 = vpow2.f32 %v5061_v40  ;;  %v4770_v40 = vsel %vm4768_vm5, %v9271_v61, -inf  ;;  %11107 = vst [vmem:[#allocation30_spill] sm:$0xff] %v9374_v1 }
0x1795   : > { %v9249_v7 = vpop.f32.mrb[88].mxu1 }
0x1796   : > { %v9251_v5 = vpop.f32.mrb[89].mxu1 }
0x1797   : > { %v9253_v32 = vpop.f32.mrb[90].mxu1 }
0x1798   : > { %v9257_v21 = vpop.f32.mrb[91].mxu1 }
0x1799   : > { %v9255_v49 = vpop.eup %7382 }
0x179a   : > { %v9259_v0 = vpop.eup %7384  ;;  %v5171_v63 = vsel %vm4768_vm5, %v9255_v49, 0.0 }
0x179b   : > { %v9263_v2 = vpop.eup %7386  ;;  %v5172_v17 = vsel %vm4768_vm5, %v9259_v0, 0.0 }
0x179c   : > { %v9267_v27 = vpop.eup %7388  ;;  %v5173_v50 = vadd.f32 %v5172_v17, %v5171_v63  ;;  %v5174_v28 = vsel %vm4768_vm5, %v9263_v2, 0.0  ;;  %v9299_v63 = vadd.f32 %v9197_v36, %v9188_v13  ;;  %v4769_v17 = vsel %vm4768_vm5, %v9283_v15, -inf }
0x179d   : > { %v9275_v22 = vpop.f32.mrb[92].mxu1  ;;  %v9279_v8 = vpop.eup %7390  ;;  %v5176_v48 = vsel %vm4768_vm5, %v9267_v27, 0.0  ;;  %v9316_v13 = vadd.f32 %v9148_v23, %v9197_v36  ;;  %v9336_v23 = vadd.f32 %v9152_v20, %v9197_v36 }
0x179e   : > { %11085 = vst [vmem:[#allocation8_spill] sm:$0xff] %v9275_v22  ;;  %v5175_v18 = vadd.f32 %v5174_v28, %v5173_v50  ;;  %v9277_v38 = vpop.f32.mrb[93].mxu1  ;;  %11091 = vst [vmem:[#allocation14_spill] sm:$0xff] %v9299_v63  ;;  %v5178_v10 = vsel %vm4768_vm5, %v9279_v8, 0.0  ;;  %v4772_v50 = vsel %vm4768_vm5, %v9287_v29, -inf }
0x179f   : > { %11086 = vst [vmem:[#allocation9_spill] sm:$0xff] %v9277_v38  ;;  %v9291_v14 = vpop.f32.mrb[94].mxu1  ;;  %11094 = vst [vmem:[#allocation17_spill] sm:$0xff] %v9316_v13  ;;  %v4796_v33 = vsel %vm4768_vm5, %v9316_v13, -inf }
0x17a0   : > { %11089 = vst [vmem:[#allocation12_spill] sm:$0xff] %v9291_v14  ;;  %v5177_v6 = vadd.f32 %v5176_v48, %v5175_v18  ;;  %v9293_v59 = vpop.f32.mrb[95].mxu1  ;;  %v9312_v18 = vadd.f32 %v9197_v36, %v4577_v42  ;;  %v4771_v48 = vmax.f32 %v4769_v17, %v4770_v40  ;;  %v4774_v42 = vsel %vm4768_vm5, %v9299_v63, -inf  ;;  %11099 = vst [vmem:[#allocation22_spill] sm:$0xff] %v9336_v23 }
0x17a1   : > { %11090 = vst [vmem:[#allocation13_spill] sm:$0xff] %v9293_v59  ;;  %v9352_v17 = vadd.f32 %v9190_v41, %v9197_v36  ;;  %v4824_v41 = vsel %vm4768_vm5, %v9324_v55, -inf  ;;  %v4828_v14 = vsel %vm4768_vm5, %v9374_v1, -inf }
0x17a2   : > { %v5179_v28 = vadd.f32 %v5178_v10, %v5177_v6  ;;  %11093 = vst [vmem:[#allocation16_spill] sm:$0xff] %v9312_v18  ;;  %v4773_v40 = vmax.f32 %v4771_v48, %v4772_v50  ;;  %v4776_v20 = vsel %vm4768_vm5, %v9312_v18, -inf  ;;  %v4778_v50 = vsel %vm4768_vm5, %v9320_v53, -inf }
0x17a3   : > { %11103 = vst [vmem:[#allocation26_spill] sm:$0xff] %v9352_v17  ;;  %v4801_v59 = vsel %vm4768_vm5, %v9352_v17, -inf }
0x17a4   : > { %7392 = vrcp.f32 %v5179_v28  ;;  %v4775_v48 = vmax.f32 %v4773_v40, %v4774_v42  ;;  %v4799_v28 = vsel %vm4768_vm5, %v9328_v60, -inf  ;;  %v9384_v42 = vadd.f32 %v9197_v36, %v9192_v43 }
0x17a5   : > { %v9332_v6 = vpop.f32.mrb[96].mxu1  ;;  %v4781_v43 = vsel %vm4768_vm5, %v9364_v16, -inf }
0x17a6   : > { %11098 = vst [vmem:[#allocation21_spill] sm:$0xff] %v9332_v6  ;;  %v9344_v10 = vpop.f32.mrb[97].mxu1  ;;  %11109 = vst [vmem:[#allocation32_spill] sm:$0xff] %v9384_v42  ;;  %v4777_v40 = vmax.f32 %v4775_v48, %v4776_v20  ;;  %v9400_v20 = vadd.f32 %v9197_v36, %v9234_v3  ;;  %v4780_v48 = vmax.f32 %v4778_v50, %v4779_v45 }
0x17a7   : > { %11101 = vst [vmem:[#allocation24_spill] sm:$0xff] %v9344_v10  ;;  %v9356_v52 = vpop.f32.mrb[98].mxu1  ;;  %v4798_v10 = vmax.f32 %v4796_v33, %v4797_v24  ;;  %v9404_v6 = vadd.f32 %v9197_v36, %v9168_v30  ;;  %v9419_v30 = vadd.f32 %v9197_v36, %v9154_v54 }
0x17a8   : > { %11104 = vst [vmem:[#allocation27_spill] sm:$0xff] %v9356_v52  ;;  %v9366_v62 = vpop.f32.mrb[99].mxu1  ;;  %v9378_v52 = vadd.f32 %v9230_v57, %v9197_v36  ;;  %v9394_v57 = vadd.f32 %v9241_v37, %v9197_v36  ;;  %11111 = vst [vmem:[#allocation34_spill] sm:$0xff] %v9400_v20  ;;  %v4921_v3 = vsub.f32 %v9271_v61, %v4777_v40 }
0x17a9   : > { %11106 = vst [vmem:[#allocation29_spill] sm:$0xff] %v9366_v62  ;;  %v4823_v62 = vsel %vm4768_vm5, %v9336_v23, -inf  ;;  %v4800_v33 = vmax.f32 %v4798_v10, %v4799_v28  ;;  %11112 = vst [vmem:[#allocation35_spill] sm:$0xff] %v9404_v6  ;;  %v4783_v28 = vsel %vm4768_vm5, %v9384_v42, -inf  ;;  %v4782_v45 = vmax.f32 %v4780_v48, %v4781_v43 }
0x17aa   : > { %11108 = vst [vmem:[#allocation31_spill] sm:$0xff] %v9378_v52  ;;  %11110 = vst [vmem:[#allocation33_spill] sm:$0xff] %v9394_v57  ;;  %v4825_v24 = vmax.f32 %v4823_v62, %v4824_v41  ;;  %v4803_v37 = vsel %vm4768_vm5, %v9378_v52, -inf  ;;  %v4830_v38 = vsel %vm4768_vm5, %v9394_v57, -inf  ;;  %v4937_v43 = vsub.f32 %v9299_v63, %v4777_v40 }
0x17ab   : > { %v4802_v41 = vmax.f32 %v4800_v33, %v4801_v59  ;;  %11114 = vst [vmem:[#allocation37_spill] sm:$0xff] %v9419_v30  ;;  %v4929_v59 = vsub.f32 %v9287_v29, %v4777_v40  ;;  %v4784_v54 = vmax.f32 %v4782_v45, %v4783_v28  ;;  %v4806_v48 = vsel %vm4768_vm5, %v9404_v6, -inf }
0x17ac   : > { %v4827_v10 = vmax.f32 %v4825_v24, %v4826_v34  ;;  %v4785_v24 = vsel %vm4768_vm5, %v9400_v20, -inf  ;;  %v4945_v29 = vsub.f32 %v9312_v18, %v4777_v40  ;;  %v4805_v28 = vsel %vm4768_vm5, %v9419_v30, -inf }
0x17ad   : > { %v9410_v62 = vpop.f32.mrb[100].mxu1  ;;  %v9426_v34 = vmax.f32 %v4802_v41, %v4803_v37  ;;  %v9445_v41 = vadd.f32 %v9197_v36, %v9210_v56  ;;  %v5025_v45 = vmul.f32 1.442695, %v4929_v59 }
0x17ae   : > { %11113 = vst [vmem:[#allocation36_spill] sm:$0xff] %v9410_v62  ;;  %v9415_v50 = vpop.f32.mrb[101].mxu1  ;;  %v4829_v62 = vmax.f32 %v4827_v10, %v4828_v14  ;;  %v9432_v61 = vpop.eup %7392  ;;  %v9439_v14 = vadd.f32 %v9197_v36, %v9182_v25  ;;  %v5009_v10 = vmul.f32 1.442695, %v4921_v3 }
0x17af   : > { %v9423_v22 = vpop.f32.mrb[102].mxu1  ;;  %11117 = vst [vmem:[#allocation40_spill] sm:$0xff] %v9445_v41  ;;  %v4916_v63 = vsub.f32 %v9316_v13, %v9426_v34  ;;  %v5347_v25 = vmul.f32 %v9432_v61, %v9279_v8  ;;  %v4932_v56 = vsub.f32 %v9328_v60, %v9426_v34  ;;  %v5315_v3 = vmul.f32 %v9432_v61, %v9255_v49 }
0x17b0   : > { %v9430_v33 = vpop.f32.mrb[103].mxu1  ;;  %11116 = vst [vmem:[#allocation39_spill] sm:$0xff] %v9439_v14  ;;  %v9441_v37 = vmax.f32 %v4829_v62, %v4830_v38  ;;  %v4807_v38 = vmax.f32 %v4805_v28, %v4806_v48  ;;  %v5041_v62 = vmul.f32 1.442695, %v4937_v43  ;;  %7394 = vpow2.f32 %v5009_v10 }
0x17b1   : > { %11115 = vst [vmem:[#allocation38_spill] sm:$0xff] %v9430_v33  ;;  %v9448_v33 = vmax.f32 %v4784_v54, %v4785_v24  ;;  %v4808_v54 = vsel %vm4768_vm5, %v9439_v14, -inf  ;;  %5565 = vperm.xlu0 %7263, %v5347_v25   ;;  %v4913_v8 = vsub.f32 %v9283_v15, %v4777_v40  ;;  %v4810_v43 = vsel %vm4768_vm5, %v9445_v41, -inf  ;;  %5405 = vperm.xlu1 %7262, %v5315_v3  }
0x17b2   : > { %v4919_v59 = vsub.f32 %v9336_v23, %v9441_v37  ;;  %v5057_v28 = vmul.f32 1.442695, %v4945_v29  ;;  %v4940_v49 = vsub.f32 %v9352_v17, %v9426_v34  ;;  %7396 = vpow2.f32 %v5025_v45 }
0x17b3   : > { %v4922_v18 = vsub.f32 %v9342_v46, %v9448_v33  ;;  %v4999_v60 = vmul.f32 1.442695, %v4916_v63  ;;  %v9479_v40 = vadd.f32 %v9197_v36, %v9243_v58  ;;  %v4993_v25 = vmul.f32 1.442695, %v4913_v8 }
0x17b4   : > { %v4809_v13 = vmax.f32 %v4807_v38, %v4808_v54  ;;  %7398 = vpow2.f32 %v5041_v62  ;;  %v5031_v29 = vmul.f32 1.442695, %v4932_v56  ;;  %v5323_v17 = vmul.f32 %v9432_v61, %v9259_v0 }
0x17b5   : > { %v9460_v24 = vpop.f32.mrb[104].mxu1  ;;  %11118 = vst [vmem:[#allocation41_spill] sm:$0xff] %v9479_v40  ;;  %v4948_v3 = vsub.f32 %v9378_v52, %v9426_v34  ;;  %v5005_v46 = vmul.f32 1.442695, %v4919_v59  ;;  %7400 = vpow2.f32 %v4993_v25  ;;  %v5011_v63 = vmul.f32 1.442695, %v4922_v18 }
0x17b6   : > { %v9467_v48 = vpop.f32.mrb[105].mxu1  ;;  %v4811_v45 = vmax.f32 %v4809_v13, %v4810_v43  ;;  %7402 = vpow2.f32 %v5057_v28  ;;  %5445 = vperm.xlu1 %7262, %v5323_v17   ;;  %v5047_v58 = vmul.f32 1.442695, %v4940_v49  ;;  %v4812_v8 = vsel %vm4768_vm5, %v9479_v40, -inf }
0x17b7   : > { %v9475_v10 = vpop.f32.mrb[106].mxu1  ;;  %7404 = vpow2.f32 %v4999_v60  ;;  %v4924_v38 = vsub.f32 %v9303_v4, %v9426_v34  ;;  %v4935_v0 = vsub.f32 %v9348_v12, %v9441_v37  ;;  %v5331_v62 = vmul.f32 %v9432_v61, %v9263_v2 }
0x17b8   : > { %v9481_v23 = vpop.f32.mrb[107].mxu1  ;;  %7406 = vpow2.f32 %v5031_v29  ;;  %v4927_v18 = vsub.f32 %v9324_v55, %v9441_v37  ;;  %v5063_v60 = vmul.f32 1.442695, %v4948_v3  ;;  %v4930_v13 = vsub.f32 %v9364_v16, %v9448_v33 }
0x17b9   : > { %11119 = vst [vmem:[#allocation42_spill] sm:$0xff] %v9481_v23  ;;  %7408 = vpow2.f32 %v5005_v46  ;;  %v5015_v34 = vmul.f32 1.442695, %v4924_v38  ;;  %v9503_v54 = vmax.f32 %v4811_v45, %v4812_v8  ;;  %v4914_v43 = vsub.f32 %v9320_v53, %v9448_v33 }
0x17ba   : > { %7410 = vpow2.f32 %v5011_v63  ;;  %5485 = vperm.xlu1 %7262, %v5331_v62   ;;  %v5021_v2 = vmul.f32 1.442695, %v4927_v18  ;;  %v9509_v28 = vpop.eup %7394  ;;  %v4938_v49 = vsub.f32 %v9384_v42, %v9448_v33  ;;  %v4943_v46 = vsub.f32 %v9374_v1, %v9441_v37 }
0x17bb   : > { %7412 = vpow2.f32 %v5015_v34  ;;  %v5037_v29 = vmul.f32 1.442695, %v4935_v0  ;;  %v5339_v3 = vmul.f32 %v9432_v61, %v9267_v27  ;;  %v4946_v63 = vsub.f32 %v9400_v20, %v9448_v33 }
0x17bc   : > { %7414 = vpow2.f32 %v5021_v2  ;;  %v9519_v45 = vpop.eup %7396  ;;  %v5027_v8 = vmul.f32 1.442695, %v4930_v13  ;;  %v4995_v38 = vmul.f32 1.442695, %v4914_v43  ;;  %v4925_v18 = vsub.f32 %v9404_v6, %v9503_v54 }
0x17bd   : > { %v9495_v56 = vpop.f32.mrb[108].mxu1  ;;  %7416 = vpow2.f32 %v5047_v58  ;;  %v5154_v0 = vsel %vm4768_vm5, %v9509_v28, 0.0  ;;  %v5043_v61 = vmul.f32 1.442695, %v4938_v49  ;;  %v4917_v58 = vsub.f32 %v9419_v30, %v9503_v54 }
0x17be   : > { %11120 = vst [vmem:[#allocation43_spill] sm:$0xff] %v9495_v56  ;;  %v9501_v17 = vpop.f32.mrb[109].mxu1  ;;  %v9523_v62 = vpop.eup %7398  ;;  %7418 = vpow2.f32 %v5063_v60  ;;  %5525 = vperm.xlu1 %7262, %v5339_v3   ;;  %v4951_v13 = vsub.f32 %v9394_v57, %v9441_v37  ;;  %v5053_v60 = vmul.f32 1.442695, %v4943_v46  ;;  %v5059_v49 = vmul.f32 1.442695, %v4946_v63 }
0x17bf   : > { %11121 = vst [vmem:[#allocation44_spill] sm:$0xff] %v9501_v17  ;;  %v9505_v59 = vpop.f32.mrb[110].mxu1  ;;  %v9529_v27 = vpop.eup %7400  ;;  %7420 = vpow2.f32 %v4995_v38  ;;  %v5017_v52 = vmul.f32 1.442695, %v4925_v18  ;;  %v5156_v37 = vsel %vm4768_vm5, %v9519_v45, 0.0  ;;  %v5158_v63 = vsel %vm4768_vm5, %v9523_v62, 0.0 }
0x17c0   : > { %11122 = vst [vmem:[#allocation45_spill] sm:$0xff] %v9505_v59  ;;  %v9513_v25 = vpop.f32.mrb[111].mxu1  ;;  %v9533_v33 = vpop.eup %7402  ;;  %7422 = vpow2.f32 %v5037_v29  ;;  %v5153_v34 = vsel %vm4768_vm5, %v9529_v27, 0.0  ;;  %v5001_v55 = vmul.f32 1.442695, %v4917_v58  ;;  %v9665_v59 = vadd.f32 %v9245_v11, %v9197_v36 }
0x17c1   : > { %11123 = vst [vmem:[#allocation46_spill] sm:$0xff] %v9513_v25  ;;  %v9541_v43 = vpop.eup %7404  ;;  %7424 = vpow2.f32 %v5027_v8  ;;  %v5155_v3 = vadd.f32 %v5154_v0, %v5153_v34  ;;  %v5069_v0 = vmul.f32 1.442695, %v4951_v13  ;;  %v5160_v58 = vsel %vm4768_vm5, %v9533_v33, 0.0 }
0x17c2   : > { %v9545_v1 = vpop.eup %7406  ;;  %7426 = vpow2.f32 %v5043_v61  ;;  %v5180_v18 = vsel %vm4768_vm5, %v9541_v43, 0.0  ;;  %v4933_v61 = vsub.f32 %v9439_v14, %v9503_v54  ;;  %11139 = vst [vmem:[#allocation62_spill] sm:$0xff] %v9665_v59 }
0x17c3   : > { %v9551_v46 = vpop.eup %7408  ;;  %v5157_v57 = vadd.f32 %v5156_v37, %v5155_v3  ;;  %7428 = vpow2.f32 %v5053_v60 }
0x17c4   : > { %11124 = vst [vmem:[#allocation47_spill] sm:$0xff] %v9551_v46  ;;  %v9555_v8 = vpop.eup %7410  ;;  %7430 = vpow2.f32 %v5059_v49  ;;  %v5207_v13 = vsel %vm4768_vm5, %v9551_v46, 0.0 }
0x17c5   : > { %v9539_v2 = vpop.f32.mrb[112].mxu1  ;;  %v9561_v34 = vpop.eup %7412  ;;  %v5159_v3 = vadd.f32 %v5158_v63, %v5157_v57  ;;  %7432 = vpow2.f32 %v5017_v52  ;;  %v5183_v52 = vsel %vm4768_vm5, %v9545_v1, 0.0  ;;  %v5163_v42 = vsel %vm4768_vm5, %v9555_v8, 0.0 }
0x17c6   : > { %v9543_v38 = vpop.f32.mrb[113].mxu1  ;;  %v9565_v37 = vpop.eup %7414  ;;  %v5181_v60 = vsel %vm4768_vm5, %v9561_v34, 0.0  ;;  %7434 = vpow2.f32 %v5001_v55 }
0x17c7   : > { %v9549_v29 = vpop.f32.mrb[114].mxu1  ;;  %v9573_v20 = vpop.eup %7416  ;;  %v5161_v6 = vadd.f32 %v5160_v58, %v5159_v3  ;;  %v5182_v49 = vadd.f32 %v5181_v60, %v5180_v18  ;;  %v5208_v14 = vsel %vm4768_vm5, %v9565_v37, 0.0  ;;  %7436 = vpow2.f32 %v5069_v0 }
0x17c8   : > { %v9553_v12 = vpop.f32.mrb[115].mxu1  ;;  %v9577_v57 = vpop.eup %7418  ;;  %v4941_v18 = vsub.f32 %v9445_v41, %v9503_v54  ;;  %v5033_v3 = vmul.f32 1.442695, %v4933_v61  ;;  %v5185_v0 = vsel %vm4768_vm5, %v9573_v20, 0.0  ;;  %v5209_v30 = vadd.f32 %v5208_v14, %v5207_v13 }
0x17c9   : > { %11125 = vst [vmem:[#allocation48_spill] sm:$0xff] %v9553_v12  ;;  %v9585_v4 = vpop.eup %7420  ;;  %7438 = vrcp.f32 %v5161_v6  ;;  %v5184_v58 = vadd.f32 %v5183_v52, %v5182_v49  ;;  %v9605_v61 = vadd.f32 %v9170_v47, %v9197_v36  ;;  %v5187_v49 = vsel %vm4768_vm5, %v9577_v57, 0.0 }
0x17ca   : > { %v9591_v60 = vpop.eup %7422  ;;  %v5162_v53 = vsel %vm4768_vm5, %v9585_v4, 0.0  ;;  %v4949_v14 = vsub.f32 %v9479_v40, %v9503_v54  ;;  %7440 = vpow2.f32 %v5033_v3  ;;  %v5049_v52 = vmul.f32 1.442695, %v4941_v18 }
0x17cb   : > { %v9599_v15 = vpop.eup %7424  ;;  %v5186_v25 = vadd.f32 %v5185_v0, %v5184_v58  ;;  %v5164_v6 = vadd.f32 %v5163_v42, %v5162_v53  ;;  %11130 = vst [vmem:[#allocation53_spill] sm:$0xff] %v9605_v61  ;;  %v5210_v58 = vsel %vm4768_vm5, %v9591_v60, 0.0  ;;  %v9619_v47 = vadd.f32 %v9156_v19, %v9197_v36 }
0x17cc   : > { %v9611_v13 = vpop.eup %7426  ;;  %v5211_v53 = vadd.f32 %v5210_v58, %v5209_v30  ;;  %v5165_v42 = vsel %vm4768_vm5, %v9599_v15, 0.0  ;;  %v9627_v54 = vadd.f32 %v9184_v26, %v9197_v36  ;;  %v9633_v3 = vadd.f32 %v9197_v36, %v9158_v51 }
0x17cd   : > { %v9581_v63 = vpop.f32.mrb[116].mxu1  ;;  %v9615_v0 = vpop.eup %7428  ;;  %11131 = vst [vmem:[#allocation54_spill] sm:$0xff] %v9619_v47  ;;  %v4833_v19 = vsel %vm4768_vm5, %v9605_v61, -inf  ;;  %v9643_v58 = vadd.f32 %v9212_v9, %v9197_v36  ;;  %v9655_v40 = vadd.f32 %v9197_v36, %v9172_v35  ;;  %v5167_v9 = vsel %vm4768_vm5, %v9611_v13, 0.0 }
0x17ce   : > { %11126 = vst [vmem:[#allocation49_spill] sm:$0xff] %v9581_v63  ;;  %v9589_v55 = vpop.f32.mrb[117].mxu1  ;;  %11132 = vst [vmem:[#allocation55_spill] sm:$0xff] %v9627_v54  ;;  %v5212_v26 = vsel %vm4768_vm5, %v9615_v0, 0.0 }
0x17cf   : > { %11127 = vst [vmem:[#allocation50_spill] sm:$0xff] %v9589_v55  ;;  %v9595_v16 = vpop.f32.mrb[118].mxu1  ;;  %11134 = vst [vmem:[#allocation57_spill] sm:$0xff] %v9633_v3  ;;  %v5213_v55 = vadd.f32 %v5212_v26, %v5211_v53  ;;  %v9677_v26 = vadd.f32 %v9197_v36, %v9186_v31  ;;  %v4837_v11 = vsel %vm4768_vm5, %v9643_v58, -inf  ;;  %v9691_v31 = vadd.f32 %v9197_v36, %v9219_v39 }
0x17d0   : > { %11128 = vst [vmem:[#allocation51_spill] sm:$0xff] %v9595_v16  ;;  %v9601_v41 = vpop.f32.mrb[119].mxu1  ;;  %v5188_v16 = vadd.f32 %v5187_v49, %v5186_v25  ;;  %v5166_v25 = vadd.f32 %v5165_v42, %v5164_v6  ;;  %11135 = vst [vmem:[#allocation58_spill] sm:$0xff] %v9643_v58  ;;  %v4832_v42 = vsel %vm4768_vm5, %v9619_v47, -inf }
0x17d1   : > { %11129 = vst [vmem:[#allocation52_spill] sm:$0xff] %v9601_v41  ;;  %v9623_v41 = vpop.eup %7430  ;;  %11137 = vst [vmem:[#allocation60_spill] sm:$0xff] %v9655_v40  ;;  %v4817_v39 = vsel %vm4768_vm5, %v9677_v26, -inf }
0x17d2   : > { %7442 = vrcp.f32 %v5188_v16  ;;  %v9629_v18 = vpop.eup %7432  ;;  %v5065_v16 = vmul.f32 1.442695, %v4949_v14  ;;  %v4835_v14 = vsel %vm4768_vm5, %v9627_v54, -inf  ;;  %v5168_v17 = vadd.f32 %v5167_v9, %v5166_v25  ;;  %11141 = vst [vmem:[#allocation64_spill] sm:$0xff] %v9677_v26  ;;  %11142 = vst [vmem:[#allocation65_spill] sm:$0xff] %v9691_v31 }
0x17d3   : > { %11133 = vst [vmem:[#allocation56_spill] sm:$0xff] %v9629_v18  ;;  %v9639_v49 = vpop.eup %7434  ;;  %7444 = vpow2.f32 %v5049_v52  ;;  %v4834_v52 = vmax.f32 %v4832_v42, %v4833_v19  ;;  %v5190_v19 = vsel %vm4768_vm5, %v9629_v18, 0.0  ;;  %v5169_v42 = vsel %vm4768_vm5, %v9623_v41, 0.0 }
0x17d4   : > { %v9649_v51 = vpop.eup %7436  ;;  %v5189_v53 = vsel %vm4768_vm5, %v9639_v49, 0.0  ;;  %7446 = vpow2.f32 %v5065_v16  ;;  %v5170_v16 = vadd.f32 %v5169_v42, %v5168_v17 }
0x17d5   : > { %v9637_v30 = vpop.f32.mrb[120].mxu1  ;;  %11136 = vst [vmem:[#allocation59_spill] sm:$0xff] %v9649_v51  ;;  %v7439_v46 = vpop.eup %7438  ;;  %v5214_v25 = vsel %vm4768_vm5, %v9649_v51, 0.0  ;;  %v4839_v51 = vsel %vm4768_vm5, %v9665_v59, -inf }
0x17d6   : > { %v9647_v6 = vpop.f32.mrb[121].mxu1  ;;  %v5313_v35 = vmul.f32 %v7439_v46, %v9529_v27  ;;  %v5321_v12 = vmul.f32 %v7439_v46, %v9509_v28  ;;  %v4815_v28 = vsel %vm4768_vm5, %v9655_v40, -inf  ;;  %v4836_v27 = vmax.f32 %v4834_v52, %v4835_v14  ;;  %v9687_v18 = vpop.eup %7440 }
0x17d7   : > { %v9659_v63 = vpop.f32.mrb[122].mxu1  ;;  %v5215_v9 = vadd.f32 %v5214_v25, %v5213_v55  ;;  %v5337_v52 = vmul.f32 %v7439_v46, %v9523_v62  ;;  %v5329_v14 = vmul.f32 %v7439_v46, %v9519_v45  ;;  %v4814_v55 = vsel %vm4768_vm5, %v9633_v3, -inf }
0x17d8   : > { %11138 = vst [vmem:[#allocation61_spill] sm:$0xff] %v9659_v63  ;;  %v9667_v56 = vpop.f32.mrb[123].mxu1  ;;  %5395 = vperm.xlu0 %7263, %v5313_v35   ;;  %5435 = vperm.xlu1 %7262, %v5321_v12   ;;  %v4838_v63 = vmax.f32 %v4836_v27, %v4837_v11  ;;  %v9705_v35 = vadd.f32 %v9197_v36, %v9247_v44  ;;  %v5192_v45 = vsel %vm4768_vm5, %v9687_v18, 0.0  ;;  %v4819_v11 = vsel %vm4768_vm5, %v9691_v31, -inf }
0x17d9   : > { %11140 = vst [vmem:[#allocation63_spill] sm:$0xff] %v9667_v56  ;;  %v5191_v56 = vadd.f32 %v5190_v19, %v5189_v53  ;;  %v4816_v17 = vmax.f32 %v4814_v55, %v4815_v28  ;;  %7448 = vrcp.f32 %v5215_v9 }
0x17da   : > { %11143 = vst [vmem:[#allocation66_spill] sm:$0xff] %v9705_v35  ;;  %v9707_v53 = vmax.f32 %v4838_v63, %v4839_v51  ;;  %7450 = vrcp.f32 %v5170_v16  ;;  %v5345_v63 = vmul.f32 %v7439_v46, %v9533_v33  ;;  %v4821_v42 = vsel %vm4768_vm5, %v9705_v35, -inf }
0x17db   : > { %v5193_v25 = vadd.f32 %v5192_v45, %v5191_v56  ;;  %v4818_v28 = vmax.f32 %v4816_v17, %v4817_v39 }
0x17dc   : > { %v7443_v12 = vpop.eup %7442  ;;  %5515 = vperm.xlu0 %7263, %v5337_v52   ;;  %5475 = vperm.xlu1 %7262, %v5329_v14   ;;  %v4928_v16 = vsub.f32 %v9605_v61, %v9707_v53  ;;  %v4936_v55 = vsub.f32 %v9627_v54, %v9707_v53  ;;  %v4944_v17 = vsub.f32 %v9643_v58, %v9707_v53  ;;  %v11176_v61 = vld [vmem:[#allocation42_spill] sm:$0xff] }
0x17dd   : > { %v9697_v23 = vpop.f32.mrb[124].mxu1  ;;  %v9713_v19 = vpop.eup %7444  ;;  %v5316_v51 = vmul.f32 %v7443_v12, %v9541_v43  ;;  %v4820_v9 = vmax.f32 %v4818_v28, %v4819_v11  ;;  %v5324_v43 = vmul.f32 %v7443_v12, %v9561_v34  ;;  %v5340_v46 = vmul.f32 %v7443_v12, %v9573_v20 }
0x17de   : > { %v9711_v62 = vpop.f32.mrb[125].mxu1  ;;  %v5194_v52 = vsel %vm4768_vm5, %v9713_v19, 0.0  ;;  %v9729_v56 = vpop.eup %7446  ;;  %v5023_v45 = vmul.f32 1.442695, %v4928_v16  ;;  %v4952_v11 = vsub.f32 %v9665_v59, %v9707_v53  ;;  %v5332_v34 = vmul.f32 %v7443_v12, %v9545_v1 }
0x17df   : > { %v9717_v44 = vpop.f32.mrb[126].mxu1  ;;  %v5195_v14 = vadd.f32 %v5194_v52, %v5193_v25  ;;  %v9731_v33 = vmax.f32 %v4820_v9, %v4821_v42  ;;  %v5196_v39 = vsel %vm4768_vm5, %v9729_v56, 0.0  ;;  %v5039_v42 = vmul.f32 1.442695, %v4936_v55 }
0x17e0   : > { %11144 = vst [vmem:[#allocation67_spill] sm:$0xff] %v9717_v44  ;;  %v9721_v27 = vpop.f32.mrb[127].mxu1  ;;  %5555 = vperm.xlu0 %7263, %v5345_v63   ;;  %5410 = vperm.xlu1 %7262, %v5316_v51   ;;  %v5348_v63 = vmul.f32 %v7443_v12, %v9577_v57  ;;  %7452 = vpow2.f32 %v5023_v45  ;;  %v5055_v52 = vmul.f32 1.442695, %v4944_v17  ;;  %v9755_v16 = vadd.f32 %v9249_v7, %v9197_v36 }
0x17e1   : > { %11145 = vst [vmem:[#allocation68_spill] sm:$0xff] %v9721_v27  ;;  %v5197_v25 = vadd.f32 %v5196_v39, %v5195_v14  ;;  %v4926_v20 = vsub.f32 %v9655_v40, %v9731_v33  ;;  %v4934_v9 = vsub.f32 %v9677_v26, %v9731_v33  ;;  %v4920_v14 = vsub.f32 %v9619_v47, %v9707_v53 }
0x17e2   : > { %v5071_v1 = vmul.f32 1.442695, %v4952_v11  ;;  %v9761_v57 = vadd.f32 %v9197_v36, %v9251_v5  ;;  %v4942_v12 = vsub.f32 %v9691_v31, %v9731_v33  ;;  %v4950_v53 = vsub.f32 %v9705_v35, %v9731_v33  ;;  %v11150_v11 = vld [vmem:[#allocation9_spill] sm:$0xff] }
0x17e3   : > { %v9743_v28 = vpop.eup %7448  ;;  %7454 = vrcp.f32 %v5197_v25  ;;  %v5035_v55 = vmul.f32 1.442695, %v4934_v9  ;;  %v9773_v5 = vadd.f32 %v9253_v32, %v9197_v36  ;;  %v9777_v39 = vsel %vm4768_vm5, %v9755_v16, -inf  ;;  %v11148_v32 = vld [vmem:[#allocation8_spill] sm:$0xff] }
0x17e4   : > { %5450 = vperm.xlu0 %7263, %v5324_v43   ;;  %5530 = vperm.xlu1 %7262, %v5340_v46   ;;  %v9749_v51 = vpop.eup %7450  ;;  %11146 = vst [vmem:[#allocation69_spill] sm:$0xff] %v9761_v57  ;;  %v5019_v43 = vmul.f32 1.442695, %v4926_v20  ;;  %v5327_v46 = vmul.f32 %v9743_v28, %v9565_v37  ;;  %7456 = vpow2.f32 %v5039_v42  ;;  %v9781_v37 = vadd.f32 %v9197_v36, %v9257_v21 }
0x17e5   : > { %v5314_v7 = vmul.f32 %v9749_v51, %v9585_v4  ;;  %11147 = vst [vmem:[#allocation70_spill] sm:$0xff] %v9773_v5  ;;  %7458 = vpow2.f32 %v5055_v52  ;;  %v5007_v4 = vmul.f32 1.442695, %v4920_v14  ;;  %v9785_v17 = vsel %vm4768_vm5, %v9761_v57, -inf  ;;  %v11152_v14 = vld [vmem:[#allocation12_spill] sm:$0xff] }
0x17e6   : > { %7460 = vpow2.f32 %v5071_v1  ;;  %v9789_v45 = vadd.f32 %v11148_v32, %v9197_v36  ;;  %v9793_v25 = vadd.f32 %v9197_v36, %v11150_v11  ;;  %v5051_v20 = vmul.f32 1.442695, %v4942_v12  ;;  %v11156_v12 = vld [vmem:[#allocation13_spill] sm:$0xff] }
0x17e7   : > { %7462 = vpow2.f32 %v5019_v43  ;;  %v5335_v21 = vmul.f32 %v9743_v28, %v9591_v60  ;;  %v9801_v42 = vsel %vm4768_vm5, %v9773_v5, -inf  ;;  %v4918_v9 = vsub.f32 %v9633_v3, %v9731_v33  ;;  %v11154_v60 = vld [vmem:[#allocation21_spill] sm:$0xff]  ;;  %v11158_v33 = vld [vmem:[#allocation24_spill] sm:$0xff] }
0x17e8   : > { %5490 = vperm.xlu0 %7263, %v5332_v34   ;;  %5570 = vperm.xlu1 %7262, %v5348_v63   ;;  %11149 = vst [vmem:[#allocation8_spill] sm:$0xff] %v9789_v45  ;;  %11151 = vst [vmem:[#allocation9_spill] sm:$0xff] %v9793_v25  ;;  %v5322_v34 = vmul.f32 %v9749_v51, %v9555_v8  ;;  %7464 = vpow2.f32 %v5035_v55  ;;  %v5067_v63 = vmul.f32 1.442695, %v4950_v53  ;;  %v9807_v52 = vsel %vm4768_vm5, %v9781_v37, -inf }
0x17e9   : > { %v9811_v1 = vadd.f32 %v11152_v14, %v9197_v36  ;;  %v9815_v8 = vadd.f32 %v11154_v60, %v9197_v36  ;;  %7466 = vpow2.f32 %v5007_v4  ;;  %v9819_v43 = vadd.f32 %v9197_v36, %v11156_v12  ;;  %v11162_v14 = vld [vmem:[#allocation29_spill] sm:$0xff] }
0x17ea   : > { %v9831_v55 = vadd.f32 %v9460_v24, %v9197_v36  ;;  %v9833_v32 = vpop.eup %7452  ;;  %7468 = vpow2.f32 %v5051_v20  ;;  %v9837_v4 = vsel %vm4768_vm5, %v9789_v45, -inf  ;;  %v5343_v11 = vmul.f32 %v9743_v28, %v9615_v0 }
0x17eb   : > { %11153 = vst [vmem:[#allocation12_spill] sm:$0xff] %v9811_v1  ;;  %11155 = vst [vmem:[#allocation21_spill] sm:$0xff] %v9815_v8  ;;  %7470 = vpow2.f32 %v5067_v63  ;;  %v9847_v24 = vsel %vm4768_vm5, %v9793_v25, -inf  ;;  %v9851_v20 = vadd.f32 %v9197_v36, %v11162_v14  ;;  %v5003_v60 = vmul.f32 1.442695, %v4918_v9 }
0x17ec   : > { %5465 = vperm.xlu0 %7263, %v5327_v46   ;;  %5400 = vperm.xlu1 %7262, %v5314_v7   ;;  %11157 = vst [vmem:[#allocation13_spill] sm:$0xff] %v9819_v43  ;;  %v9823_v46 = vadd.f32 %v9197_v36, %v11158_v33  ;;  %v11160_v7 = vld [vmem:[#allocation27_spill] sm:$0xff]  ;;  %v9855_v12 = vsel %vm4768_vm5, %v9811_v1, -inf  ;;  %v4860_v0 = vsel %vm4768_vm5, %v9815_v8, -inf  ;;  %v9865_v63 = vadd.f32 %v9539_v2, %v9197_v36 }
0x17ed   : > { %v9827_v53 = vadd.f32 %v11160_v7, %v9197_v36  ;;  %11161 = vst [vmem:[#allocation27_spill] sm:$0xff] %v9831_v55  ;;  %11163 = vst [vmem:[#allocation29_spill] sm:$0xff] %v9851_v20  ;;  %v9871_v9 = vsel %vm4768_vm5, %v9819_v43, -inf  ;;  %v9883_v2 = vadd.f32 %v9197_v36, %v9543_v38  ;;  %v5338_v59 = vmul.f32 %v9749_v51, %v9611_v13  ;;  %v11168_v38 = vld [vmem:[#allocation36_spill] sm:$0xff] }
0x17ee   : > { %11159 = vst [vmem:[#allocation24_spill] sm:$0xff] %v9823_v46  ;;  %11164 = vst [vmem:[#allocation71_spill] sm:$0xff] %v9865_v63  ;;  %v4842_v7 = vsel %vm4768_vm5, %v9823_v46, -inf  ;;  %v4861_v58 = vmax.f32 %v9777_v39, %v4860_v0  ;;  %v9898_v26 = vsel %vm4768_vm5, %v9851_v20, -inf  ;;  %v9902_v3 = vadd.f32 %v11168_v38, %v9197_v36 }
0x17ef   : > { %11165 = vst [vmem:[#allocation72_spill] sm:$0xff] %v9871_v9  ;;  %v4869_v14 = vsel %vm4768_vm5, %v9827_v53, -inf  ;;  %7472 = vpow2.f32 %v5003_v60  ;;  %v4864_v39 = vsel %vm4768_vm5, %v9865_v63, -inf  ;;  %v9916_v0 = vadd.f32 %v9197_v36, %v9647_v6 }
0x17f0   : > { %5505 = vperm.xlu0 %7263, %v5335_v21   ;;  %5440 = vperm.xlu1 %7262, %v5322_v34   ;;  %v5330_v21 = vmul.f32 %v9749_v51, %v9599_v15  ;;  %v9843_v34 = vpop.eup %7454  ;;  %v9861_v15 = vadd.f32 %v9197_v36, %v9467_v48  ;;  %v4862_v48 = vsel %vm4768_vm5, %v9831_v55, -inf  ;;  %11169 = vst [vmem:[#allocation36_spill] sm:$0xff] %v9902_v3 }
0x17f1   : > { %v9867_v33 = vpop.eup %7456  ;;  %v4843_v60 = vmax.f32 %v9785_v17, %v4842_v7  ;;  %v4870_v40 = vmax.f32 %v9801_v42, %v4869_v14  ;;  %v4863_v54 = vmax.f32 %v4861_v58, %v4862_v48  ;;  %v5333_v17 = vmul.f32 %v9843_v34, %v9687_v18 }
0x17f2   : > { %v9879_v35 = vpop.eup %7458  ;;  %v4844_v13 = vsel %vm4768_vm5, %v9861_v15, -inf  ;;  %v9942_v58 = vsel %vm4768_vm5, %v9902_v3, -inf  ;;  %v9952_v48 = vadd.f32 %v9549_v29, %v9197_v36  ;;  %v4848_v18 = vsel %vm4768_vm5, %v9916_v0, -inf }
0x17f3   : > { %v9893_v31 = vpop.eup %7460  ;;  %v4845_v42 = vmax.f32 %v4843_v60, %v4844_v13  ;;  %v4865_v7 = vmax.f32 %v4863_v54, %v4864_v39  ;;  %v5346_v39 = vmul.f32 %v9749_v51, %v9623_v41  ;;  %v9974_v43 = vadd.f32 %v9197_v36, %v11176_v61  ;;  %v11178_v51 = vld [vmem:[#allocation38_spill] sm:$0xff] }
0x17f4   : > { %5545 = vperm.xlu0 %7263, %v5343_v11   ;;  %5480 = vperm.xlu1 %7262, %v5330_v21   ;;  %v5317_v11 = vmul.f32 %v9843_v34, %v9639_v49  ;;  %v9889_v21 = vadd.f32 %v9637_v30, %v9197_v36  ;;  %11167 = vst [vmem:[#allocation74_spill] sm:$0xff] %v9893_v31  ;;  %v9904_v49 = vpop.eup %7462  ;;  %11175 = vst [vmem:[#allocation80_spill] sm:$0xff] %v9952_v48  ;;  %v5221_v61 = vsel %vm4768_vm5, %v9879_v35, 0.0 }
0x17f5   : > { %11170 = vst [vmem:[#allocation75_spill] sm:$0xff] %v9904_v49  ;;  %v9908_v30 = vadd.f32 %v9197_v36, %v9415_v50  ;;  %v9918_v38 = vpop.eup %7464  ;;  %v9924_v50 = vadd.f32 %v9423_v22, %v9197_v36  ;;  %v4852_v22 = vmax.f32 %v9807_v52, %v9898_v26  ;;  %v5217_v26 = vsel %vm4768_vm5, %v9833_v32, 0.0  ;;  %11177 = vst [vmem:[#allocation42_spill] sm:$0xff] %v9974_v43 }
0x17f6   : > { %11166 = vst [vmem:[#allocation73_spill] sm:$0xff] %v9889_v21  ;;  %v9926_v47 = vpop.eup %7466  ;;  %v4866_v6 = vsel %vm4768_vm5, %v9889_v21, -inf }
0x17f7   : > { %11171 = vst [vmem:[#allocation76_spill] sm:$0xff] %v9908_v30  ;;  %11172 = vst [vmem:[#allocation77_spill] sm:$0xff] %v9924_v50  ;;  %v9948_v14 = vsel %vm4768_vm5, %v9908_v30, -inf  ;;  %v9960_v13 = vmax.f32 %v4865_v7, %v4866_v6  ;;  %v5216_v60 = vsel %vm4768_vm5, %v9926_v47, 0.0  ;;  %v9968_v29 = vsel %vm4768_vm5, %v9924_v50, -inf  ;;  %v11179_v7 = vld [vmem:[#allocation61_spill] sm:$0xff] }
0x17f8   : > { %5415 = vperm.xlu0 %7263, %v5317_v11   ;;  %5520 = vperm.xlu1 %7262, %v5338_v59   ;;  %v9930_v11 = vadd.f32 %v9475_v10, %v9197_v36  ;;  %v4846_v59 = vsel %vm4768_vm5, %v9883_v2, -inf  ;;  %v9944_v10 = vpop.eup %7468  ;;  %v9982_v6 = vadd.f32 %v9197_v36, %v11178_v51  ;;  %v9988_v50 = vadd.f32 %v11179_v7, %v9197_v36 }
0x17f9   : > { %11174 = vst [vmem:[#allocation79_spill] sm:$0xff] %v9944_v10  ;;  %v9958_v52 = vpop.eup %7470  ;;  %v4847_v54 = vmax.f32 %v4845_v42, %v4846_v59  ;;  %v5341_v59 = vmul.f32 %v9843_v34, %v9713_v19  ;;  %v5223_v19 = vsel %vm4768_vm5, %v9893_v31, 0.0  ;;  %v5218_v1 = vadd.f32 %v5217_v26, %v5216_v60  ;;  %v11184_v31 = vld [vmem:[#allocation43_spill] sm:$0xff] }
0x17fa   : > { %11173 = vst [vmem:[#allocation78_spill] sm:$0xff] %v9930_v11  ;;  %11180 = vst [vmem:[#allocation38_spill] sm:$0xff] %v9988_v50  ;;  %v9996_v51 = vpop.eup %7472  ;;  %v4873_v36 = vsel %vm4768_vm5, %v9952_v48, -inf  ;;  %v4853_v7 = vsel %vm4768_vm5, %v9974_v43, -inf  ;;  %v4971_v41 = vsub.f32 %v9831_v55, %v9960_v13  ;;  %v5349_v26 = vmul.f32 %v9843_v34, %v9729_v56 }
0x17fb   : > { %v9984_v42 = vmax.f32 %v4847_v54, %v4848_v18  ;;  %11181 = vst [vmem:[#allocation61_spill] sm:$0xff] %v9996_v51  ;;  %v5219_v60 = vsel %vm4768_vm5, %v9867_v33, 0.0  ;;  %v4875_v55 = vsel %vm4768_vm5, %v9988_v50, -inf  ;;  %v5199_v56 = vsel %vm4768_vm5, %v9904_v49, 0.0 }
0x17fc   : > { %5495 = vperm.xlu0 %7263, %v5333_v17   ;;  %v4871_v17 = vsel %vm4768_vm5, %v9930_v11, -inf  ;;  %5560 = vperm.xlu1 %7262, %v5346_v39   ;;  %v4963_v39 = vsub.f32 %v9815_v8, %v9960_v13  ;;  %v5220_v30 = vadd.f32 %v5219_v60, %v5218_v1  ;;  %v5198_v25 = vsel %vm4768_vm5, %v9996_v51, 0.0  ;;  %v11187_v60 = vld [vmem:[#allocation45_spill] sm:$0xff] }
0x17fd   : > { %v4872_v54 = vmax.f32 %v4870_v40, %v4871_v17  ;;  %v10015_v40 = vld [vmem:[%s10956_s13] ss:$0 sm:$0xff]  ;;  %v11182_v17 = vld [vmem:[#allocation48_spill] sm:$0xff]  ;;  %v4953_v18 = vsub.f32 %v9761_v57, %v9984_v42  ;;  %v4961_v27 = vsub.f32 %v9823_v46, %v9984_v42  ;;  %v4854_v9 = vmax.f32 %v4852_v22, %v4853_v7 }
0x17fe   : > { %v4979_v57 = vsub.f32 %v9865_v63, %v9960_v13  ;;  %v5093_v44 = vmul.f32 1.442695, %v4963_v39  ;;  %v10037_v49 = vadd.f32 %v10015_v40, %v11184_v31  ;;  %v5109_v1 = vmul.f32 1.442695, %v4971_v41 }
0x17ff   : > { %v4874_v8 = vmax.f32 %v4872_v54, %v4873_v36  ;;  %v11186_v54 = vld [vmem:[#allocation44_spill] sm:$0xff]  ;;  %v10047_v46 = vadd.f32 %v10015_v40, %v11187_v60  ;;  %v4987_v22 = vsub.f32 %v9889_v21, %v9960_v13  ;;  %v5073_v7 = vmul.f32 1.442695, %v4953_v18  ;;  %v11190_v60 = vld [vmem:[#allocation47_spill] sm:$0xff] }
0x1800   : > { %5535 = vperm.xlu0 %7263, %v5341_v59   ;;  %v10019_v59 = vadd.f32 %v10015_v40, %v11182_v17  ;;  %v5203_v17 = vsel %vm4768_vm5, %v9944_v10, 0.0  ;;  %11185 = vst [vmem:[#allocation43_spill] sm:$0xff] %v10037_v49  ;;  %v10041_v36 = vadd.f32 %v10015_v40, %v11186_v54  ;;  %v5200_v39 = vadd.f32 %v5199_v56, %v5198_v25 }
0x1801   : > { %v4969_v63 = vsub.f32 %v9861_v15, %v9984_v42  ;;  %v5089_v54 = vmul.f32 1.442695, %v4961_v27  ;;  %v5222_v10 = vadd.f32 %v5221_v61, %v5220_v30  ;;  %7474 = vpow2.f32 %v5093_v44 }
0x1802   : > { %11183 = vst [vmem:[#allocation48_spill] sm:$0xff] %v10019_v59  ;;  %v4855_v31 = vsel %vm4768_vm5, %v10019_v59, -inf  ;;  %v5319_v51 = vmul.f32 %v9743_v28, %v11190_v60  ;;  %7476 = vpow2.f32 %v5109_v1  ;;  %v5201_v56 = vsel %vm4768_vm5, %v9918_v38, 0.0 }
0x1803   : > { %v5224_v18 = vadd.f32 %v5223_v19, %v5222_v10  ;;  %v5141_v21 = vmul.f32 1.442695, %v4987_v22  ;;  %7478 = vpow2.f32 %v5073_v7  ;;  %v5202_v27 = vadd.f32 %v5201_v56, %v5200_v39  ;;  %v11191_v19 = vld [vmem:[#allocation59_spill] sm:$0xff] }
0x1804   : > { %5575 = vperm.xlu0 %7263, %v5349_v26   ;;  %v10043_v26 = vmax.f32 %v4874_v8, %v4875_v55  ;;  %v5125_v8 = vmul.f32 1.442695, %v4979_v57  ;;  %v11188_v55 = vld [vmem:[#allocation63_spill] sm:$0xff]  ;;  %5425 = vperm.xlu1 %7262, %v5319_v51   ;;  %v4856_v57 = vmax.f32 %v4854_v9, %v4855_v31  ;;  %7480 = vpow2.f32 %v5089_v54 }
0x1805   : > { %v10057_v41 = vadd.f32 %v10015_v40, %v11188_v55  ;;  %v5105_v30 = vmul.f32 1.442695, %v4969_v63  ;;  %v4955_v61 = vsub.f32 %v9755_v16, %v9960_v13  ;;  %v5351_v1 = vmul.f32 %v9743_v28, %v11191_v19 }
0x1806   : > { %v4956_v25 = vsub.f32 %v9773_v5, %v10043_v26  ;;  %v4964_v44 = vsub.f32 %v9827_v53, %v10043_v26  ;;  %7482 = vpow2.f32 %v5125_v8  ;;  %v5204_v22 = vadd.f32 %v5203_v17, %v5202_v27  ;;  %v11195_v27 = vld [vmem:[#allocation50_spill] sm:$0xff]  ;;  %v11210_v5 = vld [vmem:[#allocation79_spill] sm:$0xff] }
0x1807   : > { %11189 = vst [vmem:[#allocation44_spill] sm:$0xff] %v10057_v41  ;;  %v4857_v10 = vsel %vm4768_vm5, %v10057_v41, -inf  ;;  %v4977_v7 = vsub.f32 %v9883_v2, %v9984_v42  ;;  %7484 = vrcp.f32 %v5224_v18  ;;  %v5077_v51 = vmul.f32 1.442695, %v4955_v61 }
0x1808   : > { %v5079_v55 = vmul.f32 1.442695, %v4956_v25  ;;  %v5205_v63 = vsel %vm4768_vm5, %v9958_v52, 0.0  ;;  %7486 = vpow2.f32 %v5141_v21  ;;  %v4985_v9 = vsub.f32 %v9916_v0, %v9984_v42  ;;  %5585 = vperm.xlu1 %7262, %v5351_v1   ;;  %v11192_v21 = vld [vmem:[#allocation56_spill] sm:$0xff]  ;;  %v11193_v42 = vld [vmem:[#allocation49_spill] sm:$0xff] }
0x1809   : > { %v5095_v13 = vmul.f32 1.442695, %v4964_v44  ;;  %v4898_v39 = vsel %vm4768_vm5, %v10037_v49, -inf  ;;  %v10081_v28 = vmax.f32 %v4856_v57, %v4857_v10  ;;  %v5206_v17 = vadd.f32 %v5205_v63, %v5204_v22 }
0x180a   : > { %7488 = vpow2.f32 %v5077_v51  ;;  %v4880_v31 = vsel %vm4768_vm5, %v10041_v36, -inf  ;;  %v4907_v54 = vsel %vm4768_vm5, %v10047_v46, -inf  ;;  %v5325_v8 = vmul.f32 %v9843_v34, %v11192_v21 }
0x180b   : > { %7490 = vpow2.f32 %v5105_v30  ;;  %v10091_v60 = vadd.f32 %v10015_v40, %v11193_v42  ;;  %v5121_v25 = vmul.f32 1.442695, %v4977_v7  ;;  %v4972_v18 = vsub.f32 %v9930_v11, %v10043_v26  ;;  %v10095_v56 = vpop.eup %7474 }
0x180c   : > { %7492 = vpow2.f32 %v5079_v55  ;;  %v10099_v44 = vsel %vm4768_vm5, %v9982_v6, -inf  ;;  %v10103_v57 = vadd.f32 %v10015_v40, %v11195_v27  ;;  %v5137_v34 = vmul.f32 1.442695, %v4985_v9  ;;  %5455 = vperm.xlu1 %7262, %v5325_v8   ;;  %v10105_v30 = vpop.eup %7476 }
0x180d   : > { %11194 = vst [vmem:[#allocation45_spill] sm:$0xff] %v10091_v60  ;;  %7494 = vpow2.f32 %v5095_v13  ;;  %v4954_v61 = vsub.f32 %v9781_v37, %v10081_v28  ;;  %v4962_v10 = vsub.f32 %v9851_v20, %v10081_v28  ;;  %v10113_v19 = vadd.f32 %v10015_v40, %v9697_v23  ;;  %v10115_v1 = vpop.eup %7478  ;;  %v11199_v13 = vld [vmem:[#allocation46_spill] sm:$0xff] }
0x180e   : > { %7496 = vrcp.f32 %v5206_v17  ;;  %v11196_v22 = vmax.f32 %v9837_v4, %v9942_v58  ;;  %v11197_v55 = vmax.f32 %v9847_v24, %v9948_v14  ;;  %v11198_v63 = vmax.f32 %v9855_v12, %v9968_v29  ;;  %v10134_v17 = vpop.eup %7480  ;;  %v11200_v29 = vld [vmem:[#allocation51_spill] sm:$0xff] }
0x180f   : > { %v10132_v23 = vadd.f32 %v10015_v40, %v11199_v13  ;;  %v4900_v4 = vsel %vm4768_vm5, %v10091_v60, -inf  ;;  %7498 = vpow2.f32 %v5121_v25  ;;  %v4980_v24 = vsub.f32 %v9952_v48, %v10043_v26 }
0x1810   : > { %v4899_v7 = vmax.f32 %v11196_v22, %v4898_v39  ;;  %v10123_v51 = vmax.f32 %v11197_v55, %v4880_v31  ;;  %v10128_v9 = vmax.f32 %v11198_v63, %v4907_v54  ;;  %v5111_v58 = vmul.f32 1.442695, %v4972_v18  ;;  %v10140_v14 = vpop.eup %7482 }
0x1811   : > { %v10144_v12 = vsel %vm4768_vm5, %v10103_v57, -inf  ;;  %v10148_v39 = vadd.f32 %v10015_v40, %v11200_v29  ;;  %7500 = vpow2.f32 %v5137_v34  ;;  %v4988_v31 = vsub.f32 %v9988_v50, %v10043_v26  ;;  %v7485_v54 = vpop.eup %7484 }
0x1812   : > { %v5225_v21 = vsel %vm4768_vm5, %v10115_v1, 0.0  ;;  %v5075_v8 = vmul.f32 1.442695, %v4954_v61  ;;  %v5091_v42 = vmul.f32 1.442695, %v4962_v10  ;;  %v4902_v25 = vsel %vm4768_vm5, %v10113_v19, -inf  ;;  %v10156_v18 = vpop.eup %7486 }
0x1813   : > { %v5226_v27 = vsel %vm4768_vm5, %v10134_v17, 0.0  ;;  %v5320_v22 = vmul.f32 %v7485_v54, %v9926_v47  ;;  %v5328_v34 = vmul.f32 %v7485_v54, %v9833_v32  ;;  %v5244_v26 = vsel %vm4768_vm5, %v10095_v56, 0.0 }
0x1814   : > { %v10164_v55 = vpop.eup %7488  ;;  %v4901_v63 = vmax.f32 %v4899_v7, %v4900_v4  ;;  %7502 = vpow2.f32 %v5111_v58  ;;  %v5127_v61 = vmul.f32 1.442695, %v4980_v24  ;;  %v4970_v10 = vsub.f32 %v9974_v43, %v10081_v28  ;;  %v11206_v43 = vld [vmem:[#allocation75_spill] sm:$0xff] }
0x1815   : > { %v10168_v13 = vpop.eup %7490  ;;  %v4883_v29 = vmax.f32 %v10123_v51, %v10144_v12  ;;  %v5143_v50 = vmul.f32 1.442695, %v4988_v31  ;;  %v4978_v47 = vsub.f32 %v10019_v59, %v10081_v28  ;;  %5430 = vperm.xlu0 %7263, %v5320_v22   ;;  %5470 = vperm.xlu1 %7262, %v5328_v34   ;;  %v5243_v32 = vsel %vm4768_vm5, %v10164_v55, 0.0 }
0x1816   : > { %v10176_v7 = vpop.eup %7492  ;;  %v5227_v4 = vadd.f32 %v5226_v27, %v5225_v21  ;;  %7504 = vpow2.f32 %v5075_v8  ;;  %v10178_v24 = vmax.f32 %v4901_v63, %v4902_v25  ;;  %v5245_v58 = vadd.f32 %v5244_v26, %v5243_v32  ;;  %v11201_v32 = vld [vmem:[#allocation61_spill] sm:$0xff] }
0x1817   : > { %v10180_v48 = vpop.eup %7494  ;;  %7506 = vpow2.f32 %v5091_v42  ;;  %v5344_v51 = vmul.f32 %v7485_v54, %v9879_v35  ;;  %v5336_v12 = vmul.f32 %v7485_v54, %v9867_v33  ;;  %v5246_v31 = vsel %vm4768_vm5, %v10105_v30, 0.0 }
0x1818   : > { %v10186_v22 = vpop.eup %7496  ;;  %7508 = vpow2.f32 %v5127_v61  ;;  %v5107_v34 = vmul.f32 1.442695, %v4970_v10  ;;  %v10190_v21 = vadd.f32 %v10015_v40, %v9711_v62  ;;  %v5247_v8 = vadd.f32 %v5246_v31, %v5245_v58 }
0x1819   : > { %v5248_v25 = vsel %vm4768_vm5, %v10140_v14, 0.0  ;;  %v5250_v35 = vsel %vm4768_vm5, %v10156_v18, 0.0  ;;  %v5228_v33 = vsel %vm4768_vm5, %v10168_v13, 0.0  ;;  %7510 = vpow2.f32 %v5143_v50  ;;  %5550 = vperm.xlu0 %7263, %v5344_v51   ;;  %5510 = vperm.xlu1 %7262, %v5336_v12   ;;  %v10198_v42 = vpop.eup %7498  ;;  %v11202_v51 = vld [vmem:[#allocation74_spill] sm:$0xff] }
0x181a   : > { %v5229_v27 = vadd.f32 %v5228_v33, %v5227_v4  ;;  %v4959_v62 = vsub.f32 %v9789_v45, %v10178_v24  ;;  %v4967_v26 = vsub.f32 %v9902_v3, %v10178_v24  ;;  %v5249_v63 = vadd.f32 %v5248_v25, %v5247_v8  ;;  %v11203_v45 = vld [vmem:[#allocation67_spill] sm:$0xff] }
0x181b   : > { %v10204_v61 = vpop.eup %7500  ;;  %v5252_v10 = vsel %vm4768_vm5, %v10176_v7, 0.0  ;;  %v5253_v50 = vsel %vm4768_vm5, %v10180_v48, 0.0  ;;  %v5318_v58 = vmul.f32 %v10186_v22, %v11201_v32  ;;  %v5352_v4 = vmul.f32 %v7485_v54, %v11202_v51 }
0x181c   : > { %v4909_v12 = vsel %vm4768_vm5, %v10148_v39, -inf  ;;  %v4986_v31 = vsub.f32 %v10057_v41, %v10081_v28  ;;  %v5123_v8 = vmul.f32 1.442695, %v4978_v47  ;;  %v5251_v25 = vadd.f32 %v5250_v35, %v5249_v63  ;;  %v11204_v47 = vld [vmem:[#allocation72_spill] sm:$0xff] }
0x181d   : > { %v5230_v33 = vsel %vm4768_vm5, %v10198_v42, 0.0  ;;  %7512 = vpow2.f32 %v5107_v34  ;;  %v4884_v3 = vsel %vm4768_vm5, %v10190_v21, -inf  ;;  %v10223_v32 = vadd.f32 %v10015_v40, %v11203_v45  ;;  %5420 = vperm.xlu0 %7263, %v5318_v58   ;;  %5590 = vperm.xlu1 %7262, %v5352_v4   ;;  %v11205_v63 = vld [vmem:[#allocation52_spill] sm:$0xff] }
0x181e   : > { %v10225_v54 = vpop.eup %7502  ;;  %v5231_v51 = vadd.f32 %v5230_v33, %v5229_v27  ;;  %v5254_v59 = vadd.f32 %v5253_v50, %v5252_v10  ;;  %v5085_v28 = vmul.f32 1.442695, %v4959_v62  ;;  %7514 = vrcp.f32 %v5251_v25 }
0x181f   : > { %v4888_v35 = vmax.f32 %v11204_v47, %v10099_v44  ;;  %v10231_v34 = vadd.f32 %v10015_v40, %v11205_v63  ;;  %v5101_v41 = vmul.f32 1.442695, %v4967_v26  ;;  %v5326_v45 = vmul.f32 %v10186_v22, %v11206_v43 }
0x1820   : > { %v10235_v11 = vpop.eup %7504  ;;  %v4889_v58 = vsel %vm4768_vm5, %v10132_v23, -inf  ;;  %v4910_v27 = vmax.f32 %v10128_v9, %v4909_v12  ;;  %v5139_v62 = vmul.f32 1.442695, %v4986_v31  ;;  %v10240_v10 = vmax.f32 %v4883_v29, %v4884_v3 }
0x1821   : > { %v10242_v50 = vpop.eup %7506  ;;  %v5232_v44 = vsel %vm4768_vm5, %v10204_v61, 0.0  ;;  %v5255_v26 = vsel %vm4768_vm5, %v10225_v54, 0.0  ;;  %7516 = vpow2.f32 %v5123_v8  ;;  %v4975_v43 = vsub.f32 %v10037_v49, %v10178_v24  ;;  %5460 = vperm.xlu1 %7262, %v5326_v45   ;;  %v11208_v45 = vld [vmem:[#allocation76_spill] sm:$0xff] }
0x1822   : > { %v10250_v4 = vpop.eup %7508  ;;  %v5233_v25 = vadd.f32 %v5232_v44, %v5231_v51  ;;  %v5256_v9 = vadd.f32 %v5255_v26, %v5254_v59  ;;  %7518 = vpow2.f32 %v5085_v28  ;;  %v4911_v3 = vsel %vm4768_vm5, %v10223_v32, -inf  ;;  %v11207_v51 = vld [vmem:[#allocation9_spill] sm:$0xff]  ;;  %v11209_v26 = vld [vmem:[#allocation68_spill] sm:$0xff] }
0x1823   : > { %v10254_v29 = vpop.eup %7510  ;;  %v4891_v12 = vsel %vm4768_vm5, %v10231_v34, -inf  ;;  %v4983_v31 = vsub.f32 %v10091_v60, %v10178_v24  ;;  %7520 = vpow2.f32 %v5101_v41  ;;  %v5334_v8 = vmul.f32 %v10186_v22, %v9918_v38 }
0x1824   : > { %7522 = vpow2.f32 %v5139_v62  ;;  %v5234_v59 = vsel %vm4768_vm5, %v10235_v11, 0.0  ;;  %v5235_v33 = vsel %vm4768_vm5, %v10242_v50, 0.0  ;;  %v4957_v28 = vsub.f32 %v11207_v51, %v10240_v10 }
0x1825   : > { %v5257_v47 = vsel %vm4768_vm5, %v10250_v4, 0.0  ;;  %v5117_v63 = vmul.f32 1.442695, %v4975_v43  ;;  %v4965_v41 = vsub.f32 %v11208_v45, %v10240_v10  ;;  %v10272_v44 = vmax.f32 %v4910_v27, %v4911_v3  ;;  %5500 = vperm.xlu1 %7262, %v5334_v8  }
0x1826   : > { %v4890_v38 = vmax.f32 %v4888_v35, %v4889_v58  ;;  %7524 = vrcp.f32 %v5233_v25  ;;  %v5258_v62 = vadd.f32 %v5257_v47, %v5256_v9  ;;  %v10276_v60 = vadd.f32 %v10015_v40, %v11209_v26  ;;  %v11211_v25 = vld [vmem:[#allocation12_spill] sm:$0xff] }
0x1827   : > { %v10278_v49 = vpop.eup %7512  ;;  %v5236_v51 = vadd.f32 %v5235_v33, %v5234_v59  ;;  %v4991_v20 = vsub.f32 %v10113_v19, %v10178_v24  ;;  %v5133_v43 = vmul.f32 1.442695, %v4983_v31  ;;  %v5342_v45 = vmul.f32 %v10186_v22, %v11210_v5  ;;  %v11212_v31 = vld [vmem:[#allocation77_spill] sm:$0xff] }
0x1828   : > { %v10284_v27 = vpop.eup %7514  ;;  %v4892_v3 = vmax.f32 %v4890_v38, %v4891_v12  ;;  %v5259_v35 = vsel %vm4768_vm5, %v10254_v29, 0.0  ;;  %v5081_v58 = vmul.f32 1.442695, %v4957_v28  ;;  %7526 = vpow2.f32 %v5117_v63 }
0x1829   : > { %v5097_v40 = vmul.f32 1.442695, %v4965_v41  ;;  %v4960_v9 = vsub.f32 %v11211_v25, %v10272_v44  ;;  %v5355_v8 = vmul.f32 %v10284_v27, %v10164_v55  ;;  %5540 = vperm.xlu1 %7262, %v5342_v45   ;;  %v5260_v24 = vadd.f32 %v5259_v35, %v5258_v62 }
0x182a   : > { %v5237_v5 = vsel %vm4768_vm5, %v10278_v49, 0.0  ;;  %v4968_v12 = vsub.f32 %v11212_v31, %v10272_v44  ;;  %v4893_v59 = vsel %vm4768_vm5, %v10276_v60, -inf  ;;  %7528 = vpow2.f32 %v5133_v43 }
0x182b   : > { %v10298_v33 = vpop.eup %7516  ;;  %v5238_v28 = vadd.f32 %v5237_v5, %v5236_v51  ;;  %v5149_v47 = vmul.f32 1.442695, %v4991_v20  ;;  %5605 = vperm.xlu0 %7263, %v5355_v8   ;;  %v5350_v55 = vmul.f32 %v10186_v22, %v9958_v52  ;;  %v4973_v45 = vsub.f32 %v10041_v36, %v10240_v10 }
0x182c   : > { %v10302_v63 = vpop.eup %7518  ;;  %v4981_v41 = vsub.f32 %v10103_v57, %v10240_v10  ;;  %7530 = vpow2.f32 %v5081_v58  ;;  %v5087_v62 = vmul.f32 1.442695, %v4960_v9  ;;  %v10310_v51 = vmax.f32 %v4892_v3, %v4893_v59 }
0x182d   : > { %v10308_v38 = vpop.eup %7520  ;;  %7532 = vpow2.f32 %v5097_v40  ;;  %v5371_v20 = vmul.f32 %v10284_v27, %v10105_v30  ;;  %5580 = vperm.xlu1 %7262, %v5350_v55   ;;  %v5239_v22 = vsel %vm4768_vm5, %v10298_v33, 0.0  ;;  %v4989_v26 = vsub.f32 %v10190_v21, %v10240_v10 }
0x182e   : > { %v10314_v52 = vpop.eup %7522  ;;  %7534 = vrcp.f32 %v5260_v24  ;;  %v5103_v43 = vmul.f32 1.442695, %v4968_v12  ;;  %v5240_v35 = vadd.f32 %v5239_v22, %v5238_v28  ;;  %v5363_v3 = vmul.f32 %v10284_v27, %v10095_v56  ;;  %v11213_v24 = vld [vmem:[#allocation13_spill] sm:$0xff] }
0x182f   : > { %7536 = vpow2.f32 %v5149_v47  ;;  %5685 = vperm.xlu0 %7263, %v5371_v20   ;;  %v5279_v30 = vsel %vm4768_vm5, %v10302_v63, 0.0  ;;  %v5280_v40 = vsel %vm4768_vm5, %v10308_v38, 0.0  ;;  %v5113_v9 = vmul.f32 1.442695, %v4973_v45 }
0x1830   : > { %v10322_v58 = vpop.eup %7524  ;;  %v4976_v8 = vsub.f32 %v10047_v46, %v10272_v44  ;;  %v5129_v10 = vmul.f32 1.442695, %v4981_v41  ;;  %7538 = vpow2.f32 %v5087_v62  ;;  %v4958_v5 = vsub.f32 %v11213_v24, %v10310_v51 }
0x1831   : > { %v5379_v56 = vmul.f32 %v10284_v27, %v10140_v14  ;;  %5645 = vperm.xlu1 %7262, %v5363_v3   ;;  %v5241_v12 = vsel %vm4768_vm5, %v10314_v52, 0.0  ;;  %v5145_v59 = vmul.f32 1.442695, %v4989_v26  ;;  %7540 = vpow2.f32 %v5103_v43 }
0x1832   : > { %v4966_v28 = vsub.f32 %v9982_v6, %v10310_v51  ;;  %v10338_v47 = vpop.eup %7526  ;;  %v5242_v55 = vadd.f32 %v5241_v12, %v5240_v35  ;;  %v5281_v45 = vadd.f32 %v5280_v40, %v5279_v30  ;;  %v5361_v41 = vmul.f32 %v10322_v58, %v10134_v17 }
0x1833   : > { %5725 = vperm.xlu0 %7263, %v5379_v56   ;;  %7542 = vpow2.f32 %v5113_v9  ;;  %v4984_v14 = vsub.f32 %v10148_v39, %v10272_v44  ;;  %v5119_v62 = vmul.f32 1.442695, %v4976_v8  ;;  %v5083_v22 = vmul.f32 1.442695, %v4958_v5  ;;  %v10366_v5 = vpop.permute.xlu1 %5405 }
0x1834   : > { %v10344_v20 = vpop.eup %7528  ;;  %7544 = vpow2.f32 %v5129_v10  ;;  %v5387_v26 = vmul.f32 %v10284_v27, %v10156_v18  ;;  %v5282_v35 = vsel %vm4768_vm5, %v10338_v47, 0.0  ;;  %v4992_v17 = vsub.f32 %v10223_v32, %v10272_v44 }
0x1835   : > { %5635 = vperm.xlu1 %7262, %v5361_v41   ;;  %7546 = vpow2.f32 %v5145_v59  ;;  %v5099_v3 = vmul.f32 1.442695, %v4966_v28  ;;  %v5283_v40 = vadd.f32 %v5282_v35, %v5281_v45  ;;  %v5377_v9 = vmul.f32 %v10322_v58, %v10198_v42 }
0x1836   : > { %v10348_v43 = vpop.eup %7530  ;;  %7548 = vrcp.f32 %v5242_v55  ;;  %v5135_v27 = vmul.f32 1.442695, %v4984_v14  ;;  %v4974_v8 = vsub.f32 %v10132_v23, %v10310_v51  ;;  %v5353_v44 = vmul.f32 %v10322_v58, %v10115_v1 }
0x1837   : > { %v10354_v30 = vpop.eup %7532  ;;  %5765 = vperm.xlu0 %7263, %v5387_v26   ;;  %7550 = vpow2.f32 %v5119_v62  ;;  %v5284_v56 = vsel %vm4768_vm5, %v10344_v20, 0.0  ;;  %v5151_v42 = vmul.f32 1.442695, %v4992_v17  ;;  %v5261_v28 = vsel %vm4768_vm5, %v10348_v43, 0.0 }
0x1838   : > { %v10358_v18 = vpop.eup %7534  ;;  %7552 = vpow2.f32 %v5083_v22  ;;  %v5285_v59 = vadd.f32 %v5284_v56, %v5283_v40  ;;  %v5262_v55 = vsel %vm4768_vm5, %v10354_v30, 0.0  ;;  %v4982_v41 = vsub.f32 %v10231_v34, %v10310_v51 }
0x1839   : > { %v10362_v10 = vpop.eup %7536  ;;  %5715 = vperm.xlu1 %7262, %v5377_v9   ;;  %7554 = vpow2.f32 %v5099_v3  ;;  %v5364_v1 = vmul.f32 %v10358_v18, %v10180_v48  ;;  %v5115_v14 = vmul.f32 1.442695, %v4974_v8  ;;  %v5369_v62 = vmul.f32 %v10322_v58, %v10168_v13  ;;  %v10396_v9 = vpop.permute.xlu1 %5445 }
0x183a   : > { %v10370_v12 = vpop.eup %7538  ;;  %7556 = vpow2.f32 %v5135_v27  ;;  %v5286_v26 = vsel %vm4768_vm5, %v10362_v10, 0.0  ;;  %v5263_v35 = vadd.f32 %v5262_v55, %v5261_v28  ;;  %v5372_v13 = vmul.f32 %v10358_v18, %v10225_v54 }
0x183b   : > { %5595 = vperm.xlu0 %7263, %v5353_v44   ;;  %v10378_v45 = vpop.eup %7540  ;;  %7558 = vpow2.f32 %v5151_v42  ;;  %v5287_v48 = vadd.f32 %v5286_v26, %v5285_v59  ;;  %v5288_v3 = vsel %vm4768_vm5, %v10370_v12, 0.0  ;;  %v4990_v8 = vsub.f32 %v10276_v60, %v10310_v51 }
0x183c   : > { %v5289_v40 = vsel %vm4768_vm5, %v10378_v45, 0.0  ;;  %7560 = vpow2.f32 %v5115_v14  ;;  %v5131_v44 = vmul.f32 1.442695, %v4982_v41  ;;  %v5385_v59 = vmul.f32 %v10322_v58, %v10204_v61 }
0x183d   : > { %5650 = vperm.xlu1 %7262, %v5364_v1   ;;  %v10384_v22 = vpop.eup %7542  ;;  %v5290_v55 = vadd.f32 %v5289_v40, %v5288_v3  ;;  %7562 = vrcp.f32 %v5287_v48  ;;  %v5380_v51 = vmul.f32 %v10358_v18, %v10250_v4  ;;  %v5147_v14 = vmul.f32 1.442695, %v4990_v8  ;;  %v10420_v26 = vpop.permute.xlu1 %5485 }
0x183e   : > { %v10388_v17 = vpop.eup %7544  ;;  %v5264_v42 = vsel %vm4768_vm5, %v10384_v22, 0.0  ;;  %7564 = vpow2.f32 %v5131_v44  ;;  %v5356_v58 = vmul.f32 %v10358_v18, %v10176_v7 }
0x183f   : > { %5675 = vperm.xlu0 %7263, %v5369_v62   ;;  %v10398_v27 = vpop.eup %7546  ;;  %v5265_v54 = vadd.f32 %v5264_v42, %v5263_v35  ;;  %v5266_v62 = vsel %vm4768_vm5, %v10388_v17, 0.0  ;;  %7566 = vpow2.f32 %v5147_v14 }
0x1840   : > { %v7549_v56 = vpop.eup %7548  ;;  %v5268_v7 = vsel %vm4768_vm5, %v10398_v27, 0.0 }
0x1841   : > { %5690 = vperm.xlu1 %7262, %v5372_v13   ;;  %v10406_v28 = vpop.eup %7550  ;;  %v5267_v48 = vadd.f32 %v5266_v62, %v5265_v54  ;;  %v5388_v13 = vmul.f32 %v10358_v18, %v10254_v29  ;;  %v5354_v42 = vmul.f32 %v7549_v56, %v10235_v11  ;;  %v5362_v29 = vmul.f32 %v7549_v56, %v10242_v50  ;;  %v10440_v18 = vpop.permute.xlu0 %5565 }
0x1842   : > { %v10408_v1 = vpop.eup %7552  ;;  %v5291_v61 = vsel %vm4768_vm5, %v10406_v28, 0.0  ;;  %v10442_v14 = vpop.permute.xlu1 %5525  ;;  %v5378_v50 = vmul.f32 %v7549_v56, %v10298_v33 }
0x1843   : > { %5755 = vperm.xlu0 %7263, %v5385_v59   ;;  %v10412_v41 = vpop.eup %7554  ;;  %v5292_v4 = vadd.f32 %v5291_v61, %v5290_v55  ;;  %v5270_v3 = vsel %vm4768_vm5, %v10408_v1, 0.0  ;;  %v5269_v54 = vadd.f32 %v5268_v7, %v5267_v48 }
0x1844   : > { %v10422_v35 = vpop.eup %7556  ;;  %v5271_v40 = vsel %vm4768_vm5, %v10412_v41, 0.0 }
0x1845   : > { %5730 = vperm.xlu1 %7262, %v5380_v51   ;;  %v10430_v8 = vpop.eup %7558  ;;  %v5293_v44 = vsel %vm4768_vm5, %v10422_v35, 0.0  ;;  %v5272_v51 = vadd.f32 %v5271_v40, %v5270_v3  ;;  %7568 = vrcp.f32 %v5269_v54  ;;  %v5386_v54 = vmul.f32 %v7549_v56, %v10314_v52 }
0x1846   : > { %v10437_v59 = vpop.eup %7560  ;;  %v5294_v55 = vadd.f32 %v5293_v44, %v5292_v4  ;;  %v5295_v61 = vsel %vm4768_vm5, %v10430_v8, 0.0 }
0x1847   : > { %5610 = vperm.xlu0 %7263, %v5356_v58   ;;  %v10444_v62 = vpop.eup %7562  ;;  %v5273_v11 = vsel %vm4768_vm5, %v10437_v59, 0.0  ;;  %v5370_v58 = vmul.f32 %v7549_v56, %v10278_v49 }
0x1848   : > { %v7565_v48 = vpop.eup %7564  ;;  %v5296_v4 = vadd.f32 %v5295_v61, %v5294_v55  ;;  %v5274_v3 = vadd.f32 %v5273_v11, %v5272_v51  ;;  %v5375_v33 = vmul.f32 %v10444_v62, %v10338_v47  ;;  %v5359_v61 = vmul.f32 %v10444_v62, %v10302_v63 }
0x1849   : > { %5770 = vperm.xlu1 %7262, %v5388_v13   ;;  %v5275_v40 = vsel %vm4768_vm5, %v7565_v48, 0.0  ;;  %v5367_v13 = vmul.f32 %v10444_v62, %v10308_v38 }
0x184a   : > { %7570 = vrcp.f32 %v5296_v4  ;;  %v5276_v49 = vadd.f32 %v5275_v40, %v5274_v3 }
0x184b   : > { %5600 = vperm.xlu0 %7263, %v5354_v42   ;;  %v7567_v42 = vpop.eup %7566 }
0x184c   : > { %v5277_v55 = vsel %vm4768_vm5, %v7567_v42, 0.0 }
0x184d   : > { %5640 = vperm.xlu1 %7262, %v5362_v29   ;;  %v5278_v29 = vadd.f32 %v5277_v55, %v5276_v49 }
0x184f   : > { %5680 = vperm.xlu0 %7263, %v5370_v58   ;;  %v7569_v11 = vpop.eup %7568  ;;  %v5383_v58 = vmul.f32 %v10444_v62, %v10344_v20  ;;  %7572 = vrcp.f32 %v5278_v29 }
0x1850   : > { %v5357_v47 = vmul.f32 %v7569_v11, %v10348_v43  ;;  %v5365_v3 = vmul.f32 %v7569_v11, %v10354_v30  ;;  %v5373_v20 = vmul.f32 %v7569_v11, %v10384_v22 }
0x1851   : > { %5720 = vperm.xlu1 %7262, %v5378_v50  }
0x1853   : > { %5665 = vperm.xlu0 %7263, %v5367_v13  }
0x1854   : > { %v7571_v4 = vpop.eup %7570 }
0x1855   : > { %5760 = vperm.xlu1 %7262, %v5386_v54   ;;  %v5368_v63 = vmul.f32 %v7571_v4, %v10378_v45  ;;  %v5376_v49 = vmul.f32 %v7571_v4, %v10406_v28  ;;  %v5381_v54 = vmul.f32 %v7569_v11, %v10388_v17  ;;  %v5360_v28 = vmul.f32 %v7571_v4, %v10370_v12 }
0x1857   : > { %v10455_v7 = vpop.permute.xlu0 %5395  ;;  %v10457_v44 = vpop.permute.xlu1 %5435  ;;  %5705 = vperm.xlu0 %7263, %v5375_v33   ;;  %v5389_v33 = vmul.f32 %v7569_v11, %v10398_v27  ;;  %v5384_v11 = vmul.f32 %v7571_v4, %v10422_v35 }
0x1859   : > { %5625 = vperm.xlu1 %7262, %v5359_v61   ;;  %v7573_v43 = vpop.eup %7572 }
0x185a   : > { %v5366_v45 = vmul.f32 %v7573_v43, %v10412_v41  ;;  %v5374_v22 = vmul.f32 %v7573_v43, %v10437_v59  ;;  %v5382_v17 = vmul.f32 %v7573_v43, %v7565_v48  ;;  %v5390_v27 = vmul.f32 %v7573_v43, %v7567_v42  ;;  %v11215_v42 = vld [vmem:[#allocation2_spill] sm:$0xff] }
0x185b   : > { %v10463_v51 = vpop.permute.xlu0 %5515  ;;  %v10465_v38 = vpop.permute.xlu1 %5475  ;;  %5745 = vperm.xlu0 %7263, %v5383_v58   ;;  %v5358_v58 = vmul.f32 %v7573_v43, %v10408_v1  ;;  %v5391_v59 = vmul.f32 %v10444_v62, %v10362_v10  ;;  %v5392_v48 = vmul.f32 %v7571_v4, %v10430_v8  ;;  %v5795_v35 = vmul.f32 %v10366_v5, %v11215_v42  ;;  %v11216_v43 = vld [vmem:[#allocation5_spill] sm:$0xff]  ;;  %v11218_v4 = vld [vmem:[#allocation10_spill] sm:$0xff] }
0x185d   : > { %5615 = vperm.xlu1 %7262, %v5357_v47  }
0x185f   : > { %v10471_v52 = vpop.permute.xlu1 %5410  ;;  %v10473_v56 = vpop.permute.xlu0 %5555  ;;  %5655 = vperm.xlu0 %7263, %v5365_v3  }
0x1861   : > { %5670 = vperm.xlu1 %7262, %v5368_v63  }
0x1863   : > { %v10477_v50 = vpop.permute.xlu1 %5530  ;;  %v10480_v40 = vpop.permute.xlu0 %5450  ;;  %5695 = vperm.xlu0 %7263, %v5373_v20   ;;  %v11214_v20 = vld [vmem:[#allocation3_spill] sm:$0xff] }
0x1865   : > { %5710 = vperm.xlu1 %7262, %v5376_v49   ;;  %v5803_v49 = vmul.f32 %v10396_v9, %v11214_v20  ;;  %v11222_v20 = vld [vmem:[#allocation17_spill] sm:$0xff] }
0x1867   : > { %v10483_v13 = vpop.permute.xlu1 %5570  ;;  %v10487_v30 = vpop.permute.xlu0 %5490  ;;  %5735 = vperm.xlu0 %7263, %v5381_v54   ;;  %v5811_v54 = vmul.f32 %v10420_v26, %v11216_v43  ;;  %v5892_v8 = vsel %vm602_vm0, %v5803_v49, 0.0  ;;  %v11220_v26 = vld [vmem:[#allocation11_spill] sm:$0xff]  ;;  %v11223_v49 = vld [vmem:[#allocation18_spill] sm:$0xff] }
0x1869   : > { %5660 = vperm.xlu1 %7262, %v5366_v45   ;;  %v11217_v45 = vld [vmem:[#allocation6_spill] sm:$0xff]  ;;  %v5894_v5 = vsel %vm602_vm0, %v5811_v54, 0.0  ;;  %v11225_v54 = vld [vmem:[#allocation28_spill] sm:$0xff] }
0x186a   : > { %v5801_v10 = vmul.f32 %v10457_v44, %v11217_v45  ;;  %v11221_v44 = vld [vmem:[#allocation23_spill] sm:$0xff] }
0x186b   : > { %v5401_v55 = vpop.permute.xlu1 %5400  ;;  %5775 = vperm.xlu0 %7263, %v5389_v33   ;;  %v10492_v29 = vpop.permute.xlu0 %5465 }
0x186c   : > { %v5794_v42 = vmul.f32 %v5401_v55, %v11223_v49 }
0x186d   : > { %5700 = vperm.xlu1 %7262, %v5374_v22   ;;  %v5793_v22 = vmul.f32 %v10455_v7, %v11218_v4  ;;  %v5796_v7 = vmul.f32 %v10471_v52, %v11222_v20 }
0x186f   : > { %v5441_v61 = vpop.permute.xlu1 %5440  ;;  %5630 = vperm.xlu0 %7263, %v5360_v28   ;;  %v10496_v47 = vpop.permute.xlu0 %5505  ;;  %v5891_v28 = vsel %vm602_vm0, %v5795_v35, 0.0  ;;  %v11224_v35 = vld [vmem:[#allocation7_spill] sm:$0xff]  ;;  %v5873_v43 = vsel %vm602_vm0, %v5793_v22, 0.0  ;;  %v11229_v22 = vld [vmem:[#allocation14_spill] sm:$0xff] }
0x1871   : > { %5740 = vperm.xlu1 %7262, %v5382_v17   ;;  %v11219_v17 = vld [vmem:[#allocation4_spill] sm:$0xff] }
0x1872   : > { %v5819_v9 = vmul.f32 %v10442_v14, %v11219_v17  ;;  %v5827_v14 = vmul.f32 %v10440_v18, %v11224_v35  ;;  %v11226_v17 = vld [vmem:[#allocation37_spill] sm:$0xff]  ;;  %v11232_v35 = vld [vmem:[#allocation34_spill] sm:$0xff] }
0x1873   : > { %v5481_v41 = vpop.permute.xlu1 %5480  ;;  %5620 = vperm.xlu0 %7263, %v5358_v58   ;;  %v10501_v3 = vpop.permute.xlu0 %5545  ;;  %v5874_v58 = vsel %vm602_vm0, %v5801_v10, 0.0 }
0x1874   : > { %v5810_v45 = vmul.f32 %v5481_v41, %v11225_v54  ;;  %v5817_v41 = vmul.f32 %v10463_v51, %v11229_v22 }
0x1875   : > { %5780 = vperm.xlu1 %7262, %v5390_v27   ;;  %v5809_v27 = vmul.f32 %v10465_v38, %v11220_v26  ;;  %v5896_v38 = vsel %vm602_vm0, %v5819_v9, 0.0  ;;  %v5882_v9 = vsel %vm602_vm0, %v5794_v42, 0.0 }
0x1877   : > { %5750 = vperm.xlu0 %7263, %v5384_v11   ;;  %v5521_v12 = vpop.permute.xlu1 %5520  ;;  %v5416_v1 = vpop.permute.xlu0 %5415  ;;  %v5802_v11 = vmul.f32 %v5441_v61, %v11221_v44  ;;  %v5875_v61 = vadd.f32 %v5874_v58, %v5873_v43  ;;  %v5876_v52 = vsel %vm602_vm0, %v5809_v27, 0.0  ;;  %v11228_v44 = vld [vmem:[#allocation32_spill] sm:$0xff]  ;;  %v11230_v58 = vld [vmem:[#allocation35_spill] sm:$0xff]  ;;  %v11233_v43 = vld [vmem:[#allocation22_spill] sm:$0xff] }
0x1878   : > { %v5797_v26 = vmul.f32 %v5416_v1, %v11226_v17  ;;  %v5818_v18 = vmul.f32 %v5521_v12, %v11228_v44  ;;  %v11231_v1 = vld [vmem:[#allocation39_spill] sm:$0xff] }
0x1879   : > { %5785 = vperm.xlu1 %7262, %v5391_v59   ;;  %v5883_v55 = vsel %vm602_vm0, %v5802_v11, 0.0  ;;  %v5877_v54 = vadd.f32 %v5876_v52, %v5875_v61 }
0x187a   : > { %v5909_v12 = vsel %vm602_vm0, %v5797_v26, 0.0  ;;  %v5884_v17 = vadd.f32 %v5883_v55, %v5882_v9  ;;  %v5887_v44 = vsel %vm602_vm0, %v5818_v18, 0.0  ;;  %v11236_v55 = vld [vmem:[#allocation40_spill] sm:$0xff] }
0x187b   : > { %5790 = vperm.xlu0 %7263, %v5392_v48   ;;  %v5561_v63 = vpop.permute.xlu1 %5560  ;;  %v5496_v62 = vpop.permute.xlu0 %5495  ;;  %v5893_v48 = vadd.f32 %v5892_v8, %v5891_v28  ;;  %v11227_v8 = vld [vmem:[#allocation15_spill] sm:$0xff] }
0x187c   : > { %v5804_v28 = vmul.f32 %v10480_v40, %v11227_v8  ;;  %v5813_v49 = vmul.f32 %v5496_v62, %v11231_v1  ;;  %v5885_v40 = vsel %vm602_vm0, %v5810_v45, 0.0  ;;  %v5826_v27 = vmul.f32 %v5561_v63, %v11232_v35  ;;  %v11234_v8 = vld [vmem:[#allocation19_spill] sm:$0xff]  ;;  %v11235_v63 = vld [vmem:[#allocation20_spill] sm:$0xff] }
0x187d   : > { %v5895_v4 = vadd.f32 %v5894_v5, %v5893_v48  ;;  %v5900_v5 = vsel %vm602_vm0, %v5796_v7, 0.0  ;;  %v5807_v42 = vmul.f32 %v10492_v29, %v11234_v8  ;;  %v5878_v45 = vsel %vm602_vm0, %v5817_v41, 0.0  ;;  %v11237_v29 = vld [vmem:[#allocation16_spill] sm:$0xff] }
0x187e   : > { %v5901_v7 = vsel %vm602_vm0, %v5804_v28, 0.0  ;;  %v5886_v52 = vadd.f32 %v5885_v40, %v5884_v17  ;;  %v5912_v26 = vsel %vm602_vm0, %v5813_v49, 0.0  ;;  %v5889_v28 = vsel %vm602_vm0, %v5826_v27, 0.0 }
0x187f   : > { %v5536_v10 = vpop.permute.xlu0 %5535  ;;  %v5902_v61 = vadd.f32 %v5901_v7, %v5900_v5  ;;  %v5825_v18 = vmul.f32 %v10473_v56, %v11237_v29  ;;  %v5897_v35 = vadd.f32 %v5896_v38, %v5895_v4  ;;  %v11239_v5 = vld [vmem:[#allocation25_spill] sm:$0xff] }
0x1880   : > { %v5821_v22 = vmul.f32 %v5536_v10, %v11236_v55  ;;  %v5888_v41 = vadd.f32 %v5887_v44, %v5886_v52  ;;  %v5815_v49 = vmul.f32 %v10496_v47, %v11239_v5  ;;  %v5879_v10 = vadd.f32 %v5878_v45, %v5877_v54  ;;  %v11242_v44 = vld [vmem:[#allocation30_spill] sm:$0xff]  ;;  %v11244_v5 = vld [vmem:[#allocation53_spill] sm:$0xff] }
0x1881   : > { %v5880_v7 = vsel %vm602_vm0, %v5825_v18, 0.0  ;;  %v5898_v54 = vsel %vm602_vm0, %v5827_v14, 0.0 }
0x1882   : > { %v10581_v45 = vadd.f32 %v5880_v7, %v5879_v10 }
0x1883   : > { %v5426_v33 = vpop.permute.xlu1 %5425  ;;  %v5576_v62 = vpop.permute.xlu0 %5575 }
0x1884   : > { %v5799_v11 = vmul.f32 %v5426_v33, %v11233_v43  ;;  %v5812_v33 = vmul.f32 %v10487_v30, %v11235_v63  ;;  %v5928_v30 = vsel %vm602_vm0, %v5807_v42, 0.0  ;;  %v11240_v43 = vld [vmem:[#allocation31_spill] sm:$0xff]  ;;  %v5930_v42 = vsel %vm602_vm0, %v5815_v49, 0.0 }
0x1885   : > { %v6019_v29 = vsel %vm602_vm0, %v10581_v45, 0.0 }
0x1886   : > { %v5927_v9 = vsel %vm602_vm0, %v5799_v11, 0.0  ;;  %v5903_v27 = vsel %vm602_vm0, %v5812_v33, 0.0  ;;  %v5828_v11 = vmul.f32 %v10483_v13, %v11240_v43  ;;  %v5823_v13 = vmul.f32 %v10501_v3, %v11242_v44 }
0x1887   : > { %v10523_v59 = vpop.permute.xlu1 %5585  ;;  %v5929_v56 = vadd.f32 %v5928_v30, %v5927_v9  ;;  %v5904_v17 = vadd.f32 %v5903_v27, %v5902_v61  ;;  %v10586_v61 = vadd.f32 %v5898_v54, %v5897_v35  ;;  %v11245_v27 = vld [vmem:[#allocation54_spill] sm:$0xff]  ;;  %v11249_v54 = vld [vmem:[#allocation64_spill] sm:$0xff] }
0x1888   : > { %v5907_v63 = vsel %vm602_vm0, %v5828_v11, 0.0  ;;  %v5932_v55 = vsel %vm602_vm0, %v5823_v13, 0.0  ;;  %v11246_v11 = vld [vmem:[#allocation55_spill] sm:$0xff] }
0x1889   : > { %v5931_v33 = vadd.f32 %v5930_v42, %v5929_v56 }
0x188b   : > { %v5456_v20 = vpop.permute.xlu1 %5455 }
0x188c   : > { %v5805_v48 = vmul.f32 %v5456_v20, %v11230_v58  ;;  %v11238_v58 = vld [vmem:[#allocation26_spill] sm:$0xff] }
0x188e   : > { %v5910_v51 = vsel %vm602_vm0, %v5805_v48, 0.0  ;;  %v5820_v48 = vmul.f32 %v10477_v50, %v11238_v58  ;;  %v5914_v50 = vsel %vm602_vm0, %v5821_v22, 0.0  ;;  %v11243_v22 = vld [vmem:[#allocation33_spill] sm:$0xff]  ;;  %v5933_v58 = vadd.f32 %v5932_v55, %v5931_v33 }
0x188f   : > { %v5911_v20 = vadd.f32 %v5910_v51, %v5909_v12  ;;  %v10571_v12 = vadd.f32 %v5889_v28, %v5888_v41  ;;  %v11241_v51 = vld [vmem:[#allocation41_spill] sm:$0xff]  ;;  %v5831_v28 = vmul.f32 %v10523_v59, %v11243_v22 }
0x1890   : > { %v5829_v4 = vmul.f32 %v5576_v62, %v11241_v51  ;;  %v5905_v47 = vsel %vm602_vm0, %v5820_v48, 0.0  ;;  %v6025_v48 = vsel %vm602_vm0, %v10586_v61, 0.0 }
0x1891   : > { %v5913_v1 = vadd.f32 %v5912_v26, %v5911_v20  ;;  %v6022_v62 = vsel %vm602_vm0, %v10571_v12, 0.0  ;;  %v5906_v52 = vadd.f32 %v5905_v47, %v5904_v17  ;;  %v11247_v17 = vld [vmem:[#allocation60_spill] sm:$0xff] }
0x1892   : > { %v5916_v26 = vsel %vm602_vm0, %v5829_v4, 0.0  ;;  %v11248_v4 = vld [vmem:[#allocation57_spill] sm:$0xff] }
0x1893   : > { %v5915_v8 = vadd.f32 %v5914_v50, %v5913_v1  ;;  %v10596_v18 = vadd.f32 %v5907_v63, %v5906_v52  ;;  %v5934_v1 = vsel %vm602_vm0, %v5831_v28, 0.0  ;;  %v11250_v63 = vld [vmem:[#allocation58_spill] sm:$0xff] }
0x1894   : > { %v5471_v40 = vpop.permute.xlu1 %5470  ;;  %v5431_v38 = vpop.permute.xlu0 %5430  ;;  %v10605_v30 = vadd.f32 %v5934_v1, %v5933_v58  ;;  %v11252_v58 = vld [vmem:[#allocation62_spill] sm:$0xff] }
0x1895   : > { %v10589_v14 = vadd.f32 %v5916_v26, %v5915_v8  ;;  %v6028_v59 = vsel %vm602_vm0, %v10596_v18, 0.0  ;;  %v5808_v49 = vmul.f32 %v5471_v40, %v11244_v5  ;;  %v5800_v43 = vmul.f32 %v5431_v38, %v11245_v27  ;;  %v11251_v26 = vld [vmem:[#allocation65_spill] sm:$0xff]  ;;  %v11253_v5 = vld [vmem:[#allocation66_spill] sm:$0xff] }
0x1896   : > { %v6037_v8 = vsel %vm602_vm0, %v10605_v30, 0.0 }
0x1897   : > { %v6031_v41 = vsel %vm602_vm0, %v10589_v14, 0.0  ;;  %v5937_v47 = vsel %vm602_vm0, %v5808_v49, 0.0  ;;  %v5936_v40 = vsel %vm602_vm0, %v5800_v43, 0.0 }
0x1898   : > { %v5511_v20 = vpop.permute.xlu1 %5510  ;;  %v5551_v3 = vpop.permute.xlu0 %5550  ;;  %v5938_v13 = vadd.f32 %v5937_v47, %v5936_v40  ;;  %v11255_v40 = vld [vmem:[#allocation24_spill] sm:$0xff] }
0x1899   : > { %v5816_v56 = vmul.f32 %v5511_v20, %v11246_v11  ;;  %v5824_v33 = vmul.f32 %v5551_v3, %v11250_v63 }
0x189a   : > { %6023 = vadd.xlane.f32.xlu0 %v6022_v62 }
0x189b   : > { %v5939_v44 = vsel %vm602_vm0, %v5816_v56, 0.0 }
0x189c   : > { %v5591_v9 = vpop.permute.xlu1 %5590  ;;  %v5421_v10 = vpop.permute.xlu0 %5420  ;;  %v5940_v22 = vadd.f32 %v5939_v44, %v5938_v13 }
0x189d   : > { %6020 = vadd.xlane.f32.xlu1 %v6019_v29  ;;  %v5798_v7 = vmul.f32 %v5421_v10, %v11248_v4 }
0x189e   : > { %6026 = vadd.xlane.f32.xlu0 %v6025_v48  ;;  %v5832_v48 = vmul.f32 %v5591_v9, %v11252_v58 }
0x189f   : > { %v5918_v62 = vsel %vm602_vm0, %v5798_v7, 0.0  ;;  %v11254_v7 = vld [vmem:[#allocation21_spill] sm:$0xff] }
0x18a0   : > { %v5461_v35 = vpop.permute.xlu1 %5460  ;;  %v5943_v43 = vsel %vm602_vm0, %v5832_v48, 0.0 }
0x18a1   : > { %6029 = vadd.xlane.f32.xlu1 %v6028_v59  ;;  %v5806_v50 = vmul.f32 %v5461_v35, %v11247_v17  ;;  %v5941_v59 = vsel %vm602_vm0, %v5824_v33, 0.0  ;;  %v11256_v33 = vld [vmem:[#allocation27_spill] sm:$0xff] }
0x18a2   : > { %6032 = vadd.xlane.f32.xlu0 %v6031_v41  ;;  %v5942_v3 = vadd.f32 %v5941_v59, %v5940_v22 }
0x18a3   : > { %v5919_v38 = vsel %vm602_vm0, %v5806_v50, 0.0 }
0x18a4   : > { %v5501_v51 = vpop.permute.xlu1 %5500  ;;  %v5920_v28 = vadd.f32 %v5919_v38, %v5918_v62  ;;  %v10631_v50 = vadd.f32 %v5943_v43, %v5942_v3 }
0x18a5   : > { %v5814_v42 = vmul.f32 %v5501_v51, %v11249_v54 }
0x18a6   : > { %6038 = vadd.xlane.f32.xlu0 %v6037_v8  ;;  %v6040_v54 = vsel %vm602_vm0, %v10631_v50, 0.0 }
0x18a7   : > { %v5921_v52 = vsel %vm602_vm0, %v5814_v42, 0.0 }
0x18a8   : > { %v5541_v20 = vpop.permute.xlu1 %5540  ;;  %v5922_v1 = vadd.f32 %v5921_v52, %v5920_v28  ;;  %v11257_v52 = vld [vmem:[#allocation69_spill] sm:$0xff] }
0x18a9   : > { %v5822_v55 = vmul.f32 %v5541_v20, %v11251_v26 }
0x18aa   : > { %v5606_v29 = vpop.permute.xlu0 %5605 }
0x18ab   : > { %v5923_v41 = vsel %vm602_vm0, %v5822_v55, 0.0  ;;  %v5835_v42 = vmul.f32 %v5606_v29, %v9755_v16 }
0x18ac   : > { %v5581_v35 = vpop.permute.xlu1 %5580  ;;  %v5924_v27 = vadd.f32 %v5923_v41, %v5922_v1  ;;  %v11258_v1 = vld [vmem:[#allocation71_spill] sm:$0xff] }
0x18ad   : > { %v5830_v49 = vmul.f32 %v5581_v35, %v11253_v5  ;;  %v5963_v63 = vsel %vm602_vm0, %v5835_v42, 0.0 }
0x18ae   : > { %v5686_v10 = vpop.permute.xlu0 %5685 }
0x18af   : > { %v5925_v11 = vsel %vm602_vm0, %v5830_v49, 0.0  ;;  %v5851_v62 = vmul.f32 %v5686_v10, %v11256_v33  ;;  %v11260_v33 = vld [vmem:[#allocation70_spill] sm:$0xff] }
0x18b0   : > { %v10629_v56 = vadd.f32 %v5925_v11, %v5924_v27  ;;  %v5646_v17 = vpop.permute.xlu1 %5645 }
0x18b1   : > { %v5843_v47 = vmul.f32 %v5646_v17, %v11254_v7  ;;  %v5966_v41 = vsel %vm602_vm0, %v5851_v62, 0.0  ;;  %v11259_v17 = vld [vmem:[#allocation73_spill] sm:$0xff] }
0x18b2   : > { %v5726_v9 = vpop.permute.xlu0 %5725  ;;  %v6034_v51 = vsel %vm602_vm0, %v10629_v56, 0.0 }
0x18b3   : > { %6035 = vadd.xlane.f32.xlu1 %v6034_v51  ;;  %v5964_v13 = vsel %vm602_vm0, %v5843_v47, 0.0  ;;  %v5859_v35 = vmul.f32 %v5726_v9, %v11258_v1 }
0x18b4   : > { %v5636_v4 = vpop.permute.xlu1 %5635  ;;  %v5965_v22 = vadd.f32 %v5964_v13, %v5963_v63 }
0x18b5   : > { %v5841_v44 = vmul.f32 %v5636_v4, %v11255_v40  ;;  %v5968_v11 = vsel %vm602_vm0, %v5859_v35, 0.0  ;;  %v11264_v35 = vld [vmem:[#allocation80_spill] sm:$0xff] }
0x18b6   : > { %v5766_v8 = vpop.permute.xlu0 %5765  ;;  %v5967_v5 = vadd.f32 %v5966_v41, %v5965_v22  ;;  %v11262_v22 = vld [vmem:[#allocation78_spill] sm:$0xff] }
0x18b7   : > { %6041 = vadd.xlane.f32.xlu1 %v6040_v54  ;;  %v5946_v55 = vsel %vm602_vm0, %v5841_v44, 0.0 }
0x18b8   : > { %v5716_v38 = vpop.permute.xlu1 %5715  ;;  %v5969_v47 = vadd.f32 %v5968_v11, %v5967_v5  ;;  %v11266_v11 = vld [vmem:[#allocation38_spill] sm:$0xff] }
0x18b9   : > { %v5857_v16 = vmul.f32 %v5716_v38, %v9883_v2  ;;  %v5867_v2 = vmul.f32 %v5766_v8, %v11259_v17 }
0x18ba   : > { %v5596_v20 = vpop.permute.xlu0 %5595 }
0x18bb   : > { %v5833_v26 = vmul.f32 %v5596_v20, %v11257_v52  ;;  %v5950_v10 = vsel %vm602_vm0, %v5857_v16, 0.0  ;;  %v5970_v42 = vsel %vm602_vm0, %v5867_v2, 0.0  ;;  %v11261_v52 = vld [vmem:[#allocation29_spill] sm:$0xff] }
0x18bc   : > { %v5651_v28 = vpop.permute.xlu1 %5650  ;;  %v10661_v44 = vadd.f32 %v5970_v42, %v5969_v47 }
0x18bd   : > { %v5945_v58 = vsel %vm602_vm0, %v5833_v26, 0.0  ;;  %v5844_v13 = vmul.f32 %v5651_v28, %v9827_v53 }
0x18be   : > { %v5947_v29 = vadd.f32 %v5946_v55, %v5945_v58  ;;  %v5676_v48 = vpop.permute.xlu0 %5675  ;;  %v6049_v20 = vsel %vm602_vm0, %v10661_v44, 0.0 }
0x18bf   : > { %v5849_v59 = vmul.f32 %v5676_v48, %v9861_v15  ;;  %v5973_v53 = vsel %vm602_vm0, %v5844_v13, 0.0 }
0x18c0   : > { %v5691_v49 = vpop.permute.xlu1 %5690 }
0x18c1   : > { %v5948_v3 = vsel %vm602_vm0, %v5849_v59, 0.0  ;;  %v5852_v58 = vmul.f32 %v5691_v49, %v11262_v22 }
0x18c2   : > { %v5949_v27 = vadd.f32 %v5948_v3, %v5947_v29  ;;  %v5756_v43 = vpop.permute.xlu0 %5755  ;;  %v11263_v29 = vld [vmem:[#allocation42_spill] sm:$0xff]  ;;  %v11265_v3 = vld [vmem:[#allocation48_spill] sm:$0xff] }
0x18c3   : > { %v5865_v51 = vmul.f32 %v5756_v43, %v9916_v0  ;;  %v5975_v43 = vsel %vm602_vm0, %v5852_v58, 0.0 }
0x18c4   : > { %v5951_v4 = vadd.f32 %v5950_v10, %v5949_v27  ;;  %v5731_v7 = vpop.permute.xlu1 %5730 }
0x18c5   : > { %v5952_v9 = vsel %vm602_vm0, %v5865_v51, 0.0  ;;  %v5860_v59 = vmul.f32 %v5731_v7, %v11264_v35 }
0x18c6   : > { %v10656_v15 = vadd.f32 %v5952_v9, %v5951_v4  ;;  %v5611_v54 = vpop.permute.xlu0 %5610  ;;  %v11267_v9 = vld [vmem:[#allocation44_spill] sm:$0xff] }
0x18c7   : > { %v5836_v62 = vmul.f32 %v5611_v54, %v11260_v33  ;;  %v5977_v47 = vsel %vm602_vm0, %v5860_v59, 0.0 }
0x18c8   : > { %v6043_v40 = vsel %vm602_vm0, %v10656_v15, 0.0  ;;  %v5771_v38 = vpop.permute.xlu1 %5770 }
0x18c9   : > { %6044 = vadd.xlane.f32.xlu0 %v6043_v40  ;;  %v5972_v1 = vsel %vm602_vm0, %v5836_v62, 0.0  ;;  %v5868_v17 = vmul.f32 %v5771_v38, %v11266_v11 }
0x18ca   : > { %v5601_v8 = vpop.permute.xlu0 %5600  ;;  %v5974_v51 = vadd.f32 %v5973_v53, %v5972_v1 }
0x18cb   : > { %v5834_v0 = vmul.f32 %v5601_v8, %v9781_v37  ;;  %v5979_v8 = vsel %vm602_vm0, %v5868_v17, 0.0 }
0x18cc   : > { %v5641_v63 = vpop.permute.xlu1 %5640  ;;  %v5976_v42 = vadd.f32 %v5975_v43, %v5974_v51 }
0x18cd   : > { %6050 = vadd.xlane.f32.xlu0 %v6049_v20  ;;  %v5842_v26 = vmul.f32 %v5641_v63, %v11261_v52  ;;  %v5954_v16 = vsel %vm602_vm0, %v5834_v0, 0.0 }
0x18ce   : > { %v5681_v55 = vpop.permute.xlu0 %5680  ;;  %v5978_v13 = vadd.f32 %v5977_v47, %v5976_v42 }
0x18cf   : > { %v5850_v48 = vmul.f32 %v5681_v55, %v11263_v29  ;;  %v5955_v37 = vsel %vm602_vm0, %v5842_v26, 0.0  ;;  %v11268_v26 = vld [vmem:[#allocation9_spill] sm:$0xff] }
0x18d0   : > { %v5956_v28 = vadd.f32 %v5955_v37, %v5954_v16  ;;  %v5721_v41 = vpop.permute.xlu1 %5720  ;;  %v10687_v38 = vadd.f32 %v5979_v8, %v5978_v13  ;;  %v11269_v16 = vld [vmem:[#allocation76_spill] sm:$0xff]  ;;  %v11272_v13 = vld [vmem:[#allocation43_spill] sm:$0xff] }
0x18d1   : > { %v5957_v5 = vsel %vm602_vm0, %v5850_v48, 0.0  ;;  %v5858_v10 = vmul.f32 %v5721_v41, %v11265_v3 }
0x18d2   : > { %v5666_v27 = vpop.permute.xlu0 %5665  ;;  %v5958_v49 = vadd.f32 %v5957_v5, %v5956_v28  ;;  %v6052_v58 = vsel %vm602_vm0, %v10687_v38, 0.0 }
0x18d3   : > { %v5959_v2 = vsel %vm602_vm0, %v5858_v10, 0.0 }
0x18d4   : > { %v5761_v4 = vpop.permute.xlu1 %5760  ;;  %v5960_v40 = vadd.f32 %v5959_v2, %v5958_v49  ;;  %v11270_v2 = vld [vmem:[#allocation8_spill] sm:$0xff] }
0x18d5   : > { %v5866_v54 = vmul.f32 %v5761_v4, %v11267_v9  ;;  %v11271_v9 = vld [vmem:[#allocation36_spill] sm:$0xff] }
0x18d6   : > { %v5706_v7 = vpop.permute.xlu0 %5705 }
0x18d7   : > { %v5961_v0 = vsel %vm602_vm0, %v5866_v54, 0.0  ;;  %v5847_v54 = vmul.f32 %v5666_v27, %v11271_v9 }
0x18d8   : > { %v10685_v20 = vadd.f32 %v5961_v0, %v5960_v40  ;;  %v5626_v63 = vpop.permute.xlu1 %5625 }
0x18d9   : > { %v5839_v51 = vmul.f32 %v5626_v63, %v11270_v2  ;;  %v6000_v27 = vsel %vm602_vm0, %v5847_v54, 0.0 }
0x18da   : > { %v5746_v33 = vpop.permute.xlu0 %5745  ;;  %v6046_v62 = vsel %vm602_vm0, %v10685_v20, 0.0 }
0x18db   : > { %6047 = vadd.xlane.f32.xlu1 %v6046_v62  ;;  %v5999_v8 = vsel %vm602_vm0, %v5839_v51, 0.0  ;;  %v5855_v62 = vmul.f32 %v5706_v7, %v11272_v13 }
0x18dc   : > { %v5616_v52 = vpop.permute.xlu1 %5615 }
0x18dd   : > { %v5837_v55 = vmul.f32 %v5616_v52, %v11268_v26 }
0x18de   : > { %v5656_v22 = vpop.permute.xlu0 %5655 }
0x18df   : > { %v5845_v29 = vmul.f32 %v5656_v22, %v11269_v16  ;;  %v5981_v48 = vsel %vm602_vm0, %v5837_v55, 0.0  ;;  %6053 = vadd.xlane.f32.xlu1 %v6052_v58  ;;  %v6001_v55 = vadd.f32 %v6000_v27, %v5999_v8  ;;  %v11273_v16 = vld [vmem:[#allocation45_spill] sm:$0xff] }
0x18e0   : > { %v5671_v37 = vpop.permute.xlu1 %5670 }
0x18e1   : > { %v5982_v53 = vsel %vm602_vm0, %v5845_v29, 0.0  ;;  %v5848_v63 = vmul.f32 %v5671_v37, %v11212_v31  ;;  %v6002_v31 = vsel %vm602_vm0, %v5855_v62, 0.0  ;;  %v5863_v29 = vmul.f32 %v5746_v33, %v11273_v16 }
0x18e2   : > { %v5696_v28 = vpop.permute.xlu0 %5695  ;;  %v5983_v41 = vadd.f32 %v5982_v53, %v5981_v48 }
0x18e3   : > { %v5853_v1 = vmul.f32 %v5696_v28, %v10041_v36  ;;  %v6009_v48 = vsel %vm602_vm0, %v5848_v63, 0.0  ;;  %v6004_v33 = vsel %vm602_vm0, %v5863_v29, 0.0 }
0x18e4   : > { %v5711_v35 = vpop.permute.xlu1 %5710 }
0x18e5   : > { %v5984_v59 = vsel %vm602_vm0, %v5853_v1, 0.0  ;;  %v5856_v53 = vmul.f32 %v5711_v35, %v10047_v46  ;;  %v6003_v1 = vadd.f32 %v6002_v31, %v6001_v55 }
0x18e6   : > { %v5985_v5 = vadd.f32 %v5984_v59, %v5983_v41  ;;  %v5736_v3 = vpop.permute.xlu0 %5735 }
0x18e7   : > { %v5861_v10 = vmul.f32 %v5736_v3, %v10103_v57  ;;  %v6011_v46 = vsel %vm602_vm0, %v5856_v53, 0.0  ;;  %v6005_v51 = vadd.f32 %v6004_v33, %v6003_v1 }
0x18e8   : > { %v5661_v49 = vpop.permute.xlu1 %5660 }
0x18e9   : > { %v5986_v43 = vsel %vm602_vm0, %v5861_v10, 0.0  ;;  %v5846_v0 = vmul.f32 %v5661_v49, %v9982_v6 }
0x18ea   : > { %v5987_v11 = vadd.f32 %v5986_v43, %v5985_v5  ;;  %v5776_v17 = vpop.permute.xlu0 %5775 }
0x18eb   : > { %v5869_v4 = vmul.f32 %v5776_v17, %v10190_v21 }
0x18ec   : > { %v5701_v47 = vpop.permute.xlu1 %5700 }
0x18ed   : > { %v5988_v36 = vsel %vm602_vm0, %v5869_v4, 0.0  ;;  %v5854_v26 = vmul.f32 %v5701_v47, %v10132_v23 }
0x18ee   : > { %v10705_v42 = vadd.f32 %v5988_v36, %v5987_v11  ;;  %v5631_v40 = vpop.permute.xlu0 %5630 }
0x18ef   : > { %v5840_v57 = vmul.f32 %v5631_v40, %v11211_v25  ;;  %v5991_v25 = vsel %vm602_vm0, %v5846_v0, 0.0  ;;  %v5993_v28 = vsel %vm602_vm0, %v5854_v26, 0.0 }
0x18f0   : > { %v6055_v21 = vsel %vm602_vm0, %v10705_v42, 0.0  ;;  %v5741_v52 = vpop.permute.xlu1 %5740 }
0x18f1   : > { %6056 = vadd.xlane.f32.xlu0 %v6055_v21  ;;  %v6008_v58 = vsel %vm602_vm0, %v5840_v57, 0.0  ;;  %v5862_v7 = vmul.f32 %v5741_v52, %v10231_v34 }
0x18f2   : > { %v5621_v22 = vpop.permute.xlu0 %5620  ;;  %v6010_v59 = vadd.f32 %v6009_v48, %v6008_v58 }
0x18f3   : > { %v5838_v6 = vmul.f32 %v5621_v22, %v11213_v24  ;;  %v5995_v3 = vsel %vm602_vm0, %v5862_v7, 0.0 }
0x18f4   : > { %v5781_v37 = vpop.permute.xlu1 %5780  ;;  %v6012_v11 = vadd.f32 %v6011_v46, %v6010_v59 }
0x18f5   : > { %v5990_v23 = vsel %vm602_vm0, %v5838_v6, 0.0  ;;  %v5870_v41 = vmul.f32 %v5781_v37, %v10276_v60 }
0x18f6   : > { %v5992_v24 = vadd.f32 %v5991_v25, %v5990_v23  ;;  %v5751_v5 = vpop.permute.xlu0 %5750 }
0x18f7   : > { %v5864_v34 = vmul.f32 %v5751_v5, %v10148_v39  ;;  %v5997_v43 = vsel %vm602_vm0, %v5870_v41, 0.0 }
0x18f8   : > { %v5994_v10 = vadd.f32 %v5993_v28, %v5992_v24  ;;  %v5786_v49 = vpop.permute.xlu1 %5785 }
0x18f9   : > { %v6013_v35 = vsel %vm602_vm0, %v5864_v34, 0.0  ;;  %v5871_v60 = vmul.f32 %v5786_v49, %v10113_v19 }
0x18fa   : > { %v5996_v17 = vadd.f32 %v5995_v3, %v5994_v10  ;;  %v5791_v2 = vpop.permute.xlu0 %5790  ;;  %v6014_v47 = vadd.f32 %v6013_v35, %v6012_v11 }
0x18fb   : > { %v5872_v39 = vmul.f32 %v5791_v2, %v10223_v32  ;;  %v6006_v4 = vsel %vm602_vm0, %v5871_v60, 0.0 }
0x18fc   : > { %v10736_v9 = vadd.f32 %v5997_v43, %v5996_v17  ;;  %v10738_v54 = vadd.f32 %v6006_v4, %v6005_v51 }
0x18fd   : > { %v6015_v36 = vsel %vm602_vm0, %v5872_v39, 0.0 }
0x18fe   : > { %v10741_v40 = vadd.f32 %v6015_v36, %v6014_v47  ;;  %v6058_v19 = vsel %vm602_vm0, %v10736_v9, 0.0  ;;  %v6061_v8 = vsel %vm602_vm0, %v10738_v54, 0.0 }
0x18ff   : > { %6059 = vadd.xlane.f32.xlu1 %v6058_v19  ;;  %6062 = vadd.xlane.f32.xlu0 %v6061_v8 }
0x1900   : > { %v6064_v32 = vsel %vm602_vm0, %v10741_v40, 0.0 }
0x1903   : > { %6065 = vadd.xlane.f32.xlu1 %v6064_v32 }
0x1927   : > { %v6024_v57 = vpop.xlane.xlu0 %6023 }
0x1928   : > { %v6068_v0 = vmul.f32 0.03125, %v6024_v57 }
0x192a   : > { %v10750_v13 = vsub.f32 %v10571_v12, %v6068_v0  ;;  %v6021_v62 = vpop.xlane.xlu1 %6020 }
0x192b   : > { %v6027_v63 = vpop.xlane.xlu0 %6026  ;;  %v6067_v21 = vmul.f32 0.03125, %v6021_v62 }
0x192c   : > { %v6069_v52 = vmul.f32 0.03125, %v6027_v63  ;;  %v6100_v27 = vmul.f32 %v10750_v13, %v10750_v13 }
0x192d   : > { %v10755_v26 = vsub.f32 %v10581_v45, %v6067_v21 }
0x192e   : > { %v10758_v55 = vsub.f32 %v10586_v61, %v6069_v52  ;;  %v6118_v22 = vsel %vm602_vm0, %v6100_v27, 0.0  ;;  %v6030_v58 = vpop.xlane.xlu1 %6029 }
0x192f   : > { %6119 = vadd.xlane.f32.xlu1 %v6118_v22  ;;  %v6033_v25 = vpop.xlane.xlu0 %6032  ;;  %v6070_v12 = vmul.f32 0.03125, %v6030_v58  ;;  %v6099_v6 = vmul.f32 %v10755_v26, %v10755_v26 }
0x1930   : > { %v6071_v7 = vmul.f32 0.03125, %v6033_v25  ;;  %v6101_v45 = vmul.f32 %v10758_v55, %v10758_v55 }
0x1931   : > { %v10764_v31 = vsub.f32 %v10596_v18, %v6070_v12  ;;  %v6115_v16 = vsel %vm602_vm0, %v6099_v6, 0.0 }
0x1932   : > { %v10770_v61 = vsub.f32 %v10589_v14, %v6071_v7  ;;  %6116 = vadd.xlane.f32.xlu0 %v6115_v16  ;;  %v6121_v23 = vsel %vm602_vm0, %v6101_v45, 0.0 }
0x1933   : > { %v6039_v29 = vpop.xlane.xlu0 %6038  ;;  %v6102_v48 = vmul.f32 %v10764_v31, %v10764_v31 }
0x1934   : > { %v6073_v37 = vmul.f32 0.03125, %v6039_v29  ;;  %v6103_v18 = vmul.f32 %v10770_v61, %v10770_v61 }
0x1935   : > { %v6124_v53 = vsel %vm602_vm0, %v6102_v48, 0.0 }
0x1936   : > { %v10779_v28 = vsub.f32 %v10605_v30, %v6073_v37  ;;  %6125 = vadd.xlane.f32.xlu1 %v6124_v53  ;;  %6122 = vadd.xlane.f32.xlu0 %v6121_v23  ;;  %v6127_v14 = vsel %vm602_vm0, %v6103_v18, 0.0 }
0x1938   : > { %v6105_v41 = vmul.f32 %v10779_v28, %v10779_v28 }
0x193a   : > { %6128 = vadd.xlane.f32.xlu0 %v6127_v14  ;;  %v6133_v1 = vsel %vm602_vm0, %v6105_v41, 0.0 }
0x193e   : > { %6134 = vadd.xlane.f32.xlu0 %v6133_v1 }
0x1940   : > { %v6036_v59 = vpop.xlane.xlu1 %6035 }
0x1941   : > { %v6072_v24 = vmul.f32 0.03125, %v6036_v59 }
0x1943   : > { %v10786_v5 = vsub.f32 %v10629_v56, %v6072_v24 }
0x1944   : > { %v6042_v34 = vpop.xlane.xlu1 %6041 }
0x1945   : > { %v6074_v3 = vmul.f32 0.03125, %v6042_v34  ;;  %v6104_v30 = vmul.f32 %v10786_v5, %v10786_v5 }
0x1947   : > { %v10791_v33 = vsub.f32 %v10631_v50, %v6074_v3  ;;  %v6130_v10 = vsel %vm602_vm0, %v6104_v30, 0.0 }
0x1948   : > { %6131 = vadd.xlane.f32.xlu1 %v6130_v10 }
0x1949   : > { %v6106_v49 = vmul.f32 %v10791_v33, %v10791_v33 }
0x194b   : > { %v6136_v46 = vsel %vm602_vm0, %v6106_v49, 0.0 }
0x194c   : > { %6137 = vadd.xlane.f32.xlu1 %v6136_v46 }
0x1956   : > { %v6045_v35 = vpop.xlane.xlu0 %6044 }
0x1957   : > { %v6075_v56 = vmul.f32 0.03125, %v6045_v35 }
0x1959   : > { %v10798_v43 = vsub.f32 %v10656_v15, %v6075_v56 }
0x195a   : > { %v6051_v60 = vpop.xlane.xlu0 %6050 }
0x195b   : > { %v6077_v11 = vmul.f32 0.03125, %v6051_v60  ;;  %v6107_v50 = vmul.f32 %v10798_v43, %v10798_v43 }
0x195d   : > { %v10803_v17 = vsub.f32 %v10661_v44, %v6077_v11  ;;  %v6139_v2 = vsel %vm602_vm0, %v6107_v50, 0.0 }
0x195e   : > { %6140 = vadd.xlane.f32.xlu0 %v6139_v2 }
0x195f   : > { %v6109_v51 = vmul.f32 %v10803_v17, %v10803_v17 }
0x1961   : > { %v6145_v39 = vsel %vm602_vm0, %v6109_v51, 0.0 }
0x1962   : > { %6146 = vadd.xlane.f32.xlu0 %v6145_v39 }
0x1968   : > { %v6048_v4 = vpop.xlane.xlu1 %6047 }
0x1969   : > { %v6076_v15 = vmul.f32 0.03125, %v6048_v4 }
0x196b   : > { %v10810_v47 = vsub.f32 %v10685_v20, %v6076_v15 }
0x196c   : > { %v6054_v36 = vpop.xlane.xlu1 %6053 }
0x196d   : > { %v6078_v19 = vmul.f32 0.03125, %v6054_v36  ;;  %v6108_v44 = vmul.f32 %v10810_v47, %v10810_v47 }
0x196f   : > { %v10815_v8 = vsub.f32 %v10687_v38, %v6078_v19  ;;  %v6142_v32 = vsel %vm602_vm0, %v6108_v44, 0.0 }
0x1970   : > { %6143 = vadd.xlane.f32.xlu1 %v6142_v32 }
0x1971   : > { %v6110_v57 = vmul.f32 %v10815_v8, %v10815_v8 }
0x1973   : > { %v6148_v0 = vsel %vm602_vm0, %v6110_v57, 0.0 }
0x1974   : > { %6149 = vadd.xlane.f32.xlu1 %v6148_v0 }
0x197e   : > { %v6057_v62 = vpop.xlane.xlu0 %6056 }
0x197f   : > { %v6079_v20 = vmul.f32 0.03125, %v6057_v62  ;;  %v10851_v62 = vld [vmem:[%s10957_s14] ss:$0 sm:$0xff] }
0x1981   : > { %v10822_v63 = vsub.f32 %v10705_v42, %v6079_v20 }
0x1983   : > { %v6111_v21 = vmul.f32 %v10822_v63, %v10822_v63 }
0x1985   : > { %v6151_v38 = vsel %vm602_vm0, %v6111_v21, 0.0 }
0x1986   : > { %6152 = vadd.xlane.f32.xlu0 %v6151_v38 }
0x198c   : > { %v6060_v52 = vpop.xlane.xlu1 %6059  ;;  %v6063_v27 = vpop.xlane.xlu0 %6062 }
0x198d   : > { %v6080_v22 = vmul.f32 0.03125, %v6060_v52  ;;  %v6081_v58 = vmul.f32 0.03125, %v6063_v27 }
0x198f   : > { %v10828_v25 = vsub.f32 %v10736_v9, %v6080_v22  ;;  %v10831_v12 = vsub.f32 %v10738_v54, %v6081_v58 }
0x1990   : > { %v6066_v6 = vpop.xlane.xlu1 %6065 }
0x1991   : > { %v6082_v7 = vmul.f32 0.03125, %v6066_v6  ;;  %v6112_v42 = vmul.f32 %v10828_v25, %v10828_v25  ;;  %v6113_v16 = vmul.f32 %v10831_v12, %v10831_v12 }
0x1993   : > { %v10838_v45 = vsub.f32 %v10741_v40, %v6082_v7  ;;  %v6154_v29 = vsel %vm602_vm0, %v6112_v42, 0.0  ;;  %v6157_v48 = vsel %vm602_vm0, %v6113_v16, 0.0 }
0x1994   : > { %6155 = vadd.xlane.f32.xlu1 %v6154_v29  ;;  %6158 = vadd.xlane.f32.xlu0 %v6157_v48 }
0x1995   : > { %v6114_v9 = vmul.f32 %v10838_v45, %v10838_v45 }
0x1997   : > { %v6160_v54 = vsel %vm602_vm0, %v6114_v9, 0.0 }
0x1998   : > { %6161 = vadd.xlane.f32.xlu1 %v6160_v54 }
0x19bc   : > { %v6120_v53 = vpop.xlane.xlu1 %6119 }
0x19bd   : > { %v6164_v14 = vmul.f32 0.03125, %v6120_v53 }
0x19bf   : > { %v6117_v37 = vpop.xlane.xlu0 %6116  ;;  %v6180_v1 = vadd.f32 1e-05, %v6164_v14 }
0x19c0   : > { %v6163_v18 = vmul.f32 0.03125, %v6117_v37 }
0x19c2   : > { %v6179_v40 = vadd.f32 1e-05, %v6163_v18 }
0x19c3   : > { %v6123_v23 = vpop.xlane.xlu0 %6122  ;;  %v6126_v59 = vpop.xlane.xlu1 %6125 }
0x19c4   : > { %v6165_v41 = vmul.f32 0.03125, %v6123_v23  ;;  %7574 = vrsqrt.f32 %v6179_v40  ;;  %v6166_v3 = vmul.f32 0.03125, %v6126_v59  ;;  %v7611_v23 = vld [vmem:[%s7746_s30] sm:$0xff] }
0x19c5   : > { %7576 = vrsqrt.f32 %v6180_v1  ;;  %v7612_v1 = vld [vmem:[%s7746_s30 + $0x8] sm:$0xff] }
0x19c6   : > { %v6181_v24 = vadd.f32 1e-05, %v6165_v41  ;;  %v6182_v49 = vadd.f32 1e-05, %v6166_v3 }
0x19c7   : > { %v6129_v34 = vpop.xlane.xlu0 %6128 }
0x19c8   : > { %7578 = vrsqrt.f32 %v6181_v24  ;;  %v6167_v10 = vmul.f32 0.03125, %v6129_v34  ;;  %v7613_v24 = vld [vmem:[%s7746_s30 + $0x10] sm:$0xff] }
0x19c9   : > { %7580 = vrsqrt.f32 %v6182_v49 }
0x19ca   : > { %v6183_v35 = vadd.f32 1e-05, %v6167_v10 }
0x19cb   : > { %v6135_v56 = vpop.xlane.xlu0 %6134 }
0x19cc   : > { %v6169_v11 = vmul.f32 0.03125, %v6135_v56  ;;  %7582 = vrsqrt.f32 %v6183_v35 }
0x19ce   : > { %v7575_v2 = vpop.eup %7574  ;;  %v6185_v19 = vadd.f32 1e-05, %v6169_v11 }
0x19cf   : > { %v7577_v51 = vpop.eup %7576  ;;  %v6211_v36 = vmul.f32 %v7575_v2, %v10755_v26 }
0x19d0   : > { %v6212_v57 = vmul.f32 %v7577_v51, %v10750_v13 }
0x19d1   : > { %v6231_v38 = vmul.f32 %v10851_v62, %v6211_v36 }
0x19d2   : > { %v7579_v4 = vpop.eup %7578  ;;  %v6232_v26 = vmul.f32 %v10851_v62, %v6212_v57 }
0x19d3   : > { %v6213_v0 = vmul.f32 %v7579_v4, %v10758_v55  ;;  %v7581_v52 = vpop.eup %7580  ;;  %v10859_v55 = vld [vmem:[%s10957_s14 + $0x1] ss:$0 sm:$0xff] }
0x19d4   : > { %v6251_v7 = vadd.f32 %v10859_v55, %v6231_v38  ;;  %v6214_v42 = vmul.f32 %v7581_v52, %v10764_v31  ;;  %v6252_v9 = vadd.f32 %v10859_v55, %v6232_v26 }
0x19d5   : > { %v6132_v30 = vpop.xlane.xlu1 %6131  ;;  %v6233_v22 = vmul.f32 %v10851_v62, %v6213_v0  ;;  %v7615_v0 = vld [vmem:[%s7746_s30 + $0x20] sm:$0xff] }
0x19d6   : > { %v6168_v46 = vmul.f32 0.03125, %v6132_v30  ;;  %v7583_v13 = vpop.eup %7582  ;;  %v6267_v18 = vsub.f32 %v6251_v7, %v7611_v23  ;;  %v6234_v14 = vmul.f32 %v10851_v62, %v6214_v42  ;;  %v6268_v59 = vsub.f32 %v6252_v9, %v7612_v1 }
0x19d7   : > { %v6253_v54 = vadd.f32 %v10859_v55, %v6233_v22  ;;  %v6215_v37 = vmul.f32 %v7583_v13, %v10770_v61 }
0x19d8   : > { %v6184_v60 = vadd.f32 1e-05, %v6168_v46  ;;  %v6283_v10 = vmul.f32 %v6267_v18, %v6267_v18  ;;  %v6254_v61 = vadd.f32 %v10859_v55, %v6234_v14 }
0x19d9   : > { %v6138_v50 = vpop.xlane.xlu1 %6137  ;;  %v6269_v34 = vsub.f32 %v6253_v54, %v7613_v24  ;;  %v6235_v3 = vmul.f32 %v10851_v62, %v6215_v37  ;;  %v7617_v37 = vld [vmem:[%s7746_s30 + $0x30] sm:$0xff] }
0x19da   : > { %7584 = vrsqrt.f32 %v6184_v60  ;;  %v6170_v15 = vmul.f32 0.03125, %v6138_v50  ;;  %v6299_v51 = vsel %vm602_vm0, %v6283_v10, 0.0 }
0x19db   : > { %7586 = vrsqrt.f32 %v6185_v19  ;;  %v6285_v56 = vmul.f32 %v6269_v34, %v6269_v34  ;;  %v6255_v60 = vadd.f32 %v10859_v55, %v6235_v3 }
0x19dc   : > { %v6186_v20 = vadd.f32 1e-05, %v6170_v15 }
0x19dd   : > { %v6302_v57 = vsel %vm602_vm0, %v6285_v56, 0.0 }
0x19de   : > { %7588 = vrsqrt.f32 %v6186_v20  ;;  %v6271_v20 = vsub.f32 %v6255_v60, %v7615_v0 }
0x19e4   : > { %v7585_v29 = vpop.eup %7584 }
0x19e5   : > { %v6216_v31 = vmul.f32 %v7585_v29, %v10786_v5  ;;  %v7587_v40 = vpop.eup %7586  ;;  %v6284_v5 = vmul.f32 %v6268_v59, %v6268_v59 }
0x19e6   : > { %v6217_v35 = vmul.f32 %v7587_v40, %v10779_v28 }
0x19e7   : > { %v6236_v49 = vmul.f32 %v10851_v62, %v6216_v31  ;;  %v7618_v31 = vld [vmem:[%s7746_s30 + $0x38] sm:$0xff] }
0x19e8   : > { %v7589_v46 = vpop.eup %7588  ;;  %v6237_v19 = vmul.f32 %v10851_v62, %v6217_v35 }
0x19e9   : > { %v6256_v15 = vadd.f32 %v10859_v55, %v6236_v49  ;;  %v6218_v36 = vmul.f32 %v7589_v46, %v10791_v33  ;;  %v7619_v49 = vld [vmem:[%s7746_s30 + $0x40] sm:$0xff] }
0x19ea   : > { %v6257_v13 = vadd.f32 %v10859_v55, %v6237_v19 }
0x19eb   : > { %v6141_v39 = vpop.xlane.xlu0 %6140  ;;  %v6238_v33 = vmul.f32 %v10851_v62, %v6218_v36 }
0x19ec   : > { %v6171_v32 = vmul.f32 0.03125, %v6141_v39  ;;  %v7614_v39 = vld [vmem:[%s7746_s30 + $0x18] sm:$0xff] }
0x19ed   : > { %v6270_v4 = vsub.f32 %v6254_v61, %v7614_v39  ;;  %v6258_v29 = vadd.f32 %v10859_v55, %v6238_v33 }
0x19ee   : > { %v6187_v27 = vadd.f32 1e-05, %v6171_v32  ;;  %v6300_v32 = vsel %vm602_vm0, %v6284_v5, 0.0 }
0x19ef   : > { %v6147_v58 = vpop.xlane.xlu0 %6146  ;;  %v6301_v38 = vadd.f32 %v6300_v32, %v6299_v51  ;;  %v6286_v52 = vmul.f32 %v6270_v4, %v6270_v4 }
0x19f0   : > { %7590 = vrsqrt.f32 %v6187_v27  ;;  %v6173_v48 = vmul.f32 0.03125, %v6147_v58  ;;  %v7616_v27 = vld [vmem:[%s7746_s30 + $0x28] sm:$0xff] }
0x19f1   : > { %v6272_v26 = vsub.f32 %v6256_v15, %v7616_v27  ;;  %v6303_v58 = vadd.f32 %v6302_v57, %v6301_v38  ;;  %v7622_v27 = vld [vmem:[%s7746_s30 + $0x58] sm:$0xff] }
0x19f2   : > { %v6189_v41 = vadd.f32 1e-05, %v6173_v48 }
0x19fa   : > { %v7591_v50 = vpop.eup %7590 }
0x19fd   : > { %v6144_v44 = vpop.xlane.xlu1 %6143 }
0x19fe   : > { %v6172_v21 = vmul.f32 0.03125, %v6144_v44 }
0x1a00   : > { %v6188_v6 = vadd.f32 1e-05, %v6172_v21  ;;  %v6219_v21 = vmul.f32 %v7591_v50, %v10798_v43  ;;  %v6304_v43 = vsel %vm602_vm0, %v6286_v52, 0.0  ;;  %v7620_v50 = vld [vmem:[%s7746_s30 + $0x48] sm:$0xff] }
0x1a01   : > { %v6150_v16 = vpop.xlane.xlu1 %6149  ;;  %v6305_v54 = vadd.f32 %v6304_v43, %v6303_v58  ;;  %v7623_v58 = vld [vmem:[%s7746_s30 + $0x60] sm:$0xff] }
0x1a02   : > { %7592 = vrsqrt.f32 %v6188_v6  ;;  %v6174_v53 = vmul.f32 0.03125, %v6150_v16  ;;  %v6287_v6 = vmul.f32 %v6271_v20, %v6271_v20  ;;  %v6239_v7 = vmul.f32 %v10851_v62, %v6219_v21  ;;  %v7621_v20 = vld [vmem:[%s7746_s30 + $0x50] sm:$0xff] }
0x1a03   : > { %7594 = vrsqrt.f32 %v6189_v41  ;;  %v6288_v16 = vmul.f32 %v6272_v26, %v6272_v26  ;;  %v6274_v41 = vsub.f32 %v6258_v29, %v7618_v31 }
0x1a04   : > { %v6190_v30 = vadd.f32 1e-05, %v6174_v53  ;;  %v6273_v53 = vsub.f32 %v6257_v13, %v7617_v37  ;;  %v6259_v23 = vadd.f32 %v10859_v55, %v6239_v7 }
0x1a05   : > { %v6308_v14 = vsel %vm602_vm0, %v6288_v16, 0.0 }
0x1a06   : > { %7596 = vrsqrt.f32 %v6190_v30  ;;  %v6289_v30 = vmul.f32 %v6273_v53, %v6273_v53  ;;  %v6275_v46 = vsub.f32 %v6259_v23, %v7619_v49 }
0x1a08   : > { %v6310_v39 = vsel %vm602_vm0, %v6289_v30, 0.0  ;;  %v6291_v15 = vmul.f32 %v6275_v46, %v6275_v46 }
0x1a0a   : > { %v6314_v38 = vsel %vm602_vm0, %v6291_v15, 0.0 }
0x1a0c   : > { %v7593_v28 = vpop.eup %7592 }
0x1a0d   : > { %v6220_v22 = vmul.f32 %v7593_v28, %v10810_v47  ;;  %v7595_v42 = vpop.eup %7594  ;;  %v6306_v47 = vsel %vm602_vm0, %v6287_v6, 0.0 }
0x1a0e   : > { %v6221_v18 = vmul.f32 %v7595_v42, %v10803_v17  ;;  %v6307_v3 = vadd.f32 %v6306_v47, %v6305_v54 }
0x1a0f   : > { %v6240_v48 = vmul.f32 %v10851_v62, %v6220_v22 }
0x1a10   : > { %v7597_v9 = vpop.eup %7596  ;;  %v6241_v17 = vmul.f32 %v10851_v62, %v6221_v18  ;;  %v6309_v5 = vadd.f32 %v6308_v14, %v6307_v3 }
0x1a11   : > { %v6260_v40 = vadd.f32 %v10859_v55, %v6240_v48  ;;  %v6222_v1 = vmul.f32 %v7597_v9, %v10815_v8 }
0x1a12   : > { %v6261_v36 = vadd.f32 %v10859_v55, %v6241_v17  ;;  %v6311_v19 = vadd.f32 %v6310_v39, %v6309_v5 }
0x1a13   : > { %v6153_v11 = vpop.xlane.xlu0 %6152  ;;  %v6276_v8 = vsub.f32 %v6260_v40, %v7620_v50 }
0x1a14   : > { %v6175_v2 = vmul.f32 0.03125, %v6153_v11  ;;  %v6290_v11 = vmul.f32 %v6274_v41, %v6274_v41  ;;  %v6277_v21 = vsub.f32 %v6261_v36, %v7621_v20  ;;  %v7624_v41 = vld [vmem:[%s7746_s30 + $0x68] sm:$0xff] }
0x1a15   : > { %v6292_v32 = vmul.f32 %v6276_v8, %v6276_v8 }
0x1a16   : > { %v6191_v44 = vadd.f32 1e-05, %v6175_v2  ;;  %v6242_v2 = vmul.f32 %v10851_v62, %v6222_v1  ;;  %v6312_v57 = vsel %vm602_vm0, %v6290_v11, 0.0  ;;  %v6293_v6 = vmul.f32 %v6277_v21, %v6277_v21 }
0x1a17   : > { %v6313_v52 = vadd.f32 %v6312_v57, %v6311_v19  ;;  %v6316_v33 = vsel %vm602_vm0, %v6292_v32, 0.0 }
0x1a18   : > { %7598 = vrsqrt.f32 %v6191_v44  ;;  %v6262_v44 = vadd.f32 %v10859_v55, %v6242_v2  ;;  %v6318_v37 = vsel %vm602_vm0, %v6293_v6, 0.0 }
0x1a19   : > { %v6315_v22 = vadd.f32 %v6314_v38, %v6313_v52 }
0x1a1a   : > { %v6278_v26 = vsub.f32 %v6262_v44, %v7622_v27 }
0x1a1b   : > { %v6317_v42 = vadd.f32 %v6316_v33, %v6315_v22 }
0x1a1c   : > { %v6294_v29 = vmul.f32 %v6278_v26, %v6278_v26 }
0x1a1d   : > { %v6319_v23 = vadd.f32 %v6318_v37, %v6317_v42 }
0x1a21   : > { %v6156_v59 = vpop.xlane.xlu1 %6155  ;;  %v6159_v24 = vpop.xlane.xlu0 %6158 }
0x1a22   : > { %v7599_v34 = vpop.eup %7598  ;;  %v6176_v10 = vmul.f32 0.03125, %v6156_v59  ;;  %v6177_v61 = vmul.f32 0.03125, %v6159_v24  ;;  %v7625_v59 = vld [vmem:[%s7746_s30 + $0x70] sm:$0xff] }
0x1a23   : > { %v6223_v35 = vmul.f32 %v7599_v34, %v10822_v63 }
0x1a24   : > { %v6192_v56 = vadd.f32 1e-05, %v6176_v10  ;;  %v6193_v60 = vadd.f32 1e-05, %v6177_v61  ;;  %v7626_v61 = vld [vmem:[%s7746_s30 + $0x78] sm:$0xff]  ;;  %s6474_s30 = sshll.u32 %s11277_s25, 3 }
0x1a25   : > { %v6162_v51 = vpop.xlane.xlu1 %6161  ;;  %v6243_v63 = vmul.f32 %v10851_v62, %v6223_v35  ;;  %s578_s0 = scalar_lea.vmem %s10960_s17, %s6474_s30 }
0x1a26   : > { %7600 = vrsqrt.f32 %v6192_v56  ;;  %v6178_v4 = vmul.f32 0.03125, %v6162_v51 }
0x1a27   : > { %7602 = vrsqrt.f32 %v6193_v60  ;;  %v6263_v0 = vadd.f32 %v10859_v55, %v6243_v63 }
0x1a28   : > { %v6194_v28 = vadd.f32 1e-05, %v6178_v4 }
0x1a29   : > { %v6279_v13 = vsub.f32 %v6263_v0, %v7623_v58 }
0x1a2a   : > { %7604 = vrsqrt.f32 %v6194_v28 }
0x1a2b   : > { %v6295_v54 = vmul.f32 %v6279_v13, %v6279_v13 }
0x1a2d   : > { %v6322_v1 = vsel %vm602_vm0, %v6295_v54, 0.0 }
0x1a30   : > { %v7601_v7 = vpop.eup %7600 }
0x1a31   : > { %v7603_v43 = vpop.eup %7602  ;;  %v6224_v16 = vmul.f32 %v7601_v7, %v10828_v25  ;;  %v6320_v25 = vsel %vm602_vm0, %v6294_v29, 0.0 }
0x1a32   : > { %v6225_v48 = vmul.f32 %v7603_v43, %v10831_v12  ;;  %v6321_v34 = vadd.f32 %v6320_v25, %v6319_v23 }
0x1a33   : > { %v6244_v9 = vmul.f32 %v10851_v62, %v6224_v16 }
0x1a34   : > { %v7605_v53 = vpop.eup %7604  ;;  %v6245_v47 = vmul.f32 %v10851_v62, %v6225_v48 }
0x1a35   : > { %v6226_v18 = vmul.f32 %v7605_v53, %v10838_v45  ;;  %v6264_v14 = vadd.f32 %v10859_v55, %v6244_v9  ;;  %v6323_v45 = vadd.f32 %v6322_v1, %v6321_v34 }
0x1a36   : > { %v6265_v31 = vadd.f32 %v10859_v55, %v6245_v47 }
0x1a37   : > { %v6246_v12 = vmul.f32 %v10851_v62, %v6226_v18  ;;  %v6280_v40 = vsub.f32 %v6264_v14, %v7624_v41 }
0x1a38   : > { %v6281_v24 = vsub.f32 %v6265_v31, %v7625_v59 }
0x1a39   : > { %v6266_v3 = vadd.f32 %v10859_v55, %v6246_v12  ;;  %v6296_v30 = vmul.f32 %v6280_v40, %v6280_v40 }
0x1a3a   : > { %v6297_v10 = vmul.f32 %v6281_v24, %v6281_v24 }
0x1a3b   : > { %v6282_v49 = vsub.f32 %v6266_v3, %v7626_v61  ;;  %v6324_v46 = vsel %vm602_vm0, %v6296_v30, 0.0 }
0x1a3c   : > { %v6325_v17 = vadd.f32 %v6324_v46, %v6323_v45  ;;  %v6326_v62 = vsel %vm602_vm0, %v6297_v10, 0.0 }
0x1a3d   : > { %v6298_v35 = vmul.f32 %v6282_v49, %v6282_v49 }
0x1a3e   : > { %v6327_v5 = vadd.f32 %v6326_v62, %v6325_v17 }
0x1a3f   : > { %v6328_v56 = vsel %vm602_vm0, %v6298_v35, 0.0 }
0x1a40   : > { %v6329_v60 = vadd.f32 %v6328_v56, %v6327_v5 }
0x1a42   : > { %6330 = vadd.xlane.f32.xlu0 %v6329_v60 }
0x1acf   : > { %v6331_v11 = vpop.xlane.xlu0 %6330 }
0x1ad0   : > { %v6332_v55 = vrot.slane %v6331_v11, 4 }
0x1ad2   : > { %v6333_v50 = vadd.f32 %v6332_v55, %v6331_v11 }
0x1ad4   : > { %v6334_v8 = vrot.slane %v6333_v50, 2 }
0x1ad6   : > { %v6335_v2 = vadd.f32 %v6334_v8, %v6333_v50 }
0x1ad8   : > { %v6336_v51 = vrot.slane %v6335_v2, 1 }
0x1ada   : > { %v6337_v39 = vadd.f32 %v6336_v51, %v6335_v2 }
0x1adc   : > { %7248 = vpush %v6337_v39 }
0x1b0d   : > { %s7249_s18 = spop %7248 }
0x1b0e   : > { %v6339_v4 = vstv %s7249_s18 }
0x1b0f   : > { %6340 = vst [vmem:[%s578_s0] sm:$0xff] %v6339_v4 }
0x1b10 PF: > { %s28_s24 = sadd.s32 1, %s7633_s24  }
0x1b11   : > { %p25_p5 = scmp.ge.s32.totalorder %s28_s24, 4  }
0x1b13   :  { %27 = sbr.rel (!%p25_p5) target bundleno = 3 (0x3), region = 134 }

</bundles_post_ra>
